<compile_context>
chip_gen: v7x
topology: tpu7x:2x2x1
jax: 0.10.0
libtpu: 0.0.40
codegen_flags: <defaults>
</compile_context>

<pallas_src>
import functools

import jax
import jax.numpy as jnp
from jax.experimental import pallas as pl
from jax.experimental.pallas import tpu as pltpu

_HIGHEST = jax.lax.Precision.HIGHEST  # used only in the pure-JAX reference


def _residual_group_kernel(x_ref, cw_ref, cb_ref, aw1_ref, ab1_ref, aw2_ref,
                           ab2_ref, gw_ref, gb_ref, o_ref, pad_ref,
                           *, H, W, num_block, res_scale):
    """One batch image per grid step; the full ResidualGroup stays in VMEM.

    x_ref   : (C, H*W)                input activation, flattened spatial
    cw_ref  : (2*num_block, 9, C, C)  RCAB 3x3 conv weights, tap-major
    cb_ref  : (2*num_block, C, 1)     RCAB conv biases
    aw1_ref : (num_block, C_mid, C)   CA squeeze weights
    ab1_ref : (num_block, C_mid, 1)
    aw2_ref : (num_block, C, C_mid)   CA excite weights
    ab2_ref : (num_block, C, 1)
    gw_ref  : (9, C, C)               group conv weights
    gb_ref  : (C, 1)
    o_ref   : (C, H*W)                output
    pad_ref : (C, H*W + 2*W + 2) f32  zero-padded scratch line buffer
    """
    C, HW = x_ref.shape
    PAD = W + 1  # flat offset of interior element (y=0, x=0) inside pad_ref

    # Zero the scratch once; the border stays zero for the whole step and the
    # interior is overwritten before each conv layer.
    pad_ref[...] = jnp.zeros_like(pad_ref)

    # Hoisted column-validity masks: dx = -1 / +1 taps read across row
    # boundaries of the flattened layout and must be zeroed (dx = 0 is valid).
    col = jax.lax.broadcasted_iota(jnp.int32, (1, HW), 1) % W
    col_mask = {
        -1: (col >= 1).astype(jnp.float32),
        0: None,
        1: (col <= W - 2).astype(jnp.float32),
    }

    def conv3x3(a, get_w, bias):
        # a: (C, HW) f32, get_w(tap) -> (C, C), bias: (C, 1)
        pad_ref[:, pl.ds(PAD, HW)] = a
        acc = jnp.zeros((C, HW), dtype=jnp.float32)
        tap = 0
        for dy in (-1, 0, 1):
            for dx in (-1, 0, 1):
                a_sh = pad_ref[:, pl.ds(PAD + dy * W + dx, HW)]
                m = col_mask[dx]
                if m is not None:
                    a_sh = a_sh * m
                acc = acc + jnp.dot(get_w(tap), a_sh,
                                    preferred_element_type=jnp.float32)
                tap += 1
        return acc + bias

    x = x_ref[...].astype(jnp.float32)  # group input, kept for final residual
    act = x
    for blk in range(num_block):
        # RCAB body: conv3x3 -> ReLU -> conv3x3
        t = conv3x3(act, lambda tp, k=2 * blk: cw_ref[k, tp], cb_ref[2 * blk])
        t = jnp.maximum(t, 0.0)
        t = conv3x3(t, lambda tp, k=2 * blk + 1: cw_ref[k, tp],
                    cb_ref[2 * blk + 1])
        # Channel attention (f32 gating path).
        pooled = jnp.mean(t, axis=-1, keepdims=True)                 # (C, 1)
        h = jnp.dot(aw1_ref[blk], pooled,
                    preferred_element_type=jnp.float32) + ab1_ref[blk]
        h = jnp.maximum(h, 0.0)                                      # (C_mid, 1)
        y = jnp.dot(aw2_ref[blk], h,
                    preferred_element_type=jnp.float32) + ab2_ref[blk]
        y = jax.nn.sigmoid(y)                                        # (C, 1)
        # Residual add of the scaled, gated features.
        act = act + res_scale * (t * y)

    # Group conv + residual with the group input.
    res = conv3x3(act, lambda tp: gw_ref[tp], gb_ref[...])
    o_ref[...] = (res + x).astype(o_ref.dtype)


def residual_group(x, rcab_conv_w, rcab_conv_b, ca_w1, ca_b1, ca_w2, ca_b2,
                   group_conv_w, group_conv_b, *, res_scale=1.0):
    """Fused ResidualGroup forward.

    x            : (N, C, H, W) f32
    rcab_conv_w  : (num_block, 2, C, C, 3, 3)  PyTorch-layout 3x3 conv weights
    rcab_conv_b  : (num_block, 2, C)
    ca_w1        : (num_block, C_mid, C),  ca_b1: (num_block, C_mid)
    ca_w2        : (num_block, C, C_mid),  ca_b2: (num_block, C)
    group_conv_w : (C, C, 3, 3),           group_conv_b: (C,)
    """
    N, C, H, W = x.shape
    num_block = rcab_conv_w.shape[0]
    C_mid = ca_w1.shape[1]
    HW = H * W

    # Repack conv weights tap-major: (ky, kx) -> tap = 3*ky + kx, each (Cout, Cin).
    cw = jnp.transpose(
        rcab_conv_w.reshape(2 * num_block, C, C, 3, 3),
        (0, 3, 4, 1, 2)).reshape(2 * num_block, 9, C, C)
    cb = rcab_conv_b.reshape(2 * num_block, C, 1)
    gw = jnp.transpose(group_conv_w, (2, 3, 0, 1)).reshape(9, C, C)
    gb = group_conv_b.reshape(C, 1)
    ab1 = ca_b1.reshape(num_block, C_mid, 1)
    ab2 = ca_b2.reshape(num_block, C, 1)
    x_flat = x.reshape(N, C, HW)

    kernel = functools.partial(_residual_group_kernel, H=H, W=W,
                               num_block=num_block, res_scale=res_scale)

    out_flat = pl.pallas_call(
        kernel,
        out_shape=jax.ShapeDtypeStruct((N, C, HW), x.dtype),
        grid_spec=pltpu.PrefetchScalarGridSpec(
            num_scalar_prefetch=0,
            grid=(N,),
            in_specs=[
                # Per-image activation slab (lane dim = H*W, lane-dense).
                pl.BlockSpec((None, C, HW), lambda n: (n, 0, 0)),
                # Weights: constant index maps -> fetched once, VMEM-resident.
                pl.BlockSpec((2 * num_block, 9, C, C), lambda n: (0, 0, 0, 0)),
                pl.BlockSpec((2 * num_block, C, 1), lambda n: (0, 0, 0)),
                pl.BlockSpec((num_block, C_mid, C), lambda n: (0, 0, 0)),
                pl.BlockSpec((num_block, C_mid, 1), lambda n: (0, 0, 0)),
                pl.BlockSpec((num_block, C, C_mid), lambda n: (0, 0, 0)),
                pl.BlockSpec((num_block, C, 1), lambda n: (0, 0, 0)),
                pl.BlockSpec((9, C, C), lambda n: (0, 0, 0)),
                pl.BlockSpec((C, 1), lambda n: (0, 0)),
            ],
            out_specs=pl.BlockSpec((None, C, HW), lambda n: (n, 0, 0)),
            scratch_shapes=[pltpu.VMEM((C, HW + 2 * W + 2), jnp.float32)],
        ),
        compiler_params=pltpu.CompilerParams(
            dimension_semantics=("parallel",),
            # Explicit VMEM budget: fits v7x's 64 MiB VMEM as well as v5e/v6e.
            vmem_limit_bytes=32 * 1024 * 1024,
        ),
    )(x_flat, cw, cb, ca_w1, ab1, ca_w2, ab2, gw, gb)

    return out_flat.reshape(N, C, H, W)


# ----------------------------- pure-JAX reference ----------------------------

def _conv3x3_ref(x, w, b):
    y = jax.lax.conv_general_dilated(
        x, w, window_strides=(1, 1), padding=((1, 1), (1, 1)),
        dimension_numbers=("NCHW", "OIHW", "NCHW"), precision=_HIGHEST)
    return y + b[None, :, None, None]


def residual_group_ref(x, rcab_conv_w, rcab_conv_b, ca_w1, ca_b1, ca_w2, ca_b2,
                       group_conv_w, group_conv_b, *, res_scale=1.0):
    num_block = rcab_conv_w.shape[0]
    out = x
    for blk in range(num_block):
        t = jnp.maximum(
            _conv3x3_ref(out, rcab_conv_w[blk, 0], rcab_conv_b[blk, 0]), 0.0)
        t = _conv3x3_ref(t, rcab_conv_w[blk, 1], rcab_conv_b[blk, 1])
        pooled = jnp.mean(t, axis=(2, 3))                              # (N, C)
        h = jnp.maximum(
            jnp.dot(pooled, ca_w1[blk].T, precision=_HIGHEST) + ca_b1[blk], 0.0)
        y = jax.nn.sigmoid(
            jnp.dot(h, ca_w2[blk].T, precision=_HIGHEST) + ca_b2[blk])  # (N, C)
        out = out + res_scale * (t * y[:, :, None, None])
    res = _conv3x3_ref(out, group_conv_w, group_conv_b)
    return res + x


if __name__ == "__main__":
    # Small shapes consistent with the module.
    N, C, H, W = 2, 32, 16, 16
    num_block = 2
    squeeze_factor = 8
    C_mid = C // squeeze_factor
    res_scale = 1.0

    key = jax.random.PRNGKey(0)
    ks = jax.random.split(key, 9)

    x = jax.random.normal(ks[0], (N, C, H, W), dtype=jnp.float32)

    bconv = 1.0 / ((C * 9) ** 0.5)
    rcab_conv_w = jax.random.uniform(ks[1], (num_block, 2, C, C, 3, 3),
                                     jnp.float32, -bconv, bconv)
    rcab_conv_b = jax.random.uniform(ks[2], (num_block, 2, C),
                                     jnp.float32, -bconv, bconv)
    b1 = 1.0 / (C ** 0.5)
    ca_w1 = jax.random.uniform(ks[3], (num_block, C_mid, C), jnp.float32, -b1, b1)
    ca_b1 = jax.random.uniform(ks[4], (num_block, C_mid), jnp.float32, -b1, b1)
    b2 = 1.0 / (C_mid ** 0.5)
    ca_w2 = jax.random.uniform(ks[5], (num_block, C, C_mid), jnp.float32, -b2, b2)
    ca_b2 = jax.random.uniform(ks[6], (num_block, C), jnp.float32, -b2, b2)
    group_conv_w = jax.random.uniform(ks[7], (C, C, 3, 3), jnp.float32,
                                      -bconv, bconv)
    group_conv_b = jax.random.uniform(ks[8], (C,), jnp.float32, -bconv, bconv)

    out = residual_group(x, rcab_conv_w, rcab_conv_b, ca_w1, ca_b1, ca_w2,
                         ca_b2, group_conv_w, group_conv_b,
                         res_scale=res_scale)
    out = jax.block_until_ready(out)

    ref = residual_group_ref(x, rcab_conv_w, rcab_conv_b, ca_w1, ca_b1, ca_w2,
                             ca_b2, group_conv_w, group_conv_b,
                             res_scale=res_scale)
    assert out.shape == (N, C, H, W)
    max_err = float(jnp.max(jnp.abs(out - ref)))
    assert jnp.allclose(out, ref, atol=1e-3, rtol=1e-3), (
        f"mismatch vs reference (max abs err {max_err:.3e})")

    print("KERNEL_OK")
</pallas_src>

<mosaic_0001>
module attributes {stable_mosaic.version = 11 : i64} {
  func.func @_residual_group_kernel(%arg0: i32, %arg1: memref<1x32x256xf32, #tpu.memory_space<vmem>>, %arg2: memref<4x9x32x32xf32, #tpu.memory_space<vmem>>, %arg3: memref<4x32x1xf32, #tpu.memory_space<vmem>>, %arg4: memref<2x4x32xf32, #tpu.memory_space<vmem>>, %arg5: memref<2x4x1xf32, #tpu.memory_space<vmem>>, %arg6: memref<2x32x4xf32, #tpu.memory_space<vmem>>, %arg7: memref<2x32x1xf32, #tpu.memory_space<vmem>>, %arg8: memref<9x32x32xf32, #tpu.memory_space<vmem>>, %arg9: memref<32x1xf32, #tpu.memory_space<vmem>>, %arg10: memref<1x32x256xf32, #tpu.memory_space<vmem>>, %arg11: memref<32x290xf32, #tpu.memory_space<vmem>>) attributes {dimension_semantics = [#tpu.dimension_semantics<parallel>], iteration_bounds = array<i64: 2>, scalar_prefetch = 0 : i64, scratch_operands = 1 : i64, tpu.core_type = #tpu.core_type<tc>, window_params = [{transform_indices = @transform_0, window_bounds = array<i64: 1, 32, 256>}, {pipeline_mode = #tpu.pipeline_mode<synchronous>, transform_indices = @transform_1, window_bounds = array<i64: 4, 9, 32, 32>}, {pipeline_mode = #tpu.pipeline_mode<synchronous>, transform_indices = @transform_2, window_bounds = array<i64: 4, 32, 1>}, {pipeline_mode = #tpu.pipeline_mode<synchronous>, transform_indices = @transform_3, window_bounds = array<i64: 2, 4, 32>}, {pipeline_mode = #tpu.pipeline_mode<synchronous>, transform_indices = @transform_4, window_bounds = array<i64: 2, 4, 1>}, {pipeline_mode = #tpu.pipeline_mode<synchronous>, transform_indices = @transform_5, window_bounds = array<i64: 2, 32, 4>}, {pipeline_mode = #tpu.pipeline_mode<synchronous>, transform_indices = @transform_6, window_bounds = array<i64: 2, 32, 1>}, {pipeline_mode = #tpu.pipeline_mode<synchronous>, transform_indices = @transform_7, window_bounds = array<i64: 9, 32, 32>}, {pipeline_mode = #tpu.pipeline_mode<synchronous>, transform_indices = @transform_8, window_bounds = array<i64: 32, 1>}, {transform_indices = @transform_9, window_bounds = array<i64: 1, 32, 256>}]} {
    %cst = arith.constant 0.000000e+00 : f32
    %0 = vector.broadcast %cst : f32 to vector<32x290xf32>
    %c0 = arith.constant 0 : index
    %c0_0 = arith.constant 0 : index
    %1 = vector.load %arg11[%c0, %c0_0] : memref<32x290xf32, #tpu.memory_space<vmem>>, vector<32x290xf32>
    tpu.vector_store %arg11[%c0, %c0_0], %0 {strides = array<i32>} : memref<32x290xf32, #tpu.memory_space<vmem>>, vector<32x290xf32>,
    %2 = tpu.iota {dimensions = array<i32: 1>} : vector<1x256xi32>
    %c16_i32 = arith.constant 16 : i32
    %c0_i32 = arith.constant 0 : i32
    %3 = arith.cmpi eq, %c16_i32, %c0_i32 : i32
    %c1_i32 = arith.constant 1 : i32
    %4 = arith.select %3, %c1_i32, %c16_i32 : i32
    %5 = vector.broadcast %4 : i32 to vector<1x256xi32>
    %6 = arith.remsi %2, %5 : vector<1x256xi32>
    %c0_i32_1 = arith.constant 0 : i32
    %7 = vector.broadcast %c0_i32_1 : i32 to vector<1x256xi32>
    %8 = arith.cmpi ne, %6, %7 : vector<1x256xi32>
    %c0_i32_2 = arith.constant 0 : i32
    %9 = vector.broadcast %c0_i32_2 : i32 to vector<1x256xi32>
    %10 = arith.cmpi slt, %6, %9 : vector<1x256xi32>
    %c0_i32_3 = arith.constant 0 : i32
    %11 = arith.cmpi slt, %4, %c0_i32_3 : i32
    %12 = vector.broadcast %11 : i1 to vector<1x256xi1>
    %13 = vector.broadcast %12 : vector<1x256xi1> to vector<1x256xi1>
    %14 = arith.xori %10, %13 : vector<1x256xi1>
    %15 = arith.andi %14, %8 : vector<1x256xi1>
    %16 = vector.broadcast %4 : i32 to vector<1x256xi32>
    %17 = arith.addi %6, %16 : vector<1x256xi32>
    %18 = arith.select %15, %17, %6 : vector<1x256xi1>, vector<1x256xi32>
    %c1_i32_4 = arith.constant 1 : i32
    %19 = vector.broadcast %c1_i32_4 : i32 to vector<1x256xi32>
    %20 = arith.cmpi sge, %18, %19 : vector<1x256xi32>
    %21 = arith.extui %20 : vector<1x256xi1> to vector<1x256xi32>
    %22 = arith.sitofp %21 : vector<1x256xi32> to vector<1x256xf32>
    %c14_i32 = arith.constant 14 : i32
    %23 = vector.broadcast %c14_i32 : i32 to vector<1x256xi32>
    %24 = arith.cmpi sle, %18, %23 : vector<1x256xi32>
    %25 = arith.extui %24 : vector<1x256xi1> to vector<1x256xi32>
    %26 = arith.sitofp %25 : vector<1x256xi32> to vector<1x256xf32>
    %c0_5 = arith.constant 0 : index
    %c0_6 = arith.constant 0 : index
    %c0_7 = arith.constant 0 : index
    %27 = vector.load %arg1[%c0_5, %c0_6, %c0_7] : memref<1x32x256xf32, #tpu.memory_space<vmem>>, vector<1x32x256xf32>
    %28 = vector.shape_cast %27 : vector<1x32x256xf32> to vector<32x256xf32>
    %c0_8 = arith.constant 0 : index
    %c0_9 = arith.constant 0 : index
    %c0_10 = arith.constant 0 : index
    %29 = vector.load %arg3[%c0_8, %c0_9, %c0_10] : memref<4x32x1xf32, #tpu.memory_space<vmem>>, vector<1x32x1xf32>
    %30 = vector.shape_cast %29 : vector<1x32x1xf32> to vector<32x1xf32>
    %c0_11 = arith.constant 0 : index
    %c17 = arith.constant 17 : index
    %31 = vector.load %arg11[%c0_11, %c17] : memref<32x290xf32, #tpu.memory_space<vmem>>, vector<32x256xf32>
    tpu.vector_store %arg11[%c0_11, %c17], %28 {strides = array<i32>} : memref<32x290xf32, #tpu.memory_space<vmem>>, vector<32x256xf32>,
    %cst_12 = arith.constant 0.000000e+00 : f32
    %32 = vector.broadcast %cst_12 : f32 to vector<32x256xf32>
    %c0_13 = arith.constant 0 : index
    %c0_14 = arith.constant 0 : index
    %33 = vector.load %arg11[%c0_13, %c0_14] : memref<32x290xf32, #tpu.memory_space<vmem>>, vector<32x256xf32>
    %34 = vector.broadcast %22 : vector<1x256xf32> to vector<32x256xf32>
    %35 = arith.mulf %33, %34 : vector<32x256xf32>
    %c0_15 = arith.constant 0 : index
    %c0_16 = arith.constant 0 : index
    %c0_17 = arith.constant 0 : index
    %c0_18 = arith.constant 0 : index
    %36 = vector.load %arg2[%c0_15, %c0_16, %c0_17, %c0_18] : memref<4x9x32x32xf32, #tpu.memory_space<vmem>>, vector<1x1x32x32xf32>
    %37 = vector.shape_cast %36 : vector<1x1x32x32xf32> to vector<32x32xf32>
    %cst_19 = arith.constant dense<0.000000e+00> : vector<32x256xf32>
    %38 = tpu.matmul %37, %35, %cst_19 {dimension_numbers = #tpu.dot_dimension_numbers<[1], [0], [0], [1], [0, 0, 1, 1], [], []>} : vector<32x32xf32>, vector<32x256xf32>, vector<32x256xf32> -> vector<32x256xf32>
    %39 = arith.addf %32, %38 : vector<32x256xf32>
    %c0_20 = arith.constant 0 : index
    %c1 = arith.constant 1 : index
    %40 = vector.load %arg11[%c0_20, %c1] : memref<32x290xf32, #tpu.memory_space<vmem>>, vector<32x256xf32>
    %c0_21 = arith.constant 0 : index
    %c1_22 = arith.constant 1 : index
    %c0_23 = arith.constant 0 : index
    %c0_24 = arith.constant 0 : index
    %41 = vector.load %arg2[%c0_21, %c1_22, %c0_23, %c0_24] : memref<4x9x32x32xf32, #tpu.memory_space<vmem>>, vector<1x1x32x32xf32>
    %42 = vector.shape_cast %41 : vector<1x1x32x32xf32> to vector<32x32xf32>
    %cst_25 = arith.constant dense<0.000000e+00> : vector<32x256xf32>
    %43 = tpu.matmul %42, %40, %cst_25 {dimension_numbers = #tpu.dot_dimension_numbers<[1], [0], [0], [1], [0, 0, 1, 1], [], []>} : vector<32x32xf32>, vector<32x256xf32>, vector<32x256xf32> -> vector<32x256xf32>
    %44 = arith.addf %39, %43 : vector<32x256xf32>
    %c0_26 = arith.constant 0 : index
    %c2 = arith.constant 2 : index
    %45 = vector.load %arg11[%c0_26, %c2] : memref<32x290xf32, #tpu.memory_space<vmem>>, vector<32x256xf32>
    %46 = vector.broadcast %26 : vector<1x256xf32> to vector<32x256xf32>
    %47 = arith.mulf %45, %46 : vector<32x256xf32>
    %c0_27 = arith.constant 0 : index
    %c2_28 = arith.constant 2 : index
    %c0_29 = arith.constant 0 : index
    %c0_30 = arith.constant 0 : index
    %48 = vector.load %arg2[%c0_27, %c2_28, %c0_29, %c0_30] : memref<4x9x32x32xf32, #tpu.memory_space<vmem>>, vector<1x1x32x32xf32>
    %49 = vector.shape_cast %48 : vector<1x1x32x32xf32> to vector<32x32xf32>
    %cst_31 = arith.constant dense<0.000000e+00> : vector<32x256xf32>
    %50 = tpu.matmul %49, %47, %cst_31 {dimension_numbers = #tpu.dot_dimension_numbers<[1], [0], [0], [1], [0, 0, 1, 1], [], []>} : vector<32x32xf32>, vector<32x256xf32>, vector<32x256xf32> -> vector<32x256xf32>
    %51 = arith.addf %44, %50 : vector<32x256xf32>
    %c0_32 = arith.constant 0 : index
    %c16 = arith.constant 16 : index
    %52 = vector.load %arg11[%c0_32, %c16] : memref<32x290xf32, #tpu.memory_space<vmem>>, vector<32x256xf32>
    %53 = vector.broadcast %22 : vector<1x256xf32> to vector<32x256xf32>
    %54 = arith.mulf %52, %53 : vector<32x256xf32>
    %c0_33 = arith.constant 0 : index
    %c3 = arith.constant 3 : index
    %c0_34 = arith.constant 0 : index
    %c0_35 = arith.constant 0 : index
    %55 = vector.load %arg2[%c0_33, %c3, %c0_34, %c0_35] : memref<4x9x32x32xf32, #tpu.memory_space<vmem>>, vector<1x1x32x32xf32>
    %56 = vector.shape_cast %55 : vector<1x1x32x32xf32> to vector<32x32xf32>
    %cst_36 = arith.constant dense<0.000000e+00> : vector<32x256xf32>
    %57 = tpu.matmul %56, %54, %cst_36 {dimension_numbers = #tpu.dot_dimension_numbers<[1], [0], [0], [1], [0, 0, 1, 1], [], []>} : vector<32x32xf32>, vector<32x256xf32>, vector<32x256xf32> -> vector<32x256xf32>
    %58 = arith.addf %51, %57 : vector<32x256xf32>
    %c0_37 = arith.constant 0 : index
    %c17_38 = arith.constant 17 : index
    %59 = vector.load %arg11[%c0_37, %c17_38] : memref<32x290xf32, #tpu.memory_space<vmem>>, vector<32x256xf32>
    %c0_39 = arith.constant 0 : index
    %c4 = arith.constant 4 : index
    %c0_40 = arith.constant 0 : index
    %c0_41 = arith.constant 0 : index
    %60 = vector.load %arg2[%c0_39, %c4, %c0_40, %c0_41] : memref<4x9x32x32xf32, #tpu.memory_space<vmem>>, vector<1x1x32x32xf32>
    %61 = vector.shape_cast %60 : vector<1x1x32x32xf32> to vector<32x32xf32>
    %cst_42 = arith.constant dense<0.000000e+00> : vector<32x256xf32>
    %62 = tpu.matmul %61, %59, %cst_42 {dimension_numbers = #tpu.dot_dimension_numbers<[1], [0], [0], [1], [0, 0, 1, 1], [], []>} : vector<32x32xf32>, vector<32x256xf32>, vector<32x256xf32> -> vector<32x256xf32>
    %63 = arith.addf %58, %62 : vector<32x256xf32>
    %c0_43 = arith.constant 0 : index
    %c18 = arith.constant 18 : index
    %64 = vector.load %arg11[%c0_43, %c18] : memref<32x290xf32, #tpu.memory_space<vmem>>, vector<32x256xf32>
    %65 = vector.broadcast %26 : vector<1x256xf32> to vector<32x256xf32>
    %66 = arith.mulf %64, %65 : vector<32x256xf32>
    %c0_44 = arith.constant 0 : index
    %c5 = arith.constant 5 : index
    %c0_45 = arith.constant 0 : index
    %c0_46 = arith.constant 0 : index
    %67 = vector.load %arg2[%c0_44, %c5, %c0_45, %c0_46] : memref<4x9x32x32xf32, #tpu.memory_space<vmem>>, vector<1x1x32x32xf32>
    %68 = vector.shape_cast %67 : vector<1x1x32x32xf32> to vector<32x32xf32>
    %cst_47 = arith.constant dense<0.000000e+00> : vector<32x256xf32>
    %69 = tpu.matmul %68, %66, %cst_47 {dimension_numbers = #tpu.dot_dimension_numbers<[1], [0], [0], [1], [0, 0, 1, 1], [], []>} : vector<32x32xf32>, vector<32x256xf32>, vector<32x256xf32> -> vector<32x256xf32>
    %70 = arith.addf %63, %69 : vector<32x256xf32>
    %c0_48 = arith.constant 0 : index
    %c32 = arith.constant 32 : index
    %71 = vector.load %arg11[%c0_48, %c32] : memref<32x290xf32, #tpu.memory_space<vmem>>, vector<32x256xf32>
    %72 = vector.broadcast %22 : vector<1x256xf32> to vector<32x256xf32>
    %73 = arith.mulf %71, %72 : vector<32x256xf32>
    %c0_49 = arith.constant 0 : index
    %c6 = arith.constant 6 : index
    %c0_50 = arith.constant 0 : index
    %c0_51 = arith.constant 0 : index
    %74 = vector.load %arg2[%c0_49, %c6, %c0_50, %c0_51] : memref<4x9x32x32xf32, #tpu.memory_space<vmem>>, vector<1x1x32x32xf32>
    %75 = vector.shape_cast %74 : vector<1x1x32x32xf32> to vector<32x32xf32>
    %cst_52 = arith.constant dense<0.000000e+00> : vector<32x256xf32>
    %76 = tpu.matmul %75, %73, %cst_52 {dimension_numbers = #tpu.dot_dimension_numbers<[1], [0], [0], [1], [0, 0, 1, 1], [], []>} : vector<32x32xf32>, vector<32x256xf32>, vector<32x256xf32> -> vector<32x256xf32>
    %77 = arith.addf %70, %76 : vector<32x256xf32>
    %c0_53 = arith.constant 0 : index
    %c33 = arith.constant 33 : index
    %78 = vector.load %arg11[%c0_53, %c33] : memref<32x290xf32, #tpu.memory_space<vmem>>, vector<32x256xf32>
    %c0_54 = arith.constant 0 : index
    %c7 = arith.constant 7 : index
    %c0_55 = arith.constant 0 : index
    %c0_56 = arith.constant 0 : index
    %79 = vector.load %arg2[%c0_54, %c7, %c0_55, %c0_56] : memref<4x9x32x32xf32, #tpu.memory_space<vmem>>, vector<1x1x32x32xf32>
    %80 = vector.shape_cast %79 : vector<1x1x32x32xf32> to vector<32x32xf32>
    %cst_57 = arith.constant dense<0.000000e+00> : vector<32x256xf32>
    %81 = tpu.matmul %80, %78, %cst_57 {dimension_numbers = #tpu.dot_dimension_numbers<[1], [0], [0], [1], [0, 0, 1, 1], [], []>} : vector<32x32xf32>, vector<32x256xf32>, vector<32x256xf32> -> vector<32x256xf32>
    %82 = arith.addf %77, %81 : vector<32x256xf32>
    %c0_58 = arith.constant 0 : index
    %c34 = arith.constant 34 : index
    %83 = vector.load %arg11[%c0_58, %c34] : memref<32x290xf32, #tpu.memory_space<vmem>>, vector<32x256xf32>
    %84 = vector.broadcast %26 : vector<1x256xf32> to vector<32x256xf32>
    %85 = arith.mulf %83, %84 : vector<32x256xf32>
    %c0_59 = arith.constant 0 : index
    %c8 = arith.constant 8 : index
    %c0_60 = arith.constant 0 : index
    %c0_61 = arith.constant 0 : index
    %86 = vector.load %arg2[%c0_59, %c8, %c0_60, %c0_61] : memref<4x9x32x32xf32, #tpu.memory_space<vmem>>, vector<1x1x32x32xf32>
    %87 = vector.shape_cast %86 : vector<1x1x32x32xf32> to vector<32x32xf32>
    %cst_62 = arith.constant dense<0.000000e+00> : vector<32x256xf32>
    %88 = tpu.matmul %87, %85, %cst_62 {dimension_numbers = #tpu.dot_dimension_numbers<[1], [0], [0], [1], [0, 0, 1, 1], [], []>} : vector<32x32xf32>, vector<32x256xf32>, vector<32x256xf32> -> vector<32x256xf32>
    %89 = arith.addf %82, %88 : vector<32x256xf32>
    %90 = vector.broadcast %30 : vector<32x1xf32> to vector<32x256xf32>
    %91 = arith.addf %89, %90 : vector<32x256xf32>
    %cst_63 = arith.constant 0.000000e+00 : f32
    %92 = vector.broadcast %cst_63 : f32 to vector<32x256xf32>
    %93 = arith.maximumf %91, %92 : vector<32x256xf32>
    %c1_64 = arith.constant 1 : index
    %c0_65 = arith.constant 0 : index
    %c0_66 = arith.constant 0 : index
    %94 = vector.load %arg3[%c1_64, %c0_65, %c0_66] : memref<4x32x1xf32, #tpu.memory_space<vmem>>, vector<1x32x1xf32>
    %95 = vector.shape_cast %94 : vector<1x32x1xf32> to vector<32x1xf32>
    %c0_67 = arith.constant 0 : index
    %c17_68 = arith.constant 17 : index
    %96 = vector.load %arg11[%c0_67, %c17_68] : memref<32x290xf32, #tpu.memory_space<vmem>>, vector<32x256xf32>
    tpu.vector_store %arg11[%c0_67, %c17_68], %93 {strides = array<i32>} : memref<32x290xf32, #tpu.memory_space<vmem>>, vector<32x256xf32>,
    %cst_69 = arith.constant 0.000000e+00 : f32
    %97 = vector.broadcast %cst_69 : f32 to vector<32x256xf32>
    %c0_70 = arith.constant 0 : index
    %c0_71 = arith.constant 0 : index
    %98 = vector.load %arg11[%c0_70, %c0_71] : memref<32x290xf32, #tpu.memory_space<vmem>>, vector<32x256xf32>
    %99 = vector.broadcast %22 : vector<1x256xf32> to vector<32x256xf32>
    %100 = arith.mulf %98, %99 : vector<32x256xf32>
    %c1_72 = arith.constant 1 : index
    %c0_73 = arith.constant 0 : index
    %c0_74 = arith.constant 0 : index
    %c0_75 = arith.constant 0 : index
    %101 = vector.load %arg2[%c1_72, %c0_73, %c0_74, %c0_75] : memref<4x9x32x32xf32, #tpu.memory_space<vmem>>, vector<1x1x32x32xf32>
    %102 = vector.shape_cast %101 : vector<1x1x32x32xf32> to vector<32x32xf32>
    %cst_76 = arith.constant dense<0.000000e+00> : vector<32x256xf32>
    %103 = tpu.matmul %102, %100, %cst_76 {dimension_numbers = #tpu.dot_dimension_numbers<[1], [0], [0], [1], [0, 0, 1, 1], [], []>} : vector<32x32xf32>, vector<32x256xf32>, vector<32x256xf32> -> vector<32x256xf32>
    %104 = arith.addf %97, %103 : vector<32x256xf32>
    %c0_77 = arith.constant 0 : index
    %c1_78 = arith.constant 1 : index
    %105 = vector.load %arg11[%c0_77, %c1_78] : memref<32x290xf32, #tpu.memory_space<vmem>>, vector<32x256xf32>
    %c1_79 = arith.constant 1 : index
    %c1_80 = arith.constant 1 : index
    %c0_81 = arith.constant 0 : index
    %c0_82 = arith.constant 0 : index
    %106 = vector.load %arg2[%c1_79, %c1_80, %c0_81, %c0_82] : memref<4x9x32x32xf32, #tpu.memory_space<vmem>>, vector<1x1x32x32xf32>
    %107 = vector.shape_cast %106 : vector<1x1x32x32xf32> to vector<32x32xf32>
    %cst_83 = arith.constant dense<0.000000e+00> : vector<32x256xf32>
    %108 = tpu.matmul %107, %105, %cst_83 {dimension_numbers = #tpu.dot_dimension_numbers<[1], [0], [0], [1], [0, 0, 1, 1], [], []>} : vector<32x32xf32>, vector<32x256xf32>, vector<32x256xf32> -> vector<32x256xf32>
    %109 = arith.addf %104, %108 : vector<32x256xf32>
    %c0_84 = arith.constant 0 : index
    %c2_85 = arith.constant 2 : index
    %110 = vector.load %arg11[%c0_84, %c2_85] : memref<32x290xf32, #tpu.memory_space<vmem>>, vector<32x256xf32>
    %111 = vector.broadcast %26 : vector<1x256xf32> to vector<32x256xf32>
    %112 = arith.mulf %110, %111 : vector<32x256xf32>
    %c1_86 = arith.constant 1 : index
    %c2_87 = arith.constant 2 : index
    %c0_88 = arith.constant 0 : index
    %c0_89 = arith.constant 0 : index
    %113 = vector.load %arg2[%c1_86, %c2_87, %c0_88, %c0_89] : memref<4x9x32x32xf32, #tpu.memory_space<vmem>>, vector<1x1x32x32xf32>
    %114 = vector.shape_cast %113 : vector<1x1x32x32xf32> to vector<32x32xf32>
    %cst_90 = arith.constant dense<0.000000e+00> : vector<32x256xf32>
    %115 = tpu.matmul %114, %112, %cst_90 {dimension_numbers = #tpu.dot_dimension_numbers<[1], [0], [0], [1], [0, 0, 1, 1], [], []>} : vector<32x32xf32>, vector<32x256xf32>, vector<32x256xf32> -> vector<32x256xf32>
    %116 = arith.addf %109, %115 : vector<32x256xf32>
    %c0_91 = arith.constant 0 : index
    %c16_92 = arith.constant 16 : index
    %117 = vector.load %arg11[%c0_91, %c16_92] : memref<32x290xf32, #tpu.memory_space<vmem>>, vector<32x256xf32>
    %118 = vector.broadcast %22 : vector<1x256xf32> to vector<32x256xf32>
    %119 = arith.mulf %117, %118 : vector<32x256xf32>
    %c1_93 = arith.constant 1 : index
    %c3_94 = arith.constant 3 : index
    %c0_95 = arith.constant 0 : index
    %c0_96 = arith.constant 0 : index
    %120 = vector.load %arg2[%c1_93, %c3_94, %c0_95, %c0_96] : memref<4x9x32x32xf32, #tpu.memory_space<vmem>>, vector<1x1x32x32xf32>
    %121 = vector.shape_cast %120 : vector<1x1x32x32xf32> to vector<32x32xf32>
    %cst_97 = arith.constant dense<0.000000e+00> : vector<32x256xf32>
    %122 = tpu.matmul %121, %119, %cst_97 {dimension_numbers = #tpu.dot_dimension_numbers<[1], [0], [0], [1], [0, 0, 1, 1], [], []>} : vector<32x32xf32>, vector<32x256xf32>, vector<32x256xf32> -> vector<32x256xf32>
    %123 = arith.addf %116, %122 : vector<32x256xf32>
    %c0_98 = arith.constant 0 : index
    %c17_99 = arith.constant 17 : index
    %124 = vector.load %arg11[%c0_98, %c17_99] : memref<32x290xf32, #tpu.memory_space<vmem>>, vector<32x256xf32>
    %c1_100 = arith.constant 1 : index
    %c4_101 = arith.constant 4 : index
    %c0_102 = arith.constant 0 : index
    %c0_103 = arith.constant 0 : index
    %125 = vector.load %arg2[%c1_100, %c4_101, %c0_102, %c0_103] : memref<4x9x32x32xf32, #tpu.memory_space<vmem>>, vector<1x1x32x32xf32>
    %126 = vector.shape_cast %125 : vector<1x1x32x32xf32> to vector<32x32xf32>
    %cst_104 = arith.constant dense<0.000000e+00> : vector<32x256xf32>
    %127 = tpu.matmul %126, %124, %cst_104 {dimension_numbers = #tpu.dot_dimension_numbers<[1], [0], [0], [1], [0, 0, 1, 1], [], []>} : vector<32x32xf32>, vector<32x256xf32>, vector<32x256xf32> -> vector<32x256xf32>
    %128 = arith.addf %123, %127 : vector<32x256xf32>
    %c0_105 = arith.constant 0 : index
    %c18_106 = arith.constant 18 : index
    %129 = vector.load %arg11[%c0_105, %c18_106] : memref<32x290xf32, #tpu.memory_space<vmem>>, vector<32x256xf32>
    %130 = vector.broadcast %26 : vector<1x256xf32> to vector<32x256xf32>
    %131 = arith.mulf %129, %130 : vector<32x256xf32>
    %c1_107 = arith.constant 1 : index
    %c5_108 = arith.constant 5 : index
    %c0_109 = arith.constant 0 : index
    %c0_110 = arith.constant 0 : index
    %132 = vector.load %arg2[%c1_107, %c5_108, %c0_109, %c0_110] : memref<4x9x32x32xf32, #tpu.memory_space<vmem>>, vector<1x1x32x32xf32>
    %133 = vector.shape_cast %132 : vector<1x1x32x32xf32> to vector<32x32xf32>
    %cst_111 = arith.constant dense<0.000000e+00> : vector<32x256xf32>
    %134 = tpu.matmul %133, %131, %cst_111 {dimension_numbers = #tpu.dot_dimension_numbers<[1], [0], [0], [1], [0, 0, 1, 1], [], []>} : vector<32x32xf32>, vector<32x256xf32>, vector<32x256xf32> -> vector<32x256xf32>
    %135 = arith.addf %128, %134 : vector<32x256xf32>
    %c0_112 = arith.constant 0 : index
    %c32_113 = arith.constant 32 : index
    %136 = vector.load %arg11[%c0_112, %c32_113] : memref<32x290xf32, #tpu.memory_space<vmem>>, vector<32x256xf32>
    %137 = vector.broadcast %22 : vector<1x256xf32> to vector<32x256xf32>
    %138 = arith.mulf %136, %137 : vector<32x256xf32>
    %c1_114 = arith.constant 1 : index
    %c6_115 = arith.constant 6 : index
    %c0_116 = arith.constant 0 : index
    %c0_117 = arith.constant 0 : index
    %139 = vector.load %arg2[%c1_114, %c6_115, %c0_116, %c0_117] : memref<4x9x32x32xf32, #tpu.memory_space<vmem>>, vector<1x1x32x32xf32>
    %140 = vector.shape_cast %139 : vector<1x1x32x32xf32> to vector<32x32xf32>
    %cst_118 = arith.constant dense<0.000000e+00> : vector<32x256xf32>
    %141 = tpu.matmul %140, %138, %cst_118 {dimension_numbers = #tpu.dot_dimension_numbers<[1], [0], [0], [1], [0, 0, 1, 1], [], []>} : vector<32x32xf32>, vector<32x256xf32>, vector<32x256xf32> -> vector<32x256xf32>
    %142 = arith.addf %135, %141 : vector<32x256xf32>
    %c0_119 = arith.constant 0 : index
    %c33_120 = arith.constant 33 : index
    %143 = vector.load %arg11[%c0_119, %c33_120] : memref<32x290xf32, #tpu.memory_space<vmem>>, vector<32x256xf32>
    %c1_121 = arith.constant 1 : index
    %c7_122 = arith.constant 7 : index
    %c0_123 = arith.constant 0 : index
    %c0_124 = arith.constant 0 : index
    %144 = vector.load %arg2[%c1_121, %c7_122, %c0_123, %c0_124] : memref<4x9x32x32xf32, #tpu.memory_space<vmem>>, vector<1x1x32x32xf32>
    %145 = vector.shape_cast %144 : vector<1x1x32x32xf32> to vector<32x32xf32>
    %cst_125 = arith.constant dense<0.000000e+00> : vector<32x256xf32>
    %146 = tpu.matmul %145, %143, %cst_125 {dimension_numbers = #tpu.dot_dimension_numbers<[1], [0], [0], [1], [0, 0, 1, 1], [], []>} : vector<32x32xf32>, vector<32x256xf32>, vector<32x256xf32> -> vector<32x256xf32>
    %147 = arith.addf %142, %146 : vector<32x256xf32>
    %c0_126 = arith.constant 0 : index
    %c34_127 = arith.constant 34 : index
    %148 = vector.load %arg11[%c0_126, %c34_127] : memref<32x290xf32, #tpu.memory_space<vmem>>, vector<32x256xf32>
    %149 = vector.broadcast %26 : vector<1x256xf32> to vector<32x256xf32>
    %150 = arith.mulf %148, %149 : vector<32x256xf32>
    %c1_128 = arith.constant 1 : index
    %c8_129 = arith.constant 8 : index
    %c0_130 = arith.constant 0 : index
    %c0_131 = arith.constant 0 : index
    %151 = vector.load %arg2[%c1_128, %c8_129, %c0_130, %c0_131] : memref<4x9x32x32xf32, #tpu.memory_space<vmem>>, vector<1x1x32x32xf32>
    %152 = vector.shape_cast %151 : vector<1x1x32x32xf32> to vector<32x32xf32>
    %cst_132 = arith.constant dense<0.000000e+00> : vector<32x256xf32>
    %153 = tpu.matmul %152, %150, %cst_132 {dimension_numbers = #tpu.dot_dimension_numbers<[1], [0], [0], [1], [0, 0, 1, 1], [], []>} : vector<32x32xf32>, vector<32x256xf32>, vector<32x256xf32> -> vector<32x256xf32>
    %154 = arith.addf %147, %153 : vector<32x256xf32>
    %155 = vector.broadcast %95 : vector<32x1xf32> to vector<32x256xf32>
    %156 = arith.addf %154, %155 : vector<32x256xf32>
    %cst_133 = arith.constant dense<0.000000e+00> : vector<32xf32>
    %157 = vector.multi_reduction <add>, %156, %cst_133 [1] : vector<32x256xf32> to vector<32xf32>
    %158 = vector.shape_cast %157 : vector<32xf32> to vector<32x1xf32>
    %cst_134 = arith.constant 2.560000e+02 : f32
    %159 = vector.broadcast %cst_134 : f32 to vector<32x1xf32>
    %160 = arith.divf %158, %159 : vector<32x1xf32>
    %c0_135 = arith.constant 0 : index
    %c0_136 = arith.constant 0 : index
    %c0_137 = arith.constant 0 : index
    %161 = vector.load %arg4[%c0_135, %c0_136, %c0_137] : memref<2x4x32xf32, #tpu.memory_space<vmem>>, vector<1x4x32xf32>
    %162 = vector.shape_cast %161 : vector<1x4x32xf32> to vector<4x32xf32>
    %cst_138 = arith.constant dense<0.000000e+00> : vector<4x1xf32>
    %163 = tpu.matmul %162, %160, %cst_138 {dimension_numbers = #tpu.dot_dimension_numbers<[1], [0], [0], [1], [0, 0, 1, 1], [], []>} : vector<4x32xf32>, vector<32x1xf32>, vector<4x1xf32> -> vector<4x1xf32>
    %c0_139 = arith.constant 0 : index
    %c0_140 = arith.constant 0 : index
    %c0_141 = arith.constant 0 : index
    %164 = vector.load %arg5[%c0_139, %c0_140, %c0_141] : memref<2x4x1xf32, #tpu.memory_space<vmem>>, vector<1x4x1xf32>
    %165 = vector.shape_cast %164 : vector<1x4x1xf32> to vector<4x1xf32>
    %166 = arith.addf %163, %165 : vector<4x1xf32>
    %cst_142 = arith.constant 0.000000e+00 : f32
    %167 = vector.broadcast %cst_142 : f32 to vector<4x1xf32>
    %168 = arith.maximumf %166, %167 : vector<4x1xf32>
    %c0_143 = arith.constant 0 : index
    %c0_144 = arith.constant 0 : index
    %c0_145 = arith.constant 0 : index
    %169 = vector.load %arg6[%c0_143, %c0_144, %c0_145] : memref<2x32x4xf32, #tpu.memory_space<vmem>>, vector<1x32x4xf32>
    %170 = vector.shape_cast %169 : vector<1x32x4xf32> to vector<32x4xf32>
    %cst_146 = arith.constant dense<0.000000e+00> : vector<32x1xf32>
    %171 = tpu.matmul %170, %168, %cst_146 {dimension_numbers = #tpu.dot_dimension_numbers<[1], [0], [0], [1], [0, 0, 1, 1], [], []>} : vector<32x4xf32>, vector<4x1xf32>, vector<32x1xf32> -> vector<32x1xf32>
    %c0_147 = arith.constant 0 : index
    %c0_148 = arith.constant 0 : index
    %c0_149 = arith.constant 0 : index
    %172 = vector.load %arg7[%c0_147, %c0_148, %c0_149] : memref<2x32x1xf32, #tpu.memory_space<vmem>>, vector<1x32x1xf32>
    %173 = vector.shape_cast %172 : vector<1x32x1xf32> to vector<32x1xf32>
    %174 = arith.addf %171, %173 : vector<32x1xf32>
    %175 = arith.negf %174 : vector<32x1xf32>
    %176 = math.exp %175 : vector<32x1xf32>
    %cst_150 = arith.constant 1.000000e+00 : f32
    %177 = vector.broadcast %cst_150 : f32 to vector<32x1xf32>
    %178 = arith.addf %177, %176 : vector<32x1xf32>
    %179 = arith.divf %177, %178 : vector<32x1xf32>
    %180 = vector.broadcast %179 : vector<32x1xf32> to vector<32x256xf32>
    %181 = arith.mulf %156, %180 : vector<32x256xf32>
    %cst_151 = arith.constant 1.000000e+00 : f32
    %182 = vector.broadcast %cst_151 : f32 to vector<32x256xf32>
    %183 = arith.mulf %182, %181 : vector<32x256xf32>
    %184 = arith.addf %28, %183 : vector<32x256xf32>
    %c2_152 = arith.constant 2 : index
    %c0_153 = arith.constant 0 : index
    %c0_154 = arith.constant 0 : index
    %185 = vector.load %arg3[%c2_152, %c0_153, %c0_154] : memref<4x32x1xf32, #tpu.memory_space<vmem>>, vector<1x32x1xf32>
    %186 = vector.shape_cast %185 : vector<1x32x1xf32> to vector<32x1xf32>
    %c0_155 = arith.constant 0 : index
    %c17_156 = arith.constant 17 : index
    %187 = vector.load %arg11[%c0_155, %c17_156] : memref<32x290xf32, #tpu.memory_space<vmem>>, vector<32x256xf32>
    tpu.vector_store %arg11[%c0_155, %c17_156], %184 {strides = array<i32>} : memref<32x290xf32, #tpu.memory_space<vmem>>, vector<32x256xf32>,
    %cst_157 = arith.constant 0.000000e+00 : f32
    %188 = vector.broadcast %cst_157 : f32 to vector<32x256xf32>
    %c0_158 = arith.constant 0 : index
    %c0_159 = arith.constant 0 : index
    %189 = vector.load %arg11[%c0_158, %c0_159] : memref<32x290xf32, #tpu.memory_space<vmem>>, vector<32x256xf32>
    %190 = vector.broadcast %22 : vector<1x256xf32> to vector<32x256xf32>
    %191 = arith.mulf %189, %190 : vector<32x256xf32>
    %c2_160 = arith.constant 2 : index
    %c0_161 = arith.constant 0 : index
    %c0_162 = arith.constant 0 : index
    %c0_163 = arith.constant 0 : index
    %192 = vector.load %arg2[%c2_160, %c0_161, %c0_162, %c0_163] : memref<4x9x32x32xf32, #tpu.memory_space<vmem>>, vector<1x1x32x32xf32>
    %193 = vector.shape_cast %192 : vector<1x1x32x32xf32> to vector<32x32xf32>
    %cst_164 = arith.constant dense<0.000000e+00> : vector<32x256xf32>
    %194 = tpu.matmul %193, %191, %cst_164 {dimension_numbers = #tpu.dot_dimension_numbers<[1], [0], [0], [1], [0, 0, 1, 1], [], []>} : vector<32x32xf32>, vector<32x256xf32>, vector<32x256xf32> -> vector<32x256xf32>
    %195 = arith.addf %188, %194 : vector<32x256xf32>
    %c0_165 = arith.constant 0 : index
    %c1_166 = arith.constant 1 : index
    %196 = vector.load %arg11[%c0_165, %c1_166] : memref<32x290xf32, #tpu.memory_space<vmem>>, vector<32x256xf32>
    %c2_167 = arith.constant 2 : index
    %c1_168 = arith.constant 1 : index
    %c0_169 = arith.constant 0 : index
    %c0_170 = arith.constant 0 : index
    %197 = vector.load %arg2[%c2_167, %c1_168, %c0_169, %c0_170] : memref<4x9x32x32xf32, #tpu.memory_space<vmem>>, vector<1x1x32x32xf32>
    %198 = vector.shape_cast %197 : vector<1x1x32x32xf32> to vector<32x32xf32>
    %cst_171 = arith.constant dense<0.000000e+00> : vector<32x256xf32>
    %199 = tpu.matmul %198, %196, %cst_171 {dimension_numbers = #tpu.dot_dimension_numbers<[1], [0], [0], [1], [0, 0, 1, 1], [], []>} : vector<32x32xf32>, vector<32x256xf32>, vector<32x256xf32> -> vector<32x256xf32>
    %200 = arith.addf %195, %199 : vector<32x256xf32>
    %c0_172 = arith.constant 0 : index
    %c2_173 = arith.constant 2 : index
    %201 = vector.load %arg11[%c0_172, %c2_173] : memref<32x290xf32, #tpu.memory_space<vmem>>, vector<32x256xf32>
    %202 = vector.broadcast %26 : vector<1x256xf32> to vector<32x256xf32>
    %203 = arith.mulf %201, %202 : vector<32x256xf32>
    %c2_174 = arith.constant 2 : index
    %c2_175 = arith.constant 2 : index
    %c0_176 = arith.constant 0 : index
    %c0_177 = arith.constant 0 : index
    %204 = vector.load %arg2[%c2_174, %c2_175, %c0_176, %c0_177] : memref<4x9x32x32xf32, #tpu.memory_space<vmem>>, vector<1x1x32x32xf32>
    %205 = vector.shape_cast %204 : vector<1x1x32x32xf32> to vector<32x32xf32>
    %cst_178 = arith.constant dense<0.000000e+00> : vector<32x256xf32>
    %206 = tpu.matmul %205, %203, %cst_178 {dimension_numbers = #tpu.dot_dimension_numbers<[1], [0], [0], [1], [0, 0, 1, 1], [], []>} : vector<32x32xf32>, vector<32x256xf32>, vector<32x256xf32> -> vector<32x256xf32>
    %207 = arith.addf %200, %206 : vector<32x256xf32>
    %c0_179 = arith.constant 0 : index
    %c16_180 = arith.constant 16 : index
    %208 = vector.load %arg11[%c0_179, %c16_180] : memref<32x290xf32, #tpu.memory_space<vmem>>, vector<32x256xf32>
    %209 = vector.broadcast %22 : vector<1x256xf32> to vector<32x256xf32>
    %210 = arith.mulf %208, %209 : vector<32x256xf32>
    %c2_181 = arith.constant 2 : index
    %c3_182 = arith.constant 3 : index
    %c0_183 = arith.constant 0 : index
    %c0_184 = arith.constant 0 : index
    %211 = vector.load %arg2[%c2_181, %c3_182, %c0_183, %c0_184] : memref<4x9x32x32xf32, #tpu.memory_space<vmem>>, vector<1x1x32x32xf32>
    %212 = vector.shape_cast %211 : vector<1x1x32x32xf32> to vector<32x32xf32>
    %cst_185 = arith.constant dense<0.000000e+00> : vector<32x256xf32>
    %213 = tpu.matmul %212, %210, %cst_185 {dimension_numbers = #tpu.dot_dimension_numbers<[1], [0], [0], [1], [0, 0, 1, 1], [], []>} : vector<32x32xf32>, vector<32x256xf32>, vector<32x256xf32> -> vector<32x256xf32>
    %214 = arith.addf %207, %213 : vector<32x256xf32>
    %c0_186 = arith.constant 0 : index
    %c17_187 = arith.constant 17 : index
    %215 = vector.load %arg11[%c0_186, %c17_187] : memref<32x290xf32, #tpu.memory_space<vmem>>, vector<32x256xf32>
    %c2_188 = arith.constant 2 : index
    %c4_189 = arith.constant 4 : index
    %c0_190 = arith.constant 0 : index
    %c0_191 = arith.constant 0 : index
    %216 = vector.load %arg2[%c2_188, %c4_189, %c0_190, %c0_191] : memref<4x9x32x32xf32, #tpu.memory_space<vmem>>, vector<1x1x32x32xf32>
    %217 = vector.shape_cast %216 : vector<1x1x32x32xf32> to vector<32x32xf32>
    %cst_192 = arith.constant dense<0.000000e+00> : vector<32x256xf32>
    %218 = tpu.matmul %217, %215, %cst_192 {dimension_numbers = #tpu.dot_dimension_numbers<[1], [0], [0], [1], [0, 0, 1, 1], [], []>} : vector<32x32xf32>, vector<32x256xf32>, vector<32x256xf32> -> vector<32x256xf32>
    %219 = arith.addf %214, %218 : vector<32x256xf32>
    %c0_193 = arith.constant 0 : index
    %c18_194 = arith.constant 18 : index
    %220 = vector.load %arg11[%c0_193, %c18_194] : memref<32x290xf32, #tpu.memory_space<vmem>>, vector<32x256xf32>
    %221 = vector.broadcast %26 : vector<1x256xf32> to vector<32x256xf32>
    %222 = arith.mulf %220, %221 : vector<32x256xf32>
    %c2_195 = arith.constant 2 : index
    %c5_196 = arith.constant 5 : index
    %c0_197 = arith.constant 0 : index
    %c0_198 = arith.constant 0 : index
    %223 = vector.load %arg2[%c2_195, %c5_196, %c0_197, %c0_198] : memref<4x9x32x32xf32, #tpu.memory_space<vmem>>, vector<1x1x32x32xf32>
    %224 = vector.shape_cast %223 : vector<1x1x32x32xf32> to vector<32x32xf32>
    %cst_199 = arith.constant dense<0.000000e+00> : vector<32x256xf32>
    %225 = tpu.matmul %224, %222, %cst_199 {dimension_numbers = #tpu.dot_dimension_numbers<[1], [0], [0], [1], [0, 0, 1, 1], [], []>} : vector<32x32xf32>, vector<32x256xf32>, vector<32x256xf32> -> vector<32x256xf32>
    %226 = arith.addf %219, %225 : vector<32x256xf32>
    %c0_200 = arith.constant 0 : index
    %c32_201 = arith.constant 32 : index
    %227 = vector.load %arg11[%c0_200, %c32_201] : memref<32x290xf32, #tpu.memory_space<vmem>>, vector<32x256xf32>
    %228 = vector.broadcast %22 : vector<1x256xf32> to vector<32x256xf32>
    %229 = arith.mulf %227, %228 : vector<32x256xf32>
    %c2_202 = arith.constant 2 : index
    %c6_203 = arith.constant 6 : index
    %c0_204 = arith.constant 0 : index
    %c0_205 = arith.constant 0 : index
    %230 = vector.load %arg2[%c2_202, %c6_203, %c0_204, %c0_205] : memref<4x9x32x32xf32, #tpu.memory_space<vmem>>, vector<1x1x32x32xf32>
    %231 = vector.shape_cast %230 : vector<1x1x32x32xf32> to vector<32x32xf32>
    %cst_206 = arith.constant dense<0.000000e+00> : vector<32x256xf32>
    %232 = tpu.matmul %231, %229, %cst_206 {dimension_numbers = #tpu.dot_dimension_numbers<[1], [0], [0], [1], [0, 0, 1, 1], [], []>} : vector<32x32xf32>, vector<32x256xf32>, vector<32x256xf32> -> vector<32x256xf32>
    %233 = arith.addf %226, %232 : vector<32x256xf32>
    %c0_207 = arith.constant 0 : index
    %c33_208 = arith.constant 33 : index
    %234 = vector.load %arg11[%c0_207, %c33_208] : memref<32x290xf32, #tpu.memory_space<vmem>>, vector<32x256xf32>
    %c2_209 = arith.constant 2 : index
    %c7_210 = arith.constant 7 : index
    %c0_211 = arith.constant 0 : index
    %c0_212 = arith.constant 0 : index
    %235 = vector.load %arg2[%c2_209, %c7_210, %c0_211, %c0_212] : memref<4x9x32x32xf32, #tpu.memory_space<vmem>>, vector<1x1x32x32xf32>
    %236 = vector.shape_cast %235 : vector<1x1x32x32xf32> to vector<32x32xf32>
    %cst_213 = arith.constant dense<0.000000e+00> : vector<32x256xf32>
    %237 = tpu.matmul %236, %234, %cst_213 {dimension_numbers = #tpu.dot_dimension_numbers<[1], [0], [0], [1], [0, 0, 1, 1], [], []>} : vector<32x32xf32>, vector<32x256xf32>, vector<32x256xf32> -> vector<32x256xf32>
    %238 = arith.addf %233, %237 : vector<32x256xf32>
    %c0_214 = arith.constant 0 : index
    %c34_215 = arith.constant 34 : index
    %239 = vector.load %arg11[%c0_214, %c34_215] : memref<32x290xf32, #tpu.memory_space<vmem>>, vector<32x256xf32>
    %240 = vector.broadcast %26 : vector<1x256xf32> to vector<32x256xf32>
    %241 = arith.mulf %239, %240 : vector<32x256xf32>
    %c2_216 = arith.constant 2 : index
    %c8_217 = arith.constant 8 : index
    %c0_218 = arith.constant 0 : index
    %c0_219 = arith.constant 0 : index
    %242 = vector.load %arg2[%c2_216, %c8_217, %c0_218, %c0_219] : memref<4x9x32x32xf32, #tpu.memory_space<vmem>>, vector<1x1x32x32xf32>
    %243 = vector.shape_cast %242 : vector<1x1x32x32xf32> to vector<32x32xf32>
    %cst_220 = arith.constant dense<0.000000e+00> : vector<32x256xf32>
    %244 = tpu.matmul %243, %241, %cst_220 {dimension_numbers = #tpu.dot_dimension_numbers<[1], [0], [0], [1], [0, 0, 1, 1], [], []>} : vector<32x32xf32>, vector<32x256xf32>, vector<32x256xf32> -> vector<32x256xf32>
    %245 = arith.addf %238, %244 : vector<32x256xf32>
    %246 = vector.broadcast %186 : vector<32x1xf32> to vector<32x256xf32>
    %247 = arith.addf %245, %246 : vector<32x256xf32>
    %cst_221 = arith.constant 0.000000e+00 : f32
    %248 = vector.broadcast %cst_221 : f32 to vector<32x256xf32>
    %249 = arith.maximumf %247, %248 : vector<32x256xf32>
    %c3_222 = arith.constant 3 : index
    %c0_223 = arith.constant 0 : index
    %c0_224 = arith.constant 0 : index
    %250 = vector.load %arg3[%c3_222, %c0_223, %c0_224] : memref<4x32x1xf32, #tpu.memory_space<vmem>>, vector<1x32x1xf32>
    %251 = vector.shape_cast %250 : vector<1x32x1xf32> to vector<32x1xf32>
    %c0_225 = arith.constant 0 : index
    %c17_226 = arith.constant 17 : index
    %252 = vector.load %arg11[%c0_225, %c17_226] : memref<32x290xf32, #tpu.memory_space<vmem>>, vector<32x256xf32>
    tpu.vector_store %arg11[%c0_225, %c17_226], %249 {strides = array<i32>} : memref<32x290xf32, #tpu.memory_space<vmem>>, vector<32x256xf32>,
    %cst_227 = arith.constant 0.000000e+00 : f32
    %253 = vector.broadcast %cst_227 : f32 to vector<32x256xf32>
    %c0_228 = arith.constant 0 : index
    %c0_229 = arith.constant 0 : index
    %254 = vector.load %arg11[%c0_228, %c0_229] : memref<32x290xf32, #tpu.memory_space<vmem>>, vector<32x256xf32>
    %255 = vector.broadcast %22 : vector<1x256xf32> to vector<32x256xf32>
    %256 = arith.mulf %254, %255 : vector<32x256xf32>
    %c3_230 = arith.constant 3 : index
    %c0_231 = arith.constant 0 : index
    %c0_232 = arith.constant 0 : index
    %c0_233 = arith.constant 0 : index
    %257 = vector.load %arg2[%c3_230, %c0_231, %c0_232, %c0_233] : memref<4x9x32x32xf32, #tpu.memory_space<vmem>>, vector<1x1x32x32xf32>
    %258 = vector.shape_cast %257 : vector<1x1x32x32xf32> to vector<32x32xf32>
    %cst_234 = arith.constant dense<0.000000e+00> : vector<32x256xf32>
    %259 = tpu.matmul %258, %256, %cst_234 {dimension_numbers = #tpu.dot_dimension_numbers<[1], [0], [0], [1], [0, 0, 1, 1], [], []>} : vector<32x32xf32>, vector<32x256xf32>, vector<32x256xf32> -> vector<32x256xf32>
    %260 = arith.addf %253, %259 : vector<32x256xf32>
    %c0_235 = arith.constant 0 : index
    %c1_236 = arith.constant 1 : index
    %261 = vector.load %arg11[%c0_235, %c1_236] : memref<32x290xf32, #tpu.memory_space<vmem>>, vector<32x256xf32>
    %c3_237 = arith.constant 3 : index
    %c1_238 = arith.constant 1 : index
    %c0_239 = arith.constant 0 : index
    %c0_240 = arith.constant 0 : index
    %262 = vector.load %arg2[%c3_237, %c1_238, %c0_239, %c0_240] : memref<4x9x32x32xf32, #tpu.memory_space<vmem>>, vector<1x1x32x32xf32>
    %263 = vector.shape_cast %262 : vector<1x1x32x32xf32> to vector<32x32xf32>
    %cst_241 = arith.constant dense<0.000000e+00> : vector<32x256xf32>
    %264 = tpu.matmul %263, %261, %cst_241 {dimension_numbers = #tpu.dot_dimension_numbers<[1], [0], [0], [1], [0, 0, 1, 1], [], []>} : vector<32x32xf32>, vector<32x256xf32>, vector<32x256xf32> -> vector<32x256xf32>
    %265 = arith.addf %260, %264 : vector<32x256xf32>
    %c0_242 = arith.constant 0 : index
    %c2_243 = arith.constant 2 : index
    %266 = vector.load %arg11[%c0_242, %c2_243] : memref<32x290xf32, #tpu.memory_space<vmem>>, vector<32x256xf32>
    %267 = vector.broadcast %26 : vector<1x256xf32> to vector<32x256xf32>
    %268 = arith.mulf %266, %267 : vector<32x256xf32>
    %c3_244 = arith.constant 3 : index
    %c2_245 = arith.constant 2 : index
    %c0_246 = arith.constant 0 : index
    %c0_247 = arith.constant 0 : index
    %269 = vector.load %arg2[%c3_244, %c2_245, %c0_246, %c0_247] : memref<4x9x32x32xf32, #tpu.memory_space<vmem>>, vector<1x1x32x32xf32>
    %270 = vector.shape_cast %269 : vector<1x1x32x32xf32> to vector<32x32xf32>
    %cst_248 = arith.constant dense<0.000000e+00> : vector<32x256xf32>
    %271 = tpu.matmul %270, %268, %cst_248 {dimension_numbers = #tpu.dot_dimension_numbers<[1], [0], [0], [1], [0, 0, 1, 1], [], []>} : vector<32x32xf32>, vector<32x256xf32>, vector<32x256xf32> -> vector<32x256xf32>
    %272 = arith.addf %265, %271 : vector<32x256xf32>
    %c0_249 = arith.constant 0 : index
    %c16_250 = arith.constant 16 : index
    %273 = vector.load %arg11[%c0_249, %c16_250] : memref<32x290xf32, #tpu.memory_space<vmem>>, vector<32x256xf32>
    %274 = vector.broadcast %22 : vector<1x256xf32> to vector<32x256xf32>
    %275 = arith.mulf %273, %274 : vector<32x256xf32>
    %c3_251 = arith.constant 3 : index
    %c3_252 = arith.constant 3 : index
    %c0_253 = arith.constant 0 : index
    %c0_254 = arith.constant 0 : index
    %276 = vector.load %arg2[%c3_251, %c3_252, %c0_253, %c0_254] : memref<4x9x32x32xf32, #tpu.memory_space<vmem>>, vector<1x1x32x32xf32>
    %277 = vector.shape_cast %276 : vector<1x1x32x32xf32> to vector<32x32xf32>
    %cst_255 = arith.constant dense<0.000000e+00> : vector<32x256xf32>
    %278 = tpu.matmul %277, %275, %cst_255 {dimension_numbers = #tpu.dot_dimension_numbers<[1], [0], [0], [1], [0, 0, 1, 1], [], []>} : vector<32x32xf32>, vector<32x256xf32>, vector<32x256xf32> -> vector<32x256xf32>
    %279 = arith.addf %272, %278 : vector<32x256xf32>
    %c0_256 = arith.constant 0 : index
    %c17_257 = arith.constant 17 : index
    %280 = vector.load %arg11[%c0_256, %c17_257] : memref<32x290xf32, #tpu.memory_space<vmem>>, vector<32x256xf32>
    %c3_258 = arith.constant 3 : index
    %c4_259 = arith.constant 4 : index
    %c0_260 = arith.constant 0 : index
    %c0_261 = arith.constant 0 : index
    %281 = vector.load %arg2[%c3_258, %c4_259, %c0_260, %c0_261] : memref<4x9x32x32xf32, #tpu.memory_space<vmem>>, vector<1x1x32x32xf32>
    %282 = vector.shape_cast %281 : vector<1x1x32x32xf32> to vector<32x32xf32>
    %cst_262 = arith.constant dense<0.000000e+00> : vector<32x256xf32>
    %283 = tpu.matmul %282, %280, %cst_262 {dimension_numbers = #tpu.dot_dimension_numbers<[1], [0], [0], [1], [0, 0, 1, 1], [], []>} : vector<32x32xf32>, vector<32x256xf32>, vector<32x256xf32> -> vector<32x256xf32>
    %284 = arith.addf %279, %283 : vector<32x256xf32>
    %c0_263 = arith.constant 0 : index
    %c18_264 = arith.constant 18 : index
    %285 = vector.load %arg11[%c0_263, %c18_264] : memref<32x290xf32, #tpu.memory_space<vmem>>, vector<32x256xf32>
    %286 = vector.broadcast %26 : vector<1x256xf32> to vector<32x256xf32>
    %287 = arith.mulf %285, %286 : vector<32x256xf32>
    %c3_265 = arith.constant 3 : index
    %c5_266 = arith.constant 5 : index
    %c0_267 = arith.constant 0 : index
    %c0_268 = arith.constant 0 : index
    %288 = vector.load %arg2[%c3_265, %c5_266, %c0_267, %c0_268] : memref<4x9x32x32xf32, #tpu.memory_space<vmem>>, vector<1x1x32x32xf32>
    %289 = vector.shape_cast %288 : vector<1x1x32x32xf32> to vector<32x32xf32>
    %cst_269 = arith.constant dense<0.000000e+00> : vector<32x256xf32>
    %290 = tpu.matmul %289, %287, %cst_269 {dimension_numbers = #tpu.dot_dimension_numbers<[1], [0], [0], [1], [0, 0, 1, 1], [], []>} : vector<32x32xf32>, vector<32x256xf32>, vector<32x256xf32> -> vector<32x256xf32>
    %291 = arith.addf %284, %290 : vector<32x256xf32>
    %c0_270 = arith.constant 0 : index
    %c32_271 = arith.constant 32 : index
    %292 = vector.load %arg11[%c0_270, %c32_271] : memref<32x290xf32, #tpu.memory_space<vmem>>, vector<32x256xf32>
    %293 = vector.broadcast %22 : vector<1x256xf32> to vector<32x256xf32>
    %294 = arith.mulf %292, %293 : vector<32x256xf32>
    %c3_272 = arith.constant 3 : index
    %c6_273 = arith.constant 6 : index
    %c0_274 = arith.constant 0 : index
    %c0_275 = arith.constant 0 : index
    %295 = vector.load %arg2[%c3_272, %c6_273, %c0_274, %c0_275] : memref<4x9x32x32xf32, #tpu.memory_space<vmem>>, vector<1x1x32x32xf32>
    %296 = vector.shape_cast %295 : vector<1x1x32x32xf32> to vector<32x32xf32>
    %cst_276 = arith.constant dense<0.000000e+00> : vector<32x256xf32>
    %297 = tpu.matmul %296, %294, %cst_276 {dimension_numbers = #tpu.dot_dimension_numbers<[1], [0], [0], [1], [0, 0, 1, 1], [], []>} : vector<32x32xf32>, vector<32x256xf32>, vector<32x256xf32> -> vector<32x256xf32>
    %298 = arith.addf %291, %297 : vector<32x256xf32>
    %c0_277 = arith.constant 0 : index
    %c33_278 = arith.constant 33 : index
    %299 = vector.load %arg11[%c0_277, %c33_278] : memref<32x290xf32, #tpu.memory_space<vmem>>, vector<32x256xf32>
    %c3_279 = arith.constant 3 : index
    %c7_280 = arith.constant 7 : index
    %c0_281 = arith.constant 0 : index
    %c0_282 = arith.constant 0 : index
    %300 = vector.load %arg2[%c3_279, %c7_280, %c0_281, %c0_282] : memref<4x9x32x32xf32, #tpu.memory_space<vmem>>, vector<1x1x32x32xf32>
    %301 = vector.shape_cast %300 : vector<1x1x32x32xf32> to vector<32x32xf32>
    %cst_283 = arith.constant dense<0.000000e+00> : vector<32x256xf32>
    %302 = tpu.matmul %301, %299, %cst_283 {dimension_numbers = #tpu.dot_dimension_numbers<[1], [0], [0], [1], [0, 0, 1, 1], [], []>} : vector<32x32xf32>, vector<32x256xf32>, vector<32x256xf32> -> vector<32x256xf32>
    %303 = arith.addf %298, %302 : vector<32x256xf32>
    %c0_284 = arith.constant 0 : index
    %c34_285 = arith.constant 34 : index
    %304 = vector.load %arg11[%c0_284, %c34_285] : memref<32x290xf32, #tpu.memory_space<vmem>>, vector<32x256xf32>
    %305 = vector.broadcast %26 : vector<1x256xf32> to vector<32x256xf32>
    %306 = arith.mulf %304, %305 : vector<32x256xf32>
    %c3_286 = arith.constant 3 : index
    %c8_287 = arith.constant 8 : index
    %c0_288 = arith.constant 0 : index
    %c0_289 = arith.constant 0 : index
    %307 = vector.load %arg2[%c3_286, %c8_287, %c0_288, %c0_289] : memref<4x9x32x32xf32, #tpu.memory_space<vmem>>, vector<1x1x32x32xf32>
    %308 = vector.shape_cast %307 : vector<1x1x32x32xf32> to vector<32x32xf32>
    %cst_290 = arith.constant dense<0.000000e+00> : vector<32x256xf32>
    %309 = tpu.matmul %308, %306, %cst_290 {dimension_numbers = #tpu.dot_dimension_numbers<[1], [0], [0], [1], [0, 0, 1, 1], [], []>} : vector<32x32xf32>, vector<32x256xf32>, vector<32x256xf32> -> vector<32x256xf32>
    %310 = arith.addf %303, %309 : vector<32x256xf32>
    %311 = vector.broadcast %251 : vector<32x1xf32> to vector<32x256xf32>
    %312 = arith.addf %310, %311 : vector<32x256xf32>
    %cst_291 = arith.constant dense<0.000000e+00> : vector<32xf32>
    %313 = vector.multi_reduction <add>, %312, %cst_291 [1] : vector<32x256xf32> to vector<32xf32>
    %314 = vector.shape_cast %313 : vector<32xf32> to vector<32x1xf32>
    %cst_292 = arith.constant 2.560000e+02 : f32
    %315 = vector.broadcast %cst_292 : f32 to vector<32x1xf32>
    %316 = arith.divf %314, %315 : vector<32x1xf32>
    %c1_293 = arith.constant 1 : index
    %c0_294 = arith.constant 0 : index
    %c0_295 = arith.constant 0 : index
    %317 = vector.load %arg4[%c1_293, %c0_294, %c0_295] : memref<2x4x32xf32, #tpu.memory_space<vmem>>, vector<1x4x32xf32>
    %318 = vector.shape_cast %317 : vector<1x4x32xf32> to vector<4x32xf32>
    %cst_296 = arith.constant dense<0.000000e+00> : vector<4x1xf32>
    %319 = tpu.matmul %318, %316, %cst_296 {dimension_numbers = #tpu.dot_dimension_numbers<[1], [0], [0], [1], [0, 0, 1, 1], [], []>} : vector<4x32xf32>, vector<32x1xf32>, vector<4x1xf32> -> vector<4x1xf32>
    %c1_297 = arith.constant 1 : index
    %c0_298 = arith.constant 0 : index
    %c0_299 = arith.constant 0 : index
    %320 = vector.load %arg5[%c1_297, %c0_298, %c0_299] : memref<2x4x1xf32, #tpu.memory_space<vmem>>, vector<1x4x1xf32>
    %321 = vector.shape_cast %320 : vector<1x4x1xf32> to vector<4x1xf32>
    %322 = arith.addf %319, %321 : vector<4x1xf32>
    %cst_300 = arith.constant 0.000000e+00 : f32
    %323 = vector.broadcast %cst_300 : f32 to vector<4x1xf32>
    %324 = arith.maximumf %322, %323 : vector<4x1xf32>
    %c1_301 = arith.constant 1 : index
    %c0_302 = arith.constant 0 : index
    %c0_303 = arith.constant 0 : index
    %325 = vector.load %arg6[%c1_301, %c0_302, %c0_303] : memref<2x32x4xf32, #tpu.memory_space<vmem>>, vector<1x32x4xf32>
    %326 = vector.shape_cast %325 : vector<1x32x4xf32> to vector<32x4xf32>
    %cst_304 = arith.constant dense<0.000000e+00> : vector<32x1xf32>
    %327 = tpu.matmul %326, %324, %cst_304 {dimension_numbers = #tpu.dot_dimension_numbers<[1], [0], [0], [1], [0, 0, 1, 1], [], []>} : vector<32x4xf32>, vector<4x1xf32>, vector<32x1xf32> -> vector<32x1xf32>
    %c1_305 = arith.constant 1 : index
    %c0_306 = arith.constant 0 : index
    %c0_307 = arith.constant 0 : index
    %328 = vector.load %arg7[%c1_305, %c0_306, %c0_307] : memref<2x32x1xf32, #tpu.memory_space<vmem>>, vector<1x32x1xf32>
    %329 = vector.shape_cast %328 : vector<1x32x1xf32> to vector<32x1xf32>
    %330 = arith.addf %327, %329 : vector<32x1xf32>
    %331 = arith.negf %330 : vector<32x1xf32>
    %332 = math.exp %331 : vector<32x1xf32>
    %cst_308 = arith.constant 1.000000e+00 : f32
    %333 = vector.broadcast %cst_308 : f32 to vector<32x1xf32>
    %334 = arith.addf %333, %332 : vector<32x1xf32>
    %335 = arith.divf %333, %334 : vector<32x1xf32>
    %336 = vector.broadcast %335 : vector<32x1xf32> to vector<32x256xf32>
    %337 = arith.mulf %312, %336 : vector<32x256xf32>
    %cst_309 = arith.constant 1.000000e+00 : f32
    %338 = vector.broadcast %cst_309 : f32 to vector<32x256xf32>
    %339 = arith.mulf %338, %337 : vector<32x256xf32>
    %340 = arith.addf %184, %339 : vector<32x256xf32>
    %c0_310 = arith.constant 0 : index
    %c0_311 = arith.constant 0 : index
    %341 = vector.load %arg9[%c0_310, %c0_311] : memref<32x1xf32, #tpu.memory_space<vmem>>, vector<32x1xf32>
    %c0_312 = arith.constant 0 : index
    %c17_313 = arith.constant 17 : index
    %342 = vector.load %arg11[%c0_312, %c17_313] : memref<32x290xf32, #tpu.memory_space<vmem>>, vector<32x256xf32>
    tpu.vector_store %arg11[%c0_312, %c17_313], %340 {strides = array<i32>} : memref<32x290xf32, #tpu.memory_space<vmem>>, vector<32x256xf32>,
    %cst_314 = arith.constant 0.000000e+00 : f32
    %343 = vector.broadcast %cst_314 : f32 to vector<32x256xf32>
    %c0_315 = arith.constant 0 : index
    %c0_316 = arith.constant 0 : index
    %344 = vector.load %arg11[%c0_315, %c0_316] : memref<32x290xf32, #tpu.memory_space<vmem>>, vector<32x256xf32>
    %345 = vector.broadcast %22 : vector<1x256xf32> to vector<32x256xf32>
    %346 = arith.mulf %344, %345 : vector<32x256xf32>
    %c0_317 = arith.constant 0 : index
    %c0_318 = arith.constant 0 : index
    %c0_319 = arith.constant 0 : index
    %347 = vector.load %arg8[%c0_317, %c0_318, %c0_319] : memref<9x32x32xf32, #tpu.memory_space<vmem>>, vector<1x32x32xf32>
    %348 = vector.shape_cast %347 : vector<1x32x32xf32> to vector<32x32xf32>
    %cst_320 = arith.constant dense<0.000000e+00> : vector<32x256xf32>
    %349 = tpu.matmul %348, %346, %cst_320 {dimension_numbers = #tpu.dot_dimension_numbers<[1], [0], [0], [1], [0, 0, 1, 1], [], []>} : vector<32x32xf32>, vector<32x256xf32>, vector<32x256xf32> -> vector<32x256xf32>
    %350 = arith.addf %343, %349 : vector<32x256xf32>
    %c0_321 = arith.constant 0 : index
    %c1_322 = arith.constant 1 : index
    %351 = vector.load %arg11[%c0_321, %c1_322] : memref<32x290xf32, #tpu.memory_space<vmem>>, vector<32x256xf32>
    %c1_323 = arith.constant 1 : index
    %c0_324 = arith.constant 0 : index
    %c0_325 = arith.constant 0 : index
    %352 = vector.load %arg8[%c1_323, %c0_324, %c0_325] : memref<9x32x32xf32, #tpu.memory_space<vmem>>, vector<1x32x32xf32>
    %353 = vector.shape_cast %352 : vector<1x32x32xf32> to vector<32x32xf32>
    %cst_326 = arith.constant dense<0.000000e+00> : vector<32x256xf32>
    %354 = tpu.matmul %353, %351, %cst_326 {dimension_numbers = #tpu.dot_dimension_numbers<[1], [0], [0], [1], [0, 0, 1, 1], [], []>} : vector<32x32xf32>, vector<32x256xf32>, vector<32x256xf32> -> vector<32x256xf32>
    %355 = arith.addf %350, %354 : vector<32x256xf32>
    %c0_327 = arith.constant 0 : index
    %c2_328 = arith.constant 2 : index
    %356 = vector.load %arg11[%c0_327, %c2_328] : memref<32x290xf32, #tpu.memory_space<vmem>>, vector<32x256xf32>
    %357 = vector.broadcast %26 : vector<1x256xf32> to vector<32x256xf32>
    %358 = arith.mulf %356, %357 : vector<32x256xf32>
    %c2_329 = arith.constant 2 : index
    %c0_330 = arith.constant 0 : index
    %c0_331 = arith.constant 0 : index
    %359 = vector.load %arg8[%c2_329, %c0_330, %c0_331] : memref<9x32x32xf32, #tpu.memory_space<vmem>>, vector<1x32x32xf32>
    %360 = vector.shape_cast %359 : vector<1x32x32xf32> to vector<32x32xf32>
    %cst_332 = arith.constant dense<0.000000e+00> : vector<32x256xf32>
    %361 = tpu.matmul %360, %358, %cst_332 {dimension_numbers = #tpu.dot_dimension_numbers<[1], [0], [0], [1], [0, 0, 1, 1], [], []>} : vector<32x32xf32>, vector<32x256xf32>, vector<32x256xf32> -> vector<32x256xf32>
    %362 = arith.addf %355, %361 : vector<32x256xf32>
    %c0_333 = arith.constant 0 : index
    %c16_334 = arith.constant 16 : index
    %363 = vector.load %arg11[%c0_333, %c16_334] : memref<32x290xf32, #tpu.memory_space<vmem>>, vector<32x256xf32>
    %364 = vector.broadcast %22 : vector<1x256xf32> to vector<32x256xf32>
    %365 = arith.mulf %363, %364 : vector<32x256xf32>
    %c3_335 = arith.constant 3 : index
    %c0_336 = arith.constant 0 : index
    %c0_337 = arith.constant 0 : index
    %366 = vector.load %arg8[%c3_335, %c0_336, %c0_337] : memref<9x32x32xf32, #tpu.memory_space<vmem>>, vector<1x32x32xf32>
    %367 = vector.shape_cast %366 : vector<1x32x32xf32> to vector<32x32xf32>
    %cst_338 = arith.constant dense<0.000000e+00> : vector<32x256xf32>
    %368 = tpu.matmul %367, %365, %cst_338 {dimension_numbers = #tpu.dot_dimension_numbers<[1], [0], [0], [1], [0, 0, 1, 1], [], []>} : vector<32x32xf32>, vector<32x256xf32>, vector<32x256xf32> -> vector<32x256xf32>
    %369 = arith.addf %362, %368 : vector<32x256xf32>
    %c0_339 = arith.constant 0 : index
    %c17_340 = arith.constant 17 : index
    %370 = vector.load %arg11[%c0_339, %c17_340] : memref<32x290xf32, #tpu.memory_space<vmem>>, vector<32x256xf32>
    %c4_341 = arith.constant 4 : index
    %c0_342 = arith.constant 0 : index
    %c0_343 = arith.constant 0 : index
    %371 = vector.load %arg8[%c4_341, %c0_342, %c0_343] : memref<9x32x32xf32, #tpu.memory_space<vmem>>, vector<1x32x32xf32>
    %372 = vector.shape_cast %371 : vector<1x32x32xf32> to vector<32x32xf32>
    %cst_344 = arith.constant dense<0.000000e+00> : vector<32x256xf32>
    %373 = tpu.matmul %372, %370, %cst_344 {dimension_numbers = #tpu.dot_dimension_numbers<[1], [0], [0], [1], [0, 0, 1, 1], [], []>} : vector<32x32xf32>, vector<32x256xf32>, vector<32x256xf32> -> vector<32x256xf32>
    %374 = arith.addf %369, %373 : vector<32x256xf32>
    %c0_345 = arith.constant 0 : index
    %c18_346 = arith.constant 18 : index
    %375 = vector.load %arg11[%c0_345, %c18_346] : memref<32x290xf32, #tpu.memory_space<vmem>>, vector<32x256xf32>
    %376 = vector.broadcast %26 : vector<1x256xf32> to vector<32x256xf32>
    %377 = arith.mulf %375, %376 : vector<32x256xf32>
    %c5_347 = arith.constant 5 : index
    %c0_348 = arith.constant 0 : index
    %c0_349 = arith.constant 0 : index
    %378 = vector.load %arg8[%c5_347, %c0_348, %c0_349] : memref<9x32x32xf32, #tpu.memory_space<vmem>>, vector<1x32x32xf32>
    %379 = vector.shape_cast %378 : vector<1x32x32xf32> to vector<32x32xf32>
    %cst_350 = arith.constant dense<0.000000e+00> : vector<32x256xf32>
    %380 = tpu.matmul %379, %377, %cst_350 {dimension_numbers = #tpu.dot_dimension_numbers<[1], [0], [0], [1], [0, 0, 1, 1], [], []>} : vector<32x32xf32>, vector<32x256xf32>, vector<32x256xf32> -> vector<32x256xf32>
    %381 = arith.addf %374, %380 : vector<32x256xf32>
    %c0_351 = arith.constant 0 : index
    %c32_352 = arith.constant 32 : index
    %382 = vector.load %arg11[%c0_351, %c32_352] : memref<32x290xf32, #tpu.memory_space<vmem>>, vector<32x256xf32>
    %383 = vector.broadcast %22 : vector<1x256xf32> to vector<32x256xf32>
    %384 = arith.mulf %382, %383 : vector<32x256xf32>
    %c6_353 = arith.constant 6 : index
    %c0_354 = arith.constant 0 : index
    %c0_355 = arith.constant 0 : index
    %385 = vector.load %arg8[%c6_353, %c0_354, %c0_355] : memref<9x32x32xf32, #tpu.memory_space<vmem>>, vector<1x32x32xf32>
    %386 = vector.shape_cast %385 : vector<1x32x32xf32> to vector<32x32xf32>
    %cst_356 = arith.constant dense<0.000000e+00> : vector<32x256xf32>
    %387 = tpu.matmul %386, %384, %cst_356 {dimension_numbers = #tpu.dot_dimension_numbers<[1], [0], [0], [1], [0, 0, 1, 1], [], []>} : vector<32x32xf32>, vector<32x256xf32>, vector<32x256xf32> -> vector<32x256xf32>
    %388 = arith.addf %381, %387 : vector<32x256xf32>
    %c0_357 = arith.constant 0 : index
    %c33_358 = arith.constant 33 : index
    %389 = vector.load %arg11[%c0_357, %c33_358] : memref<32x290xf32, #tpu.memory_space<vmem>>, vector<32x256xf32>
    %c7_359 = arith.constant 7 : index
    %c0_360 = arith.constant 0 : index
    %c0_361 = arith.constant 0 : index
    %390 = vector.load %arg8[%c7_359, %c0_360, %c0_361] : memref<9x32x32xf32, #tpu.memory_space<vmem>>, vector<1x32x32xf32>
    %391 = vector.shape_cast %390 : vector<1x32x32xf32> to vector<32x32xf32>
    %cst_362 = arith.constant dense<0.000000e+00> : vector<32x256xf32>
    %392 = tpu.matmul %391, %389, %cst_362 {dimension_numbers = #tpu.dot_dimension_numbers<[1], [0], [0], [1], [0, 0, 1, 1], [], []>} : vector<32x32xf32>, vector<32x256xf32>, vector<32x256xf32> -> vector<32x256xf32>
    %393 = arith.addf %388, %392 : vector<32x256xf32>
    %c0_363 = arith.constant 0 : index
    %c34_364 = arith.constant 34 : index
    %394 = vector.load %arg11[%c0_363, %c34_364] : memref<32x290xf32, #tpu.memory_space<vmem>>, vector<32x256xf32>
    %395 = vector.broadcast %26 : vector<1x256xf32> to vector<32x256xf32>
    %396 = arith.mulf %394, %395 : vector<32x256xf32>
    %c8_365 = arith.constant 8 : index
    %c0_366 = arith.constant 0 : index
    %c0_367 = arith.constant 0 : index
    %397 = vector.load %arg8[%c8_365, %c0_366, %c0_367] : memref<9x32x32xf32, #tpu.memory_space<vmem>>, vector<1x32x32xf32>
    %398 = vector.shape_cast %397 : vector<1x32x32xf32> to vector<32x32xf32>
    %cst_368 = arith.constant dense<0.000000e+00> : vector<32x256xf32>
    %399 = tpu.matmul %398, %396, %cst_368 {dimension_numbers = #tpu.dot_dimension_numbers<[1], [0], [0], [1], [0, 0, 1, 1], [], []>} : vector<32x32xf32>, vector<32x256xf32>, vector<32x256xf32> -> vector<32x256xf32>
    %400 = arith.addf %393, %399 : vector<32x256xf32>
    %401 = vector.broadcast %341 : vector<32x1xf32> to vector<32x256xf32>
    %402 = arith.addf %400, %401 : vector<32x256xf32>
    %403 = arith.addf %402, %28 : vector<32x256xf32>
    %c0_369 = arith.constant 0 : index
    %c0_370 = arith.constant 0 : index
    %c0_371 = arith.constant 0 : index
    %404 = vector.load %arg10[%c0_369, %c0_370, %c0_371] : memref<1x32x256xf32, #tpu.memory_space<vmem>>, vector<1x32x256xf32>
    %405 = vector.shape_cast %404 : vector<1x32x256xf32> to vector<32x256xf32>
    %406 = vector.shape_cast %403 : vector<32x256xf32> to vector<1x32x256xf32>
    tpu.vector_store %arg10[%c0_369, %c0_370, %c0_371], %406 {strides = array<i32>} : memref<1x32x256xf32, #tpu.memory_space<vmem>>, vector<1x32x256xf32>,
    return
  }
  func.func @transform_0(%arg0: i32) -> (i32, i32, i32) {
    %c0_i32 = arith.constant 0 : i32
    %c0_i32_0 = arith.constant 0 : i32
    %c0_i32_1 = arith.constant 0 : i32
    return %arg0, %c0_i32, %c0_i32_0 : i32, i32, i32
  }
  func.func @transform_1(%arg0: i32) -> (i32, i32, i32, i32) {
    %c0_i32 = arith.constant 0 : i32
    %c0_i32_0 = arith.constant 0 : i32
    %c0_i32_1 = arith.constant 0 : i32
    %c0_i32_2 = arith.constant 0 : i32
    %c0_i32_3 = arith.constant 0 : i32
    return %c0_i32, %c0_i32_0, %c0_i32_1, %c0_i32_2 : i32, i32, i32, i32
  }
  func.func @transform_2(%arg0: i32) -> (i32, i32, i32) {
    %c0_i32 = arith.constant 0 : i32
    %c0_i32_0 = arith.constant 0 : i32
    %c0_i32_1 = arith.constant 0 : i32
    %c0_i32_2 = arith.constant 0 : i32
    return %c0_i32, %c0_i32_0, %c0_i32_1 : i32, i32, i32
  }
  func.func @transform_3(%arg0: i32) -> (i32, i32, i32) {
    %c0_i32 = arith.constant 0 : i32
    %c0_i32_0 = arith.constant 0 : i32
    %c0_i32_1 = arith.constant 0 : i32
    %c0_i32_2 = arith.constant 0 : i32
    return %c0_i32, %c0_i32_0, %c0_i32_1 : i32, i32, i32
  }
  func.func @transform_4(%arg0: i32) -> (i32, i32, i32) {
    %c0_i32 = arith.constant 0 : i32
    %c0_i32_0 = arith.constant 0 : i32
    %c0_i32_1 = arith.constant 0 : i32
    %c0_i32_2 = arith.constant 0 : i32
    return %c0_i32, %c0_i32_0, %c0_i32_1 : i32, i32, i32
  }
  func.func @transform_5(%arg0: i32) -> (i32, i32, i32) {
    %c0_i32 = arith.constant 0 : i32
    %c0_i32_0 = arith.constant 0 : i32
    %c0_i32_1 = arith.constant 0 : i32
    %c0_i32_2 = arith.constant 0 : i32
    return %c0_i32, %c0_i32_0, %c0_i32_1 : i32, i32, i32
  }
  func.func @transform_6(%arg0: i32) -> (i32, i32, i32) {
    %c0_i32 = arith.constant 0 : i32
    %c0_i32_0 = arith.constant 0 : i32
    %c0_i32_1 = arith.constant 0 : i32
    %c0_i32_2 = arith.constant 0 : i32
    return %c0_i32, %c0_i32_0, %c0_i32_1 : i32, i32, i32
  }
  func.func @transform_7(%arg0: i32) -> (i32, i32, i32) {
    %c0_i32 = arith.constant 0 : i32
    %c0_i32_0 = arith.constant 0 : i32
    %c0_i32_1 = arith.constant 0 : i32
    %c0_i32_2 = arith.constant 0 : i32
    return %c0_i32, %c0_i32_0, %c0_i32_1 : i32, i32, i32
  }
  func.func @transform_8(%arg0: i32) -> (i32, i32) {
    %c0_i32 = arith.constant 0 : i32
    %c0_i32_0 = arith.constant 0 : i32
    %c0_i32_1 = arith.constant 0 : i32
    return %c0_i32, %c0_i32_0 : i32, i32
  }
  func.func @transform_9(%arg0: i32) -> (i32, i32, i32) {
    %c0_i32 = arith.constant 0 : i32
    %c0_i32_0 = arith.constant 0 : i32
    %c0_i32_1 = arith.constant 0 : i32
    return %arg0, %c0_i32, %c0_i32_0 : i32, i32, i32
  }
}

</mosaic_0001>

<bundles_post_ra>
// kernel: tpu_custom_call.1
= control target key start
LH: loop header
LB: loop body
LE: loop exit
PB: predicated region body
PF: predicated region fallthrough
CT: control target
= control target key end

     0   :  { %s14578_s0 = inlined_call_operand.hbm [shape: f32[2,32,256], index: 0, kind: input, shape index: {}]   ;;  %s14579_s1 = inlined_call_operand.hbm [shape: f32[4,9,32,32], index: 1, kind: input, shape index: {}]   ;;  %s14580_s2 = inlined_call_operand.vmem [shape: f32[4,32,1], index: 2, kind: input, shape index: {}]   ;;  %s14581_s3 = inlined_call_operand.vmem [shape: f32[2,4,32], index: 3, kind: input, shape index: {}]   ;;  %s14582_s4 = inlined_call_operand.vmem [shape: f32[2,4,1], index: 4, kind: input, shape index: {}]   ;;  %s14583_s5 = inlined_call_operand.vmem [shape: f32[2,32,4], index: 5, kind: input, shape index: {}]   ;;  %s14584_s6 = inlined_call_operand.vmem [shape: f32[2,32,1], index: 6, kind: input, shape index: {}]   ;;  %s14585_s7 = inlined_call_operand.vmem [shape: f32[9,32,32], index: 7, kind: input, shape index: {}]   ;;  %s14586_s8 = inlined_call_operand.vmem [shape: f32[32,1], index: 8, kind: input, shape index: {}]   ;;  %s14587_s9 = inlined_call_operand.hbm [shape: f32[2,32,256], index: 9, kind: output, shape index: {}]  }
   0x1   :  { %14618 = sst [smem:[#allocation17_spill]] %s14578_s0 }
   0x2   :  { %14619 = sst [smem:[#allocation18_spill]] %s14579_s1 }
   0x3   :  { %14 = vsyncpa [#allocation4], 0 }
   0x4   :  { %16 = vsyncpa [#allocation4 + $0x1], 0 }
   0x5   :  { %17 = vsyncpa [#allocation7], 0 }
   0x6   :  { %18 = vsyncpa [#allocation5], 0 }
   0x7   :  { %20 = vsyncpa [#allocation5 + $0x1], 0  ;;  %s11562_s30 = smov 0   ;;  %s11564_s10 = smov 0  }
   0x8   :  { %s11566_s11 = smov 0   ;;  %s11568_s12 = smov 0  }
   0x9 LB: > { %14620 = sst [smem:[#allocation12_spill]] %s11476_s10  ;;  %s11583_s13 = sadd.s32 4294967295, %s11484_s12   ;;  %s11484_s12 = sphi %s11568_s12, %s14658_s12   ;;  %s11480_s11 = sphi %s11566_s11, %s14661_s11   ;;  %s11476_s10 = sphi %s11564_s10, %s14660_s10   ;;  %s11472_s30 = sphi %s11562_s30, %s14659_s30  }
   0xa   : > { %14621 = sst [smem:[#allocation13_spill]] %s11480_s11  ;;  %s8971_s14 = sadd.s32 4294967294, %s11484_s12  }
   0xb   : > { %p46_p0 = scmp.ne.s32.totalorder %s11476_s10, %s11472_s30  ;;  %p14588_p1 = scmp.eq.s32.totalorder %s11583_s13, 0 }
   0xc   : > { %p244_p3 = scmp.eq.s32.totalorder %s8971_s14, 1  ;;  %p8972_p5 = scmp.ge.s32.totalorder %s11484_s12, 1 }
   0xd   : > { %p11592_p4 = por %p14588_p1, %p46_p0  ;;  %p251_p7 = scmp.lt.s32.totalorder %s11484_s12, 3 }
   0xe   : > { %p11597_p6 = por %p244_p3, %p46_p0  ;;  %s11486_s18 = smov [#allocation6]  }
   0xf   : > { %s14622_s15 = scalar_select %p11592_p4, 1, 0 }
  0x10   : > { %s14623_s16 = scalar_select %p11597_p6, 1, 0 }
  0x11   : > { %p11602_p8 = pnand %p8972_p5, %p251_p7  ;;  %s263_s19 = sshll.u32 %s11486_s18, 4  ;;  %s11606_s19 = int_to_ptr.vmem [resolvable:$true] %s263_s19 }
  0x12   : > { %14624 = sst [smem:[#allocation14_spill]] %s14623_s16  ;;  %s11618_s21 = sadd.s32 1, %s11484_s12  }
  0x13   : > { %s14625_s17 = scalar_select %p11602_p8, 1, 0 }
  0x14   : > { %p10009_p9 = pneg %p11602_p8  ;;  %14627 = sst [smem:[#allocation15_spill]] %s11618_s21 }
  0x15   : > { %s33_s22 = sadd.s32 1, %s11480_s11  ;;  %s30_s23 = ssub.s32 %s11484_s12, %s11618_s21 }
  0x16   : > { %p11613_p11 = pnand %p10009_p9, %p14588_p1  ;;  %s14628_s1 = sld [smem:[#allocation18_spill]] }
  0x18   : > { %p11358_p13 = pneg %p11613_p11 }
  0x1c   : > { %s11356_s26 = scalar_lea.hbm %s14628_s1, 18432 }
  0x1d   : > { %p11357_p12 = scmp.ne.s32.totalorder %s14628_s1, %s11356_s26  ;;  %p11363_p5 = scmp.lt.u32.totalorder %s11356_s26, %s14628_s1 }
  0x1f   : > { %p11359_p0 = pnand %p11358_p13, %p11357_p12 }
  0x21   : > { %p11360_p3 = pneg %p11359_p0 }
  0x23   : > { %p11365_p7 = pnand %p11363_p5, %p11360_p3 }
  0x25   : > { %11368 = shalt.err (!%p11365_p7)
}
  0x26   : > { %s11369_s18 = scalar_lea.vmem %s11606_s19, 18432  ;;  %p11377_p2 = scmp.lt.s32.totalorder %s11606_s19, %s11606_s19 }
  0x27   : > { %p11370_p9 = scmp.ne.s32.totalorder %s11606_s19, %s11369_s18  ;;  %p11378_p6 = scmp.lt.s32.totalorder %s11369_s18, %s11369_s18 }
  0x29   : > { %p11372_p10 = pnand %p11370_p9, %p11358_p13  ;;  %p11379_p4 = por %p11378_p6, %p11377_p2 }
  0x2b   : > { %p11373_p1 = pneg %p11372_p10 }
  0x2d   : > { %p11380_p8 = pnand %p11379_p4, %p11373_p1 }
  0x2f   : > { %11383 = shalt.err (!%p11380_p8)
}
  0x30   : > { %s11487_s24 = smov 128   ;;  %s11488_s25 = smov 8  }
  0x31   : > { %10012 = dma.hbm_to_vmem [thread:$0]  (!%p11613_p11), %s14628_s1, 18432, %s11606_s19, [#allocation7], %s11487_s24, %s11487_s24, %s11488_s25  }
  0x32   : > { %p31_p2 = scmp.eq.s32.totalorder %s30_s23, 0  ;;  %p40_p1 = scmp.ne.s32.totalorder %s11480_s11, %s11476_s10 }
  0x33   : > { %p41_p4 = scmp.eq.s32.totalorder %s11484_s12, 0  ;;  %p10022_p6 = scmp.lt.s32.totalorder %s11484_s12, 2 }
  0x34   : > { %s11649_s28 = scalar_select %p31_p2, %s11480_s11, %s33_s22  }
  0x35   : > { %p42_p8 = por %p41_p4, %p40_p1  ;;  %p14630_p10 = scmp.eq.s32.totalorder %s11583_s13, 1 }
  0x36   : > { %14629 = sst [smem:[#allocation16_spill]] %s11649_s28  ;;  %s298_s14 = sand.u32 1, %s11480_s11  }
  0x37   : > { %p11653_p12 = por %p14630_p10, %p40_p1  ;;  %s9245_s18 = sshll.u32 %s11484_s12, 10 }
  0x38   : > { %s8975_s21 = sshll.u32 %s298_s14, 6  ;;  %s14632_s0 = sld [smem:[#allocation17_spill]] }
  0x39   : > { %s302_s19 = scalar_lea.vmem [#allocation3], %s8975_s21  ;;  %p11664_p11 = pnand %p10022_p6, %p42_p8 }
  0x3a   : > { %s309_s22 = sshll.u32 %s302_s19, 4  ;;  %s11670_s24 = scalar_lea.sflag [#allocation4], %s298_s14  ;;  %s11668_s22 = int_to_ptr.vmem [resolvable:$true] %s309_s22 }
  0x3b   : > { %p11386_p0 = pneg %p11664_p11 }
  0x3e   : > { %s11662_s26 = scalar_lea.hbm %s14632_s0, %s9245_s18  ;;  %s11389_s27 = scalar_lea.hbm %s14632_s0, 2048 }
  0x3f   : > { %s11384_s25 = scalar_lea.hbm %s11662_s26, 1024  ;;  %p11390_p7 = scmp.lt.u32.totalorder %s11662_s26, %s14632_s0 }
  0x40   : > { %p11385_p13 = scmp.ne.s32.totalorder %s11662_s26, %s11384_s25  ;;  %p11391_p9 = scmp.lt.u32.totalorder %s11389_s27, %s11384_s25 }
  0x41   : > { %p11393_p1 = scmp.lt.u32.totalorder %s11384_s25, %s11662_s26 }
  0x42   : > { %p11387_p3 = pnand %p11386_p0, %p11385_p13  ;;  %p11392_p2 = por %p11391_p9, %p11390_p7 }
  0x44   : > { %p11388_p5 = pneg %p11387_p3  ;;  %p11394_p4 = por %p11393_p1, %p11392_p2 }
  0x46   : > { %p11395_p6 = pnand %p11394_p4, %p11388_p5 }
  0x48   : > { %11398 = shalt.err (!%p11395_p6)
}
  0x49   : > { %s11399_s14 = scalar_lea.vmem %s11668_s22, 1024  ;;  %s11489_s19 = smov [#allocation3]  }
  0x4a   : > { %p11400_p8 = scmp.ne.s32.totalorder %s11668_s22, %s11399_s14  ;;  %s11404_s16 = sshll.u32 %s11489_s19, 4  ;;  %s11405_s16 = int_to_ptr.vmem [resolvable:$false] %s11404_s16 }
  0x4b   : > { %s11406_s21 = scalar_lea.vmem %s11405_s16, 2048  ;;  %p11407_p3 = scmp.lt.s32.totalorder %s11668_s22, %s11405_s16 }
  0x4c   : > { %p11402_p10 = pnand %p11400_p8, %p11386_p0  ;;  %p11408_p7 = scmp.lt.s32.totalorder %s11406_s21, %s11399_s14 }
  0x4e   : > { %p11403_p13 = pneg %p11402_p10  ;;  %p11409_p9 = por %p11408_p7, %p11407_p3 }
  0x50   : > { %p11410_p2 = pnand %p11409_p9, %p11403_p13 }
  0x52   : > { %11413 = shalt.err (!%p11410_p2)
}
  0x53   : > { %s11490_s25 = smov 256   ;;  %s11491_s27 = smov 16  }
  0x54   : > { %10016 = dma.hbm_to_vmem [thread:$0]  (!%p11664_p11), %s11662_s26, 1024, %s11668_s22, %s11670_s24, %s11490_s25, %s11490_s25, %s11491_s27  }
  0x55   : > { %p14634_p0 = scmp.ne.s32.totalorder %s14625_s17, 0 }
  0x56   : > { %s11701_s18 = sand.u32 (!%p14634_p0), 1, %s11476_s10   ;;  %p14635_p5 = scmp.ne.s32.totalorder (!%p14634_p0), %s14622_s15, 0 }
  0x57   : > { %321 = sbr.rel (%p14634_p0) target bundleno = 4626 (0x1212), region = 56  ;;  %s14595_s20 = sshll.u32 (!%p14634_p0), %s11701_s18, 6 }
  0x58   : > { %s324_s14 = scalar_lea.sflag (!%p14634_p0), [#allocation4], %s11701_s18  ;;  %s11707_s19 = scalar_lea.vmem (!%p14634_p0), [#allocation3], %s14595_s20 }
  0x5e   : > { %11459 = dma.done.wait (%p14635_p5), %s324_s14, 1024  }
  0x5f   : > { %11461 = vsyncadd (%p14635_p5), %s324_s14, 4294966272  ;;  %p14636_p11 = scmp.eq.s32.totalorder %s11583_s13, 0 }
  0x61   : > { %11463 = dma.done.wait (%p14636_p11), [#allocation7], 18432   ;;  %p14637_p1 = pmov %p14636_p11 }
  0x62   : > { %v379_v0 = vlaneseq  ;;  %v14616_v1 = vmov 0.0   ;;  %vm368_vm0 = vcmask 277504   ;;  %v420_v4 = vld [vmem:[%s11707_s19 + $0x10] sm:$0xff]  ;;  %v418_v5 = vld [vmem:[%s11707_s19] sm:$0xff]  ;;  %s14612_s15 = smov 17   ;;  %v421_v6 = vld [vmem:[%s11707_s19 + $0x18] sm:$0xff] }
  0x63   : > { %11465 = vsyncadd (%p14637_p1), [#allocation7], 4294948864  ;;  %366 = vst [vmem:[#allocation2] sm:$0xff] %v14616_v1  ;;  %643 = vmatprep.mubr.f32.mxu1 %v14616_v1  ;;  %1271 = vmatprep.mubr.f32.mxu0 %v14616_v1  ;;  %v419_v7 = vld [vmem:[%s11707_s19 + $0x8] sm:$0xff]  ;;  %v422_v11 = vld [vmem:[%s11707_s19 + $0x20] sm:$0xff]  ;;  %s11494_s17 = smov 32  }
  0x64   : > { %370 = vst [vmem:[#allocation2 + $0x18] sm:$0xff] %v14616_v1  ;;  %373 = vst [vmem:[#allocation2 + $0x30] sm:$0xff] %v14616_v1  ;;  %v380_v2 = vand.u32 127, %v379_v0  ;;  %442 = vrot.lane.b32.xlu1 %v420_v4, %s14612_s15  ;;  %438 = vrot.lane.b32.xlu0 %v418_v5, %s14612_s15  ;;  %v423_v10 = vld [vmem:[%s11707_s19 + $0x28] sm:$0xff]  ;;  %v425_v12 = vld [vmem:[%s11707_s19 + $0x38] sm:$0xff]  ;;  %s11495_s26 = smov 18  }
  0x65   : > { %376 = vst [vmem:[#allocation2 + $0x48] sm:$0xff] %v14616_v1  ;;  %372 = vst.msk [vmem:[#allocation2 + $0x28] sm:$0xff] %vm368_vm0, %v14616_v1  ;;  %v424_v13 = vld [vmem:[%s11707_s19 + $0x30] sm:$0xff]  ;;  %s14594_s22 = smov 16   ;;  %s11497_s23 = smov 2   ;;  %vm471_vm5 = vcmask 1047688  }
  0x66   : > { %369 = vst.msk [vmem:[#allocation2 + $0x10] sm:$0xff] %vm368_vm0, %v14616_v1  ;;  %375 = vst.msk [vmem:[#allocation2 + $0x40] sm:$0xff] %vm368_vm0, %v14616_v1  ;;  %v381_v3 = vadd.s32 128, %v380_v2  ;;  %v386_v8 = vand.u32 15, %v380_v2  ;;  %s11498_s24 = smov 34   ;;  %vm454_vm6 = vcmask 138240  }
  0x67   : > { %378 = vst.msk [vmem:[#allocation2 + $0x58] sm:$0xff] %vm368_vm0, %v14616_v1  ;;  %s14602_s16 = smov 111   ;;  %s14610_s21 = smov 127   ;;  %vm1308_vm7 = vcmask 146432   ;;  %vm566_vm8 = vcmask 261120   ;;  %vm775_vm9 = vcmask 15360  }
  0x68   : > { %v393_v9 = vand.u32 15, %v381_v3  ;;  %444 = vrot.lane.b32.xlu1 %v421_v6, %s14612_s15  ;;  %440 = vrot.lane.b32.xlu0 %v419_v7, %s14612_s15  ;;  %vm406_vm1 = vcmp.ge.s32.totalorder %v386_v8, 1  ;;  %vm412_vm3 = vcmp.le.s32.totalorder %v386_v8, 14  ;;  %s14600_s25 = smov 110   ;;  %s14596_s27 = smov 95   ;;  %vm965_vm10 = vcmask 130048  }
  0x69   : > { %v11746_v14 = vsel %vm406_vm1, 1.0, %v14616_v1  ;;  %v8984_v16 = vsel %vm412_vm3, 1.0, %v14616_v1  ;;  %s14598_s14 = smov 96   ;;  %vm549_vm11 = vcmask 1039360   ;;  %vm1178_vm12 = vcmask 908288   ;;  %s14638_s20 = smov 111  }
  0x6a   : > { %vm407_vm2 = vcmp.ge.s32.totalorder %v393_v9, 1  ;;  %vm413_vm4 = vcmp.le.s32.totalorder %v393_v9, 14  ;;  %vm1366_vm13 = vcmask 900096   ;;  %vm1708_vm14 = vcmask 777216   ;;  %s9246_s11 = sshll.u32 %s11583_s13, 10 }
  0x6b   : > { %v11749_v15 = vsel %vm407_vm2, 1.0, %v14616_v1  ;;  %v8985_v17 = vsel %vm413_vm4, 1.0, %v14616_v1  ;;  %vm1553_vm15 = vcmask 785408   ;;  %vm1023_vm1 = vcmask 916480  }
  0x6c   : > { %448 = vrot.lane.b32.xlu1 %v423_v10, %s14612_s15  ;;  %446 = vrot.lane.b32.xlu0 %v422_v11, %s14612_s15  ;;  %v10086_v18 = vpack.i.bf16 %v11749_v15, %v11746_v14  ;;  %v10081_v19 = vpack.i.bf16 %v8985_v17, %v8984_v16  ;;  %vm1895_vm2 = vcmask 769024   ;;  %vm11509_vm3 = vmmov 0  }
  0x6d   : > { %vm3725_vm4 = vcmask 31744  }
  0x70   : > { %452 = vrot.lane.b32.xlu1 %v425_v12, %s14612_s15  ;;  %450 = vrot.lane.b32.xlu0 %v424_v13, %s14612_s15 }
  0x74   : > { %10087 = vrot.lane.b32.xlu1 %v10086_v18, %s11494_s17  ;;  %10082 = vrot.lane.b32.xlu0 %v10081_v19, %s11495_s26  ;;  %s14608_s17 = smov 126   ;;  %s14606_s26 = smov 112  }
  0x78   : > { %10097 = vrot.lane.b32.xlu1 %v10086_v18, %s14594_s22  ;;  %10092 = vrot.lane.b32.xlu0 %v10081_v19, %s11497_s23  ;;  %s14604_s23 = smov 94   ;;  %s14639_s22 = smov 110  }
  0x7c   : > { %10102 = vrot.lane.b32.xlu0 %v10081_v19, %s11498_s24  ;;  %s14646_s24 = smov 112  }
  0xd6   : > { %v443_v20 = vpop.permute.xlu1 %442  ;;  %v439_v21 = vpop.permute.xlu0 %438 }
  0xd7   : > { %475 = vst.msk [vmem:[#allocation2 + $0x18] sm:$0xff] %vm471_vm5, %v443_v20  ;;  %472 = vst.msk [vmem:[#allocation2] sm:$0xff] %vm471_vm5, %v439_v21 }
  0xda   : > { %v445_v22 = vpop.permute.xlu1 %444  ;;  %v441_v23 = vpop.permute.xlu0 %440 }
  0xdb   : > { %v11761_v24 = vsel %vm454_vm6, %v443_v20, %v445_v22  ;;  %477 = vst.msk [vmem:[#allocation2 + $0x28] sm:$0xff] %vm454_vm6, %v445_v22  ;;  %v11765_v25 = vsel %vm454_vm6, %v439_v21, %v441_v23  ;;  %474 = vst.msk [vmem:[#allocation2 + $0x10] sm:$0xff] %vm454_vm6, %v441_v23 }
  0xdc   : > { %v11770_v26 = vmul.f32 %v11749_v15, %v11765_v25  ;;  %v11774_v27 = vmul.f32 %v11749_v15, %v11761_v24 }
  0xde   : > { %v449_v28 = vpop.permute.xlu1 %448  ;;  %v447_v29 = vpop.permute.xlu0 %446  ;;  %v11776_v30 = vld [vmem:[#allocation2] sm:$0xff]  ;;  %v11778_v31 = vld [vmem:[#allocation2 + $0x18] sm:$0xff]  ;;  %v9313_v32 = vpack.c.bf16 %v11774_v27, %v11770_v26  ;;  %v510_v27 = vld [vmem:[#allocation6 + $0x28] sm:$0xff] }
  0xdf   : > { %480 = vst.msk [vmem:[#allocation2 + $0x40] sm:$0xff] %vm454_vm6, %v449_v28  ;;  %v11786_v33 = vpack.i.bf16 %v11778_v31, %v11776_v30  ;;  %v11789_v34 = vsel %vm454_vm6, %v447_v29, %v449_v28  ;;  %v1150_v26 = vld [vmem:[#allocation6 + $0x80] sm:$0xff] }
  0xe0   : > { %478 = vst.msk [vmem:[#allocation2 + $0x30] sm:$0xff] %vm471_vm5, %v447_v29  ;;  %v11802_v38 = vmul.f32 %v11749_v15, %v11789_v34 }
  0xe1   : > { %10112 = vrot.lane.b32.xlu0 %v11786_v33, %s14602_s16  ;;  %10107 = vrot.lane.b32.xlu1 %v11786_v33, %s14610_s21 }
  0xe2   : > { %v453_v35 = vpop.permute.xlu1 %452  ;;  %v451_v36 = vpop.permute.xlu0 %450  ;;  %v11818_v44 = vld [vmem:[#allocation2 + $0x28] sm:$0xff]  ;;  %v11820_v45 = vld [vmem:[#allocation2 + $0x10] sm:$0xff] }
  0xe3   : > { %483 = vst.msk [vmem:[#allocation2 + $0x58] sm:$0xff] %vm454_vm6, %v453_v35  ;;  %v11797_v37 = vsel %vm454_vm6, %v451_v36, %v453_v35  ;;  %v11828_v46 = vpack.i.bf16 %v11818_v44, %v11761_v24  ;;  %v10126_v47 = vpack.i.bf16 %v11820_v45, %v11765_v25 }
  0xe4   : > { %481 = vst.msk [vmem:[#allocation2 + $0x48] sm:$0xff] %vm471_vm5, %v451_v36  ;;  %v11806_v39 = vmul.f32 %v11749_v15, %v11797_v37 }
  0xe6   : > { %v9317_v40 = vpack.c.bf16 %v11806_v39, %v11802_v38  ;;  %v11837_v49 = vld [vmem:[#allocation2 + $0x40] sm:$0xff]  ;;  %v10083_v50 = vpop.permute.xlu0 %10082  ;;  %v10088_v54 = vpop.permute.xlu1 %10087  ;;  %v512_v38 = vld [vmem:[#allocation6 + $0x38] sm:$0xff] }
  0xe7   : > { %v11812_v42 = vld [vmem:[#allocation2 + $0x30] sm:$0xff]  ;;  %v11848_v52 = vpack.i.bf16 %v11837_v49, %v11789_v34  ;;  %v11850_v53 = vunpack.i.l.bf16 %v10083_v50  ;;  %v11858_v57 = vunpack.i.l.bf16 %v10088_v54  ;;  %v11866_v59 = vunpack.i.h.bf16 %v10083_v50 }
  0xe9   : > { %v1319_v58 = vmul.f32 %v11850_v53, %v11812_v42  ;;  %v1313_v60 = vmul.f32 %v11850_v53, %v11776_v30  ;;  %v1316_v0 = vmul.f32 %v11850_v53, %v11778_v31  ;;  %v1506_v2 = vmul.f32 %v11858_v57, %v11812_v42 }
  0xea   : > { %v11835_v48 = vld [vmem:[#allocation2 + $0x58] sm:$0xff]  ;;  %v10093_v56 = vpop.permute.xlu0 %10092  ;;  %v1500_v3 = vmul.f32 %v11858_v57, %v11776_v30  ;;  %v1503_v4 = vmul.f32 %v11858_v57, %v11778_v31  ;;  %v11886_v5 = vsel %vm1308_vm7, %v11850_v53, %v11866_v59  ;;  %v1318_v11 = vmul.f32 %v11866_v59, %v11818_v44 }
  0xeb   : > { %v11810_v41 = vld [vmem:[#allocation2 + $0x48] sm:$0xff]  ;;  %v11844_v51 = vpack.i.bf16 %v11835_v48, %v11797_v37  ;;  %v11870_v61 = vunpack.i.l.bf16 %v10093_v56  ;;  %v10171_v7 = vpack.i.bf16 %v1316_v0, %v1313_v60  ;;  %v1317_v10 = vmul.f32 %v11886_v5, %v11761_v24 }
  0xec   : > { %v11816_v43 = vpack.i.bf16 %v11810_v41, %v11812_v42  ;;  %v1322_v55 = vmul.f32 %v11850_v53, %v11810_v41  ;;  %v1509_v63 = vmul.f32 %v11858_v57, %v11810_v41  ;;  %v10181_v13 = vpack.i.bf16 %v1503_v4, %v1500_v3 }
  0xed   : > { %v786_v8 = vmul.f32 %v11870_v61, %v11812_v42  ;;  %v789_v9 = vmul.f32 %v11870_v61, %v11810_v41  ;;  %v780_v16 = vmul.f32 %v11870_v61, %v11776_v30  ;;  %v783_v17 = vmul.f32 %v11870_v61, %v11778_v31 }
  0xee   : > { %10122 = vrot.lane.b32.xlu0 %v11816_v43, %s14602_s16  ;;  %10117 = vrot.lane.b32.xlu1 %v11816_v43, %s14610_s21  ;;  %v10176_v62 = vpack.i.bf16 %v1322_v55, %v1319_v58  ;;  %v10186_v6 = vpack.i.bf16 %v1509_v63, %v1506_v2  ;;  %v10206_v18 = vpack.i.bf16 %v1318_v11, %v1317_v10  ;;  %v11934_v60 = vunpack.i.h.bf16 %v10093_v56 }
  0xef   : > { %v10196_v12 = vpack.i.bf16 %v789_v9, %v786_v8  ;;  %v1320_v19 = vmul.f32 %v11886_v5, %v11789_v34  ;;  %v10191_v20 = vpack.i.bf16 %v783_v17, %v780_v16  ;;  %v1321_v21 = vmul.f32 %v11866_v59, %v11837_v49  ;;  %v10098_v9 = vpop.permute.xlu1 %10097 }
  0xf0   : > { %v1314_v22 = vmul.f32 %v11886_v5, %v11765_v25  ;;  %v1315_v23 = vmul.f32 %v11866_v59, %v11820_v45  ;;  %v1323_v35 = vmul.f32 %v11886_v5, %v11797_v37  ;;  %v1324_v36 = vmul.f32 %v11866_v59, %v11835_v48 }
  0xf1   : > { %v10211_v28 = vpack.i.bf16 %v1321_v21, %v1320_v19  ;;  %v785_v2 = vmul.f32 %v11934_v60, %v11818_v44  ;;  %v788_v8 = vmul.f32 %v11934_v60, %v11837_v49  ;;  %v11975_v16 = vunpack.i.h.bf16 %v10098_v9 }
  0xf2   : > { %10132 = vrot.lane.b32.xlu0 %v11828_v46, %s14610_s21  ;;  %10127 = vrot.lane.b32.xlu1 %v10126_v47, %s14610_s21  ;;  %v10201_v29 = vpack.i.bf16 %v1315_v23, %v1314_v22  ;;  %v10221_v50 = vpack.i.bf16 %v1324_v36, %v1323_v35  ;;  %v11977_v17 = vunpack.i.l.bf16 %v10098_v9  ;;  %v791_v22 = vmul.f32 %v11934_v60, %v11835_v48 }
  0xf3   : > { %vm3738_vm7 = vcmask 1043456  }
  0xf4   : > { %v970_v36 = vmul.f32 %v11977_v17, %v11776_v30 }
  0xf6   : > { %10142 = vrot.lane.b32.xlu0 %v11828_v46, %s14602_s16  ;;  %10137 = vrot.lane.b32.xlu1 %v10126_v47, %s14602_s16 }
  0xfa   : > { %10152 = vrot.lane.b32.xlu0 %v11844_v51, %s14610_s21  ;;  %10147 = vrot.lane.b32.xlu1 %v11848_v52, %s14610_s21 }
  0xfe   : > { %10162 = vrot.lane.b32.xlu0 %v11844_v51, %s14602_s16  ;;  %10157 = vrot.lane.b32.xlu1 %v11848_v52, %s14602_s16  ;;  %s14640_s16 = smov 96  }
 0x102   : > { %10177 = vrot.lane.b32.xlu0 %v10176_v62, %s14600_s25  ;;  %10167 = vrot.lane.b32.xlu1 %v10126_v47, %s14596_s27  ;;  %v11918_v47 = vunpack.i.h.bf16 %v10088_v54 }
 0x104   : > { %v11925_v55 = vsel %vm566_vm8, %v11858_v57, %v11918_v47  ;;  %v1505_v58 = vmul.f32 %v11918_v47, %v11818_v44  ;;  %v1508_v62 = vmul.f32 %v11918_v47, %v11837_v49  ;;  %v1502_v56 = vmul.f32 %v11918_v47, %v11820_v45 }
 0x105   : > { %v1504_v54 = vmul.f32 %v11925_v55, %v11761_v24  ;;  %v1501_v0 = vmul.f32 %v11925_v55, %v11765_v25 }
 0x106   : > { %10187 = vrot.lane.b32.xlu0 %v10186_v6, %s14598_s14  ;;  %10172 = vrot.lane.b32.xlu1 %v10171_v7, %s14600_s25  ;;  %v1510_v6 = vmul.f32 %v11925_v55, %v11797_v37  ;;  %v1511_v7 = vmul.f32 %v11918_v47, %v11835_v48 }
 0x107   : > { %v10246_v63 = vpack.i.bf16 %v1505_v58, %v1504_v54  ;;  %v10241_v3 = vpack.i.bf16 %v1502_v56, %v1501_v0  ;;  %v11997_v54 = vsel %vm965_vm10, %v11977_v17, %v11975_v16 }
 0x108   : > { %v10256_v11 = vpack.i.bf16 %v1511_v7, %v1510_v6  ;;  %v971_v6 = vmul.f32 %v11997_v54, %v11765_v25  ;;  %v972_v7 = vmul.f32 %v11975_v16, %v11820_v45 }
 0x10a   : > { %10197 = vrot.lane.b32.xlu0 %v10196_v12, %s14608_s17  ;;  %10182 = vrot.lane.b32.xlu1 %v10181_v13, %s14598_s14  ;;  %v782_v13 = vmul.f32 %v11934_v60, %v11820_v45 }
 0x10e   : > { %10207 = vrot.lane.b32.xlu0 %v10206_v18, %s14600_s25  ;;  %10192 = vrot.lane.b32.xlu1 %v10191_v20, %s14608_s17  ;;  %v10103_v18 = vpop.permute.xlu0 %10102 }
 0x10f   : > { %v11985_v23 = vunpack.i.l.bf16 %v10103_v18 }
 0x111   : > { %v1842_v0 = vmul.f32 %v11985_v23, %v11776_v30  ;;  %v1845_v56 = vmul.f32 %v11985_v23, %v11778_v31 }
 0x112   : > { %10212 = vrot.lane.b32.xlu0 %v10211_v28, %s14600_s25  ;;  %10202 = vrot.lane.b32.xlu1 %v10201_v29, %s14600_s25  ;;  %v976_v28 = vmul.f32 %v11977_v17, %v11812_v42  ;;  %v979_v29 = vmul.f32 %v11977_v17, %v11810_v41 }
 0x114   : > { %v10291_v58 = vpack.i.bf16 %v979_v29, %v976_v28  ;;  %v1848_v28 = vmul.f32 %v11985_v23, %v11812_v42 }
 0x116   : > { %10217 = vrot.lane.b32.xlu0 %v11828_v46, %s14596_s27  ;;  %10222 = vrot.lane.b32.xlu1 %v10221_v50, %s14600_s25  ;;  %v1507_v46 = vmul.f32 %v11925_v55, %v11789_v34  ;;  %v973_v50 = vmul.f32 %v11977_v17, %v11778_v31  ;;  %s14641_s25 = smov 95  }
 0x11a   : > { %10232 = vrot.lane.b32.xlu0 %v11848_v52, %s14596_s27  ;;  %10227 = vrot.lane.b32.xlu1 %v11786_v33, %s14596_s27  ;;  %v11950_v52 = vsel %vm775_vm9, %v11870_v61, %v11934_v60  ;;  %v10251_v33 = vpack.i.bf16 %v1508_v62, %v1507_v46  ;;  %v974_v46 = vmul.f32 %v11997_v54, %v11761_v24 }
 0x11b   : > { %v784_v4 = vmul.f32 %v11950_v52, %v11761_v24  ;;  %v781_v12 = vmul.f32 %v11950_v52, %v11765_v25  ;;  %v790_v21 = vmul.f32 %v11950_v52, %v11797_v37  ;;  %v10286_v62 = vpack.i.bf16 %v973_v50, %v970_v36  ;;  %v426_v36 = vld [vmem:[%s14580_s2] sm:$0xff] }
 0x11c   : > { %v11507_v50 = vmov 0  }
 0x11d   : > { %v10266_v10 = vpack.i.bf16 %v785_v2, %v784_v4  ;;  %v10261_v20 = vpack.i.bf16 %v782_v13, %v781_v12  ;;  %v10281_v35 = vpack.i.bf16 %v791_v22, %v790_v21  ;;  %v978_v2 = vmul.f32 %v11975_v16, %v11837_v49  ;;  %10346 = vset.pattern.permute.xlu1 %v11507_v50 }
 0x11e   : > { %10247 = vrot.lane.b32.xlu0 %v10246_v63, %s14598_s14  ;;  %10237 = vrot.lane.b32.xlu1 %v11844_v51, %s14596_s27  ;;  %v787_v51 = vmul.f32 %v11950_v52, %v11789_v34  ;;  %v975_v63 = vmul.f32 %v11975_v16, %v11818_v44  ;;  %v10296_v4 = vpack.i.bf16 %v1845_v56, %v1842_v0 }
 0x11f   : > { %v980_v12 = vmul.f32 %v11997_v54, %v11797_v37  ;;  %v981_v13 = vmul.f32 %v11975_v16, %v11835_v48  ;;  %10347 = vset.pattern.permute.xlu0 %v11507_v50 }
 0x120   : > { %v10271_v19 = vpack.i.bf16 %v788_v8, %v787_v51 }
 0x122   : > { %10252 = vrot.lane.b32.xlu0 %v10251_v33, %s14598_s14  ;;  %10242 = vrot.lane.b32.xlu1 %v10241_v3, %s14598_s14  ;;  %v12010_v33 = vunpack.i.h.bf16 %v10103_v18  ;;  %v10306_v3 = vpack.i.bf16 %v975_v63, %v974_v46 }
 0x124   : > { %v12025_v51 = vsel %vm368_vm0, %v11985_v23, %v12010_v33  ;;  %v1847_v9 = vmul.f32 %v12010_v33, %v11818_v44  ;;  %v1850_v44 = vmul.f32 %v12010_v33, %v11837_v49  ;;  %v1844_v21 = vmul.f32 %v12010_v33, %v11820_v45 }
 0x125   : > { %v1849_v18 = vmul.f32 %v12025_v51, %v11789_v34  ;;  %v1851_v49 = vmul.f32 %v11985_v23, %v11810_v41  ;;  %v1852_v29 = vmul.f32 %v12025_v51, %v11797_v37  ;;  %v427_v37 = vld [vmem:[%s14580_s2 + $0x8] sm:$0xff]  ;;  %vm833_vm0 = vcmask 1031168  }
 0x126   : > { %10267 = vrot.lane.b32.xlu0 %v10266_v10, %s14608_s17  ;;  %10257 = vrot.lane.b32.xlu1 %v10256_v11, %s14598_s14  ;;  %v10301_v10 = vpack.i.bf16 %v972_v7, %v971_v6  ;;  %v1846_v11 = vmul.f32 %v12025_v51, %v11761_v24  ;;  %v1843_v24 = vmul.f32 %v12025_v51, %v11765_v25  ;;  %s14644_s14 = smov 127  }
 0x127   : > { %v10331_v22 = vpack.i.bf16 %v1850_v44, %v1849_v18  ;;  %v1853_v25 = vmul.f32 %v12010_v33, %v11835_v48  ;;  %v10341_v45 = vpack.i.bf16 %v1851_v49, %v1848_v28  ;;  %v428_v48 = vld [vmem:[%s14580_s2 + $0x10] sm:$0xff] }
 0x12a   : > { %10272 = vrot.lane.b32.xlu0 %v10271_v19, %s14608_s17  ;;  %10262 = vrot.lane.b32.xlu1 %v10261_v20, %s14608_s17  ;;  %v10326_v19 = vpack.i.bf16 %v1847_v9, %v1846_v11  ;;  %v10316_v20 = vpack.i.bf16 %v981_v13, %v980_v12 }
 0x12e   : > { %10277 = vrot.lane.b32.xlu0 %v11816_v43, %s14596_s27  ;;  %10282 = vrot.lane.b32.xlu1 %v10281_v35, %s14608_s17  ;;  %v977_v43 = vmul.f32 %v11997_v54, %v11789_v34  ;;  %v10321_v34 = vpack.i.bf16 %v1844_v21, %v1843_v24  ;;  %v10336_v35 = vpack.i.bf16 %v1853_v25, %v1852_v29  ;;  %s14642_s27 = smov 94  }
 0x130   : > { %v10311_v8 = vpack.i.bf16 %v978_v2, %v977_v43 }
 0x132   : > { %10292 = vrot.lane.b32.xlu0 %v10291_v58, %s14606_s26  ;;  %10287 = vrot.lane.b32.xlu1 %v10286_v62, %s14606_s26  ;;  %v429_v58 = vld [vmem:[%s14580_s2 + $0x18] sm:$0xff] }
 0x136   : > { %10307 = vrot.lane.b32.xlu0 %v10306_v3, %s14606_s26  ;;  %10297 = vrot.lane.b32.xlu1 %v10296_v4, %s14604_s23 }
 0x13a   : > { %10312 = vrot.lane.b32.xlu0 %v10311_v8, %s14606_s26  ;;  %10302 = vrot.lane.b32.xlu1 %v10301_v10, %s14606_s26 }
 0x13e   : > { %10327 = vrot.lane.b32.xlu0 %v10326_v19, %s14604_s23  ;;  %10317 = vrot.lane.b32.xlu1 %v10316_v20, %s14606_s26 }
 0x142   : > { %10332 = vrot.lane.b32.xlu0 %v10331_v22, %s14604_s23  ;;  %10322 = vrot.lane.b32.xlu1 %v10321_v34, %s14604_s23 }
 0x146   : > { %10342 = vrot.lane.b32.xlu0 %v10341_v45, %s14604_s23  ;;  %10337 = vrot.lane.b32.xlu1 %v10336_v35, %s14604_s23  ;;  %s14645_s23 = smov 126  }
 0x14a   : > { %2023 = vperm.xlu1 %10346, %v426_v36   ;;  %2028 = vperm.xlu0 %10347, %v427_v37  }
 0x14e   : > { %2033 = vperm.xlu1 %10346, %v428_v48  }
 0x152   : > { %2038 = vperm.xlu1 %10346, %v429_v58  }
 0x153   : > { %v10113_v46 = vpop.permute.xlu0 %10112  ;;  %v10108_v62 = vpop.permute.xlu1 %10107 }
 0x154   : > { %v10110_v56 = vunpack.i.h.bf16 %v10108_v62  ;;  %v10109_v43 = vunpack.i.l.bf16 %v10108_v62  ;;  %v10115_v13 = vunpack.i.h.bf16 %v10113_v46  ;;  %v10114_v18 = vunpack.i.l.bf16 %v10113_v46 }
 0x160   : > { %v12073_v63 = vpop.permute.xlu0 %10122  ;;  %v10118_v0 = vpop.permute.xlu1 %10117 }
 0x161   : > { %v10120_v35 = vunpack.i.h.bf16 %v10118_v0  ;;  %v10119_v36 = vunpack.i.l.bf16 %v10118_v0 }
 0x164   : > { %v10133_v2 = vpop.permute.xlu0 %10132  ;;  %v10128_v3 = vpop.permute.xlu1 %10127 }
 0x165   : > { %v10135_v4 = vunpack.i.h.bf16 %v10133_v2  ;;  %v10134_v6 = vunpack.i.l.bf16 %v10133_v2  ;;  %v10130_v7 = vunpack.i.h.bf16 %v10128_v3  ;;  %v10129_v8 = vunpack.i.l.bf16 %v10128_v3 }
 0x166   : > { %v492_v2 = vmul.f32 %v11746_v14, %v11776_v30  ;;  %v494_v3 = vmul.f32 %v11746_v14, %v11778_v31 }
 0x167   : > { %v551_v9 = vsel %vm549_vm11, %v10129_v8, %v10130_v7  ;;  %v553_v10 = vsel %vm549_vm11, %v10134_v6, %v10135_v4  ;;  %v550_v11 = vsel %vm549_vm11, %v10109_v43, %v10129_v8  ;;  %v552_v12 = vsel %vm549_vm11, %v10110_v56, %v10134_v6 }
 0x168   : > { %v10143_v44 = vpop.permute.xlu0 %10142  ;;  %v10138_v19 = vpop.permute.xlu1 %10137  ;;  %v9305_v20 = vpack.c.bf16 %v553_v10, %v551_v9  ;;  %v9307_v24 = vpack.c.bf16 %v552_v12, %v550_v11  ;;  %v10125_v8 = vunpack.i.h.bf16 %v12073_v63  ;;  %v10124_v9 = vunpack.i.l.bf16 %v12073_v63 }
 0x169   : > { %v10145_v21 = vunpack.i.h.bf16 %v10143_v44  ;;  %v10144_v22 = vunpack.i.l.bf16 %v10143_v44  ;;  %v10140_v28 = vunpack.i.h.bf16 %v10138_v19  ;;  %v10139_v34 = vunpack.i.l.bf16 %v10138_v19 }
 0x16a   : > { %9306 = vmatprep.subr.bf16.mxu1 %v9305_v20 }
 0x16b   : > { %9308 = vmatpush1.bf16.msra.mxu1 %v9307_v24  ;;  %v1180_v49 = vsel %vm1178_vm12, %v10139_v34, %v10140_v28  ;;  %v1182_v29 = vsel %vm1178_vm12, %v10144_v22, %v10145_v21  ;;  %v1179_v25 = vsel %vm1178_vm12, %v10114_v18, %v10139_v34  ;;  %v1181_v45 = vsel %vm1178_vm12, %v10115_v13, %v10144_v22  ;;  %v509_v24 = vld [vmem:[#allocation6 + $0x20] sm:$0xff] }
 0x16c   : > { %v10153_v50 = vpop.permute.xlu0 %10152  ;;  %v10148_v37 = vpop.permute.xlu1 %10147  ;;  %v12083_v48 = vpack.c.bf16 %v1182_v29, %v1180_v49  ;;  %v12085_v58 = vpack.c.bf16 %v1181_v45, %v1179_v25  ;;  %v9315_v29 = vpack.c.bf16 %v494_v3, %v492_v2  ;;  %v498_v25 = vmul.f32 %v11746_v14, %v11810_v41 }
 0x16d   : > { %v10155_v46 = vunpack.i.h.bf16 %v10153_v50  ;;  %v10154_v62 = vunpack.i.l.bf16 %v10153_v50  ;;  %v10150_v56 = vunpack.i.h.bf16 %v10148_v37  ;;  %v10149_v43 = vunpack.i.l.bf16 %v10148_v37 }
 0x16e   : > { %9338 = vmatprep.subr.bf16.mxu0 %v12083_v48  ;;  %v496_v45 = vmul.f32 %v11746_v14, %v11812_v42  ;;  %v1151_v42 = vld [vmem:[#allocation6 + $0x88] sm:$0xff] }
 0x16f   : > { %9340 = vmatpush1.bf16.msra.mxu0 %v12085_v58  ;;  %v555_v0 = vsel %vm549_vm11, %v10149_v43, %v10150_v56  ;;  %v557_v4 = vsel %vm549_vm11, %v10154_v62, %v10155_v46  ;;  %v554_v6 = vsel %vm549_vm11, %v10119_v36, %v10149_v43  ;;  %v556_v7 = vsel %vm549_vm11, %v10120_v35, %v10154_v62  ;;  %v511_v36 = vld [vmem:[#allocation6 + $0x30] sm:$0xff]  ;;  %v500_v56 = vld [vmem:[#allocation6] sm:$0xff] }
 0x170   : > { %v10163_v10 = vpop.permute.xlu0 %10162  ;;  %v10158_v11 = vpop.permute.xlu1 %10157  ;;  %v9309_v30 = vpack.c.bf16 %v557_v4, %v555_v0  ;;  %v9311_v12 = vpack.c.bf16 %v556_v7, %v554_v6  ;;  %v9319_v41 = vpack.c.bf16 %v498_v25, %v496_v45 }
 0x171   : > { %v10165_v13 = vunpack.i.h.bf16 %v10163_v10  ;;  %v10164_v31 = vunpack.i.l.bf16 %v10163_v10  ;;  %v10160_v18 = vunpack.i.h.bf16 %v10158_v11  ;;  %v10159_v44 = vunpack.i.l.bf16 %v10158_v11 }
 0x172   : > { %9310 = vmatprep.subr.bf16.mxu1 %v9309_v30 }
 0x173   : > { %9312 = vmatpush1.bf16.msra.mxu1 %v9311_v12  ;;  %v1184_v19 = vsel %vm1178_vm12, %v10159_v44, %v10160_v18  ;;  %v1186_v20 = vsel %vm1178_vm12, %v10164_v31, %v10165_v13  ;;  %v1183_v21 = vsel %vm1178_vm12, %v10124_v9, %v10159_v44  ;;  %v1185_v22 = vsel %vm1178_vm12, %v10125_v8, %v10164_v31  ;;  %v501_v12 = vld [vmem:[#allocation6 + $0x8] sm:$0xff] }
 0x174   : > { %v12103_v63 = vpop.permute.xlu0 %10177  ;;  %v12105_v28 = vpop.permute.xlu1 %10167  ;;  %9314 = vmatprep.subr.bf16.mxu1 %v9313_v32  ;;  %v12110_v34 = vpack.c.bf16 %v1186_v20, %v1184_v19  ;;  %v12112_v49 = vpack.c.bf16 %v1185_v22, %v1183_v21 }
 0x175   : > { %v10179_v13 = vunpack.i.l.bf16 %v12103_v63  ;;  %v10180_v20 = vunpack.i.h.bf16 %v12103_v63 }
 0x176   : > { %9342 = vmatprep.subr.bf16.mxu0 %v12110_v34  ;;  %8986 = vmatmul.mubr.msk.f32.vlgmr.msra.gmra.mrb[0].mxu1 %vm566_vm8, %v509_v24 }
 0x177   : > { %9316 = vmatpush1.bf16.msra.mxu1 %v9315_v29  ;;  %9344 = vmatpush1.bf16.msra.mxu0 %v12112_v49 }
 0x178   : > { %v12121_v32 = vpop.permute.xlu0 %10187  ;;  %v10173_v35 = vpop.permute.xlu1 %10172  ;;  %9318 = vmatprep.subr.bf16.mxu1 %v9317_v40  ;;  %649 = vmatprep.mubr.f32.mxu1 %v14616_v1 }
 0x179   : > { %v10175_v43 = vunpack.i.h.bf16 %v10173_v35  ;;  %v10174_v0 = vunpack.i.l.bf16 %v10173_v35 }
 0x17a   : > { %9002 = vmatmul.mubr.msk.f32.vlgmr.msra.gmra.mrb[0].mxu0 %vm566_vm8, %v1150_v26  ;;  %8987 = vmatmul.mubr.msk.f32.gmra.mrb[2].mxu1 %vm566_vm8, %v510_v27  ;;  %v502_v26 = vld [vmem:[#allocation6 + $0x10] sm:$0xff] }
 0x17b   : > { %9320 = vmatpush1.bf16.msra.mxu1 %v9319_v41  ;;  %1277 = vmatprep.mubr.f32.mxu0 %v14616_v1 }
 0x17c   : > { %v12130_v50 = vpop.permute.xlu0 %10197  ;;  %v12132_v37 = vpop.permute.xlu1 %10182  ;;  %655 = vmatprep.mubr.f32.mxu1 %v14616_v1 }
 0x17e   : > { %9003 = vmatmul.mubr.msk.f32.gmra.mrb[2].mxu0 %vm566_vm8, %v1151_v42  ;;  %8988 = vmatmul.mubr.msk.f32.gmra.mrb[4].mxu1 %vm566_vm8, %v511_v36  ;;  %v1326_v42 = vld [vmem:[#allocation6 + $0xa0] sm:$0xff]  ;;  %v503_v36 = vld [vmem:[#allocation6 + $0x18] sm:$0xff] }
 0x17f   : > { %1459 = vmatprep.mubr.f32.mxu0 %v14616_v1  ;;  %661 = vmatprep.mubr.f32.mxu1 %v14616_v1 }
 0x180   : > { %v10208_v39 = vpop.permute.xlu0 %10207  ;;  %v12139_v40 = vpop.permute.xlu1 %10192 }
 0x181   : > { %v10209_v46 = vunpack.i.l.bf16 %v10208_v39  ;;  %v10210_v62 = vunpack.i.h.bf16 %v10208_v39  ;;  %v10169_v39 = vunpack.i.l.bf16 %v12105_v28 }
 0x182   : > { %8989 = vmatmul.mubr.msk.f32.gmra.mrb[6].mxu1 %vm566_vm8, %v512_v38  ;;  %v10170_v38 = vunpack.i.h.bf16 %v12105_v28  ;;  %v10190_v28 = vunpack.i.h.bf16 %v12121_v32 }
 0x183   : > { %744 = vmatprep.mubr.f32.mxu1 %v14616_v1  ;;  %v1369_v7 = vsel %vm1366_vm13, %v10175_v43, %v10209_v46  ;;  %v1370_v30 = vsel %vm1366_vm13, %v10209_v46, %v10210_v62 }
 0x184   : > { %v10213_v2 = vpop.permute.xlu0 %10212  ;;  %v10203_v3 = vpop.permute.xlu1 %10202 }
 0x185   : > { %v10205_v4 = vunpack.i.h.bf16 %v10203_v3  ;;  %v10204_v6 = vunpack.i.l.bf16 %v10203_v3  ;;  %v10214_v8 = vunpack.i.l.bf16 %v10213_v2  ;;  %v10215_v9 = vunpack.i.h.bf16 %v10213_v2 }
 0x186   : > { %8990 = vmatmul.mubr.msk.f32.vlgmr.msra.gmra.mrb[0].mxu1 %vm566_vm8, %v500_v56 }
 0x187   : > { %v1367_v10 = vsel %vm1366_vm13, %v10174_v0, %v10204_v6  ;;  %v1368_v11 = vsel %vm1366_vm13, %v10204_v6, %v10205_v4  ;;  %750 = vmatprep.mubr.f32.mxu1 %v14616_v1  ;;  %v1371_v22 = vsel %vm1366_vm13, %v10179_v13, %v10214_v8  ;;  %v1372_v25 = vsel %vm1366_vm13, %v10214_v8, %v10215_v9  ;;  %v1327_v0 = vld [vmem:[#allocation6 + $0xa8] sm:$0xff] }
 0x188   : > { %v12150_v31 = vpop.permute.xlu0 %10217  ;;  %v10223_v18 = vpop.permute.xlu1 %10222  ;;  %v9345_v44 = vpack.c.bf16 %v1370_v30, %v1368_v11  ;;  %v9347_v19 = vpack.c.bf16 %v1369_v7, %v1367_v10  ;;  %v10185_v4 = vunpack.i.h.bf16 %v12132_v37  ;;  %v10184_v6 = vunpack.i.l.bf16 %v12132_v37 }
 0x189   : > { %v10225_v24 = vunpack.i.h.bf16 %v10223_v18  ;;  %v10224_v21 = vunpack.i.l.bf16 %v10223_v18  ;;  %v10220_v56 = vunpack.i.h.bf16 %v12150_v31  ;;  %v10219_v43 = vunpack.i.l.bf16 %v12150_v31 }
 0x18a   : > { %9346 = vmatprep.subr.bf16.mxu0 %v9345_v44  ;;  %8991 = vmatmul.mubr.msk.f32.gmra.mrb[2].mxu1 %vm566_vm8, %v501_v12  ;;  %v12177_v9 = vsel %vm1708_vm14, %v10169_v39, %v10170_v38  ;;  %v10189_v13 = vunpack.i.l.bf16 %v12121_v32 }
 0x18b   : > { %v1373_v29 = vsel %vm1366_vm13, %v10180_v20, %v10224_v21  ;;  %9348 = vmatpush1.bf16.msra.mxu0 %v9347_v19  ;;  %v1374_v45 = vsel %vm1366_vm13, %v10224_v21, %v10225_v24  ;;  %756 = vmatprep.mubr.f32.mxu1 %v14616_v1  ;;  %v1712_v44 = vsel %vm1708_vm14, %v10219_v43, %v10220_v56  ;;  %v1328_v20 = vld [vmem:[#allocation6 + $0xb0] sm:$0xff] }
 0x18c   : > { %v12159_v27 = vpop.permute.xlu0 %10232  ;;  %v10228_v63 = vpop.permute.xlu1 %10227  ;;  %v9349_v35 = vpack.c.bf16 %v1374_v45, %v1372_v25  ;;  %v9351_v41 = vpack.c.bf16 %v1373_v29, %v1371_v22 }
 0x18d   : > { %v10230_v10 = vunpack.i.h.bf16 %v10228_v63  ;;  %v10229_v11 = vunpack.i.l.bf16 %v10228_v63  ;;  %v10235_v22 = vunpack.i.h.bf16 %v12159_v27  ;;  %v10234_v32 = vunpack.i.l.bf16 %v12159_v27 }
 0x18e   : > { %9350 = vmatprep.subr.bf16.mxu0 %v9349_v35  ;;  %8992 = vmatmul.mubr.msk.f32.gmra.mrb[4].mxu1 %vm566_vm8, %v502_v26 }
 0x18f   : > { %9352 = vmatpush1.bf16.msra.mxu0 %v9351_v41  ;;  %762 = vmatprep.mubr.f32.mxu1 %v14616_v1  ;;  %v1711_v63 = vsel %vm1708_vm14, %v10230_v10, %v10219_v43  ;;  %v1709_v35 = vsel %vm1708_vm14, %v10229_v11, %v10169_v39  ;;  %v1329_v43 = vld [vmem:[#allocation6 + $0xb8] sm:$0xff] }
 0x190   : > { %v10248_v46 = vpop.permute.xlu0 %10247  ;;  %v12165_v62 = vpop.permute.xlu1 %10237 }
 0x191   : > { %v10249_v2 = vunpack.i.l.bf16 %v10248_v46  ;;  %v10250_v3 = vunpack.i.h.bf16 %v10248_v46  ;;  %v10239_v38 = vunpack.i.l.bf16 %v12165_v62 }
 0x192   : > { %9006 = vmatmul.mubr.msk.f32.vlgmr.msra.gmra.mrb[0].mxu0 %vm566_vm8, %v1326_v42  ;;  %8993 = vmatmul.mubr.msk.f32.gmra.mrb[6].mxu1 %vm566_vm8, %v503_v36  ;;  %v10240_v36 = vunpack.i.h.bf16 %v12165_v62  ;;  %v10194_v62 = vunpack.i.l.bf16 %v12139_v40 }
 0x193   : > { %1465 = vmatprep.mubr.f32.mxu0 %v14616_v1  ;;  %926 = vmatprep.mubr.f32.mxu1 %v14616_v1  ;;  %v1556_v31 = vsel %vm1553_vm15, %v10185_v4, %v10249_v2  ;;  %v1557_v21 = vsel %vm1553_vm15, %v10249_v2, %v10250_v3 }
 0x194   : > { %v10253_v7 = vpop.permute.xlu0 %10252  ;;  %v10243_v8 = vpop.permute.xlu1 %10242 }
 0x195   : > { %v10245_v30 = vunpack.i.h.bf16 %v10243_v8  ;;  %v10244_v12 = vunpack.i.l.bf16 %v10243_v8  ;;  %v10254_v18 = vunpack.i.l.bf16 %v10253_v7  ;;  %v10255_v19 = vunpack.i.h.bf16 %v10253_v7 }
 0x196   : > { %9007 = vmatmul.mubr.msk.f32.gmra.mrb[2].mxu0 %vm566_vm8, %v1327_v0  ;;  %v10195_v0 = vunpack.i.h.bf16 %v12139_v40  ;;  %v10200_v40 = vunpack.i.h.bf16 %v12130_v50 }
 0x197   : > { %v1554_v37 = vsel %vm1553_vm15, %v10184_v6, %v10244_v12  ;;  %1471 = vmatprep.mubr.f32.mxu0 %v14616_v1  ;;  %v1555_v24 = vsel %vm1553_vm15, %v10244_v12, %v10245_v30  ;;  %v1558_v46 = vsel %vm1553_vm15, %v10189_v13, %v10254_v18  ;;  %v1559_v39 = vsel %vm1553_vm15, %v10254_v18, %v10255_v19 }
 0x198   : > { %v10268_v29 = vpop.permute.xlu0 %10267  ;;  %v10258_v25 = vpop.permute.xlu1 %10257  ;;  %v9353_v45 = vpack.c.bf16 %v1557_v21, %v1555_v24  ;;  %v9355_v26 = vpack.c.bf16 %v1556_v31, %v1554_v37  ;;  %v1714_v30 = vsel %vm1708_vm14, %v10234_v32, %v10235_v22  ;;  %v9363_v13 = vpack.c.bf16 %v1711_v63, %v1709_v35 }
 0x199   : > { %v10260_v41 = vunpack.i.h.bf16 %v10258_v25  ;;  %v10259_v42 = vunpack.i.l.bf16 %v10258_v25  ;;  %v10269_v56 = vunpack.i.l.bf16 %v10268_v29  ;;  %v10270_v27 = vunpack.i.h.bf16 %v10268_v29 }
 0x19a   : > { %9008 = vmatmul.mubr.msk.f32.gmra.mrb[4].mxu0 %vm566_vm8, %v1328_v20  ;;  %9354 = vmatprep.subr.bf16.mxu0 %v9353_v45  ;;  %v1716_v31 = vsel %vm1708_vm14, %v10239_v38, %v10240_v36  ;;  %v10199_v35 = vunpack.i.l.bf16 %v12130_v50 }
 0x19b   : > { %v1560_v2 = vsel %vm1553_vm15, %v10190_v28, %v10259_v42  ;;  %9356 = vmatpush1.bf16.msra.mxu0 %v9355_v26  ;;  %1477 = vmatprep.mubr.f32.mxu0 %v14616_v1  ;;  %v1561_v3 = vsel %vm1553_vm15, %v10259_v42, %v10260_v41  ;;  %v9361_v28 = vpack.c.bf16 %v1712_v44, %v12177_v9  ;;  %v1513_v44 = vld [vmem:[#allocation6 + $0xc0] sm:$0xff] }
 0x19c   : > { %v10273_v4 = vpop.permute.xlu0 %10272  ;;  %v10263_v6 = vpop.permute.xlu1 %10262  ;;  %v9357_v7 = vpack.c.bf16 %v1561_v3, %v1559_v39  ;;  %v9359_v8 = vpack.c.bf16 %v1560_v2, %v1558_v46  ;;  %v836_v12 = vsel %vm833_vm0, %v10195_v0, %v10269_v56  ;;  %v837_v9 = vsel %vm833_vm0, %v10269_v56, %v10270_v27  ;;  %v1514_v56 = vld [vmem:[#allocation6 + $0xc8] sm:$0xff] }
 0x19d   : > { %v10265_v10 = vunpack.i.h.bf16 %v10263_v6  ;;  %v10264_v11 = vunpack.i.l.bf16 %v10263_v6  ;;  %v10275_v37 = vunpack.i.h.bf16 %v10273_v4  ;;  %v10274_v20 = vunpack.i.l.bf16 %v10273_v4  ;;  %v793_v6 = vld [vmem:[#allocation6 + $0x40] sm:$0xff] }
 0x19e   : > { %9009 = vmatmul.mubr.msk.f32.gmra.mrb[6].mxu0 %vm566_vm8, %v1329_v43  ;;  %9358 = vmatprep.subr.bf16.mxu0 %v9357_v7  ;;  %v9365_v41 = vpack.c.bf16 %v1716_v31, %v1714_v30 }
 0x19f   : > { %v834_v18 = vsel %vm833_vm0, %v10194_v62, %v10264_v11  ;;  %9360 = vmatpush1.bf16.msra.mxu0 %v9359_v8  ;;  %1646 = vmatprep.mubr.f32.mxu0 %v14616_v1  ;;  %v835_v19 = vsel %vm833_vm0, %v10264_v11, %v10265_v10  ;;  %v838_v27 = vsel %vm833_vm0, %v10199_v35, %v10274_v20  ;;  %v1516_v10 = vld [vmem:[#allocation6 + $0xd8] sm:$0xff] }
 0x1a0   : > { %v10278_v24 = vpop.permute.xlu0 %10277  ;;  %v10283_v21 = vpop.permute.xlu1 %10282  ;;  %9362 = vmatprep.subr.bf16.mxu0 %v9361_v28  ;;  %v9321_v22 = vpack.c.bf16 %v837_v9, %v835_v19  ;;  %v9323_v29 = vpack.c.bf16 %v836_v12, %v834_v18  ;;  %v839_v3 = vsel %vm833_vm0, %v10274_v20, %v10275_v37 }
 0x1a1   : > { %v10280_v25 = vunpack.i.h.bf16 %v10278_v24  ;;  %v10279_v45 = vunpack.i.l.bf16 %v10278_v24  ;;  %v10285_v26 = vunpack.i.h.bf16 %v10283_v21  ;;  %v10284_v63 = vunpack.i.l.bf16 %v10283_v21  ;;  %v1680_v24 = vld [vmem:[#allocation6 + $0xe0] sm:$0xff] }
 0x1a2   : > { %9322 = vmatprep.subr.bf16.mxu1 %v9321_v22  ;;  %9010 = vmatmul.mubr.msk.f32.vlgmr.msra.gmra.mrb[0].mxu0 %vm566_vm8, %v1513_v44 }
 0x1a3   : > { %v1713_v42 = vsel %vm1708_vm14, %v10279_v45, %v10234_v32  ;;  %v1715_v36 = vsel %vm1708_vm14, %v10280_v25, %v10239_v38  ;;  %v840_v46 = vsel %vm833_vm0, %v10200_v40, %v10284_v63  ;;  %9324 = vmatpush1.bf16.msra.mxu1 %v9323_v29  ;;  %9364 = vmatpush1.bf16.msra.mxu0 %v9363_v13  ;;  %v1515_v38 = vld [vmem:[#allocation6 + $0xd0] sm:$0xff]  ;;  %v794_v40 = vld [vmem:[#allocation6 + $0x48] sm:$0xff] }
 0x1a4   : > { %v10293_v2 = vpop.permute.xlu0 %10292  ;;  %v10288_v43 = vpop.permute.xlu1 %10287  ;;  %9366 = vmatprep.subr.bf16.mxu0 %v9365_v41  ;;  %1652 = vmatprep.mubr.f32.mxu0 %v14616_v1  ;;  %v841_v50 = vsel %vm833_vm0, %v10284_v63, %v10285_v26  ;;  %v9367_v39 = vpack.c.bf16 %v1715_v36, %v1713_v42  ;;  %v9327_v32 = vpack.c.bf16 %v840_v46, %v838_v27  ;;  %v795_v41 = vld [vmem:[#allocation6 + $0x50] sm:$0xff] }
 0x1a5   : > { %v9325_v0 = vpack.c.bf16 %v841_v50, %v839_v3  ;;  %v10290_v11 = vunpack.i.h.bf16 %v10288_v43  ;;  %v10289_v12 = vunpack.i.l.bf16 %v10288_v43  ;;  %v10294_v21 = vunpack.i.l.bf16 %v10293_v2  ;;  %v1681_v43 = vld [vmem:[#allocation6 + $0xe8] sm:$0xff] }
 0x1a6   : > { %9011 = vmatmul.mubr.msk.f32.gmra.mrb[2].mxu0 %vm566_vm8, %v1514_v56  ;;  %v10295_v26 = vunpack.i.h.bf16 %v10293_v2 }
 0x1a7   : > { %9368 = vmatpush1.bf16.msra.mxu0 %v9367_v39  ;;  %1658 = vmatprep.mubr.f32.mxu0 %v14616_v1 }
 0x1a8   : > { %9326 = vmatprep.subr.bf16.mxu1 %v9325_v0  ;;  %v10308_v62 = vpop.permute.xlu0 %10307  ;;  %v12222_v4 = vpop.permute.xlu1 %10297 }
 0x1a9   : > { %9328 = vmatpush1.bf16.msra.mxu1 %v9327_v32  ;;  %v10309_v7 = vunpack.i.l.bf16 %v10308_v62  ;;  %v10310_v8 = vunpack.i.h.bf16 %v10308_v62  ;;  %v10300_v50 = vunpack.i.h.bf16 %v12222_v4 }
 0x1aa   : > { %9012 = vmatmul.mubr.msk.f32.gmra.mrb[4].mxu0 %vm566_vm8, %v1515_v38  ;;  %v10299_v38 = vunpack.i.l.bf16 %v12222_v4 }
 0x1ab   : > { %1664 = vmatprep.mubr.f32.mxu0 %v14616_v1  ;;  %v1026_v18 = vsel %vm1023_vm1, %v10290_v11, %v10309_v7  ;;  %v1027_v20 = vsel %vm1023_vm1, %v10309_v7, %v10310_v8  ;;  %v796_v7 = vld [vmem:[#allocation6 + $0x58] sm:$0xff] }
 0x1ac   : > { %8994 = vmatmul.mubr.msk.f32.vlgmr.msra.gmra.mrb[0].mxu1 %vm566_vm8, %v793_v6  ;;  %v10313_v28 = vpop.permute.xlu0 %10312  ;;  %v10303_v30 = vpop.permute.xlu1 %10302 }
 0x1ad   : > { %v10305_v13 = vunpack.i.h.bf16 %v10303_v30  ;;  %v10304_v31 = vunpack.i.l.bf16 %v10303_v30  ;;  %932 = vmatprep.mubr.f32.mxu1 %v14616_v1  ;;  %v10314_v19 = vunpack.i.l.bf16 %v10313_v28  ;;  %v10315_v9 = vunpack.i.h.bf16 %v10313_v28  ;;  %v1682_v30 = vld [vmem:[#allocation6 + $0xf0] sm:$0xff] }
 0x1ae   : > { %9013 = vmatmul.mubr.msk.f32.gmra.mrb[6].mxu0 %vm566_vm8, %v1516_v10 }
 0x1af   : > { %v1024_v44 = vsel %vm1023_vm1, %v10289_v12, %v10304_v31  ;;  %1801 = vmatprep.mubr.f32.mxu0 %v14616_v1  ;;  %v1025_v37 = vsel %vm1023_vm1, %v10304_v31, %v10305_v13  ;;  %v1028_v42 = vsel %vm1023_vm1, %v10294_v21, %v10314_v19  ;;  %v1029_v27 = vsel %vm1023_vm1, %v10314_v19, %v10315_v9 }
 0x1b0   : > { %8995 = vmatmul.mubr.msk.f32.gmra.mrb[2].mxu1 %vm566_vm8, %v794_v40  ;;  %v10328_v22 = vpop.permute.xlu0 %10327  ;;  %v10318_v29 = vpop.permute.xlu1 %10317  ;;  %v9329_v25 = vpack.c.bf16 %v1027_v20, %v1025_v37  ;;  %v9331_v45 = vpack.c.bf16 %v1026_v18, %v1024_v44  ;;  %v983_v20 = vld [vmem:[#allocation6 + $0x60] sm:$0xff] }
 0x1b1   : > { %v10320_v63 = vunpack.i.h.bf16 %v10318_v29  ;;  %v10319_v35 = vunpack.i.l.bf16 %v10318_v29  ;;  %938 = vmatprep.mubr.f32.mxu1 %v14616_v1  ;;  %v10329_v36 = vunpack.i.l.bf16 %v10328_v22  ;;  %v10330_v46 = vunpack.i.h.bf16 %v10328_v22 }
 0x1b2   : > { %9330 = vmatprep.subr.bf16.mxu1 %v9329_v25  ;;  %9014 = vmatmul.mubr.msk.f32.vlgmr.msra.gmra.mrb[0].mxu0 %vm566_vm8, %v1680_v24 }
 0x1b3   : > { %v1030_v56 = vsel %vm1023_vm1, %v10295_v26, %v10319_v35  ;;  %9332 = vmatpush1.bf16.msra.mxu1 %v9331_v45  ;;  %1807 = vmatprep.mubr.f32.mxu0 %v14616_v1  ;;  %v1031_v2 = vsel %vm1023_vm1, %v10319_v35, %v10320_v63  ;;  %v1898_v8 = vsel %vm1895_vm2, %v10300_v50, %v10329_v36  ;;  %v984_v26 = vld [vmem:[#allocation6 + $0x68] sm:$0xff]  ;;  %v1855_v63 = vld [vmem:[#allocation6 + $0x100] sm:$0xff]  ;;  %v985_v35 = vld [vmem:[#allocation6 + $0x70] sm:$0xff] }
 0x1b4   : > { %8996 = vmatmul.mubr.msk.f32.gmra.mrb[4].mxu1 %vm566_vm8, %v795_v41  ;;  %v10333_v39 = vpop.permute.xlu0 %10332  ;;  %v10323_v3 = vpop.permute.xlu1 %10322  ;;  %v9333_v32 = vpack.c.bf16 %v1031_v2, %v1029_v27  ;;  %v9335_v0 = vpack.c.bf16 %v1030_v56, %v1028_v42  ;;  %v1899_v12 = vsel %vm1895_vm2, %v10329_v36, %v10330_v46  ;;  %v1152_v41 = vld [vmem:[#allocation6 + $0x90] sm:$0xff]  ;;  %v1858_v42 = vld [vmem:[#allocation6 + $0x118] sm:$0xff] }
 0x1b5   : > { %v10325_v62 = vunpack.i.h.bf16 %v10323_v3  ;;  %v10324_v6 = vunpack.i.l.bf16 %v10323_v3  ;;  %944 = vmatprep.mubr.f32.mxu1 %v14616_v1  ;;  %v10335_v10 = vunpack.i.h.bf16 %v10333_v39  ;;  %v10334_v11 = vunpack.i.l.bf16 %v10333_v39  ;;  %v1153_v36 = vld [vmem:[#allocation6 + $0x98] sm:$0xff] }
 0x1b6   : > { %9334 = vmatprep.subr.bf16.mxu1 %v9333_v32  ;;  %9015 = vmatmul.mubr.msk.f32.gmra.mrb[2].mxu0 %vm566_vm8, %v1681_v43 }
 0x1b7   : > { %v1896_v28 = vsel %vm1895_vm2, %v10299_v38, %v10324_v6  ;;  %9336 = vmatpush1.bf16.msra.mxu1 %v9335_v0  ;;  %1813 = vmatprep.mubr.f32.mxu0 %v14616_v1  ;;  %v1897_v4 = vsel %vm1895_vm2, %v10324_v6, %v10325_v62  ;;  %v1901_v24 = vsel %vm1895_vm2, %v10334_v11, %v10335_v10 }
 0x1b8   : > { %8997 = vmatmul.mubr.msk.f32.gmra.mrb[6].mxu1 %vm566_vm8, %v796_v7  ;;  %v10343_v13 = vpop.permute.xlu0 %10342  ;;  %v10338_v31 = vpop.permute.xlu1 %10337  ;;  %9677 = vmatprep.subr.bf16.mxu1 %v12083_v48  ;;  %v9369_v40 = vpack.c.bf16 %v1899_v12, %v1897_v4  ;;  %v9371_v18 = vpack.c.bf16 %v1898_v8, %v1896_v28  ;;  %v1683_v48 = vld [vmem:[#allocation6 + $0xf8] sm:$0xff] }
 0x1b9   : > { %v10345_v19 = vunpack.i.h.bf16 %v10343_v13  ;;  %v10344_v9 = vunpack.i.l.bf16 %v10343_v13  ;;  %v10340_v44 = vunpack.i.h.bf16 %v10338_v31  ;;  %v10339_v37 = vunpack.i.l.bf16 %v10338_v31  ;;  %1116 = vmatprep.mubr.f32.mxu1 %v14616_v1 }
 0x1ba   : > { %9016 = vmatmul.mubr.msk.f32.gmra.mrb[4].mxu0 %vm566_vm8, %v1682_v30  ;;  %9370 = vmatprep.subr.bf16.mxu0 %v9369_v40 }
 0x1bb   : > { %v1900_v21 = vsel %vm1895_vm2, %v10344_v9, %v10334_v11  ;;  %v1902_v22 = vsel %vm1895_vm2, %v10345_v19, %v10339_v37  ;;  %9372 = vmatpush1.bf16.msra.mxu0 %v9371_v18  ;;  %1819 = vmatprep.mubr.f32.mxu0 %v14616_v1  ;;  %v1903_v29 = vsel %vm1895_vm2, %v10339_v37, %v10340_v44 }
 0x1bc   : > { %8998 = vmatmul.mubr.msk.f32.vlgmr.msra.gmra.mrb[0].mxu1 %vm566_vm8, %v983_v20  ;;  %v9373_v25 = vpack.c.bf16 %v1903_v29, %v1901_v24  ;;  %v9375_v45 = vpack.c.bf16 %v1902_v22, %v1900_v21 }
 0x1bd   : > { %9679 = vmatpush1.bf16.msra.mxu1 %v12085_v58  ;;  %1122 = vmatprep.mubr.f32.mxu1 %v14616_v1  ;;  %v1856_v58 = vld [vmem:[#allocation6 + $0x108] sm:$0xff] }
 0x1be   : > { %9678 = vmatprep.subr.bf16.mxu1 %v12110_v34  ;;  %9017 = vmatmul.mubr.msk.f32.gmra.mrb[6].mxu0 %vm566_vm8, %v1683_v48  ;;  %v986_v34 = vld [vmem:[#allocation6 + $0x78] sm:$0xff] }
 0x1bf   : > { %9374 = vmatprep.subr.bf16.mxu0 %v9373_v25  ;;  %1988 = vmatprep.mubr.f32.mxu0 %v14616_v1 }
 0x1c0   : > { %8999 = vmatmul.mubr.msk.f32.gmra.mrb[2].mxu1 %vm566_vm8, %v984_v26  ;;  %9376 = vmatpush1.bf16.msra.mxu0 %v9375_v45 }
 0x1c1   : > { %9680 = vmatpush1.bf16.msra.mxu1 %v12112_v49  ;;  %1128 = vmatprep.mubr.f32.mxu1 %v14616_v1  ;;  %v1857_v49 = vld [vmem:[#allocation6 + $0x110] sm:$0xff] }
 0x1c3   : > { %9018 = vmatmul.mubr.msk.f32.vlgmr.msra.gmra.mrb[0].mxu0 %vm566_vm8, %v1855_v63 }
 0x1c4   : > { %9000 = vmatmul.mubr.msk.f32.gmra.mrb[4].mxu1 %vm566_vm8, %v985_v35  ;;  %1994 = vmatprep.mubr.f32.mxu0 %v14616_v1 }
 0x1c5   : > { %1134 = vmatprep.mubr.f32.mxu1 %v14616_v1 }
 0x1c7   : > { %9019 = vmatmul.mubr.msk.f32.gmra.mrb[2].mxu0 %vm566_vm8, %v1856_v58 }
 0x1c8   : > { %9001 = vmatmul.mubr.msk.f32.gmra.mrb[6].mxu1 %vm566_vm8, %v986_v34  ;;  %2000 = vmatprep.mubr.f32.mxu0 %v14616_v1 }
 0x1c9   : > { %1283 = vmatprep.mubr.f32.mxu1 %v14616_v1  ;;  %v2024_v3 = vpop.permute.xlu1 %2023  ;;  %v2029_v6 = vpop.permute.xlu0 %2028 }
 0x1cb   : > { %9020 = vmatmul.mubr.msk.f32.gmra.mrb[4].mxu0 %vm566_vm8, %v1857_v49 }
 0x1cc   : > { %9004 = vmatmul.mubr.msk.f32.vlgmr.msra.gmra.mrb[4].mxu1 %vm566_vm8, %v1152_v41  ;;  %2006 = vmatprep.mubr.f32.mxu0 %v14616_v1 }
 0x1cd   : > { %1289 = vmatprep.mubr.f32.mxu1 %v14616_v1  ;;  %v2034_v4 = vpop.permute.xlu1 %2033 }
 0x1cf   : > { %9021 = vmatmul.mubr.msk.f32.gmra.mrb[6].mxu0 %vm566_vm8, %v1858_v42 }
 0x1d0   : > { %9005 = vmatmul.mubr.msk.f32.gmra.mrb[6].mxu1 %vm566_vm8, %v1153_v36  ;;  %9275 = vmatprep.mubr.msk.f32.mxu0 %vm11509_vm3, %v14616_v1 }
 0x1d1   : > { %2272 = vmatprep.mubr.f32.mxu1 %v14616_v1  ;;  %v2039_v26 = vpop.permute.xlu1 %2038 }
 0x28f   : > { %v1118_v46 = vpop.f32.mrb[0].mxu1 }
 0x290   : > { %v1120_v56 = vpop.f32.mrb[1].mxu1 }
 0x293   : > { %v1124_v27 = vpop.f32.mrb[2].mxu1 }
 0x294   : > { %v1126_v2 = vpop.f32.mrb[3].mxu1 }
 0x296   : > { %v1990_v43 = vpop.f32.mrb[0].mxu0 }
 0x297   : > { %v9681_v50 = vadd.f32 %v1990_v43, %v1118_v46  ;;  %v1992_v39 = vpop.f32.mrb[1].mxu0 }
 0x298   : > { %v9682_v32 = vadd.f32 %v1992_v39, %v1120_v56 }
 0x299   : > { %v2041_v0 = vadd.f32 %v9681_v50, %v2024_v3 }
 0x29a   : > { %v2042_v38 = vadd.f32 %v9682_v32, %v2024_v3  ;;  %v1996_v62 = vpop.f32.mrb[2].mxu0 }
 0x29b   : > { %v2049_v7 = vmax.f32 %v2041_v0, 0.0  ;;  %v9683_v8 = vadd.f32 %v1996_v62, %v1124_v27  ;;  %v1998_v10 = vpop.f32.mrb[3].mxu0 }
 0x29c   : > { %v2050_v11 = vmax.f32 %v2042_v38, 0.0  ;;  %v9684_v28 = vadd.f32 %v1998_v10, %v1126_v2 }
 0x29d   : > { %v2043_v30 = vadd.f32 %v9683_v8, %v2029_v6  ;;  %2070 = vrot.lane.b32.xlu0 %v2049_v7, %s14612_s15 }
 0x29e   : > { %v2044_v12 = vadd.f32 %v9684_v28, %v2029_v6  ;;  %v2002_v13 = vpop.f32.mrb[4].mxu0  ;;  %2072 = vrot.lane.b32.xlu1 %v2050_v11, %s14612_s15 }
 0x29f   : > { %v1285_v31 = vpop.f32.mrb[4].mxu1  ;;  %v2004_v40 = vpop.f32.mrb[5].mxu0  ;;  %v2051_v18 = vmax.f32 %v2043_v30, 0.0 }
 0x2a0   : > { %v9685_v19 = vadd.f32 %v2002_v13, %v1285_v31  ;;  %v1287_v9 = vpop.f32.mrb[5].mxu1  ;;  %v2052_v44 = vmax.f32 %v2044_v12, 0.0 }
 0x2a1   : > { %v9686_v37 = vadd.f32 %v2004_v40, %v1287_v9  ;;  %2074 = vrot.lane.b32.xlu0 %v2051_v18, %s14612_s15 }
 0x2a2   : > { %v2045_v20 = vadd.f32 %v9685_v19, %v2034_v4  ;;  %v2008_v24 = vpop.f32.mrb[6].mxu0  ;;  %2076 = vrot.lane.b32.xlu1 %v2052_v44, %s14612_s15 }
 0x2a3   : > { %v2046_v21 = vadd.f32 %v9686_v37, %v2034_v4  ;;  %v1291_v22 = vpop.f32.mrb[6].mxu1  ;;  %v2010_v48 = vpop.f32.mrb[7].mxu0 }
 0x2a4   : > { %v2053_v29 = vmax.f32 %v2045_v20, 0.0  ;;  %v9687_v25 = vadd.f32 %v2008_v24, %v1291_v22  ;;  %v1293_v45 = vpop.f32.mrb[7].mxu1 }
 0x2a5   : > { %v2054_v63 = vmax.f32 %v2046_v21, 0.0  ;;  %v9688_v35 = vadd.f32 %v2010_v48, %v1293_v45 }
 0x2a6   : > { %v2047_v58 = vadd.f32 %v9687_v25, %v2039_v26  ;;  %2078 = vrot.lane.b32.xlu0 %v2053_v29, %s14612_s15 }
 0x2a7   : > { %v2048_v34 = vadd.f32 %v9688_v35, %v2039_v26  ;;  %2080 = vrot.lane.b32.xlu1 %v2054_v63, %s14612_s15 }
 0x2a8   : > { %v2055_v49 = vmax.f32 %v2047_v58, 0.0 }
 0x2a9   : > { %v2056_v41 = vmax.f32 %v2048_v34, 0.0 }
 0x2aa   : > { %2082 = vrot.lane.b32.xlu0 %v2055_v49, %s14612_s15 }
 0x2ab   : > { %2084 = vrot.lane.b32.xlu1 %v2056_v41, %s14612_s15 }
 0x30f   : > { %v2071_v42 = vpop.permute.xlu0 %2070 }
 0x310   : > { %2102 = vst.msk [vmem:[#allocation2] sm:$0xff] %vm471_vm5, %v2071_v42  ;;  %v2073_v36 = vpop.permute.xlu1 %2072 }
 0x311   : > { %2104 = vst.msk [vmem:[#allocation2 + $0x10] sm:$0xff] %vm454_vm6, %v2073_v36  ;;  %v12298_v27 = vsel %vm454_vm6, %v2071_v42, %v2073_v36 }
 0x312   : > { %v2399_v44 = vmul.f32 %v12298_v27, %v11950_v52  ;;  %v12389_v25 = vmul.f32 %v11749_v15, %v12298_v27 }
 0x313   : > { %v2075_v46 = vpop.permute.xlu0 %2074 }
 0x314   : > { %2105 = vst.msk [vmem:[#allocation2 + $0x18] sm:$0xff] %vm471_vm5, %v2075_v46  ;;  %v2077_v56 = vpop.permute.xlu1 %2076 }
 0x315   : > { %2107 = vst.msk [vmem:[#allocation2 + $0x28] sm:$0xff] %vm454_vm6, %v2077_v56  ;;  %v12315_v0 = vsel %vm454_vm6, %v2075_v46, %v2077_v56 }
 0x316   : > { %v2402_v9 = vmul.f32 %v12315_v0, %v11950_v52  ;;  %v12379_v22 = vmul.f32 %v11749_v15, %v12315_v0 }
 0x317   : > { %v12310_v3 = vld [vmem:[#allocation2] sm:$0xff] }
 0x318   : > { %v2079_v2 = vpop.permute.xlu0 %2078  ;;  %v12300_v43 = vld [vmem:[#allocation2 + $0x10] sm:$0xff]  ;;  %v2398_v48 = vmul.f32 %v11870_v61, %v12310_v3  ;;  %v9385_v58 = vpack.c.bf16 %v12379_v22, %v12389_v25 }
 0x319   : > { %2108 = vst.msk [vmem:[#allocation2 + $0x30] sm:$0xff] %vm471_vm5, %v2079_v2  ;;  %v2081_v50 = vpop.permute.xlu1 %2080  ;;  %v12305_v39 = vpack.i.bf16 %v12300_v43, %v12298_v27  ;;  %v2400_v19 = vmul.f32 %v11934_v60, %v12300_v43 }
 0x31a   : > { %2110 = vst.msk [vmem:[#allocation2 + $0x40] sm:$0xff] %vm454_vm6, %v2081_v50  ;;  %v12334_v10 = vsel %vm454_vm6, %v2079_v2, %v2081_v50  ;;  %v2578_v2 = vmul.f32 %v11975_v16, %v12300_v43 }
 0x31b   : > { %10349 = vrot.lane.b32.xlu0 %v12305_v39, %s14610_s21  ;;  %v12312_v32 = vld [vmem:[#allocation2 + $0x18] sm:$0xff]  ;;  %v10378_v24 = vpack.i.bf16 %v2400_v19, %v2399_v44  ;;  %v2405_v29 = vmul.f32 %v12334_v10, %v11950_v52  ;;  %v12405_v41 = vmul.f32 %v11749_v15, %v12334_v10 }
 0x31c   : > { %v2083_v38 = vpop.permute.xlu0 %2082  ;;  %v12319_v62 = vpack.i.bf16 %v12312_v32, %v12310_v3  ;;  %v12321_v6 = vld [vmem:[#allocation2 + $0x28] sm:$0xff]  ;;  %v2401_v37 = vmul.f32 %v11870_v61, %v12312_v32  ;;  %v2579_v44 = vmul.f32 %v11977_v17, %v12312_v32 }
 0x31d   : > { %2111 = vst.msk [vmem:[#allocation2 + $0x48] sm:$0xff] %vm471_vm5, %v2083_v38  ;;  %v2085_v7 = vpop.permute.xlu1 %2084  ;;  %v12326_v8 = vpack.i.bf16 %v12321_v6, %v12315_v0  ;;  %v2403_v18 = vmul.f32 %v11934_v60, %v12321_v6  ;;  %v2581_v56 = vmul.f32 %v11975_v16, %v12321_v6 }
 0x31e   : > { %2113 = vst.msk [vmem:[#allocation2 + $0x58] sm:$0xff] %vm454_vm6, %v2085_v7  ;;  %v12349_v12 = vsel %vm454_vm6, %v2083_v38, %v2085_v7  ;;  %v10388_v45 = vpack.i.bf16 %v2401_v37, %v2398_v48  ;;  %v2580_v38 = vmul.f32 %v12315_v0, %v11997_v54  ;;  %v2577_v7 = vmul.f32 %v12298_v27, %v11997_v54 }
 0x31f   : > { %10354 = vrot.lane.b32.xlu0 %v12319_v62, %s14610_s21  ;;  %10359 = vrot.lane.b32.xlu1 %v12326_v8, %s14610_s21  ;;  %v10383_v20 = vpack.i.bf16 %v2403_v18, %v2402_v9  ;;  %v2408_v49 = vmul.f32 %v12349_v12, %v11950_v52  ;;  %v12409_v42 = vmul.f32 %v11749_v15, %v12349_v12 }
 0x320   : > { %v12344_v30 = vld [vmem:[#allocation2 + $0x30] sm:$0xff]  ;;  %v10413_v18 = vpack.i.bf16 %v2581_v56, %v2580_v38  ;;  %v10408_v19 = vpack.i.bf16 %v2578_v2, %v2577_v7  ;;  %v2583_v37 = vmul.f32 %v12334_v10, %v11997_v54  ;;  %v2911_v7 = vmul.f32 %v11850_v53, %v12312_v32 }
 0x321   : > { %v12336_v11 = vld [vmem:[#allocation2 + $0x40] sm:$0xff]  ;;  %v2404_v34 = vmul.f32 %v11870_v61, %v12344_v30  ;;  %v9389_v50 = vpack.c.bf16 %v12409_v42, %v12405_v41  ;;  %v2143_v41 = vld [vmem:[#allocation6 + $0x158] sm:$0xff] }
 0x322   : > { %v12340_v28 = vpack.i.bf16 %v12336_v11, %v12334_v10  ;;  %v2406_v21 = vmul.f32 %v11934_v60, %v12336_v11  ;;  %v2584_v9 = vmul.f32 %v11975_v16, %v12336_v11  ;;  %v2916_v38 = vmul.f32 %v11866_v59, %v12336_v11 }
 0x324   : > { %10364 = vrot.lane.b32.xlu1 %v12340_v28, %s14610_s21  ;;  %v12346_v4 = vld [vmem:[#allocation2 + $0x48] sm:$0xff]  ;;  %v10393_v26 = vpack.i.bf16 %v2406_v21, %v2405_v29 }
 0x325   : > { %v12353_v13 = vpack.i.bf16 %v12346_v4, %v12344_v30  ;;  %v12355_v31 = vld [vmem:[#allocation2 + $0x58] sm:$0xff]  ;;  %v2407_v63 = vmul.f32 %v11870_v61, %v12346_v4  ;;  %v2585_v48 = vmul.f32 %v11977_v17, %v12346_v4 }
 0x326   : > { %v12359_v40 = vpack.i.bf16 %v12355_v31, %v12349_v12  ;;  %v2409_v35 = vmul.f32 %v11934_v60, %v12355_v31  ;;  %v2587_v29 = vmul.f32 %v11975_v16, %v12355_v31 }
 0x327   : > { %v10403_v36 = vpack.i.bf16 %v2407_v63, %v2404_v34  ;;  %v2913_v34 = vmul.f32 %v11866_v59, %v12321_v6 }
 0x328   : > { %10374 = vrot.lane.b32.xlu1 %v12353_v13, %s14610_s21  ;;  %10369 = vrot.lane.b32.xlu0 %v12359_v40, %s14610_s21  ;;  %v10398_v46 = vpack.i.bf16 %v2409_v35, %v2408_v49  ;;  %v2910_v49 = vmul.f32 %v11866_v59, %v12300_v43 }
 0x32c   : > { %10384 = vrot.lane.b32.xlu1 %v10383_v20, %s14608_s17  ;;  %10379 = vrot.lane.b32.xlu0 %v10378_v24, %s14608_s17  ;;  %v2576_v20 = vmul.f32 %v11977_v17, %v12310_v3  ;;  %v10423_v24 = vpack.i.bf16 %v2584_v9, %v2583_v37  ;;  %v2917_v37 = vmul.f32 %v11850_v53, %v12346_v4 }
 0x32e   : > { %v10418_v21 = vpack.i.bf16 %v2579_v44, %v2576_v20  ;;  %v2919_v20 = vmul.f32 %v11866_v59, %v12355_v31 }
 0x330   : > { %10394 = vrot.lane.b32.xlu1 %v10393_v26, %s14608_s17  ;;  %10389 = vrot.lane.b32.xlu0 %v10388_v45, %s14608_s17  ;;  %v2582_v45 = vmul.f32 %v11977_v17, %v12344_v30  ;;  %v2586_v26 = vmul.f32 %v12349_v12, %v11997_v54 }
 0x332   : > { %v10433_v63 = vpack.i.bf16 %v2585_v48, %v2582_v45  ;;  %v10428_v35 = vpack.i.bf16 %v2587_v29, %v2586_v26  ;;  %v3091_v45 = vmul.f32 %v11918_v47, %v12321_v6  ;;  %v3088_v26 = vmul.f32 %v11918_v47, %v12300_v43 }
 0x334   : > { %10404 = vrot.lane.b32.xlu1 %v10403_v36, %s14608_s17  ;;  %10399 = vrot.lane.b32.xlu0 %v10398_v46, %s14608_s17  ;;  %v2912_v36 = vmul.f32 %v12315_v0, %v11886_v5  ;;  %v2909_v46 = vmul.f32 %v12298_v27, %v11886_v5  ;;  %s14653_s17 = sshll.u32 %s11701_s18, 6 }
 0x335   : > { %s14510_s1 = scalar_lea.vmem [#allocation8], %s14653_s17 }
 0x336   : > { %v10473_v56 = vpack.i.bf16 %v2913_v34, %v2912_v36  ;;  %v10468_v2 = vpack.i.bf16 %v2910_v49, %v2909_v46  ;;  %v3094_v36 = vmul.f32 %v11918_v47, %v12336_v11  ;;  %v3089_v46 = vmul.f32 %v11858_v57, %v12312_v32  ;;  %s8888_s10 = sshll.u32 %s14510_s1, 4  ;;  %s14524_s10 = int_to_ptr.vmem [resolvable:$true] %s8888_s10 }
 0x337   : > { %s11414_s13 = scalar_lea.vmem %s14524_s10, 1024 }
 0x338   : > { %10414 = vrot.lane.b32.xlu1 %v10413_v18, %s14606_s26  ;;  %10409 = vrot.lane.b32.xlu0 %v10408_v19, %s14606_s26  ;;  %v2915_v18 = vmul.f32 %v12334_v10, %v11886_v5  ;;  %v2908_v19 = vmul.f32 %v11850_v53, %v12310_v3  ;;  %p11415_p4 = scmp.ne.s32.totalorder %s14524_s10, %s11414_s13 }
 0x33a   : > { %v10483_v9 = vpack.i.bf16 %v2916_v38, %v2915_v18  ;;  %v10478_v44 = vpack.i.bf16 %v2911_v7, %v2908_v19  ;;  %v3095_v18 = vmul.f32 %v11858_v57, %v12346_v4  ;;  %v3097_v19 = vmul.f32 %v11918_v47, %v12355_v31  ;;  %p11416_p6 = pnand %p11415_p4, %p11653_p12 }
 0x33c   : > { %10424 = vrot.lane.b32.xlu1 %v10423_v24, %s14606_s26  ;;  %10419 = vrot.lane.b32.xlu0 %v10418_v21, %s14606_s26  ;;  %v2914_v24 = vmul.f32 %v11850_v53, %v12344_v30  ;;  %v2918_v21 = vmul.f32 %v12349_v12, %v11886_v5  ;;  %p11417_p8 = pneg %p11416_p6 }
 0x33e   : > { %v10493_v48 = vpack.i.bf16 %v2917_v37, %v2914_v24  ;;  %v10488_v29 = vpack.i.bf16 %v2919_v20, %v2918_v21  ;;  %v3423_v24 = vmul.f32 %v12010_v33, %v12321_v6  ;;  %v3420_v21 = vmul.f32 %v12010_v33, %v12300_v43 }
 0x33f   : > { %v3426_v6 = vmul.f32 %v12010_v33, %v12336_v11  ;;  %v3421_v43 = vmul.f32 %v11985_v23, %v12312_v32  ;;  %v3429_v11 = vmul.f32 %v12010_v33, %v12355_v31  ;;  %v9023_v31 = vld [vmem:[%s14580_s2 + $0x28] sm:$0xff] }
 0x340   : > { %10434 = vrot.lane.b32.xlu1 %v10433_v63, %s14606_s26  ;;  %10429 = vrot.lane.b32.xlu0 %v10428_v35, %s14606_s26  ;;  %v3090_v63 = vmul.f32 %v12315_v0, %v11925_v55  ;;  %v3087_v35 = vmul.f32 %v12298_v27, %v11925_v55  ;;  %s14643_s26 = smov 17  }
 0x342   : > { %v10503_v34 = vpack.i.bf16 %v3091_v45, %v3090_v63  ;;  %v10498_v49 = vpack.i.bf16 %v3088_v26, %v3087_v35  ;;  %v9022_v63 = vld [vmem:[%s14580_s2 + $0x20] sm:$0xff]  ;;  %v9024_v35 = vld [vmem:[%s14580_s2 + $0x30] sm:$0xff] }
 0x344   : > { %10444 = vrot.lane.b32.xlu1 %v12326_v8, %s14638_s20  ;;  %10439 = vrot.lane.b32.xlu0 %v12305_v39, %s14638_s20 }
 0x348   : > { %10454 = vrot.lane.b32.xlu1 %v12340_v28, %s14638_s20  ;;  %10449 = vrot.lane.b32.xlu0 %v12319_v62, %s14638_s20 }
 0x34c   : > { %10464 = vrot.lane.b32.xlu1 %v12353_v13, %s14638_s20  ;;  %10459 = vrot.lane.b32.xlu0 %v12359_v40, %s14638_s20 }
 0x350   : > { %10474 = vrot.lane.b32.xlu1 %v10473_v56, %s14639_s22  ;;  %10469 = vrot.lane.b32.xlu0 %v10468_v2, %s14639_s22  ;;  %v3093_v56 = vmul.f32 %v12334_v10, %v11925_v55  ;;  %v3086_v2 = vmul.f32 %v11858_v57, %v12310_v3 }
 0x352   : > { %v10513_v38 = vpack.i.bf16 %v3094_v36, %v3093_v56  ;;  %v10508_v7 = vpack.i.bf16 %v3089_v46, %v3086_v2 }
 0x354   : > { %10484 = vrot.lane.b32.xlu1 %v10483_v9, %s14639_s22  ;;  %10479 = vrot.lane.b32.xlu0 %v10478_v44, %s14639_s22  ;;  %v3092_v9 = vmul.f32 %v11858_v57, %v12344_v30  ;;  %v3096_v44 = vmul.f32 %v12349_v12, %v11925_v55 }
 0x356   : > { %v10523_v37 = vpack.i.bf16 %v3095_v18, %v3092_v9  ;;  %v10518_v20 = vpack.i.bf16 %v3097_v19, %v3096_v44 }
 0x358   : > { %10494 = vrot.lane.b32.xlu1 %v10493_v48, %s14639_s22  ;;  %10489 = vrot.lane.b32.xlu0 %v10488_v29, %s14639_s22  ;;  %v3427_v48 = vmul.f32 %v11985_v23, %v12346_v4  ;;  %v3424_v29 = vmul.f32 %v11985_v23, %v12344_v30 }
 0x35a   : > { %v10583_v45 = vpack.i.bf16 %v3427_v48, %v3424_v29 }
 0x35c   : > { %10504 = vrot.lane.b32.xlu1 %v10503_v34, %s14640_s16  ;;  %10499 = vrot.lane.b32.xlu0 %v10498_v49, %s14640_s16 }
 0x360   : > { %10514 = vrot.lane.b32.xlu1 %v10513_v38, %s14640_s16  ;;  %10509 = vrot.lane.b32.xlu0 %v10508_v7, %s14640_s16 }
 0x364   : > { %10524 = vrot.lane.b32.xlu1 %v10523_v37, %s14640_s16  ;;  %10519 = vrot.lane.b32.xlu0 %v10518_v20, %s14640_s16 }
 0x368   : > { %10534 = vrot.lane.b32.xlu1 %v12326_v8, %s14641_s25  ;;  %10529 = vrot.lane.b32.xlu0 %v12305_v39, %s14641_s25  ;;  %v3422_v39 = vmul.f32 %v12315_v0, %v12025_v51  ;;  %v3419_v8 = vmul.f32 %v12298_v27, %v12025_v51  ;;  %v3418_v0 = vmul.f32 %v11985_v23, %v12310_v3 }
 0x36a   : > { %v10568_v27 = vpack.i.bf16 %v3421_v43, %v3418_v0 }
 0x36c   : > { %10544 = vrot.lane.b32.xlu1 %v12340_v28, %s14641_s25  ;;  %10539 = vrot.lane.b32.xlu0 %v12319_v62, %s14641_s25  ;;  %v10563_v28 = vpack.i.bf16 %v3423_v24, %v3422_v39  ;;  %v10558_v62 = vpack.i.bf16 %v3420_v21, %v3419_v8 }
 0x370   : > { %10554 = vrot.lane.b32.xlu1 %v12353_v13, %s14641_s25  ;;  %10549 = vrot.lane.b32.xlu0 %v12359_v40, %s14641_s25  ;;  %v3425_v13 = vmul.f32 %v12334_v10, %v12025_v51  ;;  %v3428_v10 = vmul.f32 %v12349_v12, %v12025_v51  ;;  %v9025_v12 = vld [vmem:[%s14580_s2 + $0x38] sm:$0xff] }
 0x372   : > { %v10573_v40 = vpack.i.bf16 %v3426_v6, %v3425_v13  ;;  %v10578_v26 = vpack.i.bf16 %v3429_v11, %v3428_v10 }
 0x374   : > { %10564 = vrot.lane.b32.xlu1 %v10563_v28, %s14642_s27  ;;  %10559 = vrot.lane.b32.xlu0 %v10558_v62, %s14642_s27 }
 0x378   : > { %10574 = vrot.lane.b32.xlu1 %v10573_v40, %s14642_s27  ;;  %10569 = vrot.lane.b32.xlu0 %v10568_v27, %s14642_s27 }
 0x37c   : > { %10584 = vrot.lane.b32.xlu1 %v10583_v45, %s14642_s27  ;;  %10579 = vrot.lane.b32.xlu0 %v10578_v26, %s14642_s27 }
 0x380   : > { %3603 = vperm.xlu1 %10346, %v9023_v31   ;;  %3598 = vperm.xlu0 %10347, %v9022_v63   ;;  %v2124_v31 = vmul.f32 %v11746_v14, %v12312_v32  ;;  %v2122_v63 = vmul.f32 %v11746_v14, %v12310_v3  ;;  %v2128_v32 = vmul.f32 %v11746_v14, %v12346_v4  ;;  %v2141_v3 = vld [vmem:[#allocation6 + $0x148] sm:$0xff] }
 0x384   : > { %3613 = vperm.xlu1 %10346, %v9025_v12   ;;  %3608 = vperm.xlu0 %10347, %v9024_v35  }
 0x38d   : > { %v10350_v34 = vpop.permute.xlu0 %10349 }
 0x38e   : > { %v10352_v49 = vunpack.i.h.bf16 %v10350_v34  ;;  %v10351_v36 = vunpack.i.l.bf16 %v10350_v34 }
 0x390   : > { %v2181_v44 = vsel %vm549_vm11, %v10351_v36, %v10352_v49 }
 0x391   : > { %v10355_v46 = vpop.permute.xlu0 %10354  ;;  %v10360_v56 = vpop.permute.xlu1 %10359 }
 0x392   : > { %v10357_v2 = vunpack.i.h.bf16 %v10355_v46  ;;  %v10356_v38 = vunpack.i.l.bf16 %v10355_v46  ;;  %v10362_v7 = vunpack.i.h.bf16 %v10360_v56  ;;  %v10361_v18 = vunpack.i.l.bf16 %v10360_v56 }
 0x394   : > { %v2180_v19 = vsel %vm549_vm11, %v10356_v38, %v10351_v36  ;;  %v2182_v9 = vsel %vm549_vm11, %v10357_v2, %v10361_v18  ;;  %v2183_v37 = vsel %vm549_vm11, %v10361_v18, %v10362_v7  ;;  %v2140_v36 = vld [vmem:[#allocation6 + $0x140] sm:$0xff]  ;;  %v9387_v2 = vpack.c.bf16 %v2124_v31, %v2122_v63 }
 0x395   : > { %v9377_v20 = vpack.c.bf16 %v2183_v37, %v2181_v44  ;;  %v9379_v24 = vpack.c.bf16 %v2182_v9, %v2180_v19  ;;  %v2126_v38 = vmul.f32 %v11746_v14, %v12344_v30 }
 0x396   : > { %v10365_v21 = vpop.permute.xlu1 %10364 }
 0x397   : > { %9378 = vmatprep.subr.bf16.mxu1 %v9377_v20  ;;  %v10367_v39 = vunpack.i.h.bf16 %v10365_v21  ;;  %v10366_v8 = vunpack.i.l.bf16 %v10365_v21  ;;  %v9391_v4 = vpack.c.bf16 %v2128_v32, %v2126_v38 }
 0x398   : > { %9380 = vmatpush1.bf16.msra.mxu1 %v9379_v24 }
 0x399   : > { %v2185_v48 = vsel %vm549_vm11, %v10366_v8, %v10367_v39 }
 0x39a   : > { %v10370_v28 = vpop.permute.xlu0 %10369  ;;  %v10375_v62 = vpop.permute.xlu1 %10374 }
 0x39b   : > { %v10372_v6 = vunpack.i.h.bf16 %v10370_v28  ;;  %v10371_v43 = vunpack.i.l.bf16 %v10370_v28  ;;  %v10377_v13 = vunpack.i.h.bf16 %v10375_v62  ;;  %v10376_v0 = vunpack.i.l.bf16 %v10375_v62 }
 0x39d   : > { %v2186_v40 = vsel %vm549_vm11, %v10377_v13, %v10371_v43  ;;  %v2184_v27 = vsel %vm549_vm11, %v10376_v0, %v10366_v8  ;;  %v2187_v11 = vsel %vm549_vm11, %v10371_v43, %v10372_v6 }
 0x39e   : > { %v10380_v29 = vpop.permute.xlu0 %10379  ;;  %v10385_v10 = vpop.permute.xlu1 %10384  ;;  %v9381_v45 = vpack.c.bf16 %v2187_v11, %v2185_v48  ;;  %v9383_v26 = vpack.c.bf16 %v2186_v40, %v2184_v27  ;;  %v2131_v48 = vld [vmem:[#allocation6 + $0x120] sm:$0xff] }
 0x39f   : > { %v10382_v12 = vunpack.i.h.bf16 %v10380_v29  ;;  %v10381_v35 = vunpack.i.l.bf16 %v10380_v29  ;;  %v10387_v34 = vunpack.i.h.bf16 %v10385_v10  ;;  %v10386_v49 = vunpack.i.l.bf16 %v10385_v10 }
 0x3a0   : > { %9382 = vmatprep.subr.bf16.mxu1 %v9381_v45 }
 0x3a1   : > { %9384 = vmatpush1.bf16.msra.mxu1 %v9383_v26  ;;  %v2452_v7 = vsel %vm833_vm0, %v10381_v35, %v10382_v12  ;;  %v2454_v18 = vsel %vm833_vm0, %v10386_v49, %v10387_v34  ;;  %v2132_v12 = vld [vmem:[#allocation6 + $0x128] sm:$0xff] }
 0x3a2   : > { %v10390_v46 = vpop.permute.xlu0 %10389  ;;  %v10395_v56 = vpop.permute.xlu1 %10394  ;;  %9386 = vmatprep.subr.bf16.mxu1 %v9385_v58  ;;  %v9393_v25 = vpack.c.bf16 %v2454_v18, %v2452_v7  ;;  %v2142_v58 = vld [vmem:[#allocation6 + $0x150] sm:$0xff] }
 0x3a3   : > { %v10391_v44 = vunpack.i.l.bf16 %v10390_v46  ;;  %v10392_v37 = vunpack.i.h.bf16 %v10390_v46  ;;  %v10397_v39 = vunpack.i.h.bf16 %v10395_v56  ;;  %v10396_v8 = vunpack.i.l.bf16 %v10395_v56 }
 0x3a4   : > { %9026 = vmatmul.mubr.msk.f32.vlgmr.msra.gmra.mrb[8].mxu1 %vm566_vm8, %v2140_v36 }
 0x3a5   : > { %9388 = vmatpush1.bf16.msra.mxu1 %v9387_v2  ;;  %2278 = vmatprep.mubr.f32.mxu1 %v14616_v1  ;;  %v2451_v21 = vsel %vm833_vm0, %v10391_v44, %v10381_v35  ;;  %v2453_v28 = vsel %vm833_vm0, %v10392_v37, %v10386_v49  ;;  %v2456_v45 = vsel %vm833_vm0, %v10396_v8, %v10397_v39  ;;  %v2133_v2 = vld [vmem:[#allocation6 + $0x130] sm:$0xff] }
 0x3a6   : > { %v10400_v19 = vpop.permute.xlu0 %10399  ;;  %v10405_v22 = vpop.permute.xlu1 %10404  ;;  %9390 = vmatprep.subr.bf16.mxu1 %v9389_v50  ;;  %v9395_v10 = vpack.c.bf16 %v2453_v28, %v2451_v21  ;;  %v2411_v21 = vld [vmem:[#allocation6 + $0x160] sm:$0xff] }
 0x3a7   : > { %v10402_v20 = vunpack.i.h.bf16 %v10400_v19  ;;  %v10401_v24 = vunpack.i.l.bf16 %v10400_v19  ;;  %v10407_v62 = vunpack.i.h.bf16 %v10405_v22  ;;  %v10406_v6 = vunpack.i.l.bf16 %v10405_v22  ;;  %v2134_v22 = vld [vmem:[#allocation6 + $0x138] sm:$0xff] }
 0x3a8   : > { %9027 = vmatmul.mubr.msk.f32.gmra.mrb[10].mxu1 %vm566_vm8, %v2141_v3 }
 0x3a9   : > { %9392 = vmatpush1.bf16.msra.mxu1 %v9391_v4  ;;  %2284 = vmatprep.mubr.f32.mxu1 %v14616_v1  ;;  %v2458_v43 = vsel %vm833_vm0, %v10401_v24, %v10402_v20  ;;  %v2457_v26 = vsel %vm833_vm0, %v10407_v62, %v10401_v24  ;;  %v2455_v31 = vsel %vm833_vm0, %v10406_v6, %v10396_v8 }
 0x3aa   : > { %v10410_v9 = vpop.permute.xlu0 %10409  ;;  %v10415_v30 = vpop.permute.xlu1 %10414  ;;  %9394 = vmatprep.subr.bf16.mxu1 %v9393_v25  ;;  %v9397_v63 = vpack.c.bf16 %v2458_v43, %v2456_v45  ;;  %v9399_v46 = vpack.c.bf16 %v2457_v26, %v2455_v31 }
 0x3ab   : > { %v10412_v13 = vunpack.i.h.bf16 %v10410_v9  ;;  %v10411_v0 = vunpack.i.l.bf16 %v10410_v9  ;;  %v10417_v40 = vunpack.i.h.bf16 %v10415_v30  ;;  %v10416_v27 = vunpack.i.l.bf16 %v10415_v30 }
 0x3ac   : > { %9028 = vmatmul.mubr.msk.f32.gmra.mrb[12].mxu1 %vm566_vm8, %v2142_v58 }
 0x3ad   : > { %2290 = vmatprep.mubr.f32.mxu1 %v14616_v1  ;;  %v2630_v35 = vsel %vm1023_vm1, %v10411_v0, %v10412_v13  ;;  %v2632_v34 = vsel %vm1023_vm1, %v10416_v27, %v10417_v40  ;;  %v2412_v13 = vld [vmem:[#allocation6 + $0x168] sm:$0xff] }
 0x3ae   : > { %v10420_v42 = vpop.permute.xlu0 %10419  ;;  %v12601_v50 = vpop.permute.xlu1 %10424  ;;  %v9401_v56 = vpack.c.bf16 %v2632_v34, %v2630_v35 }
 0x3af   : > { %v10421_v32 = vunpack.i.l.bf16 %v10420_v42  ;;  %v10422_v3 = vunpack.i.h.bf16 %v10420_v42  ;;  %v10427_v25 = vunpack.i.h.bf16 %v12601_v50  ;;  %v10426_v58 = vunpack.i.l.bf16 %v12601_v50 }
 0x3b0   : > { %9029 = vmatmul.mubr.msk.f32.gmra.mrb[14].mxu1 %vm566_vm8, %v2143_v41 }
 0x3b1   : > { %2373 = vmatprep.mubr.f32.mxu1 %v14616_v1  ;;  %v2629_v4 = vsel %vm1023_vm1, %v10421_v32, %v10411_v0  ;;  %v2631_v9 = vsel %vm1023_vm1, %v10422_v3, %v10416_v27  ;;  %v2634_v28 = vsel %vm1023_vm1, %v10426_v58, %v10427_v25 }
 0x3b2   : > { %v10430_v11 = vpop.permute.xlu0 %10429  ;;  %v10435_v29 = vpop.permute.xlu1 %10434  ;;  %v9403_v8 = vpack.c.bf16 %v2631_v9, %v2629_v4  ;;  %v2589_v4 = vld [vmem:[#allocation6 + $0x180] sm:$0xff] }
 0x3b3   : > { %v10432_v38 = vunpack.i.h.bf16 %v10430_v11  ;;  %v10431_v7 = vunpack.i.l.bf16 %v10430_v11  ;;  %v10437_v30 = vunpack.i.h.bf16 %v10435_v29  ;;  %v10436_v44 = vunpack.i.l.bf16 %v10435_v29 }
 0x3b4   : > { %9030 = vmatmul.mubr.msk.f32.vlgmr.msra.gmra.mrb[8].mxu1 %vm566_vm8, %v2131_v48 }
 0x3b5   : > { %9396 = vmatpush1.bf16.msra.mxu1 %v9395_v10  ;;  %2379 = vmatprep.mubr.f32.mxu1 %v14616_v1  ;;  %v2636_v37 = vsel %vm1023_vm1, %v10431_v7, %v10432_v38  ;;  %v2635_v62 = vsel %vm1023_vm1, %v10437_v30, %v10431_v7  ;;  %v2633_v6 = vsel %vm1023_vm1, %v10436_v44, %v10426_v58  ;;  %v2413_v10 = vld [vmem:[#allocation6 + $0x170] sm:$0xff] }
 0x3b6   : > { %9398 = vmatprep.subr.bf16.mxu1 %v9397_v63  ;;  %v12615_v49 = vpop.permute.xlu0 %10439  ;;  %v12617_v36 = vpop.permute.xlu1 %10444  ;;  %v9405_v43 = vpack.c.bf16 %v2636_v37, %v2634_v28  ;;  %v9407_v27 = vpack.c.bf16 %v2635_v62, %v2633_v6 }
 0x3b7   : > { %v10442_v20 = vunpack.i.h.bf16 %v12615_v49  ;;  %v10441_v24 = vunpack.i.l.bf16 %v12615_v49  ;;  %v10447_v41 = vunpack.i.h.bf16 %v12617_v36  ;;  %v10446_v42 = vunpack.i.l.bf16 %v12617_v36 }
 0x3b8   : > { %9031 = vmatmul.mubr.msk.f32.gmra.mrb[10].mxu1 %vm566_vm8, %v2132_v12  ;;  %v2414_v12 = vld [vmem:[#allocation6 + $0x178] sm:$0xff] }
 0x3b9   : > { %9400 = vmatpush1.bf16.msra.mxu1 %v9399_v46  ;;  %2385 = vmatprep.mubr.f32.mxu1 %v14616_v1  ;;  %v2784_v0 = vsel %vm1178_vm12, %v10441_v24, %v10442_v20  ;;  %v2786_v40 = vsel %vm1178_vm12, %v10446_v42, %v10447_v41  ;;  %v2590_v20 = vld [vmem:[#allocation6 + $0x188] sm:$0xff] }
 0x3ba   : > { %9402 = vmatprep.subr.bf16.mxu1 %v9401_v56  ;;  %v10450_v18 = vpop.permute.xlu0 %10449  ;;  %v12621_v19 = vpop.permute.xlu1 %10454  ;;  %v9409_v29 = vpack.c.bf16 %v2786_v40, %v2784_v0 }
 0x3bb   : > { %v10451_v45 = vunpack.i.l.bf16 %v10450_v18  ;;  %v10452_v26 = vunpack.i.h.bf16 %v10450_v18  ;;  %v10457_v36 = vunpack.i.h.bf16 %v12621_v19  ;;  %v10456_v46 = vunpack.i.l.bf16 %v12621_v19 }
 0x3bc   : > { %9032 = vmatmul.mubr.msk.f32.gmra.mrb[12].mxu1 %vm566_vm8, %v2133_v2 }
 0x3bd   : > { %2391 = vmatprep.mubr.f32.mxu1 %v14616_v1  ;;  %v2783_v49 = vsel %vm1178_vm12, %v10451_v45, %v10441_v24  ;;  %v2785_v56 = vsel %vm1178_vm12, %v10452_v26, %v10446_v42  ;;  %v2788_v25 = vsel %vm1178_vm12, %v10456_v46, %v10457_v36 }
 0x3be   : > { %v10460_v50 = vpop.permute.xlu0 %10459  ;;  %v10465_v39 = vpop.permute.xlu1 %10464  ;;  %v9411_v19 = vpack.c.bf16 %v2785_v56, %v2783_v49  ;;  %v2755_v49 = vld [vmem:[#allocation6 + $0x1a0] sm:$0xff] }
 0x3bf   : > { %v10462_v31 = vunpack.i.h.bf16 %v10460_v50  ;;  %v10461_v63 = vunpack.i.l.bf16 %v10460_v50  ;;  %v10467_v2 = vunpack.i.h.bf16 %v10465_v39  ;;  %v10466_v32 = vunpack.i.l.bf16 %v10465_v39  ;;  %v2591_v50 = vld [vmem:[#allocation6 + $0x190] sm:$0xff] }
 0x3c0   : > { %9033 = vmatmul.mubr.msk.f32.gmra.mrb[14].mxu1 %vm566_vm8, %v2134_v22 }
 0x3c1   : > { %2543 = vmatprep.mubr.f32.mxu1 %v14616_v1  ;;  %v2790_v3 = vsel %vm1178_vm12, %v10461_v63, %v10462_v31  ;;  %v2789_v58 = vsel %vm1178_vm12, %v10467_v2, %v10461_v63  ;;  %v2787_v9 = vsel %vm1178_vm12, %v10466_v32, %v10456_v46  ;;  %v2756_v32 = vld [vmem:[#allocation6 + $0x1a8] sm:$0xff] }
 0x3c2   : > { %v12643_v48 = vpop.permute.xlu0 %10469  ;;  %v12645_v11 = vpop.permute.xlu1 %10474  ;;  %v9413_v37 = vpack.c.bf16 %v2790_v3, %v2788_v25  ;;  %v9415_v42 = vpack.c.bf16 %v2789_v58, %v2787_v9 }
 0x3c3   : > { %v10472_v38 = vunpack.i.h.bf16 %v12643_v48  ;;  %v10471_v7 = vunpack.i.l.bf16 %v12643_v48  ;;  %v10477_v18 = vunpack.i.h.bf16 %v12645_v11  ;;  %v10476_v22 = vunpack.i.l.bf16 %v12645_v11 }
 0x3c4   : > { %9034 = vmatmul.mubr.msk.f32.vlgmr.msra.gmra.mrb[8].mxu1 %vm566_vm8, %v2411_v21 }
 0x3c5   : > { %9404 = vmatpush1.bf16.msra.mxu1 %v9403_v8  ;;  %2549 = vmatprep.mubr.f32.mxu1 %v14616_v1  ;;  %v2962_v24 = vsel %vm1366_vm13, %v10471_v7, %v10472_v38  ;;  %v2964_v41 = vsel %vm1366_vm13, %v10476_v22, %v10477_v18 }
 0x3c6   : > { %9406 = vmatprep.subr.bf16.mxu1 %v9405_v43  ;;  %v10480_v35 = vpop.permute.xlu0 %10479  ;;  %v12651_v34 = vpop.permute.xlu1 %10484  ;;  %v9417_v21 = vpack.c.bf16 %v2964_v41, %v2962_v24 }
 0x3c7   : > { %v10481_v28 = vunpack.i.l.bf16 %v10480_v35  ;;  %v10482_v62 = vunpack.i.h.bf16 %v10480_v35  ;;  %v10487_v40 = vunpack.i.h.bf16 %v12651_v34 }
 0x3c8   : > { %9035 = vmatmul.mubr.msk.f32.gmra.mrb[10].mxu1 %vm566_vm8, %v2412_v13  ;;  %v2592_v13 = vld [vmem:[#allocation6 + $0x198] sm:$0xff] }
 0x3c9   : > { %9408 = vmatpush1.bf16.msra.mxu1 %v9407_v27  ;;  %2555 = vmatprep.mubr.f32.mxu1 %v14616_v1  ;;  %v2961_v0 = vsel %vm1366_vm13, %v10481_v28, %v10471_v7  ;;  %v10486_v27 = vunpack.i.l.bf16 %v12651_v34  ;;  %v2963_v48 = vsel %vm1366_vm13, %v10482_v62, %v10476_v22 }
 0x3ca   : > { %9410 = vmatprep.subr.bf16.mxu1 %v9409_v29  ;;  %v10490_v30 = vpop.permute.xlu0 %10489  ;;  %v10495_v44 = vpop.permute.xlu1 %10494  ;;  %v9419_v36 = vpack.c.bf16 %v2963_v48, %v2961_v0 }
 0x3cb   : > { %v10492_v6 = vunpack.i.h.bf16 %v10490_v30  ;;  %v10491_v43 = vunpack.i.l.bf16 %v10490_v30  ;;  %v10497_v11 = vunpack.i.h.bf16 %v10495_v44  ;;  %v10496_v29 = vunpack.i.l.bf16 %v10495_v44 }
 0x3cc   : > { %9036 = vmatmul.mubr.msk.f32.gmra.mrb[12].mxu1 %vm566_vm8, %v2413_v10  ;;  %v2966_v34 = vsel %vm1366_vm13, %v10486_v27, %v10487_v40 }
 0x3cd   : > { %2561 = vmatprep.mubr.f32.mxu1 %v14616_v1  ;;  %v2968_v26 = vsel %vm1366_vm13, %v10491_v43, %v10492_v6  ;;  %v2967_v46 = vsel %vm1366_vm13, %v10497_v11, %v10491_v43  ;;  %v2965_v56 = vsel %vm1366_vm13, %v10496_v29, %v10486_v27 }
 0x3ce   : > { %v10500_v39 = vpop.permute.xlu0 %10499  ;;  %v10505_v8 = vpop.permute.xlu1 %10504  ;;  %v9421_v2 = vpack.c.bf16 %v2968_v26, %v2966_v34  ;;  %v9423_v22 = vpack.c.bf16 %v2967_v46, %v2965_v56 }
 0x3cf   : > { %v10502_v31 = vunpack.i.h.bf16 %v10500_v39  ;;  %v10501_v63 = vunpack.i.l.bf16 %v10500_v39  ;;  %v10506_v35 = vunpack.i.l.bf16 %v10505_v8 }
 0x3d0   : > { %9037 = vmatmul.mubr.msk.f32.gmra.mrb[14].mxu1 %vm566_vm8, %v2414_v12  ;;  %v10507_v12 = vunpack.i.h.bf16 %v10505_v8 }
 0x3d1   : > { %2721 = vmatprep.mubr.f32.mxu1 %v14616_v1  ;;  %v3140_v3 = vsel %vm1553_vm15, %v10501_v63, %v10502_v31 }
 0x3d2   : > { %v10510_v10 = vpop.permute.xlu0 %10509  ;;  %v10515_v45 = vpop.permute.xlu1 %10514  ;;  %v3142_v38 = vsel %vm1553_vm15, %v10506_v35, %v10507_v12 }
 0x3d3   : > { %v10511_v25 = vunpack.i.l.bf16 %v10510_v10  ;;  %v10512_v58 = vunpack.i.h.bf16 %v10510_v10  ;;  %v10517_v41 = vunpack.i.h.bf16 %v10515_v45 }
 0x3d4   : > { %9038 = vmatmul.mubr.msk.f32.vlgmr.msra.gmra.mrb[8].mxu1 %vm566_vm8, %v2589_v4  ;;  %v9425_v4 = vpack.c.bf16 %v3142_v38, %v3140_v3 }
 0x3d5   : > { %9412 = vmatpush1.bf16.msra.mxu1 %v9411_v19  ;;  %2727 = vmatprep.mubr.f32.mxu1 %v14616_v1  ;;  %v2757_v19 = vld [vmem:[#allocation6 + $0x1b0] sm:$0xff]  ;;  %v3139_v24 = vsel %vm1553_vm15, %v10511_v25, %v10501_v63 }
 0x3d6   : > { %9414 = vmatprep.subr.bf16.mxu1 %v9413_v37  ;;  %v10520_v7 = vpop.permute.xlu0 %10519  ;;  %v10525_v18 = vpop.permute.xlu1 %10524 }
 0x3d7   : > { %v10522_v9 = vunpack.i.h.bf16 %v10520_v7  ;;  %v10521_v30 = vunpack.i.l.bf16 %v10520_v7  ;;  %v10526_v39 = vunpack.i.l.bf16 %v10525_v18 }
 0x3d8   : > { %9039 = vmatmul.mubr.msk.f32.gmra.mrb[10].mxu1 %vm566_vm8, %v2590_v20  ;;  %v2758_v20 = vld [vmem:[#allocation6 + $0x1b8] sm:$0xff] }
 0x3d9   : > { %9416 = vmatpush1.bf16.msra.mxu1 %v9415_v42  ;;  %2733 = vmatprep.mubr.f32.mxu1 %v14616_v1  ;;  %v10516_v42 = vunpack.i.l.bf16 %v10515_v45  ;;  %v3146_v8 = vsel %vm1553_vm15, %v10521_v30, %v10522_v9  ;;  %v2922_v45 = vld [vmem:[#allocation6 + $0x1c8] sm:$0xff] }
 0x3da   : > { %9418 = vmatprep.subr.bf16.mxu1 %v9417_v21  ;;  %v10530_v44 = vpop.permute.xlu0 %10529  ;;  %v10535_v37 = vpop.permute.xlu1 %10534  ;;  %v3141_v21 = vsel %vm1553_vm15, %v10512_v58, %v10506_v35 }
 0x3db   : > { %v10532_v28 = vunpack.i.h.bf16 %v10530_v44  ;;  %v10531_v62 = vunpack.i.l.bf16 %v10530_v44  ;;  %v10537_v6 = vunpack.i.h.bf16 %v10535_v37  ;;  %v10536_v43 = vunpack.i.l.bf16 %v10535_v37 }
 0x3dc   : > { %9040 = vmatmul.mubr.msk.f32.gmra.mrb[12].mxu1 %vm566_vm8, %v2591_v50  ;;  %v10527_v50 = vunpack.i.h.bf16 %v10525_v18  ;;  %v9427_v27 = vpack.c.bf16 %v3141_v21, %v3139_v24  ;;  %v3144_v48 = vsel %vm1553_vm15, %v10516_v42, %v10517_v41  ;;  %v3143_v29 = vsel %vm1553_vm15, %v10526_v39, %v10516_v42 }
 0x3dd   : > { %2739 = vmatprep.mubr.f32.mxu1 %v14616_v1  ;;  %v9429_v10 = vpack.c.bf16 %v3146_v8, %v3144_v48  ;;  %v3294_v26 = vsel %vm1708_vm14, %v10531_v62, %v10532_v28  ;;  %v3296_v31 = vsel %vm1708_vm14, %v10536_v43, %v10537_v6  ;;  %v3100_v8 = vld [vmem:[#allocation6 + $0x1e8] sm:$0xff] }
 0x3de   : > { %v10540_v0 = vpop.permute.xlu0 %10539  ;;  %v10545_v40 = vpop.permute.xlu1 %10544  ;;  %v3145_v11 = vsel %vm1553_vm15, %v10527_v50, %v10521_v30 }
 0x3df   : > { %v9431_v63 = vpack.c.bf16 %v3145_v11, %v3143_v29  ;;  %v10541_v34 = vunpack.i.l.bf16 %v10540_v0  ;;  %v10542_v46 = vunpack.i.h.bf16 %v10540_v0  ;;  %v10547_v18 = vunpack.i.h.bf16 %v10545_v40  ;;  %v3101_v0 = vld [vmem:[#allocation6 + $0x1f0] sm:$0xff] }
 0x3e0   : > { %9041 = vmatmul.mubr.msk.f32.gmra.mrb[14].mxu1 %vm566_vm8, %v2592_v13  ;;  %v2921_v13 = vld [vmem:[#allocation6 + $0x1c0] sm:$0xff] }
 0x3e1   : > { %2875 = vmatprep.mubr.f32.mxu1 %v14616_v1  ;;  %v3293_v7 = vsel %vm1708_vm14, %v10541_v34, %v10531_v62 }
 0x3e2   : > { %v10550_v12 = vpop.permute.xlu0 %10549  ;;  %v10555_v35 = vpop.permute.xlu1 %10554 }
 0x3e3   : > { %v10552_v56 = vunpack.i.h.bf16 %v10550_v12  ;;  %v10556_v25 = vunpack.i.l.bf16 %v10555_v35 }
 0x3e4   : > { %9042 = vmatmul.mubr.msk.f32.vlgmr.msra.gmra.mrb[8].mxu1 %vm566_vm8, %v2755_v49  ;;  %v9433_v49 = vpack.c.bf16 %v3296_v31, %v3294_v26 }
 0x3e5   : > { %9420 = vmatpush1.bf16.msra.mxu1 %v9419_v36  ;;  %2881 = vmatprep.mubr.f32.mxu1 %v14616_v1  ;;  %v2923_v36 = vld [vmem:[#allocation6 + $0x1d0] sm:$0xff] }
 0x3e6   : > { %9422 = vmatprep.subr.bf16.mxu1 %v9421_v2  ;;  %v10551_v2 = vunpack.i.l.bf16 %v10550_v12  ;;  %v10560_v3 = vpop.permute.xlu0 %10559  ;;  %v10565_v38 = vpop.permute.xlu1 %10564 }
 0x3e7   : > { %v10562_v9 = vunpack.i.h.bf16 %v10560_v3  ;;  %v10561_v30 = vunpack.i.l.bf16 %v10560_v3  ;;  %v10567_v44 = vunpack.i.h.bf16 %v10565_v38  ;;  %v10566_v37 = vunpack.i.l.bf16 %v10565_v38  ;;  %v3266_v38 = vld [vmem:[#allocation6 + $0x208] sm:$0xff] }
 0x3e8   : > { %9043 = vmatmul.mubr.msk.f32.gmra.mrb[10].mxu1 %vm566_vm8, %v2756_v32  ;;  %v2924_v32 = vld [vmem:[#allocation6 + $0x1d8] sm:$0xff]  ;;  %v3300_v58 = vsel %vm1708_vm14, %v10551_v2, %v10552_v56 }
 0x3e9   : > { %9424 = vmatpush1.bf16.msra.mxu1 %v9423_v22  ;;  %2887 = vmatprep.mubr.f32.mxu1 %v14616_v1  ;;  %v10546_v22 = vunpack.i.l.bf16 %v10545_v40  ;;  %v3472_v28 = vsel %vm1895_vm2, %v10561_v30, %v10562_v9  ;;  %v3474_v62 = vsel %vm1895_vm2, %v10566_v37, %v10567_v44 }
 0x3ea   : > { %9426 = vmatprep.subr.bf16.mxu1 %v9425_v4  ;;  %v3295_v4 = vsel %vm1708_vm14, %v10542_v46, %v10536_v43  ;;  %v10570_v50 = vpop.permute.xlu0 %10569  ;;  %v10575_v6 = vpop.permute.xlu1 %10574 }
 0x3eb   : > { %v9435_v24 = vpack.c.bf16 %v3295_v4, %v3293_v7  ;;  %v3298_v41 = vsel %vm1708_vm14, %v10546_v22, %v10547_v18  ;;  %v3297_v21 = vsel %vm1708_vm14, %v10556_v25, %v10546_v22  ;;  %v10571_v48 = vunpack.i.l.bf16 %v10570_v50  ;;  %v3267_v18 = vld [vmem:[#allocation6 + $0x210] sm:$0xff]  ;;  %v3268_v22 = vld [vmem:[#allocation6 + $0x218] sm:$0xff]  ;;  %v3431_v4 = vld [vmem:[#allocation6 + $0x220] sm:$0xff] }
 0x3ec   : > { %9044 = vmatmul.mubr.msk.f32.gmra.mrb[12].mxu1 %vm566_vm8, %v2757_v19  ;;  %v10557_v19 = vunpack.i.h.bf16 %v10555_v35  ;;  %v9437_v39 = vpack.c.bf16 %v3300_v58, %v3298_v41  ;;  %v10577_v26 = vunpack.i.h.bf16 %v10575_v6  ;;  %v10576_v31 = vunpack.i.l.bf16 %v10575_v6  ;;  %v3433_v25 = vld [vmem:[#allocation6 + $0x230] sm:$0xff]  ;;  %v3434_v58 = vld [vmem:[#allocation6 + $0x238] sm:$0xff] }
 0x3ed   : > { %2893 = vmatprep.mubr.f32.mxu1 %v14616_v1 }
 0x3ee   : > { %v3299_v42 = vsel %vm1708_vm14, %v10557_v19, %v10551_v2  ;;  %v10580_v40 = vpop.permute.xlu0 %10579  ;;  %v3476_v56 = vsel %vm1895_vm2, %v10576_v31, %v10577_v26  ;;  %v3432_v19 = vld [vmem:[#allocation6 + $0x228] sm:$0xff] }
 0x3ef   : > { %v9439_v43 = vpack.c.bf16 %v3299_v42, %v3297_v21  ;;  %v10582_v11 = vunpack.i.h.bf16 %v10580_v40  ;;  %v10581_v29 = vunpack.i.l.bf16 %v10580_v40 }
 0x3f0   : > { %9045 = vmatmul.mubr.msk.f32.gmra.mrb[14].mxu1 %vm566_vm8, %v2758_v20  ;;  %v3099_v20 = vld [vmem:[#allocation6 + $0x1e0] sm:$0xff] }
 0x3f1   : > { %3053 = vmatprep.mubr.f32.mxu1 %v14616_v1  ;;  %v3478_v34 = vsel %vm1895_vm2, %v10581_v29, %v10582_v11 }
 0x3f2   : > { %v9445_v3 = vpack.c.bf16 %v3478_v34, %v3476_v56 }
 0x3f4   : > { %9046 = vmatmul.mubr.msk.f32.vlgmr.msra.gmra.mrb[8].mxu1 %vm566_vm8, %v2921_v13  ;;  %v9441_v13 = vpack.c.bf16 %v3474_v62, %v3472_v28 }
 0x3f5   : > { %9428 = vmatpush1.bf16.msra.mxu1 %v9427_v27  ;;  %3059 = vmatprep.mubr.f32.mxu1 %v14616_v1  ;;  %v10572_v27 = vunpack.i.h.bf16 %v10570_v50 }
 0x3f6   : > { %9430 = vmatprep.subr.bf16.mxu1 %v9429_v10  ;;  %v10585_v10 = vpop.permute.xlu1 %10584 }
 0x3f7   : > { %v3473_v12 = vsel %vm1895_vm2, %v10572_v27, %v10566_v37  ;;  %v10587_v35 = vunpack.i.h.bf16 %v10585_v10 }
 0x3f8   : > { %9047 = vmatmul.mubr.msk.f32.gmra.mrb[10].mxu1 %vm566_vm8, %v2922_v45  ;;  %v3102_v45 = vld [vmem:[#allocation6 + $0x1f8] sm:$0xff] }
 0x3f9   : > { %9432 = vmatpush1.bf16.msra.mxu1 %v9431_v63  ;;  %3065 = vmatprep.mubr.f32.mxu1 %v14616_v1  ;;  %v3471_v63 = vsel %vm1895_vm2, %v10571_v48, %v10561_v30  ;;  %v3477_v2 = vsel %vm1895_vm2, %v10587_v35, %v10581_v29 }
 0x3fa   : > { %9434 = vmatprep.subr.bf16.mxu1 %v9433_v49  ;;  %v10586_v49 = vunpack.i.l.bf16 %v10585_v10  ;;  %v9443_v46 = vpack.c.bf16 %v3473_v12, %v3471_v63 }
 0x3fc   : > { %9048 = vmatmul.mubr.msk.f32.gmra.mrb[12].mxu1 %vm566_vm8, %v2923_v36  ;;  %v3265_v36 = vld [vmem:[#allocation6 + $0x200] sm:$0xff] }
 0x3fd   : > { %3071 = vmatprep.mubr.f32.mxu1 %v14616_v1 }
 0x3ff   : > { %v3599_v9 = vpop.permute.xlu0 %3598 }
 0x400   : > { %9049 = vmatmul.mubr.msk.f32.gmra.mrb[14].mxu1 %vm566_vm8, %v2924_v32  ;;  %v3475_v32 = vsel %vm1895_vm2, %v10586_v49, %v10576_v31 }
 0x401   : > { %3231 = vmatprep.mubr.f32.mxu1 %v14616_v1  ;;  %v9447_v7 = vpack.c.bf16 %v3477_v2, %v3475_v32  ;;  %v3641_v2 = vld [vmem:[%s14581_s3] sm:$0xf] }
 0x402   : > { %v3717_v32 = vld [vmem:[%s14583_s5] sm:$0xff] }
 0x404   : > { %9050 = vmatmul.mubr.msk.f32.vlgmr.msra.gmra.mrb[8].mxu1 %vm566_vm8, %v3099_v20 }
 0x405   : > { %9436 = vmatpush1.bf16.msra.mxu1 %v9435_v24  ;;  %3237 = vmatprep.mubr.f32.mxu1 %v14616_v1  ;;  %v3604_v24 = vpop.permute.xlu1 %3603 }
 0x406   : > { %9438 = vmatprep.subr.bf16.mxu1 %v9437_v39 }
 0x408   : > { %9051 = vmatmul.mubr.msk.f32.gmra.mrb[10].mxu1 %vm566_vm8, %v3100_v8  ;;  %v3609_v8 = vpop.permute.xlu0 %3608 }
 0x409   : > { %9440 = vmatpush1.bf16.msra.mxu1 %v9439_v43  ;;  %3243 = vmatprep.mubr.f32.mxu1 %v14616_v1 }
 0x40a   : > { %9442 = vmatprep.subr.bf16.mxu1 %v9441_v13 }
 0x40c   : > { %9052 = vmatmul.mubr.msk.f32.gmra.mrb[12].mxu1 %vm566_vm8, %v3101_v0  ;;  %v3614_v0 = vpop.permute.xlu1 %3613 }
 0x40d   : > { %3249 = vmatprep.mubr.f32.mxu1 %v14616_v1 }
 0x410   : > { %9053 = vmatmul.mubr.msk.f32.gmra.mrb[14].mxu1 %vm566_vm8, %v3102_v45  ;;  %v11508_v45 = vmov 0.0|0.0  }
 0x411   : > { %3385 = vmatprep.mubr.f32.mxu1 %v14616_v1  ;;  %9449 = vmatprep.subr.bf16.mxu0 %v11508_v45 }
 0x414   : > { %9054 = vmatmul.mubr.msk.f32.vlgmr.msra.gmra.mrb[8].mxu1 %vm566_vm8, %v3265_v36 }
 0x415   : > { %9444 = vmatpush1.bf16.msra.mxu1 %v9443_v46  ;;  %3391 = vmatprep.mubr.f32.mxu1 %v14616_v1 }
 0x416   : > { %9446 = vmatprep.subr.bf16.mxu1 %v9445_v3  ;;  %v3642_v3 = vld [vmem:[%s14582_s4] sm:$0xf] }
 0x418   : > { %9055 = vmatmul.mubr.msk.f32.gmra.mrb[10].mxu1 %vm566_vm8, %v3266_v38 }
 0x419   : > { %9448 = vmatpush1.bf16.msra.mxu1 %v9447_v7  ;;  %3397 = vmatprep.mubr.f32.mxu1 %v14616_v1 }
 0x41c   : > { %9056 = vmatmul.mubr.msk.f32.gmra.mrb[12].mxu1 %vm566_vm8, %v3267_v18 }
 0x41d   : > { %3403 = vmatprep.mubr.f32.mxu1 %v14616_v1 }
 0x420   : > { %9057 = vmatmul.mubr.msk.f32.gmra.mrb[14].mxu1 %vm566_vm8, %v3268_v22 }
 0x421   : > { %3563 = vmatprep.mubr.f32.mxu1 %v14616_v1 }
 0x424   : > { %9058 = vmatmul.mubr.msk.f32.vlgmr.msra.gmra.mrb[8].mxu1 %vm566_vm8, %v3431_v4  ;;  %v3718_v4 = vld [vmem:[%s14583_s5 + $0x8] sm:$0xff] }
 0x425   : > { %3569 = vmatprep.mubr.f32.mxu1 %v14616_v1 }
 0x428   : > { %9059 = vmatmul.mubr.msk.f32.gmra.mrb[10].mxu1 %vm566_vm8, %v3432_v19  ;;  %v3719_v19 = vld [vmem:[%s14583_s5 + $0x10] sm:$0xff] }
 0x429   : > { %3575 = vmatprep.mubr.f32.mxu1 %v14616_v1 }
 0x42c   : > { %9060 = vmatmul.mubr.msk.f32.gmra.mrb[12].mxu1 %vm566_vm8, %v3433_v25  ;;  %v3720_v25 = vld [vmem:[%s14583_s5 + $0x18] sm:$0xff] }
 0x42d   : > { %3581 = vmatprep.mubr.f32.mxu1 %v14616_v1 }
 0x430   : > { %9061 = vmatmul.mubr.msk.f32.gmra.mrb[14].mxu1 %vm566_vm8, %v3434_v58  ;;  %v3722_v58 = vld [vmem:[%s14584_s6 + $0x8] sm:$0xff] }
 0x431   : > { %9280 = vmatprep.mubr.msk.f32.mxu1 %vm3725_vm4, %v3717_v32 }
 0x4f7   : > { %v3565_v30 = vpop.f32.mrb[8].mxu1 }
 0x4f8   : > { %v12748_v44 = vadd.f32 %v3599_v9, %v3565_v30  ;;  %v3567_v37 = vpop.f32.mrb[9].mxu1 }
 0x4f9   : > { %v12750_v20 = vadd.f32 %v3599_v9, %v3567_v37  ;;  %v3721_v9 = vld [vmem:[%s14584_s6] sm:$0xff] }
 0x4fb   : > { %v3624_v41 = vadd.f32 %v12750_v20, %v12748_v44  ;;  %v3571_v42 = vpop.f32.mrb[10].mxu1 }
 0x4fc   : > { %v12754_v21 = vadd.f32 %v3604_v24, %v3571_v42  ;;  %v3573_v50 = vpop.f32.mrb[11].mxu1  ;;  %v3724_v42 = vld [vmem:[%s14584_s6 + $0x18] sm:$0xff] }
 0x4fd   : > { %v12756_v39 = vadd.f32 %v3604_v24, %v3573_v50  ;;  %3625 = vadd.xlane.f32.xlu0 %v3624_v41 }
 0x4ff   : > { %v3627_v28 = vadd.f32 %v12756_v39, %v12754_v21  ;;  %v3577_v62 = vpop.f32.mrb[12].mxu1 }
 0x500   : > { %v12760_v6 = vadd.f32 %v3609_v8, %v3577_v62  ;;  %v3579_v43 = vpop.f32.mrb[13].mxu1 }
 0x501   : > { %v12762_v13 = vadd.f32 %v3609_v8, %v3579_v43  ;;  %3628 = vadd.xlane.f32.xlu1 %v3627_v28  ;;  %v3723_v8 = vld [vmem:[%s14584_s6 + $0x10] sm:$0xff] }
 0x503   : > { %v3630_v40 = vadd.f32 %v12762_v13, %v12760_v6  ;;  %v3583_v27 = vpop.f32.mrb[14].mxu1 }
 0x504   : > { %v12766_v48 = vadd.f32 %v3614_v0, %v3583_v27  ;;  %v3585_v11 = vpop.f32.mrb[15].mxu1 }
 0x505   : > { %v12768_v29 = vadd.f32 %v3614_v0, %v3585_v11  ;;  %3631 = vadd.xlane.f32.xlu0 %v3630_v40 }
 0x507   : > { %v3633_v10 = vadd.f32 %v12768_v29, %v12766_v48 }
 0x509   : > { %3634 = vadd.xlane.f32.xlu0 %v3633_v10 }
 0x58a   : > { %v3626_v26 = vpop.xlane.xlu0 %3625 }
 0x58b   : > { %v3637_v63 = vmul.f32 0.00390625, %v3626_v26 }
 0x58e   : > { %v3629_v31 = vpop.xlane.xlu1 %3628 }
 0x58f   : > { %v3638_v12 = vmul.f32 0.00390625, %v3629_v31 }
 0x591   : > { %v9450_v35 = vpack.c.bf16 %v3638_v12, %v3637_v63 }
 0x592   : > { %v3632_v49 = vpop.xlane.xlu0 %3631 }
 0x593   : > { %9451 = vmatpush3.bf16.msra.mxu0 %v9450_v35  ;;  %v3639_v34 = vmul.f32 0.00390625, %v3632_v49 }
 0x594   : > { %9452 = vmatprep.subr.bf16.mxu0 %v11508_v45 }
 0x596   : > { %v3635_v36 = vpop.xlane.xlu0 %3634 }
 0x597   : > { %v3640_v46 = vmul.f32 0.00390625, %v3635_v36 }
 0x599   : > { %v9453_v56 = vpack.c.bf16 %v3640_v46, %v3639_v34 }
 0x59b   : > { %9454 = vmatpush3.bf16.msra.mxu0 %v9453_v56 }
 0x59e   : > { %9276 = vmatmul.mubr.msk.f32.vlgmr.msra.gmra.mrb[8].mxu0 %vm566_vm8, %v3641_v2 }
 0x59f   : > { %4102 = vmatprep.mubr.f32.mxu0 %v14616_v1 }
 0x671   : > { %v3712_v38 = vpop.f32.mrb[8].mxu0 }
 0x672   : > { %v3713_v7 = vadd.f32 %v3712_v38, %v3642_v3  ;;  %v9277_v18 = vpop.f32.mrb[9].mxu0 }
 0x673   : > { %v11340_v18 = vld [vmem:[%s11707_s19 + $0x10] sm:$0xff] }
 0x674   : > { %v3716_v22 = vmax.f32 %v3713_v7, 0.0 }
 0x676   : > { %9278 = vmatprep.subr.msk.mxu1 %vm3738_vm7, %v3716_v22 }
 0x677   : > { %9279 = vmatpush3.msk.msra.mxu1 %vm3738_vm7, %v3716_v22 }
 0x678   : > { %9281 = vmatmul.mubr.msk.f32.vlgmr.msra.gmra.mrb[16].mxu1 %vm3725_vm4, %v3718_v4  ;;  %v11341_v4 = vld [vmem:[%s11707_s19 + $0x18] sm:$0xff] }
 0x679   : > { %9283 = vmatprep.mubr.msk.f32.mxu1 %vm3725_vm4, %v3719_v19 }
 0x67c   : > { %9284 = vmatmul.mubr.msk.f32.gmra.mrb[18].mxu1 %vm3725_vm4, %v3720_v25 }
 0x67d   : > { %5677 = vmatprep.mubr.f32.mxu1 %v14616_v1 }
 0x74b   : > { %v9282_v30 = vpop.f32.mrb[16].mxu1 }
 0x74c   : > { %v3814_v37 = vadd.f32 %v9282_v30, %v3722_v58  ;;  %v3808_v24 = vpop.f32.mrb[17].mxu1  ;;  %v11343_v30 = vld [vmem:[%s11707_s19 + $0x8] sm:$0xff] }
 0x74d   : > { %v3809_v41 = vadd.f32 %v3808_v24, %v3721_v9 }
 0x74e   : > { %v9069_v50 = vmul.f32 -1.442695, %v3814_v37 }
 0x74f   : > { %v9068_v28 = vmul.f32 -1.442695, %v3809_v41  ;;  %v9285_v62 = vpop.f32.mrb[18].mxu1  ;;  %v11344_v41 = vld [vmem:[%s11707_s19 + $0x20] sm:$0xff] }
 0x750   : > { %11308 = vpow2.f32 %v9069_v50  ;;  %v3824_v43 = vadd.f32 %v9285_v62, %v3724_v42  ;;  %v3818_v0 = vpop.f32.mrb[19].mxu1  ;;  %v11345_v50 = vld [vmem:[%s11707_s19 + $0x28] sm:$0xff] }
 0x751   : > { %11310 = vpow2.f32 %v9068_v28  ;;  %v3819_v40 = vadd.f32 %v3818_v0, %v3723_v8 }
 0x752   : > { %v9071_v27 = vmul.f32 -1.442695, %v3824_v43  ;;  %v11347_v43 = vld [vmem:[%s11707_s19 + $0x38] sm:$0xff] }
 0x753   : > { %v9070_v11 = vmul.f32 -1.442695, %v3819_v40 }
 0x754   : > { %11312 = vpow2.f32 %v9071_v27 }
 0x755   : > { %11314 = vpow2.f32 %v9070_v11 }
 0x75a   : > { %v11309_v10 = vpop.eup %11308 }
 0x75b   : > { %v11311_v26 = vpop.eup %11310  ;;  %v3840_v31 = vadd.f32 1.0, %v11309_v10 }
 0x75c   : > { %v3839_v63 = vadd.f32 1.0, %v11311_v26 }
 0x75d   : > { %11316 = vrcp.f32 %v3840_v31 }
 0x75e   : > { %v11313_v12 = vpop.eup %11312  ;;  %11318 = vrcp.f32 %v3839_v63 }
 0x75f   : > { %v11315_v35 = vpop.eup %11314  ;;  %v3842_v36 = vadd.f32 1.0, %v11313_v12 }
 0x760   : > { %v3841_v49 = vadd.f32 1.0, %v11315_v35 }
 0x762   : > { %11320 = vrcp.f32 %v3841_v49 }
 0x763   : > { %11322 = vrcp.f32 %v3842_v36 }
 0x767   : > { %v11317_v34 = vpop.eup %11316 }
 0x768   : > { %v11319_v46 = vpop.eup %11318  ;;  %3858 = vperm.xlu0 %10347, %v11317_v34  }
 0x769   : > { %3853 = vperm.xlu1 %10346, %v11319_v46  }
 0x76c   : > { %v11321_v56 = vpop.eup %11320 }
 0x76d   : > { %3863 = vperm.xlu1 %10346, %v11321_v56   ;;  %v11323_v2 = vpop.eup %11322 }
 0x771   : > { %3868 = vperm.xlu1 %10346, %v11323_v2  }
 0x7e7   : > { %v3859_v32 = vpop.permute.xlu0 %3858 }
 0x7e8   : > { %v3873_v3 = vmul.f32 %v3859_v32, %v12754_v21  ;;  %v3874_v38 = vmul.f32 %v3859_v32, %v12756_v39  ;;  %v3854_v7 = vpop.permute.xlu1 %3853  ;;  %v11342_v39 = vld [vmem:[%s11707_s19] sm:$0xff] }
 0x7e9   : > { %v3871_v25 = vmul.f32 %v3854_v7, %v12748_v44  ;;  %v3872_v58 = vmul.f32 %v3854_v7, %v12750_v20 }
 0x7ea   : > { %v12818_v22 = vadd.f32 %v11340_v18, %v3873_v3  ;;  %v12821_v19 = vadd.f32 %v11341_v4, %v3874_v38 }
 0x7eb   : > { %v12830_v9 = vadd.f32 %v11342_v39, %v3871_v25  ;;  %v12833_v37 = vadd.f32 %v11343_v30, %v3872_v58 }
 0x7ec   : > { %3904 = vrot.lane.b32.xlu0 %v12818_v22, %s14643_s26  ;;  %3906 = vrot.lane.b32.xlu1 %v12821_v19, %s14643_s26  ;;  %v3864_v21 = vpop.permute.xlu1 %3863 }
 0x7ed   : > { %v3875_v44 = vmul.f32 %v3864_v21, %v12760_v6  ;;  %v3876_v24 = vmul.f32 %v3864_v21, %v12762_v13  ;;  %v11346_v6 = vld [vmem:[%s11707_s19 + $0x30] sm:$0xff] }
 0x7ef   : > { %v12842_v42 = vadd.f32 %v11344_v41, %v3875_v44  ;;  %v12845_v8 = vadd.f32 %v11345_v50, %v3876_v24 }
 0x7f0   : > { %3902 = vrot.lane.b32.xlu1 %v12833_v37, %s14643_s26  ;;  %3900 = vrot.lane.b32.xlu0 %v12830_v9, %s14643_s26  ;;  %v3869_v20 = vpop.permute.xlu1 %3868 }
 0x7f1   : > { %v3877_v28 = vmul.f32 %v3869_v20, %v12766_v48  ;;  %v3878_v62 = vmul.f32 %v3869_v20, %v12768_v29 }
 0x7f3   : > { %v12854_v13 = vadd.f32 %v11346_v6, %v3877_v28  ;;  %v12857_v0 = vadd.f32 %v11347_v43, %v3878_v62 }
 0x7f4   : > { %3910 = vrot.lane.b32.xlu1 %v12845_v8, %s14643_s26  ;;  %3908 = vrot.lane.b32.xlu0 %v12842_v42, %s14643_s26 }
 0x7f8   : > { %3914 = vrot.lane.b32.xlu1 %v12857_v0, %s14643_s26  ;;  %3912 = vrot.lane.b32.xlu0 %v12854_v13, %s14643_s26 }
 0x85e   : > { %v3905_v48 = vpop.permute.xlu0 %3904  ;;  %v3907_v29 = vpop.permute.xlu1 %3906 }
 0x85f   : > { %3935 = vst.msk [vmem:[#allocation2 + $0x18] sm:$0xff] %vm471_vm5, %v3905_v48  ;;  %v12868_v11 = vsel %vm454_vm6, %v3905_v48, %v3907_v29 }
 0x860   : > { %3937 = vst.msk [vmem:[#allocation2 + $0x28] sm:$0xff] %vm454_vm6, %v3907_v29  ;;  %v4232_v44 = vmul.f32 %v12868_v11, %v11950_v52 }
 0x862   : > { %v3901_v40 = vpop.permute.xlu0 %3900  ;;  %v3903_v27 = vpop.permute.xlu1 %3902 }
 0x863   : > { %3932 = vst.msk [vmem:[#allocation2] sm:$0xff] %vm471_vm5, %v3901_v40  ;;  %v12895_v56 = vsel %vm454_vm6, %v3901_v40, %v3903_v27 }
 0x864   : > { %3934 = vst.msk [vmem:[#allocation2 + $0x10] sm:$0xff] %vm454_vm6, %v3903_v27  ;;  %v4229_v24 = vmul.f32 %v12895_v56, %v11950_v52  ;;  %v12955_v43 = vmul.f32 %v11749_v15, %v12895_v56 }
 0x866   : > { %v3909_v10 = vpop.permute.xlu0 %3908  ;;  %v3911_v26 = vpop.permute.xlu1 %3910  ;;  %v12882_v36 = vld [vmem:[#allocation2 + $0x18] sm:$0xff] }
 0x867   : > { %v12870_v31 = vld [vmem:[#allocation2 + $0x28] sm:$0xff]  ;;  %3938 = vst.msk [vmem:[#allocation2 + $0x30] sm:$0xff] %vm471_vm5, %v3909_v10  ;;  %v12898_v2 = vsel %vm454_vm6, %v3909_v10, %v3911_v26  ;;  %v4231_v6 = vmul.f32 %v11870_v61, %v12882_v36  ;;  %v12963_v10 = vmul.f32 %v11749_v15, %v12868_v11 }
 0x868   : > { %3940 = vst.msk [vmem:[#allocation2 + $0x40] sm:$0xff] %vm454_vm6, %v3911_v26  ;;  %v12876_v63 = vpack.i.bf16 %v12870_v31, %v12868_v11  ;;  %v4233_v39 = vmul.f32 %v11934_v60, %v12870_v31  ;;  %v4235_v62 = vmul.f32 %v12898_v2, %v11950_v52 }
 0x86a   : > { %10589 = vrot.lane.b32.xlu1 %v12876_v63, %s14644_s14  ;;  %v3913_v12 = vpop.permute.xlu0 %3912  ;;  %v3915_v35 = vpop.permute.xlu1 %3914  ;;  %v12880_v49 = vld [vmem:[#allocation2] sm:$0xff]  ;;  %v10623_v20 = vpack.i.bf16 %v4233_v39, %v4232_v44 }
 0x86b   : > { %3941 = vst.msk [vmem:[#allocation2 + $0x48] sm:$0xff] %vm471_vm5, %v3913_v12  ;;  %v12888_v34 = vpack.i.bf16 %v12882_v36, %v12880_v49  ;;  %v12890_v46 = vld [vmem:[#allocation2 + $0x10] sm:$0xff]  ;;  %v12915_v7 = vsel %vm454_vm6, %v3913_v12, %v3915_v35  ;;  %v4228_v28 = vmul.f32 %v11870_v61, %v12880_v49 }
 0x86c   : > { %3943 = vst.msk [vmem:[#allocation2 + $0x58] sm:$0xff] %vm454_vm6, %v3915_v35  ;;  %v12904_v3 = vpack.i.bf16 %v12890_v46, %v12895_v56  ;;  %v4230_v30 = vmul.f32 %v11934_v60, %v12890_v46  ;;  %v4238_v12 = vmul.f32 %v12915_v7, %v11950_v52  ;;  %v4411_v35 = vmul.f32 %v11975_v16, %v12870_v31 }
 0x86d   : > { %10594 = vrot.lane.b32.xlu0 %v12888_v34, %s14644_s14  ;;  %v10628_v29 = vpack.i.bf16 %v4231_v6, %v4228_v28  ;;  %v4408_v39 = vmul.f32 %v11975_v16, %v12890_v46  ;;  %v4407_v28 = vmul.f32 %v12895_v56, %v11997_v54 }
 0x86e   : > { %v12917_v18 = vld [vmem:[#allocation2 + $0x30] sm:$0xff]  ;;  %v10618_v41 = vpack.i.bf16 %v4230_v30, %v4229_v24  ;;  %v9463_v30 = vpack.c.bf16 %v12963_v10, %v12955_v43 }
 0x86f   : > { %v12900_v32 = vld [vmem:[#allocation2 + $0x40] sm:$0xff]  ;;  %v4234_v26 = vmul.f32 %v11870_v61, %v12917_v18 }
 0x870   : > { %v12908_v38 = vpack.i.bf16 %v12900_v32, %v12898_v2  ;;  %v4236_v50 = vmul.f32 %v11934_v60, %v12900_v32 }
 0x871   : > { %10599 = vrot.lane.b32.xlu0 %v12904_v3, %s14644_s14 }
 0x872   : > { %10609 = vrot.lane.b32.xlu1 %v12908_v38, %s14644_s14  ;;  %v12919_v4 = vld [vmem:[#allocation2 + $0x48] sm:$0xff]  ;;  %v10638_v48 = vpack.i.bf16 %v4236_v50, %v4235_v62  ;;  %v4410_v50 = vmul.f32 %v12868_v11, %v11997_v54 }
 0x873   : > { %v12921_v25 = vld [vmem:[#allocation2 + $0x58] sm:$0xff]  ;;  %v12925_v58 = vpack.i.bf16 %v12919_v4, %v12917_v18  ;;  %v4237_v40 = vmul.f32 %v11870_v61, %v12919_v4 }
 0x874   : > { %v12929_v21 = vpack.i.bf16 %v12921_v25, %v12915_v7  ;;  %v4239_v27 = vmul.f32 %v11934_v60, %v12921_v25  ;;  %v10653_v6 = vpack.i.bf16 %v4411_v35, %v4410_v50  ;;  %v4415_v35 = vmul.f32 %v11977_v17, %v12919_v4 }
 0x875   : > { %v10643_v44 = vpack.i.bf16 %v4237_v40, %v4234_v26  ;;  %v4406_v40 = vmul.f32 %v11977_v17, %v12880_v49  ;;  %v4409_v26 = vmul.f32 %v11977_v17, %v12882_v36  ;;  %v4416_v50 = vmul.f32 %v12915_v7, %v11997_v54 }
 0x876   : > { %10614 = vrot.lane.b32.xlu1 %v12925_v58, %s14644_s14  ;;  %10604 = vrot.lane.b32.xlu0 %v12929_v21, %s14644_s14  ;;  %v10633_v24 = vpack.i.bf16 %v4239_v27, %v4238_v12  ;;  %v4413_v27 = vmul.f32 %v12898_v2, %v11997_v54 }
 0x87a   : > { %10624 = vrot.lane.b32.xlu1 %v10623_v20, %s14645_s23  ;;  %10619 = vrot.lane.b32.xlu0 %v10618_v41, %s14645_s23  ;;  %v12979_v20 = vmul.f32 %v11749_v15, %v12898_v2  ;;  %v12983_v41 = vmul.f32 %v11749_v15, %v12915_v7 }
 0x87c   : > { %v9467_v62 = vpack.c.bf16 %v12983_v41, %v12979_v20  ;;  %v3973_v20 = vld [vmem:[#allocation6 + $0x278] sm:$0xff] }
 0x87e   : > { %10639 = vrot.lane.b32.xlu1 %v10638_v48, %s14645_s23  ;;  %10629 = vrot.lane.b32.xlu0 %v10628_v29, %s14645_s23  ;;  %v10648_v48 = vpack.i.bf16 %v4408_v39, %v4407_v28  ;;  %v4414_v29 = vmul.f32 %v11975_v16, %v12900_v32  ;;  %v4417_v39 = vmul.f32 %v11975_v16, %v12921_v25 }
 0x880   : > { %v10668_v12 = vpack.i.bf16 %v4414_v29, %v4413_v27  ;;  %v4740_v29 = vmul.f32 %v11866_v59, %v12890_v46  ;;  %v4739_v27 = vmul.f32 %v12895_v56, %v11886_v5 }
 0x882   : > { %10644 = vrot.lane.b32.xlu1 %v10643_v44, %s14645_s23  ;;  %10634 = vrot.lane.b32.xlu0 %v10633_v24, %s14645_s23  ;;  %v10658_v44 = vpack.i.bf16 %v4409_v26, %v4406_v40  ;;  %v4412_v24 = vmul.f32 %v11977_v17, %v12917_v18  ;;  %v4742_v40 = vmul.f32 %v12868_v11, %v11886_v5 }
 0x884   : > { %v10673_v28 = vpack.i.bf16 %v4415_v35, %v4412_v24  ;;  %v4738_v35 = vmul.f32 %v11850_v53, %v12880_v49  ;;  %v4741_v24 = vmul.f32 %v11850_v53, %v12882_v36 }
 0x886   : > { %10654 = vrot.lane.b32.xlu1 %v10653_v6, %s14646_s24  ;;  %10649 = vrot.lane.b32.xlu0 %v10648_v48, %s14646_s24  ;;  %v10663_v6 = vpack.i.bf16 %v4417_v39, %v4416_v50  ;;  %v4743_v48 = vmul.f32 %v11866_v59, %v12870_v31  ;;  %v4745_v39 = vmul.f32 %v12898_v2, %v11886_v5 }
 0x888   : > { %v10713_v26 = vpack.i.bf16 %v4743_v48, %v4742_v40  ;;  %v4749_v48 = vmul.f32 %v11866_v59, %v12921_v25  ;;  %v4748_v40 = vmul.f32 %v12915_v7, %v11886_v5 }
 0x88a   : > { %10669 = vrot.lane.b32.xlu1 %v10668_v12, %s14646_s24  ;;  %10659 = vrot.lane.b32.xlu0 %v10658_v44, %s14646_s24  ;;  %v10708_v12 = vpack.i.bf16 %v4740_v29, %v4739_v27  ;;  %v4746_v44 = vmul.f32 %v11866_v59, %v12900_v32  ;;  %v4744_v29 = vmul.f32 %v11850_v53, %v12917_v18 }
 0x88c   : > { %v10728_v50 = vpack.i.bf16 %v4746_v44, %v4745_v39  ;;  %v4918_v44 = vmul.f32 %v11918_v47, %v12890_v46  ;;  %v4917_v39 = vmul.f32 %v12895_v56, %v11925_v55 }
 0x88e   : > { %10674 = vrot.lane.b32.xlu1 %v10673_v28, %s14646_s24  ;;  %10664 = vrot.lane.b32.xlu0 %v10663_v6, %s14646_s24  ;;  %v10718_v28 = vpack.i.bf16 %v4741_v24, %v4738_v35  ;;  %v4747_v6 = vmul.f32 %v11850_v53, %v12919_v4  ;;  %v4920_v35 = vmul.f32 %v12868_v11, %v11925_v55 }
 0x890   : > { %v10733_v27 = vpack.i.bf16 %v4747_v6, %v4744_v29  ;;  %v4916_v6 = vmul.f32 %v11858_v57, %v12880_v49  ;;  %v4919_v29 = vmul.f32 %v11858_v57, %v12882_v36 }
 0x892   : > { %10684 = vrot.lane.b32.xlu1 %v12876_v63, %s14638_s20  ;;  %10679 = vrot.lane.b32.xlu0 %v12904_v3, %s14638_s20 }
 0x896   : > { %10694 = vrot.lane.b32.xlu1 %v12908_v38, %s14638_s20  ;;  %10689 = vrot.lane.b32.xlu0 %v12888_v34, %s14638_s20 }
 0x89a   : > { %10704 = vrot.lane.b32.xlu1 %v12925_v58, %s14638_s20  ;;  %10699 = vrot.lane.b32.xlu0 %v12929_v21, %s14638_s20 }
 0x89e   : > { %10714 = vrot.lane.b32.xlu1 %v10713_v26, %s14639_s22  ;;  %10709 = vrot.lane.b32.xlu0 %v10708_v12, %s14639_s22  ;;  %v10723_v26 = vpack.i.bf16 %v4749_v48, %v4748_v40  ;;  %v4921_v12 = vmul.f32 %v11918_v47, %v12870_v31  ;;  %v4923_v48 = vmul.f32 %v12898_v2, %v11925_v55 }
 0x8a0   : > { %v10743_v24 = vpack.i.bf16 %v4921_v12, %v4920_v35  ;;  %v4927_v12 = vmul.f32 %v11918_v47, %v12921_v25  ;;  %v4926_v35 = vmul.f32 %v12915_v7, %v11925_v55 }
 0x8a2   : > { %10729 = vrot.lane.b32.xlu1 %v10728_v50, %s14639_s22  ;;  %10719 = vrot.lane.b32.xlu0 %v10718_v28, %s14639_s22  ;;  %v10738_v50 = vpack.i.bf16 %v4918_v44, %v4917_v39  ;;  %v4924_v28 = vmul.f32 %v11918_v47, %v12900_v32  ;;  %v4922_v44 = vmul.f32 %v11858_v57, %v12917_v18 }
 0x8a4   : > { %v10758_v40 = vpack.i.bf16 %v4924_v28, %v4923_v48  ;;  %v5250_v28 = vmul.f32 %v12010_v33, %v12890_v46  ;;  %v5248_v46 = vmul.f32 %v11985_v23, %v12880_v49  ;;  %v5254_v48 = vmul.f32 %v11985_v23, %v12917_v18 }
 0x8a6   : > { %10734 = vrot.lane.b32.xlu1 %v10733_v27, %s14639_s22  ;;  %10724 = vrot.lane.b32.xlu0 %v10723_v26, %s14639_s22  ;;  %v10748_v27 = vpack.i.bf16 %v4919_v29, %v4916_v6  ;;  %v4925_v26 = vmul.f32 %v11858_v57, %v12919_v4  ;;  %v5257_v6 = vmul.f32 %v11985_v23, %v12919_v4 }
 0x8a8   : > { %v10763_v39 = vpack.i.bf16 %v4925_v26, %v4922_v44  ;;  %v10823_v29 = vpack.i.bf16 %v5257_v6, %v5254_v48  ;;  %v9074_v26 = vld [vmem:[%s14580_s2 + $0x50] sm:$0xff] }
 0x8aa   : > { %10744 = vrot.lane.b32.xlu1 %v10743_v24, %s14640_s16  ;;  %10739 = vrot.lane.b32.xlu0 %v10738_v50, %s14640_s16  ;;  %v10753_v24 = vpack.i.bf16 %v4927_v12, %v4926_v35  ;;  %v5253_v50 = vmul.f32 %v12010_v33, %v12870_v31  ;;  %v5256_v31 = vmul.f32 %v12010_v33, %v12900_v32 }
 0x8ab   : > { %v5259_v32 = vmul.f32 %v12010_v33, %v12921_v25  ;;  %v9073_v25 = vld [vmem:[%s14580_s2 + $0x48] sm:$0xff] }
 0x8ae   : > { %10759 = vrot.lane.b32.xlu1 %v10758_v40, %s14640_s16  ;;  %10749 = vrot.lane.b32.xlu0 %v10748_v27, %s14640_s16  ;;  %v9072_v27 = vld [vmem:[%s14580_s2 + $0x40] sm:$0xff] }
 0x8b2   : > { %10764 = vrot.lane.b32.xlu1 %v10763_v39, %s14640_s16  ;;  %10754 = vrot.lane.b32.xlu0 %v10753_v24, %s14640_s16 }
 0x8b6   : > { %10774 = vrot.lane.b32.xlu1 %v12876_v63, %s14641_s25  ;;  %10769 = vrot.lane.b32.xlu0 %v12904_v3, %s14641_s25  ;;  %v5252_v63 = vmul.f32 %v12868_v11, %v12025_v51  ;;  %v5249_v3 = vmul.f32 %v12895_v56, %v12025_v51  ;;  %v5251_v11 = vmul.f32 %v11985_v23, %v12882_v36 }
 0x8b8   : > { %v10808_v56 = vpack.i.bf16 %v5251_v11, %v5248_v46 }
 0x8ba   : > { %10784 = vrot.lane.b32.xlu1 %v12908_v38, %s14641_s25  ;;  %10779 = vrot.lane.b32.xlu0 %v12888_v34, %s14641_s25  ;;  %v10803_v38 = vpack.i.bf16 %v5253_v50, %v5252_v63  ;;  %v10798_v34 = vpack.i.bf16 %v5250_v28, %v5249_v3 }
 0x8be   : > { %10794 = vrot.lane.b32.xlu1 %v12925_v58, %s14641_s25  ;;  %10789 = vrot.lane.b32.xlu0 %v12929_v21, %s14641_s25  ;;  %v5255_v58 = vmul.f32 %v12898_v2, %v12025_v51  ;;  %v5258_v2 = vmul.f32 %v12915_v7, %v12025_v51  ;;  %v9075_v7 = vld [vmem:[%s14580_s2 + $0x58] sm:$0xff] }
 0x8c0   : > { %v10818_v21 = vpack.i.bf16 %v5256_v31, %v5255_v58  ;;  %v10813_v40 = vpack.i.bf16 %v5259_v32, %v5258_v2 }
 0x8c2   : > { %10804 = vrot.lane.b32.xlu1 %v10803_v38, %s14642_s27  ;;  %10799 = vrot.lane.b32.xlu0 %v10798_v34, %s14642_s27 }
 0x8c6   : > { %10819 = vrot.lane.b32.xlu1 %v10818_v21, %s14642_s27  ;;  %10809 = vrot.lane.b32.xlu0 %v10808_v56, %s14642_s27 }
 0x8ca   : > { %10824 = vrot.lane.b32.xlu1 %v10823_v29, %s14642_s27  ;;  %10814 = vrot.lane.b32.xlu0 %v10813_v40, %s14642_s27 }
 0x8ce   : > { %5433 = vperm.xlu1 %10346, %v9073_v25   ;;  %5428 = vperm.xlu0 %10347, %v9072_v27  }
 0x8d2   : > { %5443 = vperm.xlu1 %10346, %v9075_v7   ;;  %5438 = vperm.xlu0 %10347, %v9074_v26  }
 0x8dc   : > { %v10590_v12 = vpop.permute.xlu1 %10589 }
 0x8dd   : > { %v10592_v35 = vunpack.i.h.bf16 %v10590_v12  ;;  %v10591_v39 = vunpack.i.l.bf16 %v10590_v12 }
 0x8df   : > { %v10595_v44 = vpop.permute.xlu0 %10594  ;;  %v4013_v31 = vsel %vm549_vm11, %v10591_v39, %v10592_v35 }
 0x8e0   : > { %v10597_v24 = vunpack.i.h.bf16 %v10595_v44  ;;  %v10596_v63 = vunpack.i.l.bf16 %v10595_v44 }
 0x8e2   : > { %v4012_v34 = vsel %vm549_vm11, %v10597_v24, %v10591_v39 }
 0x8e3   : > { %v10600_v50 = vpop.permute.xlu0 %10599 }
 0x8e4   : > { %v10610_v28 = vpop.permute.xlu1 %10609  ;;  %v10602_v3 = vunpack.i.h.bf16 %v10600_v50  ;;  %v10601_v38 = vunpack.i.l.bf16 %v10600_v50  ;;  %v3952_v50 = vmul.f32 %v11746_v14, %v12880_v49  ;;  %v3958_v49 = vmul.f32 %v11746_v14, %v12919_v4 }
 0x8e5   : > { %v10612_v58 = vunpack.i.h.bf16 %v10610_v28  ;;  %v10611_v11 = vunpack.i.l.bf16 %v10610_v28  ;;  %v3954_v28 = vmul.f32 %v11746_v14, %v12882_v36  ;;  %v3971_v36 = vld [vmem:[#allocation6 + $0x268] sm:$0xff] }
 0x8e6   : > { %v4010_v46 = vsel %vm549_vm11, %v10596_v63, %v10601_v38  ;;  %v4011_v21 = vsel %vm549_vm11, %v10601_v38, %v10602_v3 }
 0x8e7   : > { %v9455_v32 = vpack.c.bf16 %v4013_v31, %v4011_v21  ;;  %v9457_v48 = vpack.c.bf16 %v4012_v34, %v4010_v46  ;;  %v4015_v26 = vsel %vm549_vm11, %v10611_v11, %v10612_v58  ;;  %v3970_v31 = vld [vmem:[#allocation6 + $0x260] sm:$0xff]  ;;  %v3956_v21 = vmul.f32 %v11746_v14, %v12917_v18 }
 0x8e8   : > { %v10605_v56 = vpop.permute.xlu0 %10604  ;;  %v10615_v6 = vpop.permute.xlu1 %10614 }
 0x8e9   : > { %v10607_v2 = vunpack.i.h.bf16 %v10605_v56  ;;  %v10606_v29 = vunpack.i.l.bf16 %v10605_v56  ;;  %v10617_v40 = vunpack.i.h.bf16 %v10615_v6  ;;  %v10616_v25 = vunpack.i.l.bf16 %v10615_v6  ;;  %9456 = vmatprep.subr.bf16.mxu0 %v9455_v32 }
 0x8ea   : > { %9458 = vmatpush1.bf16.msra.mxu0 %v9457_v48  ;;  %v9469_v4 = vpack.c.bf16 %v3958_v49, %v3956_v21 }
 0x8eb   : > { %v4016_v27 = vsel %vm549_vm11, %v10617_v40, %v10606_v29  ;;  %v4014_v7 = vsel %vm549_vm11, %v10616_v25, %v10611_v11  ;;  %v4017_v12 = vsel %vm549_vm11, %v10606_v29, %v10607_v2  ;;  %v9465_v11 = vpack.c.bf16 %v3954_v28, %v3952_v50 }
 0x8ec   : > { %v10620_v44 = vpop.permute.xlu0 %10619  ;;  %v10625_v35 = vpop.permute.xlu1 %10624  ;;  %v9459_v39 = vpack.c.bf16 %v4017_v12, %v4015_v26  ;;  %v9461_v24 = vpack.c.bf16 %v4016_v27, %v4014_v7 }
 0x8ed   : > { %v10622_v63 = vunpack.i.h.bf16 %v10620_v44  ;;  %v10621_v3 = vunpack.i.l.bf16 %v10620_v44  ;;  %v10627_v38 = vunpack.i.h.bf16 %v10625_v35  ;;  %v10626_v34 = vunpack.i.l.bf16 %v10625_v35 }
 0x8ee   : > { %9460 = vmatprep.subr.bf16.mxu0 %v9459_v39 }
 0x8ef   : > { %9462 = vmatpush1.bf16.msra.mxu0 %v9461_v24  ;;  %v4282_v56 = vsel %vm833_vm0, %v10621_v3, %v10622_v63  ;;  %v4284_v6 = vsel %vm833_vm0, %v10626_v34, %v10627_v38  ;;  %v3961_v38 = vld [vmem:[#allocation6 + $0x240] sm:$0xff] }
 0x8f0   : > { %v10630_v46 = vpop.permute.xlu0 %10629  ;;  %v10640_v58 = vpop.permute.xlu1 %10639  ;;  %9464 = vmatprep.subr.bf16.mxu0 %v9463_v30  ;;  %v9471_v10 = vpack.c.bf16 %v4284_v6, %v4282_v56  ;;  %v3972_v30 = vld [vmem:[#allocation6 + $0x270] sm:$0xff] }
 0x8f1   : > { %v10631_v2 = vunpack.i.l.bf16 %v10630_v46  ;;  %v10632_v29 = vunpack.i.h.bf16 %v10630_v46  ;;  %v10642_v7 = vunpack.i.h.bf16 %v10640_v58  ;;  %v10641_v26 = vunpack.i.l.bf16 %v10640_v58 }
 0x8f2   : > { %9076 = vmatmul.mubr.msk.f32.vlgmr.msra.gmra.mrb[10].mxu0 %vm566_vm8, %v3970_v31 }
 0x8f3   : > { %9466 = vmatpush1.bf16.msra.mxu0 %v9465_v11  ;;  %4108 = vmatprep.mubr.f32.mxu0 %v14616_v1  ;;  %v4281_v27 = vsel %vm833_vm0, %v10631_v2, %v10621_v3  ;;  %v4283_v12 = vsel %vm833_vm0, %v10632_v29, %v10626_v34  ;;  %v4286_v58 = vsel %vm833_vm0, %v10641_v26, %v10642_v7 }
 0x8f4   : > { %v10635_v32 = vpop.permute.xlu0 %10634  ;;  %v10645_v43 = vpop.permute.xlu1 %10644  ;;  %9468 = vmatprep.subr.bf16.mxu0 %v9467_v62  ;;  %v9473_v3 = vpack.c.bf16 %v4283_v12, %v4281_v27 }
 0x8f5   : > { %v10637_v40 = vunpack.i.h.bf16 %v10635_v32  ;;  %v10636_v25 = vunpack.i.l.bf16 %v10635_v32  ;;  %v10647_v44 = vunpack.i.h.bf16 %v10645_v43  ;;  %v10646_v35 = vunpack.i.l.bf16 %v10645_v43 }
 0x8f6   : > { %9077 = vmatmul.mubr.msk.f32.gmra.mrb[12].mxu0 %vm566_vm8, %v3971_v36  ;;  %v3962_v36 = vld [vmem:[#allocation6 + $0x248] sm:$0xff] }
 0x8f7   : > { %9470 = vmatpush1.bf16.msra.mxu0 %v9469_v4  ;;  %4114 = vmatprep.mubr.f32.mxu0 %v14616_v1  ;;  %v4288_v39 = vsel %vm833_vm0, %v10636_v25, %v10637_v40  ;;  %v4287_v34 = vsel %vm833_vm0, %v10647_v44, %v10636_v25  ;;  %v4285_v11 = vsel %vm833_vm0, %v10646_v35, %v10641_v26  ;;  %v3964_v25 = vld [vmem:[#allocation6 + $0x258] sm:$0xff] }
 0x8f8   : > { %v10650_v48 = vpop.permute.xlu0 %10649  ;;  %v10655_v18 = vpop.permute.xlu1 %10654  ;;  %9472 = vmatprep.subr.bf16.mxu0 %v9471_v10  ;;  %v9475_v49 = vpack.c.bf16 %v4288_v39, %v4286_v58  ;;  %v9477_v43 = vpack.c.bf16 %v4287_v34, %v4285_v11  ;;  %v3963_v10 = vld [vmem:[#allocation6 + $0x250] sm:$0xff]  ;;  %v4242_v34 = vld [vmem:[#allocation6 + $0x288] sm:$0xff] }
 0x8f9   : > { %v10652_v24 = vunpack.i.h.bf16 %v10650_v48  ;;  %v10651_v50 = vunpack.i.l.bf16 %v10650_v48  ;;  %v10657_v28 = vunpack.i.h.bf16 %v10655_v18  ;;  %v10656_v63 = vunpack.i.l.bf16 %v10655_v18 }
 0x8fa   : > { %9078 = vmatmul.mubr.msk.f32.gmra.mrb[14].mxu0 %vm566_vm8, %v3972_v30 }
 0x8fb   : > { %4120 = vmatprep.mubr.f32.mxu0 %v14616_v1  ;;  %v4460_v21 = vsel %vm1023_vm1, %v10651_v50, %v10652_v24  ;;  %v4462_v56 = vsel %vm1023_vm1, %v10656_v63, %v10657_v28  ;;  %v4241_v28 = vld [vmem:[#allocation6 + $0x280] sm:$0xff] }
 0x8fc   : > { %v10660_v41 = vpop.permute.xlu0 %10659  ;;  %v13171_v62 = vpop.permute.xlu1 %10669  ;;  %v9479_v4 = vpack.c.bf16 %v4462_v56, %v4460_v21 }
 0x8fd   : > { %v10661_v30 = vunpack.i.l.bf16 %v10660_v41  ;;  %v10662_v48 = vunpack.i.h.bf16 %v10660_v41  ;;  %v10672_v27 = vunpack.i.h.bf16 %v13171_v62  ;;  %v10671_v7 = vunpack.i.l.bf16 %v13171_v62 }
 0x8fe   : > { %9079 = vmatmul.mubr.msk.f32.gmra.mrb[16].mxu0 %vm566_vm8, %v3973_v20 }
 0x8ff   : > { %4203 = vmatprep.mubr.f32.mxu0 %v14616_v1  ;;  %v4459_v20 = vsel %vm1023_vm1, %v10661_v30, %v10651_v50  ;;  %v4461_v26 = vsel %vm1023_vm1, %v10662_v48, %v10656_v63  ;;  %v4244_v48 = vld [vmem:[#allocation6 + $0x298] sm:$0xff] }
 0x900   : > { %v10665_v31 = vpop.permute.xlu0 %10664  ;;  %v10675_v46 = vpop.permute.xlu1 %10674  ;;  %v9481_v63 = vpack.c.bf16 %v4461_v26, %v4459_v20 }
 0x901   : > { %v10667_v18 = vunpack.i.h.bf16 %v10665_v31  ;;  %v10666_v2 = vunpack.i.l.bf16 %v10665_v31  ;;  %v10677_v12 = vunpack.i.h.bf16 %v10675_v46  ;;  %v10676_v41 = vunpack.i.l.bf16 %v10675_v46 }
 0x902   : > { %9080 = vmatmul.mubr.msk.f32.vlgmr.msra.gmra.mrb[10].mxu0 %vm566_vm8, %v3961_v38  ;;  %v4464_v31 = vsel %vm1023_vm1, %v10671_v7, %v10672_v27 }
 0x903   : > { %9474 = vmatpush1.bf16.msra.mxu0 %v9473_v3  ;;  %4209 = vmatprep.mubr.f32.mxu0 %v14616_v1  ;;  %v4466_v44 = vsel %vm1023_vm1, %v10666_v2, %v10667_v18  ;;  %v4465_v46 = vsel %vm1023_vm1, %v10677_v12, %v10666_v2  ;;  %v4463_v3 = vsel %vm1023_vm1, %v10676_v41, %v10671_v7 }
 0x904   : > { %9476 = vmatprep.subr.bf16.mxu0 %v9475_v49  ;;  %v13185_v6 = vpop.permute.xlu0 %10679  ;;  %v13187_v32 = vpop.permute.xlu1 %10684  ;;  %v9483_v58 = vpack.c.bf16 %v4466_v44, %v4464_v31 }
 0x905   : > { %v10682_v35 = vunpack.i.h.bf16 %v13185_v6  ;;  %v10681_v39 = vunpack.i.l.bf16 %v13185_v6  ;;  %v10687_v24 = vunpack.i.h.bf16 %v13187_v32  ;;  %v10686_v50 = vunpack.i.l.bf16 %v13187_v32  ;;  %v4243_v32 = vld [vmem:[#allocation6 + $0x290] sm:$0xff] }
 0x906   : > { %9081 = vmatmul.mubr.msk.f32.gmra.mrb[12].mxu0 %vm566_vm8, %v3962_v36  ;;  %v9485_v36 = vpack.c.bf16 %v4465_v46, %v4463_v3  ;;  %v4420_v46 = vld [vmem:[#allocation6 + $0x2a8] sm:$0xff] }
 0x907   : > { %9478 = vmatpush1.bf16.msra.mxu0 %v9477_v43  ;;  %4215 = vmatprep.mubr.f32.mxu0 %v14616_v1  ;;  %v4614_v11 = vsel %vm1178_vm12, %v10681_v39, %v10682_v35  ;;  %v4616_v49 = vsel %vm1178_vm12, %v10686_v50, %v10687_v24  ;;  %v4419_v24 = vld [vmem:[#allocation6 + $0x2a0] sm:$0xff] }
 0x908   : > { %9480 = vmatprep.subr.bf16.mxu0 %v9479_v4  ;;  %v10690_v29 = vpop.permute.xlu0 %10689  ;;  %v13191_v40 = vpop.permute.xlu1 %10694  ;;  %v9487_v6 = vpack.c.bf16 %v4616_v49, %v4614_v11  ;;  %v4421_v49 = vld [vmem:[#allocation6 + $0x2b0] sm:$0xff] }
 0x909   : > { %v10691_v43 = vunpack.i.l.bf16 %v10690_v29  ;;  %v10692_v4 = vunpack.i.h.bf16 %v10690_v29  ;;  %v10697_v20 = vunpack.i.h.bf16 %v13191_v40  ;;  %v10696_v27 = vunpack.i.l.bf16 %v13191_v40 }
 0x90a   : > { %9082 = vmatmul.mubr.msk.f32.gmra.mrb[14].mxu0 %vm566_vm8, %v3963_v10 }
 0x90b   : > { %4221 = vmatprep.mubr.f32.mxu0 %v14616_v1  ;;  %v4615_v7 = vsel %vm1178_vm12, %v10692_v4, %v10686_v50  ;;  %v4618_v50 = vsel %vm1178_vm12, %v10696_v27, %v10697_v20  ;;  %v4422_v4 = vld [vmem:[#allocation6 + $0x2b8] sm:$0xff] }
 0x90c   : > { %v10700_v62 = vpop.permute.xlu0 %10699  ;;  %v10705_v38 = vpop.permute.xlu1 %10704 }
 0x90d   : > { %v10702_v10 = vunpack.i.h.bf16 %v10700_v62  ;;  %v10701_v30 = vunpack.i.l.bf16 %v10700_v62  ;;  %v10707_v26 = vunpack.i.h.bf16 %v10705_v38  ;;  %v10706_v29 = vunpack.i.l.bf16 %v10705_v38 }
 0x90e   : > { %9083 = vmatmul.mubr.msk.f32.gmra.mrb[16].mxu0 %vm566_vm8, %v3964_v25  ;;  %v4613_v25 = vsel %vm1178_vm12, %v10691_v43, %v10681_v39 }
 0x90f   : > { %4373 = vmatprep.mubr.f32.mxu0 %v14616_v1  ;;  %v4620_v12 = vsel %vm1178_vm12, %v10701_v30, %v10702_v10  ;;  %v9489_v40 = vpack.c.bf16 %v4615_v7, %v4613_v25  ;;  %v4617_v62 = vsel %vm1178_vm12, %v10706_v29, %v10696_v27 }
 0x910   : > { %v13213_v21 = vpop.permute.xlu0 %10709  ;;  %v13215_v56 = vpop.permute.xlu1 %10714  ;;  %v9491_v31 = vpack.c.bf16 %v4620_v12, %v4618_v50 }
 0x911   : > { %v10712_v41 = vunpack.i.h.bf16 %v13213_v21  ;;  %v10711_v44 = vunpack.i.l.bf16 %v13213_v21  ;;  %v10717_v35 = vunpack.i.h.bf16 %v13215_v56  ;;  %v10716_v39 = vunpack.i.l.bf16 %v13215_v56 }
 0x912   : > { %9084 = vmatmul.mubr.msk.f32.vlgmr.msra.gmra.mrb[10].mxu0 %vm566_vm8, %v4241_v28  ;;  %v4619_v28 = vsel %vm1178_vm12, %v10707_v26, %v10701_v30 }
 0x913   : > { %9482 = vmatpush1.bf16.msra.mxu0 %v9481_v63  ;;  %4379 = vmatprep.mubr.f32.mxu0 %v14616_v1  ;;  %v4792_v3 = vsel %vm1366_vm13, %v10711_v44, %v10712_v41 }
 0x914   : > { %9484 = vmatprep.subr.bf16.mxu0 %v9483_v58  ;;  %v10720_v18 = vpop.permute.xlu0 %10719  ;;  %v13221_v2 = vpop.permute.xlu1 %10729  ;;  %v4794_v58 = vsel %vm1366_vm13, %v10716_v39, %v10717_v35 }
 0x915   : > { %v9495_v11 = vpack.c.bf16 %v4794_v58, %v4792_v3  ;;  %v10721_v56 = vunpack.i.l.bf16 %v10720_v18  ;;  %v10732_v30 = vunpack.i.h.bf16 %v13221_v2  ;;  %v4587_v58 = vld [vmem:[#allocation6 + $0x2d0] sm:$0xff] }
 0x916   : > { %9085 = vmatmul.mubr.msk.f32.gmra.mrb[12].mxu0 %vm566_vm8, %v4242_v34  ;;  %v9493_v34 = vpack.c.bf16 %v4619_v28, %v4617_v62  ;;  %v4586_v28 = vld [vmem:[#allocation6 + $0x2c8] sm:$0xff] }
 0x917   : > { %9486 = vmatpush1.bf16.msra.mxu0 %v9485_v36  ;;  %4385 = vmatprep.mubr.f32.mxu0 %v14616_v1  ;;  %v4791_v10 = vsel %vm1366_vm13, %v10721_v56, %v10711_v44  ;;  %v4585_v44 = vld [vmem:[#allocation6 + $0x2c0] sm:$0xff] }
 0x918   : > { %9488 = vmatprep.subr.bf16.mxu0 %v9487_v6  ;;  %v10725_v38 = vpop.permute.xlu0 %10724  ;;  %v10735_v63 = vpop.permute.xlu1 %10734  ;;  %v10722_v6 = vunpack.i.h.bf16 %v10720_v18 }
 0x919   : > { %v10726_v43 = vunpack.i.l.bf16 %v10725_v38  ;;  %v10737_v20 = vunpack.i.h.bf16 %v10735_v63  ;;  %v10736_v27 = vunpack.i.l.bf16 %v10735_v63 }
 0x91a   : > { %9086 = vmatmul.mubr.msk.f32.gmra.mrb[14].mxu0 %vm566_vm8, %v4243_v32  ;;  %v10727_v32 = vunpack.i.h.bf16 %v10725_v38  ;;  %v4793_v25 = vsel %vm1366_vm13, %v10722_v6, %v10716_v39  ;;  %v4588_v6 = vld [vmem:[#allocation6 + $0x2d8] sm:$0xff] }
 0x91b   : > { %4391 = vmatprep.mubr.f32.mxu0 %v14616_v1  ;;  %v4797_v39 = vsel %vm1366_vm13, %v10737_v20, %v10726_v43 }
 0x91c   : > { %v10740_v36 = vpop.permute.xlu0 %10739  ;;  %v10745_v21 = vpop.permute.xlu1 %10744  ;;  %v4798_v18 = vsel %vm1366_vm13, %v10726_v43, %v10727_v32 }
 0x91d   : > { %v10742_v29 = vunpack.i.h.bf16 %v10740_v36  ;;  %v10741_v12 = vunpack.i.l.bf16 %v10740_v36  ;;  %v10747_v41 = vunpack.i.h.bf16 %v10745_v21  ;;  %v10746_v35 = vunpack.i.l.bf16 %v10745_v21 }
 0x91e   : > { %9087 = vmatmul.mubr.msk.f32.gmra.mrb[16].mxu0 %vm566_vm8, %v4244_v48  ;;  %v10731_v48 = vunpack.i.l.bf16 %v13221_v2 }
 0x91f   : > { %4551 = vmatprep.mubr.f32.mxu0 %v14616_v1  ;;  %v4970_v62 = vsel %vm1553_vm15, %v10741_v12, %v10742_v29  ;;  %v4972_v38 = vsel %vm1553_vm15, %v10746_v35, %v10747_v41  ;;  %v4751_v29 = vld [vmem:[#allocation6 + $0x2e0] sm:$0xff] }
 0x920   : > { %v10750_v7 = vpop.permute.xlu0 %10749  ;;  %v10760_v26 = vpop.permute.xlu1 %10759  ;;  %v4796_v2 = vsel %vm1366_vm13, %v10731_v48, %v10732_v30  ;;  %v9503_v3 = vpack.c.bf16 %v4972_v38, %v4970_v62 }
 0x921   : > { %v9499_v50 = vpack.c.bf16 %v4798_v18, %v4796_v2  ;;  %v10762_v43 = vunpack.i.h.bf16 %v10760_v26 }
 0x922   : > { %9088 = vmatmul.mubr.msk.f32.vlgmr.msra.gmra.mrb[10].mxu0 %vm566_vm8, %v4419_v24  ;;  %v9497_v24 = vpack.c.bf16 %v4793_v25, %v4791_v10 }
 0x923   : > { %9490 = vmatpush1.bf16.msra.mxu0 %v9489_v40  ;;  %4557 = vmatprep.mubr.f32.mxu0 %v14616_v1  ;;  %v4795_v40 = vsel %vm1366_vm13, %v10736_v27, %v10731_v48 }
 0x924   : > { %9492 = vmatprep.subr.bf16.mxu0 %v9491_v31  ;;  %v10755_v63 = vpop.permute.xlu0 %10754  ;;  %v10765_v31 = vpop.permute.xlu1 %10764 }
 0x925   : > { %v10756_v36 = vunpack.i.l.bf16 %v10755_v63  ;;  %v10767_v30 = vunpack.i.h.bf16 %v10765_v31  ;;  %v10766_v48 = vunpack.i.l.bf16 %v10765_v31  ;;  %v4753_v31 = vld [vmem:[#allocation6 + $0x2f0] sm:$0xff] }
 0x926   : > { %9089 = vmatmul.mubr.msk.f32.gmra.mrb[12].mxu0 %vm566_vm8, %v4420_v46  ;;  %v9501_v46 = vpack.c.bf16 %v4797_v39, %v4795_v40  ;;  %v4752_v39 = vld [vmem:[#allocation6 + $0x2e8] sm:$0xff] }
 0x927   : > { %9494 = vmatpush1.bf16.msra.mxu0 %v9493_v34  ;;  %4563 = vmatprep.mubr.f32.mxu0 %v14616_v1  ;;  %v10751_v34 = vunpack.i.l.bf16 %v10750_v7 }
 0x928   : > { %9496 = vmatprep.subr.bf16.mxu0 %v9495_v11  ;;  %v10752_v11 = vunpack.i.h.bf16 %v10750_v7  ;;  %v10770_v21 = vpop.permute.xlu0 %10769  ;;  %v10775_v56 = vpop.permute.xlu1 %10774 }
 0x929   : > { %v4969_v32 = vsel %vm1553_vm15, %v10751_v34, %v10741_v12  ;;  %v10772_v20 = vunpack.i.h.bf16 %v10770_v21  ;;  %v10771_v27 = vunpack.i.l.bf16 %v10770_v21  ;;  %v10777_v7 = vunpack.i.h.bf16 %v10775_v56 }
 0x92a   : > { %9090 = vmatmul.mubr.msk.f32.gmra.mrb[14].mxu0 %vm566_vm8, %v4421_v49  ;;  %v10757_v49 = vunpack.i.h.bf16 %v10755_v63  ;;  %v4971_v10 = vsel %vm1553_vm15, %v10752_v11, %v10746_v35  ;;  %v10776_v18 = vunpack.i.l.bf16 %v10775_v56  ;;  %v4975_v35 = vsel %vm1553_vm15, %v10767_v30, %v10756_v36  ;;  %v4754_v11 = vld [vmem:[#allocation6 + $0x2f8] sm:$0xff] }
 0x92b   : > { %4569 = vmatprep.mubr.f32.mxu0 %v14616_v1  ;;  %v9505_v12 = vpack.c.bf16 %v4971_v10, %v4969_v32  ;;  %v5124_v40 = vsel %vm1708_vm14, %v10771_v27, %v10772_v20 }
 0x92c   : > { %v4976_v25 = vsel %vm1553_vm15, %v10756_v36, %v10757_v49  ;;  %v10780_v41 = vpop.permute.xlu0 %10779 }
 0x92e   : > { %9091 = vmatmul.mubr.msk.f32.gmra.mrb[16].mxu0 %vm566_vm8, %v4422_v4  ;;  %v10761_v4 = vunpack.i.l.bf16 %v10760_v26 }
 0x92f   : > { %4705 = vmatprep.mubr.f32.mxu0 %v14616_v1 }
 0x930   : > { %v4974_v26 = vsel %vm1553_vm15, %v10761_v4, %v10762_v43  ;;  %v10790_v62 = vpop.permute.xlu0 %10789 }
 0x931   : > { %v9507_v2 = vpack.c.bf16 %v4976_v25, %v4974_v26  ;;  %v10791_v34 = vunpack.i.l.bf16 %v10790_v62  ;;  %v4930_v26 = vld [vmem:[#allocation6 + $0x308] sm:$0xff] }
 0x932   : > { %9092 = vmatmul.mubr.msk.f32.vlgmr.msra.gmra.mrb[10].mxu0 %vm566_vm8, %v4585_v44  ;;  %v10785_v44 = vpop.permute.xlu1 %10784 }
 0x933   : > { %9498 = vmatpush1.bf16.msra.mxu0 %v9497_v24  ;;  %4711 = vmatprep.mubr.f32.mxu0 %v14616_v1  ;;  %v4973_v24 = vsel %vm1553_vm15, %v10766_v48, %v10761_v4  ;;  %v10787_v56 = vunpack.i.h.bf16 %v10785_v44 }
 0x934   : > { %9500 = vmatprep.subr.bf16.mxu0 %v9499_v50  ;;  %v5126_v50 = vsel %vm1708_vm14, %v10776_v18, %v10777_v7  ;;  %v10800_v49 = vpop.permute.xlu0 %10799  ;;  %v4929_v7 = vld [vmem:[#allocation6 + $0x300] sm:$0xff] }
 0x935   : > { %v9511_v63 = vpack.c.bf16 %v5126_v50, %v5124_v40  ;;  %v10802_v30 = vunpack.i.h.bf16 %v10800_v49  ;;  %v10801_v48 = vunpack.i.l.bf16 %v10800_v49  ;;  %v4931_v50 = vld [vmem:[#allocation6 + $0x310] sm:$0xff] }
 0x936   : > { %9093 = vmatmul.mubr.msk.f32.gmra.mrb[12].mxu0 %vm566_vm8, %v4586_v28  ;;  %v9509_v28 = vpack.c.bf16 %v4975_v35, %v4973_v24  ;;  %v10795_v38 = vpop.permute.xlu1 %10794 }
 0x937   : > { %9502 = vmatpush1.bf16.msra.mxu0 %v9501_v46  ;;  %4717 = vmatprep.mubr.f32.mxu0 %v14616_v1  ;;  %v10781_v46 = vunpack.i.l.bf16 %v10780_v41  ;;  %v10797_v43 = vunpack.i.h.bf16 %v10795_v38  ;;  %v10796_v4 = vunpack.i.l.bf16 %v10795_v38  ;;  %v5302_v35 = vsel %vm1895_vm2, %v10801_v48, %v10802_v30 }
 0x938   : > { %9504 = vmatprep.subr.bf16.mxu0 %v9503_v3  ;;  %v10782_v3 = vunpack.i.h.bf16 %v10780_v41 }
 0x939   : > { %v5123_v21 = vsel %vm1708_vm14, %v10781_v46, %v10771_v27  ;;  %v5129_v41 = vsel %vm1708_vm14, %v10797_v43, %v10791_v34 }
 0x93a   : > { %9094 = vmatmul.mubr.msk.f32.gmra.mrb[14].mxu0 %vm566_vm8, %v4587_v58  ;;  %v10792_v58 = vunpack.i.h.bf16 %v10790_v62  ;;  %v10805_v36 = vpop.permute.xlu1 %10804  ;;  %v5125_v32 = vsel %vm1708_vm14, %v10782_v3, %v10776_v18  ;;  %v4932_v3 = vld [vmem:[#allocation6 + $0x318] sm:$0xff] }
 0x93b   : > { %4723 = vmatprep.mubr.f32.mxu0 %v14616_v1  ;;  %v10807_v25 = vunpack.i.h.bf16 %v10805_v36  ;;  %v10806_v20 = vunpack.i.l.bf16 %v10805_v36 }
 0x93c   : > { %v5130_v10 = vsel %vm1708_vm14, %v10791_v34, %v10792_v58 }
 0x93d   : > { %v5304_v24 = vsel %vm1895_vm2, %v10806_v20, %v10807_v25 }
 0x93e   : > { %9095 = vmatmul.mubr.msk.f32.gmra.mrb[16].mxu0 %vm566_vm8, %v4588_v6  ;;  %v10786_v6 = vunpack.i.l.bf16 %v10785_v44  ;;  %v10810_v44 = vpop.permute.xlu0 %10809  ;;  %v9519_v40 = vpack.c.bf16 %v5304_v24, %v5302_v35 }
 0x93f   : > { %4883 = vmatprep.mubr.f32.mxu0 %v14616_v1  ;;  %v10812_v62 = vunpack.i.h.bf16 %v10810_v44  ;;  %v10811_v38 = vunpack.i.l.bf16 %v10810_v44 }
 0x940   : > { %v5128_v27 = vsel %vm1708_vm14, %v10786_v6, %v10787_v56  ;;  %v5127_v18 = vsel %vm1708_vm14, %v10796_v4, %v10786_v6  ;;  %v5095_v56 = vld [vmem:[#allocation6 + $0x320] sm:$0xff] }
 0x941   : > { %v5303_v49 = vsel %vm1895_vm2, %v10812_v62, %v10806_v20  ;;  %v5097_v20 = vld [vmem:[#allocation6 + $0x330] sm:$0xff] }
 0x942   : > { %9096 = vmatmul.mubr.msk.f32.vlgmr.msra.gmra.mrb[10].mxu0 %vm566_vm8, %v4751_v29  ;;  %v9513_v29 = vpack.c.bf16 %v5125_v32, %v5123_v21 }
 0x943   : > { %9506 = vmatpush1.bf16.msra.mxu0 %v9505_v12  ;;  %4889 = vmatprep.mubr.f32.mxu0 %v14616_v1  ;;  %v9515_v12 = vpack.c.bf16 %v5130_v10, %v5128_v27  ;;  %v5262_v27 = vld [vmem:[#allocation6 + $0x348] sm:$0xff] }
 0x944   : > { %9508 = vmatprep.subr.bf16.mxu0 %v9507_v2  ;;  %v10820_v2 = vpop.permute.xlu1 %10819 }
 0x945   : > { %v10822_v58 = vunpack.i.h.bf16 %v10820_v2  ;;  %v10821_v34 = vunpack.i.l.bf16 %v10820_v2 }
 0x946   : > { %9097 = vmatmul.mubr.msk.f32.gmra.mrb[12].mxu0 %vm566_vm8, %v4752_v39  ;;  %v9517_v39 = vpack.c.bf16 %v5129_v41, %v5127_v18  ;;  %v5263_v41 = vld [vmem:[#allocation6 + $0x350] sm:$0xff]  ;;  %v5264_v18 = vld [vmem:[#allocation6 + $0x358] sm:$0xff] }
 0x947   : > { %9510 = vmatpush1.bf16.msra.mxu0 %v9509_v28  ;;  %4895 = vmatprep.mubr.f32.mxu0 %v14616_v1  ;;  %v10815_v28 = vpop.permute.xlu0 %10814  ;;  %v5306_v43 = vsel %vm1895_vm2, %v10821_v34, %v10822_v58 }
 0x948   : > { %9512 = vmatprep.subr.bf16.mxu0 %v9511_v63  ;;  %v10817_v63 = vunpack.i.h.bf16 %v10815_v28  ;;  %v10825_v46 = vpop.permute.xlu1 %10824 }
 0x949   : > { %v10827_v36 = vunpack.i.h.bf16 %v10825_v46  ;;  %v10826_v21 = vunpack.i.l.bf16 %v10825_v46 }
 0x94a   : > { %9098 = vmatmul.mubr.msk.f32.gmra.mrb[14].mxu0 %vm566_vm8, %v4753_v31  ;;  %v10816_v31 = vunpack.i.l.bf16 %v10815_v28 }
 0x94b   : > { %4901 = vmatprep.mubr.f32.mxu0 %v14616_v1  ;;  %v5305_v10 = vsel %vm1895_vm2, %v10826_v21, %v10821_v34 }
 0x94c   : > { %v5308_v6 = vsel %vm1895_vm2, %v10816_v31, %v10817_v63  ;;  %v5307_v4 = vsel %vm1895_vm2, %v10827_v36, %v10816_v31 }
 0x94d   : > { %v9523_v30 = vpack.c.bf16 %v5308_v6, %v5306_v43  ;;  %v9525_v25 = vpack.c.bf16 %v5307_v4, %v5305_v10  ;;  %v5429_v44 = vpop.permute.xlu0 %5428 }
 0x94e   : > { %9099 = vmatmul.mubr.msk.f32.gmra.mrb[16].mxu0 %vm566_vm8, %v4754_v11  ;;  %v5301_v11 = vsel %vm1895_vm2, %v10811_v38, %v10801_v48  ;;  %v5096_v48 = vld [vmem:[#allocation6 + $0x328] sm:$0xff] }
 0x94f   : > { %5061 = vmatprep.mubr.f32.mxu0 %v14616_v1  ;;  %v9521_v32 = vpack.c.bf16 %v5303_v49, %v5301_v11 }
 0x951   : > { %v5439_v31 = vpop.permute.xlu0 %5438 }
 0x952   : > { %9100 = vmatmul.mubr.msk.f32.vlgmr.msra.gmra.mrb[10].mxu0 %vm566_vm8, %v4929_v7  ;;  %v5098_v7 = vld [vmem:[#allocation6 + $0x338] sm:$0xff] }
 0x953   : > { %9514 = vmatpush1.bf16.msra.mxu0 %v9513_v29  ;;  %5067 = vmatprep.mubr.f32.mxu0 %v14616_v1  ;;  %v5261_v29 = vld [vmem:[#allocation6 + $0x340] sm:$0xff] }
 0x954   : > { %9516 = vmatprep.subr.bf16.mxu0 %v9515_v12 }
 0x956   : > { %9101 = vmatmul.mubr.msk.f32.gmra.mrb[12].mxu0 %vm566_vm8, %v4930_v26 }
 0x957   : > { %9518 = vmatpush1.bf16.msra.mxu0 %v9517_v39  ;;  %5073 = vmatprep.mubr.f32.mxu0 %v14616_v1  ;;  %v5434_v39 = vpop.permute.xlu1 %5433 }
 0x958   : > { %9520 = vmatprep.subr.bf16.mxu0 %v9519_v40 }
 0x95a   : > { %9102 = vmatmul.mubr.msk.f32.gmra.mrb[14].mxu0 %vm566_vm8, %v4931_v50 }
 0x95b   : > { %5079 = vmatprep.mubr.f32.mxu0 %v14616_v1  ;;  %v5444_v36 = vpop.permute.xlu1 %5443 }
 0x95e   : > { %9103 = vmatmul.mubr.msk.f32.gmra.mrb[16].mxu0 %vm566_vm8, %v4932_v3 }
 0x95f   : > { %5215 = vmatprep.mubr.f32.mxu0 %v14616_v1 }
 0x962   : > { %9104 = vmatmul.mubr.msk.f32.vlgmr.msra.gmra.mrb[10].mxu0 %vm566_vm8, %v5095_v56 }
 0x963   : > { %9522 = vmatpush1.bf16.msra.mxu0 %v9521_v32  ;;  %5221 = vmatprep.mubr.f32.mxu0 %v14616_v1 }
 0x964   : > { %9524 = vmatprep.subr.bf16.mxu0 %v9523_v30 }
 0x966   : > { %9105 = vmatmul.mubr.msk.f32.gmra.mrb[12].mxu0 %vm566_vm8, %v5096_v48 }
 0x967   : > { %9526 = vmatpush1.bf16.msra.mxu0 %v9525_v25  ;;  %5227 = vmatprep.mubr.f32.mxu0 %v14616_v1 }
 0x968   : > { %9599 = vmatprep.subr.bf16.mxu0 %v11508_v45 }
 0x96a   : > { %9106 = vmatmul.mubr.msk.f32.gmra.mrb[14].mxu0 %vm566_vm8, %v5097_v20 }
 0x96b   : > { %5233 = vmatprep.mubr.f32.mxu0 %v14616_v1 }
 0x96e   : > { %9107 = vmatmul.mubr.msk.f32.gmra.mrb[16].mxu0 %vm566_vm8, %v5098_v7 }
 0x96f   : > { %5393 = vmatprep.mubr.f32.mxu0 %v14616_v1 }
 0x972   : > { %9108 = vmatmul.mubr.msk.f32.vlgmr.msra.gmra.mrb[10].mxu0 %vm566_vm8, %v5261_v29 }
 0x973   : > { %5399 = vmatprep.mubr.f32.mxu0 %v14616_v1 }
 0x976   : > { %9109 = vmatmul.mubr.msk.f32.gmra.mrb[12].mxu0 %vm566_vm8, %v5262_v27 }
 0x977   : > { %5405 = vmatprep.mubr.f32.mxu0 %v14616_v1 }
 0x97a   : > { %9110 = vmatmul.mubr.msk.f32.gmra.mrb[14].mxu0 %vm566_vm8, %v5263_v41 }
 0x97b   : > { %5411 = vmatprep.mubr.f32.mxu0 %v14616_v1 }
 0x97e   : > { %9111 = vmatmul.mubr.msk.f32.gmra.mrb[16].mxu0 %vm566_vm8, %v5264_v18 }
 0x97f   : > { %9294 = vmatprep.mubr.msk.f32.mxu0 %vm11509_vm3, %v14616_v1 }
 0xa45   : > { %v5395_v12 = vpop.f32.mrb[10].mxu0 }
 0xa46   : > { %v5446_v26 = vadd.f32 %v5429_v44, %v5395_v12  ;;  %v5397_v35 = vpop.f32.mrb[11].mxu0 }
 0xa47   : > { %v5447_v24 = vadd.f32 %v5429_v44, %v5397_v35 }
 0xa48   : > { %v5454_v2 = vmax.f32 %v5446_v26, 0.0 }
 0xa49   : > { %v5455_v40 = vmax.f32 %v5447_v24, 0.0  ;;  %v5401_v50 = vpop.f32.mrb[12].mxu0 }
 0xa4a   : > { %v5448_v28 = vadd.f32 %v5434_v39, %v5401_v50  ;;  %5475 = vrot.lane.b32.xlu0 %v5454_v2, %s14643_s26  ;;  %v5403_v62 = vpop.f32.mrb[13].mxu0 }
 0xa4b   : > { %v5449_v38 = vadd.f32 %v5434_v39, %v5403_v62  ;;  %5477 = vrot.lane.b32.xlu1 %v5455_v40, %s14643_s26 }
 0xa4c   : > { %v5456_v63 = vmax.f32 %v5448_v28, 0.0 }
 0xa4d   : > { %v5457_v46 = vmax.f32 %v5449_v38, 0.0  ;;  %v5407_v3 = vpop.f32.mrb[14].mxu0 }
 0xa4e   : > { %v5450_v58 = vadd.f32 %v5439_v31, %v5407_v3  ;;  %5479 = vrot.lane.b32.xlu0 %v5456_v63, %s14643_s26  ;;  %v5409_v34 = vpop.f32.mrb[15].mxu0 }
 0xa4f   : > { %v5451_v11 = vadd.f32 %v5439_v31, %v5409_v34  ;;  %5481 = vrot.lane.b32.xlu1 %v5457_v46, %s14643_s26 }
 0xa50   : > { %v5458_v49 = vmax.f32 %v5450_v58, 0.0 }
 0xa51   : > { %v5459_v21 = vmax.f32 %v5451_v11, 0.0  ;;  %v5413_v56 = vpop.f32.mrb[16].mxu0 }
 0xa52   : > { %v5452_v6 = vadd.f32 %v5444_v36, %v5413_v56  ;;  %5483 = vrot.lane.b32.xlu0 %v5458_v49, %s14643_s26  ;;  %v5415_v32 = vpop.f32.mrb[17].mxu0 }
 0xa53   : > { %v5453_v43 = vadd.f32 %v5444_v36, %v5415_v32  ;;  %5485 = vrot.lane.b32.xlu1 %v5459_v21, %s14643_s26 }
 0xa54   : > { %v5460_v4 = vmax.f32 %v5452_v6, 0.0 }
 0xa55   : > { %v5461_v10 = vmax.f32 %v5453_v43, 0.0 }
 0xa56   : > { %5487 = vrot.lane.b32.xlu0 %v5460_v4, %s14643_s26 }
 0xa57   : > { %5489 = vrot.lane.b32.xlu1 %v5461_v10, %s14643_s26 }
 0xabc   : > { %v5476_v30 = vpop.permute.xlu0 %5475 }
 0xabd   : > { %5507 = vst.msk [vmem:[#allocation2] sm:$0xff] %vm471_vm5, %v5476_v30  ;;  %v5478_v48 = vpop.permute.xlu1 %5477 }
 0xabe   : > { %5509 = vst.msk [vmem:[#allocation2 + $0x10] sm:$0xff] %vm454_vm6, %v5478_v48  ;;  %v13334_v29 = vsel %vm454_vm6, %v5476_v30, %v5478_v48 }
 0xabf   : > { %v5804_v36 = vmul.f32 %v13334_v29, %v11950_v52  ;;  %v13425_v30 = vmul.f32 %v11749_v15, %v13334_v29 }
 0xac0   : > { %v5480_v25 = vpop.permute.xlu0 %5479 }
 0xac1   : > { %5510 = vst.msk [vmem:[#allocation2 + $0x18] sm:$0xff] %vm471_vm5, %v5480_v25  ;;  %v5482_v20 = vpop.permute.xlu1 %5481 }
 0xac2   : > { %5512 = vst.msk [vmem:[#allocation2 + $0x28] sm:$0xff] %vm454_vm6, %v5482_v20  ;;  %v13351_v35 = vsel %vm454_vm6, %v5480_v25, %v5482_v20 }
 0xac3   : > { %v5807_v49 = vmul.f32 %v13351_v35, %v11950_v52  ;;  %v13421_v10 = vmul.f32 %v11749_v15, %v13351_v35 }
 0xac4   : > { %v5484_v7 = vpop.permute.xlu0 %5483  ;;  %v13346_v12 = vld [vmem:[#allocation2] sm:$0xff] }
 0xac5   : > { %5513 = vst.msk [vmem:[#allocation2 + $0x30] sm:$0xff] %vm471_vm5, %v5484_v7  ;;  %v5486_v27 = vpop.permute.xlu1 %5485  ;;  %v13337_v41 = vld [vmem:[#allocation2 + $0x10] sm:$0xff]  ;;  %v5803_v4 = vmul.f32 %v11870_v61, %v13346_v12 }
 0xac6   : > { %5515 = vst.msk [vmem:[#allocation2 + $0x40] sm:$0xff] %vm454_vm6, %v5486_v27  ;;  %v13342_v18 = vpack.i.bf16 %v13337_v41, %v13334_v29  ;;  %v13370_v50 = vsel %vm454_vm6, %v5484_v7, %v5486_v27  ;;  %v5805_v11 = vmul.f32 %v11934_v60, %v13337_v41 }
 0xac7   : > { %v5810_v43 = vmul.f32 %v13370_v50, %v11950_v52 }
 0xac8   : > { %v5488_v44 = vpop.permute.xlu0 %5487  ;;  %10829 = vrot.lane.b32.xlu0 %v13342_v18, %s14644_s14  ;;  %v13348_v26 = vld [vmem:[#allocation2 + $0x18] sm:$0xff]  ;;  %v10858_v56 = vpack.i.bf16 %v5805_v11, %v5804_v36  ;;  %v5983_v11 = vmul.f32 %v11975_v16, %v13337_v41 }
 0xac9   : > { %5516 = vst.msk [vmem:[#allocation2 + $0x48] sm:$0xff] %vm471_vm5, %v5488_v44  ;;  %v5490_v24 = vpop.permute.xlu1 %5489  ;;  %v13356_v2 = vpack.i.bf16 %v13348_v26, %v13346_v12  ;;  %v13358_v39 = vld [vmem:[#allocation2 + $0x28] sm:$0xff]  ;;  %v5806_v32 = vmul.f32 %v11870_v61, %v13348_v26 }
 0xaca   : > { %5518 = vst.msk [vmem:[#allocation2 + $0x58] sm:$0xff] %vm454_vm6, %v5490_v24  ;;  %v13363_v40 = vpack.i.bf16 %v13358_v39, %v13351_v35  ;;  %v13385_v31 = vsel %vm454_vm6, %v5488_v44, %v5490_v24  ;;  %v5808_v34 = vmul.f32 %v11934_v60, %v13358_v39  ;;  %v9535_v24 = vpack.c.bf16 %v13421_v10, %v13425_v30 }
 0xacb   : > { %v10868_v25 = vpack.i.bf16 %v5806_v32, %v5803_v4  ;;  %v5813_v44 = vmul.f32 %v13385_v31, %v11950_v52  ;;  %v5982_v32 = vmul.f32 %v13334_v29, %v11997_v54 }
 0xacc   : > { %10834 = vrot.lane.b32.xlu0 %v13356_v2, %s14644_s14  ;;  %10839 = vrot.lane.b32.xlu1 %v13363_v40, %s14644_s14  ;;  %v13380_v38 = vld [vmem:[#allocation2 + $0x30] sm:$0xff]  ;;  %v10863_v21 = vpack.i.bf16 %v5808_v34, %v5807_v49  ;;  %v5986_v34 = vmul.f32 %v11975_v16, %v13358_v39 }
 0xacd   : > { %v13372_v28 = vld [vmem:[#allocation2 + $0x40] sm:$0xff]  ;;  %v5809_v27 = vmul.f32 %v11870_v61, %v13380_v38 }
 0xace   : > { %v13376_v62 = vpack.i.bf16 %v13372_v28, %v13370_v50  ;;  %v5811_v6 = vmul.f32 %v11934_v60, %v13372_v28 }
 0xad0   : > { %10844 = vrot.lane.b32.xlu1 %v13376_v62, %s14644_s14  ;;  %v13382_v63 = vld [vmem:[#allocation2 + $0x48] sm:$0xff]  ;;  %v10873_v48 = vpack.i.bf16 %v5811_v6, %v5810_v43  ;;  %v5985_v6 = vmul.f32 %v13351_v35, %v11997_v54 }
 0xad1   : > { %v13389_v46 = vpack.i.bf16 %v13382_v63, %v13380_v38  ;;  %v13391_v3 = vld [vmem:[#allocation2 + $0x58] sm:$0xff]  ;;  %v5812_v20 = vmul.f32 %v11870_v61, %v13382_v63 }
 0xad2   : > { %v13395_v58 = vpack.i.bf16 %v13391_v3, %v13385_v31  ;;  %v5814_v7 = vmul.f32 %v11934_v60, %v13391_v3  ;;  %v10893_v4 = vpack.i.bf16 %v5986_v34, %v5985_v6  ;;  %v5990_v34 = vmul.f32 %v11977_v17, %v13382_v63 }
 0xad3   : > { %v10883_v49 = vpack.i.bf16 %v5812_v20, %v5809_v27  ;;  %v5984_v20 = vmul.f32 %v11977_v17, %v13348_v26  ;;  %v5981_v27 = vmul.f32 %v11977_v17, %v13346_v12  ;;  %v5991_v6 = vmul.f32 %v13385_v31, %v11997_v54 }
 0xad4   : > { %10854 = vrot.lane.b32.xlu1 %v13389_v46, %s14644_s14  ;;  %10849 = vrot.lane.b32.xlu0 %v13395_v58, %s14644_s14  ;;  %v10878_v36 = vpack.i.bf16 %v5814_v7, %v5813_v44  ;;  %v5988_v7 = vmul.f32 %v13370_v50, %v11997_v54 }
 0xad8   : > { %10864 = vrot.lane.b32.xlu1 %v10863_v21, %s14645_s23  ;;  %10859 = vrot.lane.b32.xlu0 %v10858_v56, %s14645_s23  ;;  %v13445_v21 = vmul.f32 %v11749_v15, %v13370_v50  ;;  %v13449_v56 = vmul.f32 %v11749_v15, %v13385_v31 }
 0xada   : > { %v9539_v43 = vpack.c.bf16 %v13449_v56, %v13445_v21  ;;  %v5548_v21 = vld [vmem:[#allocation6 + $0x398] sm:$0xff] }
 0xadc   : > { %10874 = vrot.lane.b32.xlu1 %v10873_v48, %s14645_s23  ;;  %10869 = vrot.lane.b32.xlu0 %v10868_v25, %s14645_s23  ;;  %v10888_v48 = vpack.i.bf16 %v5983_v11, %v5982_v32  ;;  %v5989_v25 = vmul.f32 %v11975_v16, %v13372_v28  ;;  %v5992_v11 = vmul.f32 %v11975_v16, %v13391_v3 }
 0xade   : > { %v10903_v44 = vpack.i.bf16 %v5989_v25, %v5988_v7  ;;  %v6315_v25 = vmul.f32 %v11866_v59, %v13337_v41  ;;  %v6314_v7 = vmul.f32 %v13334_v29, %v11886_v5 }
 0xae0   : > { %10884 = vrot.lane.b32.xlu1 %v10883_v49, %s14645_s23  ;;  %10879 = vrot.lane.b32.xlu0 %v10878_v36, %s14645_s23  ;;  %v10898_v49 = vpack.i.bf16 %v5984_v20, %v5981_v27  ;;  %v5987_v36 = vmul.f32 %v11977_v17, %v13380_v38  ;;  %v6317_v20 = vmul.f32 %v13351_v35, %v11886_v5 }
 0xae2   : > { %v10913_v32 = vpack.i.bf16 %v5990_v34, %v5987_v36  ;;  %v6316_v34 = vmul.f32 %v11850_v53, %v13348_v26  ;;  %v6313_v36 = vmul.f32 %v11850_v53, %v13346_v12 }
 0xae4   : > { %10894 = vrot.lane.b32.xlu1 %v10893_v4, %s14646_s24  ;;  %10889 = vrot.lane.b32.xlu0 %v10888_v48, %s14646_s24  ;;  %v10908_v4 = vpack.i.bf16 %v5992_v11, %v5991_v6  ;;  %v6318_v48 = vmul.f32 %v11866_v59, %v13358_v39  ;;  %v6320_v11 = vmul.f32 %v13370_v50, %v11886_v5 }
 0xae6   : > { %v10953_v27 = vpack.i.bf16 %v6318_v48, %v6317_v20  ;;  %v6324_v48 = vmul.f32 %v11866_v59, %v13391_v3  ;;  %v6323_v20 = vmul.f32 %v13385_v31, %v11886_v5 }
 0xae8   : > { %10904 = vrot.lane.b32.xlu1 %v10903_v44, %s14646_s24  ;;  %10899 = vrot.lane.b32.xlu0 %v10898_v49, %s14646_s24  ;;  %v10948_v44 = vpack.i.bf16 %v6315_v25, %v6314_v7  ;;  %v6321_v49 = vmul.f32 %v11866_v59, %v13372_v28  ;;  %v6319_v25 = vmul.f32 %v11850_v53, %v13380_v38 }
 0xaea   : > { %v10963_v6 = vpack.i.bf16 %v6321_v49, %v6320_v11  ;;  %v6493_v49 = vmul.f32 %v11918_v47, %v13337_v41  ;;  %v6492_v11 = vmul.f32 %v13334_v29, %v11925_v55 }
 0xaec   : > { %10914 = vrot.lane.b32.xlu1 %v10913_v32, %s14646_s24  ;;  %10909 = vrot.lane.b32.xlu0 %v10908_v4, %s14646_s24  ;;  %v10958_v32 = vpack.i.bf16 %v6316_v34, %v6313_v36  ;;  %v6322_v4 = vmul.f32 %v11850_v53, %v13382_v63  ;;  %v6495_v34 = vmul.f32 %v13351_v35, %v11925_v55 }
 0xaee   : > { %v10973_v7 = vpack.i.bf16 %v6322_v4, %v6319_v25  ;;  %v6494_v4 = vmul.f32 %v11858_v57, %v13348_v26  ;;  %v6491_v25 = vmul.f32 %v11858_v57, %v13346_v12 }
 0xaf0   : > { %10924 = vrot.lane.b32.xlu1 %v13363_v40, %s14638_s20  ;;  %10919 = vrot.lane.b32.xlu0 %v13342_v18, %s14638_s20 }
 0xaf4   : > { %10934 = vrot.lane.b32.xlu1 %v13376_v62, %s14638_s20  ;;  %10929 = vrot.lane.b32.xlu0 %v13356_v2, %s14638_s20 }
 0xaf8   : > { %10944 = vrot.lane.b32.xlu1 %v13389_v46, %s14638_s20  ;;  %10939 = vrot.lane.b32.xlu0 %v13395_v58, %s14638_s20 }
 0xafc   : > { %10954 = vrot.lane.b32.xlu1 %v10953_v27, %s14639_s22  ;;  %10949 = vrot.lane.b32.xlu0 %v10948_v44, %s14639_s22  ;;  %v10968_v27 = vpack.i.bf16 %v6324_v48, %v6323_v20  ;;  %v6496_v44 = vmul.f32 %v11918_v47, %v13358_v39  ;;  %v6498_v48 = vmul.f32 %v13370_v50, %v11925_v55 }
 0xafe   : > { %v10983_v36 = vpack.i.bf16 %v6496_v44, %v6495_v34  ;;  %v6502_v44 = vmul.f32 %v11918_v47, %v13391_v3  ;;  %v6501_v34 = vmul.f32 %v13385_v31, %v11925_v55 }
 0xb00   : > { %10964 = vrot.lane.b32.xlu1 %v10963_v6, %s14639_s22  ;;  %10959 = vrot.lane.b32.xlu0 %v10958_v32, %s14639_s22  ;;  %v10978_v6 = vpack.i.bf16 %v6493_v49, %v6492_v11  ;;  %v6499_v32 = vmul.f32 %v11918_v47, %v13372_v28  ;;  %v6497_v49 = vmul.f32 %v11858_v57, %v13380_v38 }
 0xb02   : > { %v10993_v20 = vpack.i.bf16 %v6499_v32, %v6498_v48  ;;  %v6825_v32 = vmul.f32 %v12010_v33, %v13337_v41  ;;  %v6826_v41 = vmul.f32 %v11985_v23, %v13348_v26  ;;  %v6829_v48 = vmul.f32 %v11985_v23, %v13380_v38 }
 0xb04   : > { %10974 = vrot.lane.b32.xlu1 %v10973_v7, %s14639_s22  ;;  %10969 = vrot.lane.b32.xlu0 %v10968_v27, %s14639_s22  ;;  %v10988_v7 = vpack.i.bf16 %v6494_v4, %v6491_v25  ;;  %v6500_v27 = vmul.f32 %v11858_v57, %v13382_v63  ;;  %v6832_v4 = vmul.f32 %v11985_v23, %v13382_v63 }
 0xb06   : > { %v11003_v11 = vpack.i.bf16 %v6500_v27, %v6497_v49  ;;  %v11063_v25 = vpack.i.bf16 %v6832_v4, %v6829_v48  ;;  %v9114_v27 = vld [vmem:[%s14580_s2 + $0x70] sm:$0xff] }
 0xb08   : > { %10984 = vrot.lane.b32.xlu1 %v10983_v36, %s14640_s16  ;;  %10979 = vrot.lane.b32.xlu0 %v10978_v6, %s14640_s16  ;;  %v10998_v36 = vpack.i.bf16 %v6502_v44, %v6501_v34  ;;  %v6828_v6 = vmul.f32 %v12010_v33, %v13358_v39  ;;  %v6831_v39 = vmul.f32 %v12010_v33, %v13372_v28 }
 0xb09   : > { %v6834_v28 = vmul.f32 %v12010_v33, %v13391_v3  ;;  %v9113_v3 = vld [vmem:[%s14580_s2 + $0x68] sm:$0xff] }
 0xb0c   : > { %10994 = vrot.lane.b32.xlu1 %v10993_v20, %s14640_s16  ;;  %10989 = vrot.lane.b32.xlu0 %v10988_v7, %s14640_s16  ;;  %v9112_v7 = vld [vmem:[%s14580_s2 + $0x60] sm:$0xff] }
 0xb10   : > { %11004 = vrot.lane.b32.xlu1 %v11003_v11, %s14640_s16  ;;  %10999 = vrot.lane.b32.xlu0 %v10998_v36, %s14640_s16 }
 0xb14   : > { %11014 = vrot.lane.b32.xlu1 %v13363_v40, %s14641_s25  ;;  %11009 = vrot.lane.b32.xlu0 %v13342_v18, %s14641_s25  ;;  %v6827_v18 = vmul.f32 %v13351_v35, %v12025_v51  ;;  %v6824_v40 = vmul.f32 %v13334_v29, %v12025_v51  ;;  %v6823_v35 = vmul.f32 %v11985_v23, %v13346_v12 }
 0xb16   : > { %v11048_v29 = vpack.i.bf16 %v6826_v41, %v6823_v35 }
 0xb18   : > { %11024 = vrot.lane.b32.xlu1 %v13376_v62, %s14641_s25  ;;  %11019 = vrot.lane.b32.xlu0 %v13356_v2, %s14641_s25  ;;  %v11043_v62 = vpack.i.bf16 %v6828_v6, %v6827_v18  ;;  %v11038_v2 = vpack.i.bf16 %v6825_v32, %v6824_v40 }
 0xb1c   : > { %11034 = vrot.lane.b32.xlu1 %v13389_v46, %s14641_s25  ;;  %11029 = vrot.lane.b32.xlu0 %v13395_v58, %s14641_s25  ;;  %v6830_v46 = vmul.f32 %v13370_v50, %v12025_v51  ;;  %v6833_v50 = vmul.f32 %v13385_v31, %v12025_v51  ;;  %v9115_v31 = vld [vmem:[%s14580_s2 + $0x78] sm:$0xff] }
 0xb1e   : > { %v11053_v58 = vpack.i.bf16 %v6831_v39, %v6830_v46  ;;  %v11058_v20 = vpack.i.bf16 %v6834_v28, %v6833_v50 }
 0xb20   : > { %11044 = vrot.lane.b32.xlu1 %v11043_v62, %s14642_s27  ;;  %11039 = vrot.lane.b32.xlu0 %v11038_v2, %s14642_s27 }
 0xb24   : > { %11054 = vrot.lane.b32.xlu1 %v11053_v58, %s14642_s27  ;;  %11049 = vrot.lane.b32.xlu0 %v11048_v29, %s14642_s27 }
 0xb28   : > { %11064 = vrot.lane.b32.xlu1 %v11063_v25, %s14642_s27  ;;  %11059 = vrot.lane.b32.xlu0 %v11058_v20, %s14642_s27 }
 0xb2c   : > { %7008 = vperm.xlu1 %10346, %v9113_v3   ;;  %7003 = vperm.xlu0 %10347, %v9112_v7  }
 0xb30   : > { %7018 = vperm.xlu1 %10346, %v9115_v31   ;;  %7013 = vperm.xlu0 %10347, %v9114_v27  }
 0xb3a   : > { %v10830_v44 = vpop.permute.xlu0 %10829 }
 0xb3b   : > { %v10832_v49 = vunpack.i.h.bf16 %v10830_v44  ;;  %v10831_v34 = vunpack.i.l.bf16 %v10830_v44 }
 0xb3d   : > { %v5586_v39 = vsel %vm549_vm11, %v10831_v34, %v10832_v49 }
 0xb3e   : > { %v10835_v11 = vpop.permute.xlu0 %10834  ;;  %v10840_v36 = vpop.permute.xlu1 %10839 }
 0xb3f   : > { %v10837_v6 = vunpack.i.h.bf16 %v10835_v11  ;;  %v10836_v32 = vunpack.i.l.bf16 %v10835_v11  ;;  %v10842_v18 = vunpack.i.h.bf16 %v10840_v36  ;;  %v10841_v40 = vunpack.i.l.bf16 %v10840_v36 }
 0xb41   : > { %v5585_v62 = vsel %vm549_vm11, %v10836_v32, %v10831_v34  ;;  %v5587_v2 = vsel %vm549_vm11, %v10837_v6, %v10841_v40  ;;  %v5588_v41 = vsel %vm549_vm11, %v10841_v40, %v10842_v18  ;;  %v5529_v6 = vmul.f32 %v11746_v14, %v13348_v26 }
 0xb42   : > { %v10845_v46 = vpop.permute.xlu1 %10844  ;;  %v9527_v35 = vpack.c.bf16 %v5588_v41, %v5586_v39  ;;  %v9529_v58 = vpack.c.bf16 %v5587_v2, %v5585_v62  ;;  %v5527_v32 = vmul.f32 %v11746_v14, %v13346_v12  ;;  %v5545_v39 = vld [vmem:[#allocation6 + $0x380] sm:$0xff]  ;;  %v5533_v26 = vmul.f32 %v11746_v14, %v13382_v63  ;;  %v5546_v12 = vld [vmem:[#allocation6 + $0x388] sm:$0xff] }
 0xb43   : > { %v10847_v29 = vunpack.i.h.bf16 %v10845_v46  ;;  %v10846_v4 = vunpack.i.l.bf16 %v10845_v46 }
 0xb44   : > { %9528 = vmatprep.subr.bf16.mxu1 %v9527_v35  ;;  %v9537_v35 = vpack.c.bf16 %v5529_v6, %v5527_v32 }
 0xb45   : > { %9530 = vmatpush1.bf16.msra.mxu1 %v9529_v58  ;;  %v5590_v27 = vsel %vm549_vm11, %v10846_v4, %v10847_v29  ;;  %v5531_v58 = vmul.f32 %v11746_v14, %v13380_v38 }
 0xb46   : > { %v10850_v28 = vpop.permute.xlu0 %10849  ;;  %v10855_v48 = vpop.permute.xlu1 %10854 }
 0xb47   : > { %v10852_v50 = vunpack.i.h.bf16 %v10850_v28  ;;  %v10851_v25 = vunpack.i.l.bf16 %v10850_v28  ;;  %v10857_v20 = vunpack.i.h.bf16 %v10855_v48  ;;  %v10856_v3 = vunpack.i.l.bf16 %v10855_v48 }
 0xb48   : > { %v9541_v63 = vpack.c.bf16 %v5533_v26, %v5531_v58 }
 0xb49   : > { %v5591_v7 = vsel %vm549_vm11, %v10857_v20, %v10851_v25  ;;  %v5589_v31 = vsel %vm549_vm11, %v10856_v3, %v10846_v4  ;;  %v5592_v44 = vsel %vm549_vm11, %v10851_v25, %v10852_v50 }
 0xb4a   : > { %v10860_v49 = vpop.permute.xlu0 %10859  ;;  %v10865_v34 = vpop.permute.xlu1 %10864  ;;  %v9531_v11 = vpack.c.bf16 %v5592_v44, %v5590_v27  ;;  %v9533_v36 = vpack.c.bf16 %v5591_v7, %v5589_v31 }
 0xb4b   : > { %v10862_v18 = vunpack.i.h.bf16 %v10860_v49  ;;  %v10861_v40 = vunpack.i.l.bf16 %v10860_v49  ;;  %v10867_v62 = vunpack.i.h.bf16 %v10865_v34  ;;  %v10866_v2 = vunpack.i.l.bf16 %v10865_v34 }
 0xb4c   : > { %9532 = vmatprep.subr.bf16.mxu1 %v9531_v11 }
 0xb4d   : > { %9534 = vmatpush1.bf16.msra.mxu1 %v9533_v36  ;;  %v5857_v29 = vsel %vm833_vm0, %v10861_v40, %v10862_v18  ;;  %v5859_v4 = vsel %vm833_vm0, %v10866_v2, %v10867_v62  ;;  %v5536_v62 = vld [vmem:[#allocation6 + $0x360] sm:$0xff] }
 0xb4e   : > { %v10870_v41 = vpop.permute.xlu0 %10869  ;;  %v10875_v46 = vpop.permute.xlu1 %10874  ;;  %9536 = vmatprep.subr.bf16.mxu1 %v9535_v24  ;;  %v9543_v30 = vpack.c.bf16 %v5859_v4, %v5857_v29  ;;  %v5547_v24 = vld [vmem:[#allocation6 + $0x390] sm:$0xff] }
 0xb4f   : > { %v10871_v50 = vunpack.i.l.bf16 %v10870_v41  ;;  %v10872_v25 = vunpack.i.h.bf16 %v10870_v41  ;;  %v10877_v31 = vunpack.i.h.bf16 %v10875_v46  ;;  %v10876_v27 = vunpack.i.l.bf16 %v10875_v46 }
 0xb50   : > { %9116 = vmatmul.mubr.msk.f32.vlgmr.msra.gmra.mrb[20].mxu1 %vm566_vm8, %v5545_v39 }
 0xb51   : > { %9538 = vmatpush1.bf16.msra.mxu1 %v9537_v35  ;;  %5683 = vmatprep.mubr.f32.mxu1 %v14616_v1  ;;  %v5856_v7 = vsel %vm833_vm0, %v10871_v50, %v10861_v40  ;;  %v5858_v44 = vsel %vm833_vm0, %v10872_v25, %v10866_v2  ;;  %v5861_v46 = vsel %vm833_vm0, %v10876_v27, %v10877_v31 }
 0xb52   : > { %v10880_v28 = vpop.permute.xlu0 %10879  ;;  %v10885_v10 = vpop.permute.xlu1 %10884  ;;  %9540 = vmatprep.subr.bf16.mxu1 %v9539_v43  ;;  %v9545_v40 = vpack.c.bf16 %v5858_v44, %v5856_v7 }
 0xb53   : > { %v10882_v20 = vunpack.i.h.bf16 %v10880_v28  ;;  %v10881_v3 = vunpack.i.l.bf16 %v10880_v28  ;;  %v10887_v49 = vunpack.i.h.bf16 %v10885_v10  ;;  %v10886_v34 = vunpack.i.l.bf16 %v10885_v10 }
 0xb54   : > { %9117 = vmatmul.mubr.msk.f32.gmra.mrb[22].mxu1 %vm566_vm8, %v5546_v12  ;;  %v5537_v12 = vld [vmem:[#allocation6 + $0x368] sm:$0xff] }
 0xb55   : > { %9542 = vmatpush1.bf16.msra.mxu1 %v9541_v63  ;;  %5689 = vmatprep.mubr.f32.mxu1 %v14616_v1  ;;  %v5863_v11 = vsel %vm833_vm0, %v10881_v3, %v10882_v20  ;;  %v5862_v2 = vsel %vm833_vm0, %v10887_v49, %v10881_v3  ;;  %v5860_v35 = vsel %vm833_vm0, %v10886_v34, %v10876_v27  ;;  %v5539_v3 = vld [vmem:[#allocation6 + $0x378] sm:$0xff] }
 0xb56   : > { %v10890_v48 = vpop.permute.xlu0 %10889  ;;  %v10895_v38 = vpop.permute.xlu1 %10894  ;;  %9544 = vmatprep.subr.bf16.mxu1 %v9543_v30  ;;  %v9547_v26 = vpack.c.bf16 %v5863_v11, %v5861_v46  ;;  %v9549_v10 = vpack.c.bf16 %v5862_v2, %v5860_v35  ;;  %v5538_v30 = vld [vmem:[#allocation6 + $0x370] sm:$0xff]  ;;  %v5817_v2 = vld [vmem:[#allocation6 + $0x3a8] sm:$0xff] }
 0xb57   : > { %v10892_v36 = vunpack.i.h.bf16 %v10890_v48  ;;  %v10891_v6 = vunpack.i.l.bf16 %v10890_v48  ;;  %v10897_v32 = vunpack.i.h.bf16 %v10895_v38  ;;  %v10896_v18 = vunpack.i.l.bf16 %v10895_v38 }
 0xb58   : > { %9118 = vmatmul.mubr.msk.f32.gmra.mrb[24].mxu1 %vm566_vm8, %v5547_v24 }
 0xb59   : > { %5695 = vmatprep.mubr.f32.mxu1 %v14616_v1  ;;  %v6035_v58 = vsel %vm1023_vm1, %v10891_v6, %v10892_v36  ;;  %v6037_v29 = vsel %vm1023_vm1, %v10896_v18, %v10897_v32  ;;  %v5816_v32 = vld [vmem:[#allocation6 + $0x3a0] sm:$0xff] }
 0xb5a   : > { %v10900_v56 = vpop.permute.xlu0 %10899  ;;  %v13637_v43 = vpop.permute.xlu1 %10904  ;;  %v9551_v63 = vpack.c.bf16 %v6037_v29, %v6035_v58 }
 0xb5b   : > { %v10901_v24 = vunpack.i.l.bf16 %v10900_v56  ;;  %v10902_v48 = vunpack.i.h.bf16 %v10900_v56  ;;  %v10907_v7 = vunpack.i.h.bf16 %v13637_v43  ;;  %v10906_v31 = vunpack.i.l.bf16 %v13637_v43 }
 0xb5c   : > { %9119 = vmatmul.mubr.msk.f32.gmra.mrb[26].mxu1 %vm566_vm8, %v5548_v21 }
 0xb5d   : > { %5778 = vmatprep.mubr.f32.mxu1 %v14616_v1  ;;  %v6034_v21 = vsel %vm1023_vm1, %v10901_v24, %v10891_v6  ;;  %v6036_v27 = vsel %vm1023_vm1, %v10902_v48, %v10896_v18  ;;  %v5819_v48 = vld [vmem:[#allocation6 + $0x3b8] sm:$0xff] }
 0xb5e   : > { %v10910_v39 = vpop.permute.xlu0 %10909  ;;  %v10915_v41 = vpop.permute.xlu1 %10914  ;;  %v9553_v18 = vpack.c.bf16 %v6036_v27, %v6034_v21 }
 0xb5f   : > { %v10912_v38 = vunpack.i.h.bf16 %v10910_v39  ;;  %v10911_v50 = vunpack.i.l.bf16 %v10910_v39  ;;  %v10917_v44 = vunpack.i.h.bf16 %v10915_v41  ;;  %v10916_v56 = vunpack.i.l.bf16 %v10915_v41 }
 0xb60   : > { %9120 = vmatmul.mubr.msk.f32.vlgmr.msra.gmra.mrb[20].mxu1 %vm566_vm8, %v5536_v62  ;;  %v6039_v39 = vsel %vm1023_vm1, %v10906_v31, %v10907_v7 }
 0xb61   : > { %9546 = vmatpush1.bf16.msra.mxu1 %v9545_v40  ;;  %5784 = vmatprep.mubr.f32.mxu1 %v14616_v1  ;;  %v6041_v49 = vsel %vm1023_vm1, %v10911_v50, %v10912_v38  ;;  %v6040_v41 = vsel %vm1023_vm1, %v10917_v44, %v10911_v50  ;;  %v6038_v40 = vsel %vm1023_vm1, %v10916_v56, %v10906_v31 }
 0xb62   : > { %9548 = vmatprep.subr.bf16.mxu1 %v9547_v26  ;;  %v13651_v4 = vpop.permute.xlu0 %10919  ;;  %v13653_v28 = vpop.permute.xlu1 %10924  ;;  %v9555_v46 = vpack.c.bf16 %v6041_v49, %v6039_v39 }
 0xb63   : > { %v10922_v34 = vunpack.i.h.bf16 %v13651_v4  ;;  %v10921_v11 = vunpack.i.l.bf16 %v13651_v4  ;;  %v10927_v36 = vunpack.i.h.bf16 %v13653_v28  ;;  %v10926_v6 = vunpack.i.l.bf16 %v13653_v28  ;;  %v5818_v28 = vld [vmem:[#allocation6 + $0x3b0] sm:$0xff] }
 0xb64   : > { %9121 = vmatmul.mubr.msk.f32.gmra.mrb[22].mxu1 %vm566_vm8, %v5537_v12  ;;  %v9557_v12 = vpack.c.bf16 %v6040_v41, %v6038_v40  ;;  %v5995_v41 = vld [vmem:[#allocation6 + $0x3c8] sm:$0xff] }
 0xb65   : > { %9550 = vmatpush1.bf16.msra.mxu1 %v9549_v10  ;;  %5790 = vmatprep.mubr.f32.mxu1 %v14616_v1  ;;  %v6189_v35 = vsel %vm1178_vm12, %v10921_v11, %v10922_v34  ;;  %v6191_v26 = vsel %vm1178_vm12, %v10926_v6, %v10927_v36  ;;  %v5994_v36 = vld [vmem:[#allocation6 + $0x3c0] sm:$0xff] }
 0xb66   : > { %9552 = vmatprep.subr.bf16.mxu1 %v9551_v63  ;;  %v10930_v25 = vpop.permute.xlu0 %10929  ;;  %v13657_v20 = vpop.permute.xlu1 %10934  ;;  %v9559_v4 = vpack.c.bf16 %v6191_v26, %v6189_v35  ;;  %v5996_v26 = vld [vmem:[#allocation6 + $0x3d0] sm:$0xff] }
 0xb67   : > { %v10931_v10 = vunpack.i.l.bf16 %v10930_v25  ;;  %v10932_v63 = vunpack.i.h.bf16 %v10930_v25  ;;  %v10937_v21 = vunpack.i.h.bf16 %v13657_v20  ;;  %v10936_v7 = vunpack.i.l.bf16 %v13657_v20 }
 0xb68   : > { %9122 = vmatmul.mubr.msk.f32.gmra.mrb[24].mxu1 %vm566_vm8, %v5538_v30 }
 0xb69   : > { %5796 = vmatprep.mubr.f32.mxu1 %v14616_v1  ;;  %v6190_v31 = vsel %vm1178_vm12, %v10932_v63, %v10926_v6  ;;  %v6193_v6 = vsel %vm1178_vm12, %v10936_v7, %v10937_v21  ;;  %v5997_v63 = vld [vmem:[#allocation6 + $0x3d8] sm:$0xff] }
 0xb6a   : > { %v10940_v43 = vpop.permute.xlu0 %10939  ;;  %v10945_v62 = vpop.permute.xlu1 %10944 }
 0xb6b   : > { %v10942_v30 = vunpack.i.h.bf16 %v10940_v43  ;;  %v10941_v24 = vunpack.i.l.bf16 %v10940_v43  ;;  %v10947_v27 = vunpack.i.h.bf16 %v10945_v62  ;;  %v10946_v25 = vunpack.i.l.bf16 %v10945_v62 }
 0xb6c   : > { %9123 = vmatmul.mubr.msk.f32.gmra.mrb[26].mxu1 %vm566_vm8, %v5539_v3  ;;  %v6188_v3 = vsel %vm1178_vm12, %v10931_v10, %v10921_v11 }
 0xb6d   : > { %5948 = vmatprep.mubr.f32.mxu1 %v14616_v1  ;;  %v6195_v44 = vsel %vm1178_vm12, %v10941_v24, %v10942_v30  ;;  %v9561_v20 = vpack.c.bf16 %v6190_v31, %v6188_v3  ;;  %v6192_v43 = vsel %vm1178_vm12, %v10946_v25, %v10936_v7 }
 0xb6e   : > { %v13679_v58 = vpop.permute.xlu0 %10949  ;;  %v13681_v29 = vpop.permute.xlu1 %10954  ;;  %v9563_v39 = vpack.c.bf16 %v6195_v44, %v6193_v6 }
 0xb6f   : > { %v10952_v56 = vunpack.i.h.bf16 %v13679_v58  ;;  %v10951_v49 = vunpack.i.l.bf16 %v13679_v58  ;;  %v10957_v34 = vunpack.i.h.bf16 %v13681_v29  ;;  %v10956_v11 = vunpack.i.l.bf16 %v13681_v29 }
 0xb70   : > { %9124 = vmatmul.mubr.msk.f32.vlgmr.msra.gmra.mrb[20].mxu1 %vm566_vm8, %v5816_v32  ;;  %v6194_v32 = vsel %vm1178_vm12, %v10947_v27, %v10941_v24 }
 0xb71   : > { %9554 = vmatpush1.bf16.msra.mxu1 %v9553_v18  ;;  %5954 = vmatprep.mubr.f32.mxu1 %v14616_v1  ;;  %v6367_v40 = vsel %vm1366_vm13, %v10951_v49, %v10952_v56 }
 0xb72   : > { %9556 = vmatprep.subr.bf16.mxu1 %v9555_v46  ;;  %v10960_v38 = vpop.permute.xlu0 %10959  ;;  %v13687_v50 = vpop.permute.xlu1 %10964  ;;  %v6369_v46 = vsel %vm1366_vm13, %v10956_v11, %v10957_v34 }
 0xb73   : > { %v9567_v35 = vpack.c.bf16 %v6369_v46, %v6367_v40  ;;  %v10961_v29 = vunpack.i.l.bf16 %v10960_v38  ;;  %v10967_v24 = vunpack.i.h.bf16 %v13687_v50  ;;  %v6162_v46 = vld [vmem:[#allocation6 + $0x3f0] sm:$0xff] }
 0xb74   : > { %9125 = vmatmul.mubr.msk.f32.gmra.mrb[22].mxu1 %vm566_vm8, %v5817_v2  ;;  %v9565_v2 = vpack.c.bf16 %v6194_v32, %v6192_v43  ;;  %v6161_v32 = vld [vmem:[#allocation6 + $0x3e8] sm:$0xff] }
 0xb75   : > { %9558 = vmatpush1.bf16.msra.mxu1 %v9557_v12  ;;  %5960 = vmatprep.mubr.f32.mxu1 %v14616_v1  ;;  %v6366_v30 = vsel %vm1366_vm13, %v10961_v29, %v10951_v49  ;;  %v6160_v49 = vld [vmem:[#allocation6 + $0x3e0] sm:$0xff] }
 0xb76   : > { %9560 = vmatprep.subr.bf16.mxu1 %v9559_v4  ;;  %v10970_v62 = vpop.permute.xlu0 %10969  ;;  %v10975_v18 = vpop.permute.xlu1 %10974  ;;  %v10962_v4 = vunpack.i.h.bf16 %v10960_v38 }
 0xb77   : > { %v10971_v10 = vunpack.i.l.bf16 %v10970_v62  ;;  %v10977_v21 = vunpack.i.h.bf16 %v10975_v18  ;;  %v10976_v7 = vunpack.i.l.bf16 %v10975_v18 }
 0xb78   : > { %9126 = vmatmul.mubr.msk.f32.gmra.mrb[24].mxu1 %vm566_vm8, %v5818_v28  ;;  %v10972_v28 = vunpack.i.h.bf16 %v10970_v62  ;;  %v6368_v3 = vsel %vm1366_vm13, %v10962_v4, %v10956_v11  ;;  %v6163_v4 = vld [vmem:[#allocation6 + $0x3f8] sm:$0xff] }
 0xb79   : > { %5966 = vmatprep.mubr.f32.mxu1 %v14616_v1  ;;  %v6372_v11 = vsel %vm1366_vm13, %v10977_v21, %v10971_v10 }
 0xb7a   : > { %v10980_v12 = vpop.permute.xlu0 %10979  ;;  %v10985_v58 = vpop.permute.xlu1 %10984  ;;  %v6373_v38 = vsel %vm1366_vm13, %v10971_v10, %v10972_v28 }
 0xb7b   : > { %v10982_v25 = vunpack.i.h.bf16 %v10980_v12  ;;  %v10981_v44 = vunpack.i.l.bf16 %v10980_v12  ;;  %v10987_v56 = vunpack.i.h.bf16 %v10985_v58  ;;  %v10986_v34 = vunpack.i.l.bf16 %v10985_v58 }
 0xb7c   : > { %9127 = vmatmul.mubr.msk.f32.gmra.mrb[26].mxu1 %vm566_vm8, %v5819_v48  ;;  %v10966_v48 = vunpack.i.l.bf16 %v13687_v50 }
 0xb7d   : > { %6126 = vmatprep.mubr.f32.mxu1 %v14616_v1  ;;  %v6545_v43 = vsel %vm1553_vm15, %v10981_v44, %v10982_v25  ;;  %v6547_v62 = vsel %vm1553_vm15, %v10986_v34, %v10987_v56  ;;  %v6326_v25 = vld [vmem:[#allocation6 + $0x400] sm:$0xff] }
 0xb7e   : > { %v10990_v31 = vpop.permute.xlu0 %10989  ;;  %v10995_v27 = vpop.permute.xlu1 %10994  ;;  %v6371_v50 = vsel %vm1366_vm13, %v10966_v48, %v10967_v24  ;;  %v9575_v40 = vpack.c.bf16 %v6547_v62, %v6545_v43 }
 0xb7f   : > { %v9571_v6 = vpack.c.bf16 %v6373_v38, %v6371_v50  ;;  %v10997_v10 = vunpack.i.h.bf16 %v10995_v27 }
 0xb80   : > { %9128 = vmatmul.mubr.msk.f32.vlgmr.msra.gmra.mrb[20].mxu1 %vm566_vm8, %v5994_v36  ;;  %v9569_v36 = vpack.c.bf16 %v6368_v3, %v6366_v30 }
 0xb81   : > { %9562 = vmatpush1.bf16.msra.mxu1 %v9561_v20  ;;  %6132 = vmatprep.mubr.f32.mxu1 %v14616_v1  ;;  %v6370_v20 = vsel %vm1366_vm13, %v10976_v7, %v10966_v48 }
 0xb82   : > { %9564 = vmatprep.subr.bf16.mxu1 %v9563_v39  ;;  %v11000_v18 = vpop.permute.xlu0 %10999  ;;  %v11005_v39 = vpop.permute.xlu1 %11004 }
 0xb83   : > { %v11001_v12 = vunpack.i.l.bf16 %v11000_v18  ;;  %v11007_v24 = vunpack.i.h.bf16 %v11005_v39  ;;  %v11006_v48 = vunpack.i.l.bf16 %v11005_v39  ;;  %v6328_v39 = vld [vmem:[#allocation6 + $0x410] sm:$0xff] }
 0xb84   : > { %9129 = vmatmul.mubr.msk.f32.gmra.mrb[22].mxu1 %vm566_vm8, %v5995_v41  ;;  %v9573_v41 = vpack.c.bf16 %v6372_v11, %v6370_v20  ;;  %v6327_v11 = vld [vmem:[#allocation6 + $0x408] sm:$0xff] }
 0xb85   : > { %9566 = vmatpush1.bf16.msra.mxu1 %v9565_v2  ;;  %6138 = vmatprep.mubr.f32.mxu1 %v14616_v1  ;;  %v10991_v2 = vunpack.i.l.bf16 %v10990_v31 }
 0xb86   : > { %9568 = vmatprep.subr.bf16.mxu1 %v9567_v35  ;;  %v10992_v35 = vunpack.i.h.bf16 %v10990_v31  ;;  %v11010_v58 = vpop.permute.xlu0 %11009  ;;  %v11015_v29 = vpop.permute.xlu1 %11014 }
 0xb87   : > { %v6544_v28 = vsel %vm1553_vm15, %v10991_v2, %v10981_v44  ;;  %v11012_v21 = vunpack.i.h.bf16 %v11010_v58  ;;  %v11011_v7 = vunpack.i.l.bf16 %v11010_v58  ;;  %v11017_v31 = vunpack.i.h.bf16 %v11015_v29 }
 0xb88   : > { %9130 = vmatmul.mubr.msk.f32.gmra.mrb[24].mxu1 %vm566_vm8, %v5996_v26  ;;  %v11002_v26 = vunpack.i.h.bf16 %v11000_v18  ;;  %v6546_v30 = vsel %vm1553_vm15, %v10992_v35, %v10986_v34  ;;  %v11016_v38 = vunpack.i.l.bf16 %v11015_v29  ;;  %v6550_v34 = vsel %vm1553_vm15, %v11007_v24, %v11001_v12  ;;  %v6329_v35 = vld [vmem:[#allocation6 + $0x418] sm:$0xff] }
 0xb89   : > { %6144 = vmatprep.mubr.f32.mxu1 %v14616_v1  ;;  %v9577_v44 = vpack.c.bf16 %v6546_v30, %v6544_v28  ;;  %v6699_v20 = vsel %vm1708_vm14, %v11011_v7, %v11012_v21 }
 0xb8a   : > { %v6551_v3 = vsel %vm1553_vm15, %v11001_v12, %v11002_v26  ;;  %v11020_v56 = vpop.permute.xlu0 %11019 }
 0xb8c   : > { %9131 = vmatmul.mubr.msk.f32.gmra.mrb[26].mxu1 %vm566_vm8, %v5997_v63  ;;  %v10996_v63 = vunpack.i.l.bf16 %v10995_v27 }
 0xb8d   : > { %6280 = vmatprep.mubr.f32.mxu1 %v14616_v1 }
 0xb8e   : > { %v6549_v27 = vsel %vm1553_vm15, %v10996_v63, %v10997_v10  ;;  %v11030_v43 = vpop.permute.xlu0 %11029 }
 0xb8f   : > { %v9579_v50 = vpack.c.bf16 %v6551_v3, %v6549_v27  ;;  %v11031_v2 = vunpack.i.l.bf16 %v11030_v43  ;;  %v6505_v27 = vld [vmem:[#allocation6 + $0x428] sm:$0xff] }
 0xb90   : > { %9132 = vmatmul.mubr.msk.f32.vlgmr.msra.gmra.mrb[20].mxu1 %vm566_vm8, %v6160_v49  ;;  %v11025_v49 = vpop.permute.xlu1 %11024 }
 0xb91   : > { %9570 = vmatpush1.bf16.msra.mxu1 %v9569_v36  ;;  %6286 = vmatprep.mubr.f32.mxu1 %v14616_v1  ;;  %v6548_v36 = vsel %vm1553_vm15, %v11006_v48, %v10996_v63  ;;  %v11027_v29 = vunpack.i.h.bf16 %v11025_v49 }
 0xb92   : > { %9572 = vmatprep.subr.bf16.mxu1 %v9571_v6  ;;  %v6701_v6 = vsel %vm1708_vm14, %v11016_v38, %v11017_v31  ;;  %v11040_v26 = vpop.permute.xlu0 %11039  ;;  %v6504_v31 = vld [vmem:[#allocation6 + $0x420] sm:$0xff] }
 0xb93   : > { %v9583_v18 = vpack.c.bf16 %v6701_v6, %v6699_v20  ;;  %v11042_v24 = vunpack.i.h.bf16 %v11040_v26  ;;  %v11041_v48 = vunpack.i.l.bf16 %v11040_v26  ;;  %v6506_v6 = vld [vmem:[#allocation6 + $0x430] sm:$0xff] }
 0xb94   : > { %9133 = vmatmul.mubr.msk.f32.gmra.mrb[22].mxu1 %vm566_vm8, %v6161_v32  ;;  %v9581_v32 = vpack.c.bf16 %v6550_v34, %v6548_v36  ;;  %v11035_v62 = vpop.permute.xlu1 %11034 }
 0xb95   : > { %9574 = vmatpush1.bf16.msra.mxu1 %v9573_v41  ;;  %6292 = vmatprep.mubr.f32.mxu1 %v14616_v1  ;;  %v11021_v41 = vunpack.i.l.bf16 %v11020_v56  ;;  %v11037_v10 = vunpack.i.h.bf16 %v11035_v62  ;;  %v11036_v63 = vunpack.i.l.bf16 %v11035_v62  ;;  %v6877_v34 = vsel %vm1895_vm2, %v11041_v48, %v11042_v24 }
 0xb96   : > { %9576 = vmatprep.subr.bf16.mxu1 %v9575_v40  ;;  %v11022_v40 = vunpack.i.h.bf16 %v11020_v56 }
 0xb97   : > { %v6698_v58 = vsel %vm1708_vm14, %v11021_v41, %v11011_v7  ;;  %v6704_v56 = vsel %vm1708_vm14, %v11037_v10, %v11031_v2 }
 0xb98   : > { %9134 = vmatmul.mubr.msk.f32.gmra.mrb[24].mxu1 %vm566_vm8, %v6162_v46  ;;  %v11032_v46 = vunpack.i.h.bf16 %v11030_v43  ;;  %v11045_v12 = vpop.permute.xlu1 %11044  ;;  %v6700_v28 = vsel %vm1708_vm14, %v11022_v40, %v11016_v38  ;;  %v6507_v40 = vld [vmem:[#allocation6 + $0x438] sm:$0xff] }
 0xb99   : > { %6298 = vmatprep.mubr.f32.mxu1 %v14616_v1  ;;  %v11047_v3 = vunpack.i.h.bf16 %v11045_v12  ;;  %v11046_v21 = vunpack.i.l.bf16 %v11045_v12 }
 0xb9a   : > { %v6705_v30 = vsel %vm1708_vm14, %v11031_v2, %v11032_v46 }
 0xb9b   : > { %v6879_v36 = vsel %vm1895_vm2, %v11046_v21, %v11047_v3 }
 0xb9c   : > { %9135 = vmatmul.mubr.msk.f32.gmra.mrb[26].mxu1 %vm566_vm8, %v6163_v4  ;;  %v11026_v4 = vunpack.i.l.bf16 %v11025_v49  ;;  %v11050_v49 = vpop.permute.xlu0 %11049  ;;  %v9591_v20 = vpack.c.bf16 %v6879_v36, %v6877_v34 }
 0xb9d   : > { %6458 = vmatprep.mubr.f32.mxu1 %v14616_v1  ;;  %v11052_v43 = vunpack.i.h.bf16 %v11050_v49  ;;  %v11051_v62 = vunpack.i.l.bf16 %v11050_v49 }
 0xb9e   : > { %v6703_v7 = vsel %vm1708_vm14, %v11026_v4, %v11027_v29  ;;  %v6702_v38 = vsel %vm1708_vm14, %v11036_v63, %v11026_v4  ;;  %v6670_v29 = vld [vmem:[#allocation6 + $0x440] sm:$0xff] }
 0xb9f   : > { %v6878_v26 = vsel %vm1895_vm2, %v11052_v43, %v11046_v21  ;;  %v6672_v21 = vld [vmem:[#allocation6 + $0x450] sm:$0xff] }
 0xba0   : > { %9136 = vmatmul.mubr.msk.f32.vlgmr.msra.gmra.mrb[20].mxu1 %vm566_vm8, %v6326_v25  ;;  %v9585_v25 = vpack.c.bf16 %v6700_v28, %v6698_v58 }
 0xba1   : > { %9578 = vmatpush1.bf16.msra.mxu1 %v9577_v44  ;;  %6464 = vmatprep.mubr.f32.mxu1 %v14616_v1  ;;  %v9587_v44 = vpack.c.bf16 %v6705_v30, %v6703_v7  ;;  %v6837_v7 = vld [vmem:[#allocation6 + $0x468] sm:$0xff] }
 0xba2   : > { %9580 = vmatprep.subr.bf16.mxu1 %v9579_v50  ;;  %v9589_v50 = vpack.c.bf16 %v6704_v56, %v6702_v38  ;;  %v6838_v56 = vld [vmem:[#allocation6 + $0x470] sm:$0xff]  ;;  %v6839_v38 = vld [vmem:[#allocation6 + $0x478] sm:$0xff] }
 0xba4   : > { %9137 = vmatmul.mubr.msk.f32.gmra.mrb[22].mxu1 %vm566_vm8, %v6327_v11  ;;  %v11055_v11 = vpop.permute.xlu1 %11054 }
 0xba5   : > { %9582 = vmatpush1.bf16.msra.mxu1 %v9581_v32  ;;  %6470 = vmatprep.mubr.f32.mxu1 %v14616_v1  ;;  %v11060_v32 = vpop.permute.xlu0 %11059  ;;  %v11057_v46 = vunpack.i.h.bf16 %v11055_v11  ;;  %v11056_v2 = vunpack.i.l.bf16 %v11055_v11 }
 0xba6   : > { %9584 = vmatprep.subr.bf16.mxu1 %v9583_v18  ;;  %v11062_v18 = vunpack.i.h.bf16 %v11060_v32 }
 0xba7   : > { %v6881_v10 = vsel %vm1895_vm2, %v11056_v2, %v11057_v46 }
 0xba8   : > { %9138 = vmatmul.mubr.msk.f32.gmra.mrb[24].mxu1 %vm566_vm8, %v6328_v39  ;;  %v11061_v39 = vunpack.i.l.bf16 %v11060_v32  ;;  %v11065_v41 = vpop.permute.xlu1 %11064 }
 0xba9   : > { %6476 = vmatprep.mubr.f32.mxu1 %v14616_v1  ;;  %v11067_v12 = vunpack.i.h.bf16 %v11065_v41  ;;  %v11066_v58 = vunpack.i.l.bf16 %v11065_v41 }
 0xbaa   : > { %v6883_v4 = vsel %vm1895_vm2, %v11061_v39, %v11062_v18 }
 0xbab   : > { %v6882_v63 = vsel %vm1895_vm2, %v11067_v12, %v11061_v39  ;;  %v6880_v30 = vsel %vm1895_vm2, %v11066_v58, %v11056_v2  ;;  %v9595_v24 = vpack.c.bf16 %v6883_v4, %v6881_v10  ;;  %v7004_v49 = vpop.permute.xlu0 %7003 }
 0xbac   : > { %9139 = vmatmul.mubr.msk.f32.gmra.mrb[26].mxu1 %vm566_vm8, %v6329_v35  ;;  %v6876_v35 = vsel %vm1895_vm2, %v11051_v62, %v11041_v48  ;;  %v6671_v48 = vld [vmem:[#allocation6 + $0x448] sm:$0xff]  ;;  %v9597_v3 = vpack.c.bf16 %v6882_v63, %v6880_v30 }
 0xbad   : > { %6636 = vmatprep.mubr.f32.mxu1 %v14616_v1  ;;  %v9593_v28 = vpack.c.bf16 %v6878_v26, %v6876_v35 }
 0xbaf   : > { %v7014_v62 = vpop.permute.xlu0 %7013 }
 0xbb0   : > { %9140 = vmatmul.mubr.msk.f32.vlgmr.msra.gmra.mrb[20].mxu1 %vm566_vm8, %v6504_v31  ;;  %v6673_v31 = vld [vmem:[#allocation6 + $0x458] sm:$0xff] }
 0xbb1   : > { %9586 = vmatpush1.bf16.msra.mxu1 %v9585_v25  ;;  %6642 = vmatprep.mubr.f32.mxu1 %v14616_v1  ;;  %v6836_v25 = vld [vmem:[#allocation6 + $0x460] sm:$0xff] }
 0xbb2   : > { %9588 = vmatprep.subr.bf16.mxu1 %v9587_v44 }
 0xbb4   : > { %9141 = vmatmul.mubr.msk.f32.gmra.mrb[22].mxu1 %vm566_vm8, %v6505_v27 }
 0xbb5   : > { %9590 = vmatpush1.bf16.msra.mxu1 %v9589_v50  ;;  %6648 = vmatprep.mubr.f32.mxu1 %v14616_v1  ;;  %v7009_v50 = vpop.permute.xlu1 %7008 }
 0xbb6   : > { %9592 = vmatprep.subr.bf16.mxu1 %v9591_v20 }
 0xbb8   : > { %9142 = vmatmul.mubr.msk.f32.gmra.mrb[24].mxu1 %vm566_vm8, %v6506_v6 }
 0xbb9   : > { %6654 = vmatprep.mubr.f32.mxu1 %v14616_v1  ;;  %v7019_v2 = vpop.permute.xlu1 %7018 }
 0xbbc   : > { %9143 = vmatmul.mubr.msk.f32.gmra.mrb[26].mxu1 %vm566_vm8, %v6507_v40 }
 0xbbd   : > { %6790 = vmatprep.mubr.f32.mxu1 %v14616_v1 }
 0xbc0   : > { %9144 = vmatmul.mubr.msk.f32.vlgmr.msra.gmra.mrb[20].mxu1 %vm566_vm8, %v6670_v29 }
 0xbc1   : > { %9594 = vmatpush1.bf16.msra.mxu1 %v9593_v28  ;;  %6796 = vmatprep.mubr.f32.mxu1 %v14616_v1 }
 0xbc2   : > { %9596 = vmatprep.subr.bf16.mxu1 %v9595_v24 }
 0xbc4   : > { %9145 = vmatmul.mubr.msk.f32.gmra.mrb[22].mxu1 %vm566_vm8, %v6671_v48 }
 0xbc5   : > { %9598 = vmatpush1.bf16.msra.mxu1 %v9597_v3  ;;  %6802 = vmatprep.mubr.f32.mxu1 %v14616_v1 }
 0xbc8   : > { %9146 = vmatmul.mubr.msk.f32.gmra.mrb[24].mxu1 %vm566_vm8, %v6672_v21 }
 0xbc9   : > { %6808 = vmatprep.mubr.f32.mxu1 %v14616_v1 }
 0xbcc   : > { %9147 = vmatmul.mubr.msk.f32.gmra.mrb[26].mxu1 %vm566_vm8, %v6673_v31 }
 0xbcd   : > { %6968 = vmatprep.mubr.f32.mxu1 %v14616_v1 }
 0xbd0   : > { %9148 = vmatmul.mubr.msk.f32.vlgmr.msra.gmra.mrb[20].mxu1 %vm566_vm8, %v6836_v25 }
 0xbd1   : > { %6974 = vmatprep.mubr.f32.mxu1 %v14616_v1 }
 0xbd4   : > { %9149 = vmatmul.mubr.msk.f32.gmra.mrb[22].mxu1 %vm566_vm8, %v6837_v7  ;;  %v9152_v7 = vld [vmem:[%s14581_s3 + $0x4] sm:$0xf] }
 0xbd5   : > { %6980 = vmatprep.mubr.f32.mxu1 %v14616_v1 }
 0xbd8   : > { %9150 = vmatmul.mubr.msk.f32.gmra.mrb[24].mxu1 %vm566_vm8, %v6838_v56  ;;  %v9155_v56 = vld [vmem:[%s14583_s5 + $0x20] sm:$0xff] }
 0xbd9   : > { %6986 = vmatprep.mubr.f32.mxu1 %v14616_v1 }
 0xbdc   : > { %9151 = vmatmul.mubr.msk.f32.gmra.mrb[26].mxu1 %vm566_vm8, %v6839_v38 }
 0xbdd   : > { %9299 = vmatprep.mubr.msk.f32.mxu1 %vm3725_vm4, %v9155_v56 }
 0xca3   : > { %v6970_v44 = vpop.f32.mrb[20].mxu1 }
 0xca4   : > { %v13784_v27 = vadd.f32 %v7004_v49, %v6970_v44  ;;  %v6972_v34 = vpop.f32.mrb[21].mxu1 }
 0xca5   : > { %v13786_v36 = vadd.f32 %v7004_v49, %v6972_v34 }
 0xca7   : > { %v7029_v11 = vadd.f32 %v13786_v36, %v13784_v27  ;;  %v6976_v20 = vpop.f32.mrb[22].mxu1 }
 0xca8   : > { %v13790_v6 = vadd.f32 %v7009_v50, %v6976_v20  ;;  %v6978_v32 = vpop.f32.mrb[23].mxu1  ;;  %v9158_v20 = vld [vmem:[%s14583_s5 + $0x38] sm:$0xff] }
 0xca9   : > { %v13792_v43 = vadd.f32 %v7009_v50, %v6978_v32  ;;  %7030 = vadd.xlane.f32.xlu0 %v7029_v11  ;;  %v9156_v50 = vld [vmem:[%s14583_s5 + $0x28] sm:$0xff]  ;;  %v9157_v11 = vld [vmem:[%s14583_s5 + $0x30] sm:$0xff] }
 0xcaa   : > { %v9160_v32 = vld [vmem:[%s14584_s6 + $0x28] sm:$0xff] }
 0xcab   : > { %v7032_v18 = vadd.f32 %v13792_v43, %v13790_v6  ;;  %v6982_v39 = vpop.f32.mrb[24].mxu1 }
 0xcac   : > { %v13796_v41 = vadd.f32 %v7014_v62, %v6982_v39  ;;  %v6984_v40 = vpop.f32.mrb[25].mxu1 }
 0xcad   : > { %v13798_v46 = vadd.f32 %v7014_v62, %v6984_v40  ;;  %7033 = vadd.xlane.f32.xlu1 %v7032_v18  ;;  %v9159_v62 = vld [vmem:[%s14584_s6 + $0x20] sm:$0xff] }
 0xcaf   : > { %v7035_v35 = vadd.f32 %v13798_v46, %v13796_v41  ;;  %v6988_v26 = vpop.f32.mrb[26].mxu1 }
 0xcb0   : > { %v13802_v12 = vadd.f32 %v7019_v2, %v6988_v26  ;;  %v6990_v58 = vpop.f32.mrb[27].mxu1 }
 0xcb1   : > { %v13804_v29 = vadd.f32 %v7019_v2, %v6990_v58  ;;  %7036 = vadd.xlane.f32.xlu0 %v7035_v35  ;;  %v9162_v35 = vld [vmem:[%s14584_s6 + $0x38] sm:$0xff]  ;;  %v9161_v58 = vld [vmem:[%s14584_s6 + $0x30] sm:$0xff] }
 0xcb3   : > { %v7038_v4 = vadd.f32 %v13804_v29, %v13802_v12 }
 0xcb5   : > { %7039 = vadd.xlane.f32.xlu0 %v7038_v4 }
 0xd36   : > { %v7031_v28 = vpop.xlane.xlu0 %7030 }
 0xd37   : > { %v7041_v63 = vmul.f32 0.00390625, %v7031_v28 }
 0xd3a   : > { %v7034_v10 = vpop.xlane.xlu1 %7033 }
 0xd3b   : > { %v7042_v30 = vmul.f32 0.00390625, %v7034_v10 }
 0xd3d   : > { %v9600_v24 = vpack.c.bf16 %v7042_v30, %v7041_v63 }
 0xd3e   : > { %v7037_v48 = vpop.xlane.xlu0 %7036 }
 0xd3f   : > { %9601 = vmatpush3.bf16.msra.mxu0 %v9600_v24  ;;  %v7043_v21 = vmul.f32 0.00390625, %v7037_v48 }
 0xd40   : > { %9602 = vmatprep.subr.bf16.mxu0 %v11508_v45  ;;  %v9153_v45 = vld [vmem:[%s14582_s4 + $0x4] sm:$0xf] }
 0xd42   : > { %v7040_v3 = vpop.xlane.xlu0 %7039 }
 0xd43   : > { %v7044_v31 = vmul.f32 0.00390625, %v7040_v3 }
 0xd45   : > { %v9603_v25 = vpack.c.bf16 %v7044_v31, %v7043_v21 }
 0xd47   : > { %9604 = vmatpush3.bf16.msra.mxu0 %v9603_v25 }
 0xd4a   : > { %9295 = vmatmul.mubr.msk.f32.vlgmr.msra.gmra.mrb[18].mxu0 %vm566_vm8, %v9152_v7 }
 0xd4b   : > { %7506 = vmatprep.mubr.f32.mxu0 %v14616_v1 }
 0xe1d   : > { %v7118_v38 = vpop.f32.mrb[18].mxu0 }
 0xe1e   : > { %v7119_v49 = vadd.f32 %v9153_v45, %v7118_v38  ;;  %v9296_v44 = vpop.f32.mrb[19].mxu0 }
 0xe20   : > { %v7122_v34 = vmax.f32 %v7119_v49, 0.0 }
 0xe22   : > { %9297 = vmatprep.subr.msk.mxu1 %vm3738_vm7, %v7122_v34 }
 0xe23   : > { %9298 = vmatpush3.msk.msra.mxu1 %vm3738_vm7, %v7122_v34 }
 0xe24   : > { %9300 = vmatmul.mubr.msk.f32.vlgmr.msra.gmra.mrb[28].mxu1 %vm3725_vm4, %v9156_v50 }
 0xe25   : > { %9302 = vmatprep.mubr.msk.f32.mxu1 %vm3725_vm4, %v9157_v11 }
 0xe28   : > { %9303 = vmatmul.mubr.msk.f32.gmra.mrb[30].mxu1 %vm3725_vm4, %v9158_v20 }
 0xef7   : > { %v9301_v18 = vpop.f32.mrb[28].mxu1 }
 0xef8   : > { %v7220_v39 = vadd.f32 %v9301_v18, %v9160_v32  ;;  %v7214_v40 = vpop.f32.mrb[29].mxu1 }
 0xef9   : > { %v7215_v2 = vadd.f32 %v9159_v62, %v7214_v40 }
 0xefa   : > { %v9169_v26 = vmul.f32 -1.442695, %v7220_v39 }
 0xefb   : > { %v9168_v4 = vmul.f32 -1.442695, %v7215_v2  ;;  %v9304_v28 = vpop.f32.mrb[30].mxu1 }
 0xefc   : > { %11324 = vpow2.f32 %v9169_v26  ;;  %v7230_v10 = vadd.f32 %v9304_v28, %v9162_v35  ;;  %v7224_v63 = vpop.f32.mrb[31].mxu1 }
 0xefd   : > { %11326 = vpow2.f32 %v9168_v4  ;;  %v7225_v30 = vadd.f32 %v9161_v58, %v7224_v63 }
 0xefe   : > { %v9171_v24 = vmul.f32 -1.442695, %v7230_v10 }
 0xeff   : > { %v9170_v48 = vmul.f32 -1.442695, %v7225_v30 }
 0xf00   : > { %11328 = vpow2.f32 %v9171_v24 }
 0xf01   : > { %11330 = vpow2.f32 %v9170_v48 }
 0xf06   : > { %v11325_v3 = vpop.eup %11324 }
 0xf07   : > { %v11327_v21 = vpop.eup %11326  ;;  %v7246_v31 = vadd.f32 1.0, %v11325_v3 }
 0xf08   : > { %v7245_v25 = vadd.f32 1.0, %v11327_v21 }
 0xf09   : > { %11332 = vrcp.f32 %v7246_v31 }
 0xf0a   : > { %v11329_v7 = vpop.eup %11328  ;;  %11334 = vrcp.f32 %v7245_v25 }
 0xf0b   : > { %v11331_v56 = vpop.eup %11330  ;;  %v7248_v38 = vadd.f32 1.0, %v11329_v7 }
 0xf0c   : > { %v7247_v45 = vadd.f32 1.0, %v11331_v56 }
 0xf0e   : > { %11336 = vrcp.f32 %v7247_v45 }
 0xf0f   : > { %11338 = vrcp.f32 %v7248_v38 }
 0xf13   : > { %v11333_v49 = vpop.eup %11332 }
 0xf14   : > { %v11335_v44 = vpop.eup %11334  ;;  %7264 = vperm.xlu0 %10347, %v11333_v49  }
 0xf15   : > { %7259 = vperm.xlu1 %10346, %v11335_v44  }
 0xf18   : > { %v11337_v34 = vpop.eup %11336 }
 0xf19   : > { %7269 = vperm.xlu1 %10346, %v11337_v34   ;;  %v11339_v50 = vpop.eup %11338 }
 0xf1d   : > { %7274 = vperm.xlu1 %10346, %v11339_v50  }
 0xf93   : > { %v7265_v11 = vpop.permute.xlu0 %7264 }
 0xf94   : > { %v7279_v20 = vmul.f32 %v7265_v11, %v13790_v6  ;;  %v7280_v32 = vmul.f32 %v7265_v11, %v13792_v43  ;;  %v7260_v62 = vpop.permute.xlu1 %7259 }
 0xf95   : > { %v7277_v40 = vmul.f32 %v7260_v62, %v13784_v27  ;;  %v7278_v2 = vmul.f32 %v7260_v62, %v13786_v36 }
 0xf96   : > { %v7287_v18 = vadd.f32 %v7279_v20, %v12818_v22  ;;  %v7288_v39 = vadd.f32 %v7280_v32, %v12821_v19 }
 0xf97   : > { %v7285_v26 = vadd.f32 %v7277_v40, %v12830_v9  ;;  %v7286_v6 = vadd.f32 %v7278_v2, %v12833_v37 }
 0xf98   : > { %7309 = vrot.lane.b32.xlu0 %v7287_v18, %s14643_s26  ;;  %7311 = vrot.lane.b32.xlu1 %v7288_v39, %s14643_s26  ;;  %v7270_v35 = vpop.permute.xlu1 %7269 }
 0xf99   : > { %v7281_v43 = vmul.f32 %v7270_v35, %v13796_v41  ;;  %v7282_v58 = vmul.f32 %v7270_v35, %v13798_v46 }
 0xf9b   : > { %v7289_v19 = vadd.f32 %v7281_v43, %v12842_v42  ;;  %v7290_v27 = vadd.f32 %v7282_v58, %v12845_v8 }
 0xf9c   : > { %7307 = vrot.lane.b32.xlu1 %v7286_v6, %s14643_s26  ;;  %7305 = vrot.lane.b32.xlu0 %v7285_v26, %s14643_s26  ;;  %v7275_v22 = vpop.permute.xlu1 %7274 }
 0xf9d   : > { %v7283_v36 = vmul.f32 %v7275_v22, %v13802_v12  ;;  %v7284_v4 = vmul.f32 %v7275_v22, %v13804_v29 }
 0xf9f   : > { %v7291_v9 = vadd.f32 %v7283_v36, %v12854_v13  ;;  %v7292_v37 = vadd.f32 %v7284_v4, %v12857_v0 }
 0xfa0   : > { %7315 = vrot.lane.b32.xlu1 %v7290_v27, %s14643_s26  ;;  %7313 = vrot.lane.b32.xlu0 %v7289_v19, %s14643_s26 }
 0xfa4   : > { %7319 = vrot.lane.b32.xlu1 %v7292_v37, %s14643_s26  ;;  %7317 = vrot.lane.b32.xlu0 %v7291_v9, %s14643_s26 }
0x100a   : > { %v7310_v41 = vpop.permute.xlu0 %7309  ;;  %v7312_v42 = vpop.permute.xlu1 %7311 }
0x100b   : > { %7340 = vst.msk [vmem:[#allocation2 + $0x18] sm:$0xff] %vm471_vm5, %v7310_v41  ;;  %v13873_v8 = vsel %vm454_vm6, %v7310_v41, %v7312_v42 }
0x100c   : > { %7342 = vst.msk [vmem:[#allocation2 + $0x28] sm:$0xff] %vm454_vm6, %v7312_v42  ;;  %v7636_v32 = vmul.f32 %v13873_v8, %v11950_v52  ;;  %v13947_v62 = vmul.f32 %v13873_v8, %v12025_v51  ;;  %v13951_v18 = vmul.f32 %v11749_v15, %v13873_v8 }
0x100e   : > { %v7306_v46 = vpop.permute.xlu0 %7305  ;;  %v7308_v12 = vpop.permute.xlu1 %7307 }
0x100f   : > { %7337 = vst.msk [vmem:[#allocation2] sm:$0xff] %vm471_vm5, %v7306_v46  ;;  %v13878_v13 = vsel %vm454_vm6, %v7306_v46, %v7308_v12 }
0x1010   : > { %7339 = vst.msk [vmem:[#allocation2 + $0x10] sm:$0xff] %vm454_vm6, %v7308_v12  ;;  %v7633_v39 = vmul.f32 %v13878_v13, %v11950_v52  ;;  %v13969_v6 = vmul.f32 %v13878_v13, %v12025_v51  ;;  %v13973_v43 = vmul.f32 %v11749_v15, %v13878_v13 }
0x1012   : > { %v7314_v0 = vpop.permute.xlu0 %7313  ;;  %v7316_v29 = vpop.permute.xlu1 %7315  ;;  %v13896_v3 = vld [vmem:[#allocation2 + $0x18] sm:$0xff] }
0x1013   : > { %v13881_v28 = vld [vmem:[#allocation2 + $0x28] sm:$0xff]  ;;  %7343 = vst.msk [vmem:[#allocation2 + $0x30] sm:$0xff] %vm471_vm5, %v7314_v0  ;;  %v13885_v10 = vsel %vm454_vm6, %v7314_v0, %v7316_v29  ;;  %v7635_v27 = vmul.f32 %v11870_v61, %v13896_v3 }
0x1014   : > { %7345 = vst.msk [vmem:[#allocation2 + $0x40] sm:$0xff] %vm454_vm6, %v7316_v29  ;;  %v13890_v63 = vpack.i.bf16 %v13881_v28, %v13873_v8  ;;  %v7637_v11 = vmul.f32 %v11934_v60, %v13881_v28  ;;  %v7639_v19 = vmul.f32 %v13885_v10, %v11950_v52  ;;  %v7815_v4 = vmul.f32 %v11975_v16, %v13881_v28 }
0x1015   : > { %v13999_v12 = vmul.f32 %v13885_v10, %v12025_v51 }
0x1016   : > { %11069 = vrot.lane.b32.xlu1 %v13890_v63, %s14644_s14  ;;  %v7318_v30 = vpop.permute.xlu0 %7317  ;;  %v7320_v24 = vpop.permute.xlu1 %7319  ;;  %v13894_v48 = vld [vmem:[#allocation2] sm:$0xff]  ;;  %v11103_v58 = vpack.i.bf16 %v7637_v11, %v7636_v32 }
0x1017   : > { %7346 = vst.msk [vmem:[#allocation2 + $0x48] sm:$0xff] %vm471_vm5, %v7318_v30  ;;  %v13900_v21 = vsel %vm454_vm6, %v7318_v30, %v7320_v24  ;;  %v13905_v31 = vpack.i.bf16 %v13896_v3, %v13894_v48  ;;  %v13907_v25 = vld [vmem:[#allocation2 + $0x10] sm:$0xff]  ;;  %v7632_v2 = vmul.f32 %v11870_v61, %v13894_v48  ;;  %v14007_v29 = vmul.f32 %v11985_v23, %v13894_v48 }
0x1018   : > { %7348 = vst.msk [vmem:[#allocation2 + $0x58] sm:$0xff] %vm454_vm6, %v7320_v24  ;;  %v13915_v56 = vpack.i.bf16 %v13907_v25, %v13878_v13  ;;  %v7634_v20 = vmul.f32 %v11934_v60, %v13907_v25  ;;  %v7812_v9 = vmul.f32 %v11975_v16, %v13907_v25  ;;  %v14013_v24 = vmul.f32 %v11985_v23, %v13896_v3 }
0x1019   : > { %11074 = vrot.lane.b32.xlu0 %v13905_v31, %s14644_s14  ;;  %v11108_v41 = vpack.i.bf16 %v7635_v27, %v7632_v2 }
0x101a   : > { %v13925_v38 = vld [vmem:[#allocation2 + $0x30] sm:$0xff]  ;;  %v11098_v22 = vpack.i.bf16 %v7634_v20, %v7633_v39  ;;  %v11288_v2 = vpack.i.bf16 %v14013_v24, %v14007_v29 }
0x101b   : > { %v13911_v7 = vld [vmem:[#allocation2 + $0x40] sm:$0xff]  ;;  %v7638_v36 = vmul.f32 %v11870_v61, %v13925_v38  ;;  %v14017_v11 = vmul.f32 %v11985_v23, %v13925_v38 }
0x101c   : > { %v13919_v45 = vpack.i.bf16 %v13911_v7, %v13885_v10  ;;  %v7640_v40 = vmul.f32 %v11934_v60, %v13911_v7  ;;  %v14003_v0 = vmul.f32 %v12010_v33, %v13911_v7 }
0x101d   : > { %11079 = vrot.lane.b32.xlu0 %v13915_v56, %s14644_s14 }
0x101e   : > { %11089 = vrot.lane.b32.xlu1 %v13919_v45, %s14644_s14  ;;  %v13927_v49 = vld [vmem:[#allocation2 + $0x48] sm:$0xff]  ;;  %v11118_v37 = vpack.i.bf16 %v7640_v40, %v7639_v19  ;;  %v11298_v39 = vpack.i.bf16 %v14003_v0, %v13999_v12  ;;  %v14031_v40 = vmul.f32 %v13900_v21, %v12025_v51  ;;  %v14049_v51 = vmul.f32 %v11746_v14, %v13896_v3 }
0x101f   : > { %v13929_v44 = vld [vmem:[#allocation2 + $0x58] sm:$0xff]  ;;  %v13933_v34 = vpack.i.bf16 %v13927_v49, %v13925_v38  ;;  %v7641_v35 = vmul.f32 %v11870_v61, %v13927_v49  ;;  %v13991_v61 = vmul.f32 %v12010_v33, %v13881_v28  ;;  %v14021_v20 = vmul.f32 %v11985_v23, %v13927_v49 }
0x1020   : > { %v13937_v50 = vpack.i.bf16 %v13929_v44, %v13900_v21  ;;  %v7643_v26 = vmul.f32 %v11934_v60, %v13929_v44  ;;  %v7642_v60 = vmul.f32 %v13900_v21, %v11950_v52  ;;  %v13995_v52 = vmul.f32 %v12010_v33, %v13907_v25 }
0x1021   : > { %v11123_v42 = vpack.i.bf16 %v7641_v35, %v7638_v36  ;;  %v11283_v30 = vpack.i.bf16 %v13991_v61, %v13947_v62  ;;  %v11303_v23 = vpack.i.bf16 %v14021_v20, %v14017_v11  ;;  %v14039_v35 = vmul.f32 %v12010_v33, %v13929_v44 }
0x1022   : > { %11094 = vrot.lane.b32.xlu1 %v13933_v34, %s14644_s14  ;;  %11084 = vrot.lane.b32.xlu0 %v13937_v50, %s14644_s14  ;;  %v11113_v46 = vpack.i.bf16 %v7643_v26, %v7642_v60  ;;  %v11278_v32 = vpack.i.bf16 %v13995_v52, %v13969_v6  ;;  %v14057_v19 = vmul.f32 %v11749_v15, %v13900_v21 }
0x1023   : > { %v7814_v33 = vmul.f32 %v13873_v8, %v11997_v54  ;;  %v14065_v36 = vmul.f32 %v11746_v14, %v13925_v38  ;;  %v14069_v60 = vmul.f32 %v11746_v14, %v13927_v49 }
0x1025   : > { %v11133_v26 = vpack.i.bf16 %v7815_v4, %v7814_v33  ;;  %v7819_v4 = vmul.f32 %v11977_v17, %v13927_v49  ;;  %v7820_v33 = vmul.f32 %v13900_v21, %v11997_v54 }
0x1026   : > { %11104 = vrot.lane.b32.xlu1 %v11103_v58, %s14645_s23  ;;  %11099 = vrot.lane.b32.xlu0 %v11098_v22, %s14645_s23  ;;  %v14045_v58 = vmul.f32 %v11746_v14, %v13894_v48  ;;  %v14053_v22 = vmul.f32 %v11749_v15, %v13885_v10  ;;  %v7811_v15 = vmul.f32 %v13878_v13, %v11997_v54 }
0x1027   : > { %v7818_v14 = vmul.f32 %v11975_v16, %v13911_v7 }
0x1028   : > { %v11128_v27 = vpack.i.bf16 %v7812_v9, %v7811_v15  ;;  %v7821_v9 = vmul.f32 %v11975_v16, %v13929_v44  ;;  %v8144_v16 = vmul.f32 %v11866_v59, %v13907_v25 }
0x102a   : > { %11119 = vrot.lane.b32.xlu1 %v11118_v37, %s14645_s23  ;;  %11109 = vrot.lane.b32.xlu0 %v11108_v41, %s14645_s23  ;;  %v7813_v41 = vmul.f32 %v11977_v17, %v13896_v3  ;;  %v11143_v15 = vpack.i.bf16 %v7821_v9, %v7820_v33  ;;  %v8151_v33 = vmul.f32 %v11850_v53, %v13927_v49 }
0x102e   : > { %11124 = vrot.lane.b32.xlu1 %v11123_v42, %s14645_s23  ;;  %11114 = vrot.lane.b32.xlu0 %v11113_v46, %s14645_s23  ;;  %v7810_v42 = vmul.f32 %v11977_v17, %v13894_v48  ;;  %v7817_v46 = vmul.f32 %v13885_v10, %v11997_v54  ;;  %v8143_v54 = vmul.f32 %v13878_v13, %v11886_v5 }
0x1030   : > { %v11148_v37 = vpack.i.bf16 %v7818_v14, %v7817_v46  ;;  %v11138_v1 = vpack.i.bf16 %v7813_v41, %v7810_v42  ;;  %v11188_v41 = vpack.i.bf16 %v8144_v16, %v8143_v54  ;;  %v8150_v14 = vmul.f32 %v11866_v59, %v13911_v7 }
0x1031   : > { %v8142_v42 = vmul.f32 %v11850_v53, %v13894_v48  ;;  %v8149_v46 = vmul.f32 %v13885_v10, %v11886_v5  ;;  %v8325_v54 = vmul.f32 %v11918_v47, %v13881_v28 }
0x1032   : > { %11134 = vrot.lane.b32.xlu1 %v11133_v26, %s14646_s24  ;;  %11129 = vrot.lane.b32.xlu0 %v11128_v27, %s14646_s24  ;;  %v7816_v26 = vmul.f32 %v11977_v17, %v13925_v38  ;;  %v8146_v17 = vmul.f32 %v13873_v8, %v11886_v5 }
0x1033   : > { %v11208_v9 = vpack.i.bf16 %v8150_v14, %v8149_v46  ;;  %v8328_v14 = vmul.f32 %v11918_v47, %v13911_v7  ;;  %v8329_v46 = vmul.f32 %v11858_v57, %v13927_v49  ;;  %v8331_v7 = vmul.f32 %v11918_v47, %v13929_v44 }
0x1034   : > { %v11153_v27 = vpack.i.bf16 %v7819_v4, %v7816_v26  ;;  %v8145_v4 = vmul.f32 %v11850_v53, %v13896_v3 }
0x1036   : > { %11149 = vrot.lane.b32.xlu1 %v11148_v37, %s14646_s24  ;;  %11139 = vrot.lane.b32.xlu0 %v11138_v1, %s14646_s24  ;;  %v8147_v1 = vmul.f32 %v11866_v59, %v13881_v28  ;;  %v11198_v26 = vpack.i.bf16 %v8145_v4, %v8142_v42  ;;  %v8320_v28 = vmul.f32 %v11858_v57, %v13894_v48 }
0x1037   : > { %v8326_v48 = vmul.f32 %v11858_v57, %v13925_v38 }
0x1038   : > { %v11193_v37 = vpack.i.bf16 %v8147_v1, %v8146_v17  ;;  %v8152_v1 = vmul.f32 %v13900_v21, %v11886_v5 }
0x1039   : > { %v11243_v4 = vpack.i.bf16 %v8329_v46, %v8326_v48 }
0x103a   : > { %11154 = vrot.lane.b32.xlu1 %v11153_v27, %s14646_s24  ;;  %11144 = vrot.lane.b32.xlu0 %v11143_v15, %s14646_s24  ;;  %v8153_v27 = vmul.f32 %v11866_v59, %v13929_v44  ;;  %v8148_v15 = vmul.f32 %v11850_v53, %v13925_v38  ;;  %v8324_v59 = vmul.f32 %v13873_v8, %v11925_v55 }
0x103b   : > { %v8321_v53 = vmul.f32 %v13878_v13, %v11925_v55  ;;  %v8323_v8 = vmul.f32 %v11858_v57, %v13896_v3  ;;  %v14647_v57 = vpack.i.bf16 %v14039_v35, %v14031_v40 }
0x103c   : > { %v11213_v16 = vpack.i.bf16 %v8151_v33, %v8148_v15  ;;  %v11203_v17 = vpack.i.bf16 %v8153_v27, %v8152_v1 }
0x103d   : > { %v11228_v13 = vpack.i.bf16 %v8323_v8, %v8320_v28  ;;  %v14649_v28 = vpack.c.bf16 %v14049_v51, %v14045_v58  ;;  %v9173_v8 = vld [vmem:[%s14585_s7 + $0x28] sm:$0xff]  ;;  %v14652_v58 = vpack.c.bf16 %v14069_v60, %v14065_v36  ;;  %v9174_v51 = vld [vmem:[%s14585_s7 + $0x30] sm:$0xff]  ;;  %v9175_v36 = vld [vmem:[%s14585_s7 + $0x38] sm:$0xff] }
0x103e   : > { %11164 = vrot.lane.b32.xlu1 %v13890_v63, %s14638_s20  ;;  %11159 = vrot.lane.b32.xlu0 %v13915_v56, %s14638_s20 }
0x1042   : > { %11174 = vrot.lane.b32.xlu1 %v13919_v45, %s14638_s20  ;;  %11169 = vrot.lane.b32.xlu0 %v13905_v31, %s14638_s20 }
0x1046   : > { %11184 = vrot.lane.b32.xlu1 %v13933_v34, %s14638_s20  ;;  %11179 = vrot.lane.b32.xlu0 %v13937_v50, %s14638_s20 }
0x104a   : > { %11194 = vrot.lane.b32.xlu1 %v11193_v37, %s14639_s22  ;;  %11189 = vrot.lane.b32.xlu0 %v11188_v41, %s14639_s22  ;;  %v8322_v37 = vmul.f32 %v11918_v47, %v13907_v25  ;;  %v11223_v41 = vpack.i.bf16 %v8325_v54, %v8324_v59  ;;  %v8327_v25 = vmul.f32 %v13885_v10, %v11925_v55  ;;  %v7294_v47 = vld [vmem:[%s14586_s8 + $0x8] sm:$0xff] }
0x104b   : > { %v8330_v10 = vmul.f32 %v13900_v21, %v11925_v55  ;;  %v7293_v55 = vld [vmem:[%s14586_s8] sm:$0xff]  ;;  %v7295_v21 = vld [vmem:[%s14586_s8 + $0x10] sm:$0xff] }
0x104c   : > { %v11218_v5 = vpack.i.bf16 %v8322_v37, %v8321_v53  ;;  %v11238_v42 = vpack.i.bf16 %v8328_v14, %v8327_v25  ;;  %v9172_v53 = vld [vmem:[%s14585_s7 + $0x20] sm:$0xff]  ;;  %v14648_v14 = vpack.c.bf16 %v13951_v18, %v13973_v43  ;;  %v14650_v25 = vmov 0.0  }
0x104d   : > { %v11233_v3 = vpack.i.bf16 %v8331_v7, %v8330_v10  ;;  %v14651_v18 = vpack.c.bf16 %v14057_v19, %v14053_v22 }
0x104e   : > { %11209 = vrot.lane.b32.xlu1 %v11208_v9, %s14639_s22  ;;  %11199 = vrot.lane.b32.xlu0 %v11198_v26, %s14639_s22 }
0x1052   : > { %11214 = vrot.lane.b32.xlu1 %v11213_v16, %s14639_s22  ;;  %11204 = vrot.lane.b32.xlu0 %v11203_v17, %s14639_s22  ;;  %s14531_s22 = scalar_lea.hbm %s14587_s9, %s9246_s11 }
0x1056   : > { %11224 = vrot.lane.b32.xlu1 %v11223_v41, %s14640_s16  ;;  %11219 = vrot.lane.b32.xlu0 %v11218_v5, %s14640_s16 }
0x105a   : > { %11239 = vrot.lane.b32.xlu1 %v11238_v42, %s14640_s16  ;;  %11229 = vrot.lane.b32.xlu0 %v11228_v13, %s14640_s16 }
0x105e   : > { %11244 = vrot.lane.b32.xlu1 %v11243_v4, %s14640_s16  ;;  %11234 = vrot.lane.b32.xlu0 %v11233_v3, %s14640_s16  ;;  %s8875_s16 = scalar_lea.sflag [#allocation5], %s11701_s18 }
0x1062   : > { %11254 = vrot.lane.b32.xlu1 %v13890_v63, %s14641_s25  ;;  %11249 = vrot.lane.b32.xlu0 %v13915_v56, %s14641_s25  ;;  %v7296_v63 = vld [vmem:[%s14586_s8 + $0x18] sm:$0xff] }
0x1066   : > { %11264 = vrot.lane.b32.xlu1 %v13919_v45, %s14641_s25  ;;  %11259 = vrot.lane.b32.xlu0 %v13905_v31, %s14641_s25 }
0x106a   : > { %11274 = vrot.lane.b32.xlu1 %v13933_v34, %s14641_s25  ;;  %11269 = vrot.lane.b32.xlu0 %v13937_v50, %s14641_s25  ;;  %s11510_s25 = smov [#allocation8]  }
0x106b   : > { %s11418_s26 = sshll.u32 %s11510_s25, 4  ;;  %s11419_s26 = int_to_ptr.vmem [resolvable:$false] %s11418_s26 }
0x106c   : > { %s11420_s14 = scalar_lea.vmem %s11419_s26, 2048  ;;  %p11421_p10 = scmp.lt.s32.totalorder %s14524_s10, %s11419_s26 }
0x106d   : > { %p11422_p13 = scmp.lt.s32.totalorder %s11420_s14, %s11414_s13 }
0x106e   : > { %11284 = vrot.lane.b32.xlu1 %v11283_v30, %s14642_s27  ;;  %11279 = vrot.lane.b32.xlu0 %v11278_v32, %s14642_s27 }
0x106f   : > { %p11423_p3 = por %p11422_p13, %p11421_p10 }
0x1071   : > { %p11424_p7 = pnand %p11423_p3, %p11417_p8 }
0x1072   : > { %11299 = vrot.lane.b32.xlu1 %v11298_v39, %s14642_s27  ;;  %11289 = vrot.lane.b32.xlu0 %v11288_v2, %s14642_s27 }
0x1076   : > { %11304 = vrot.lane.b32.xlu1 %v11303_v23, %s14642_s27  ;;  %11294 = vrot.lane.b32.xlu0 %v14647_v57, %s14642_s27 }
0x107a   : > { %8837 = vperm.xlu1 %10346, %v7294_v47   ;;  %8832 = vperm.xlu0 %10347, %v7293_v55  }
0x107e   : > { %8847 = vperm.xlu1 %10346, %v7296_v63   ;;  %8842 = vperm.xlu0 %10347, %v7295_v21  }
0x1088   : > { %v11070_v31 = vpop.permute.xlu1 %11069 }
0x1089   : > { %v11072_v45 = vunpack.i.h.bf16 %v11070_v31  ;;  %v11071_v38 = vunpack.i.l.bf16 %v11070_v31 }
0x108b   : > { %v11075_v56 = vpop.permute.xlu0 %11074  ;;  %v7417_v52 = vsel %vm549_vm11, %v11071_v38, %v11072_v45 }
0x108c   : > { %v11077_v49 = vunpack.i.h.bf16 %v11075_v56  ;;  %v11076_v50 = vunpack.i.l.bf16 %v11075_v56 }
0x108e   : > { %v7416_v61 = vsel %vm549_vm11, %v11077_v49, %v11071_v38 }
0x108f   : > { %v11080_v44 = vpop.permute.xlu0 %11079 }
0x1090   : > { %v11090_v34 = vpop.permute.xlu1 %11089  ;;  %v11082_v62 = vunpack.i.h.bf16 %v11080_v44  ;;  %v11081_v6 = vunpack.i.l.bf16 %v11080_v44 }
0x1091   : > { %v11092_v0 = vunpack.i.h.bf16 %v11090_v34  ;;  %v11091_v29 = vunpack.i.l.bf16 %v11090_v34 }
0x1092   : > { %v7414_v12 = vsel %vm549_vm11, %v11076_v50, %v11081_v6  ;;  %v7415_v30 = vsel %vm549_vm11, %v11081_v6, %v11082_v62  ;;  %v7365_v50 = vld [vmem:[%s14585_s7] sm:$0xff] }
0x1093   : > { %v9607_v24 = vpack.c.bf16 %v7416_v61, %v7414_v12  ;;  %v9605_v32 = vpack.c.bf16 %v7417_v52, %v7415_v30  ;;  %v7419_v26 = vsel %vm549_vm11, %v11091_v29, %v11092_v0  ;;  %v7366_v30 = vld [vmem:[%s14585_s7 + $0x8] sm:$0xff] }
0x1094   : > { %v11085_v11 = vpop.permute.xlu0 %11084  ;;  %v11095_v20 = vpop.permute.xlu1 %11094 }
0x1095   : > { %v11087_v39 = vunpack.i.h.bf16 %v11085_v11  ;;  %v11086_v40 = vunpack.i.l.bf16 %v11085_v11  ;;  %v11097_v2 = vunpack.i.h.bf16 %v11095_v20  ;;  %v11096_v23 = vunpack.i.l.bf16 %v11095_v20  ;;  %9606 = vmatprep.subr.bf16.mxu0 %v9605_v32 }
0x1096   : > { %9608 = vmatpush1.bf16.msra.mxu0 %v9607_v24 }
0x1097   : > { %v7420_v35 = vsel %vm549_vm11, %v11097_v2, %v11086_v40  ;;  %v7418_v9 = vsel %vm549_vm11, %v11096_v23, %v11091_v29  ;;  %v7421_v33 = vsel %vm549_vm11, %v11086_v40, %v11087_v39  ;;  %v7367_v2 = vld [vmem:[%s14585_s7 + $0x10] sm:$0xff] }
0x1098   : > { %v9611_v27 = vpack.c.bf16 %v7420_v35, %v7418_v9  ;;  %v11100_v15 = vpop.permute.xlu0 %11099  ;;  %v11105_v1 = vpop.permute.xlu1 %11104  ;;  %v9609_v16 = vpack.c.bf16 %v7421_v33, %v7419_v26 }
0x1099   : > { %v11102_v17 = vunpack.i.h.bf16 %v11100_v15  ;;  %v11101_v54 = vunpack.i.l.bf16 %v11100_v15  ;;  %v11107_v37 = vunpack.i.h.bf16 %v11105_v1  ;;  %v11106_v59 = vunpack.i.l.bf16 %v11105_v1  ;;  %v7368_v15 = vld [vmem:[%s14585_s7 + $0x18] sm:$0xff] }
0x109a   : > { %9610 = vmatprep.subr.bf16.mxu0 %v9609_v16 }
0x109b   : > { %9612 = vmatpush1.bf16.msra.mxu0 %v9611_v27  ;;  %v7686_v42 = vsel %vm833_vm0, %v11101_v54, %v11102_v17  ;;  %v7688_v13 = vsel %vm833_vm0, %v11106_v59, %v11107_v37 }
0x109c   : > { %v11110_v41 = vpop.permute.xlu0 %11109  ;;  %v11120_v5 = vpop.permute.xlu1 %11119  ;;  %9614 = vmatprep.subr.bf16.mxu0 %v14648_v14  ;;  %v9621_v43 = vpack.c.bf16 %v7688_v13, %v7686_v42 }
0x109d   : > { %v11111_v4 = vunpack.i.l.bf16 %v11110_v41  ;;  %v11112_v3 = vunpack.i.h.bf16 %v11110_v41  ;;  %v11122_v55 = vunpack.i.h.bf16 %v11120_v5  ;;  %v11121_v63 = vunpack.i.l.bf16 %v11120_v5 }
0x109e   : > { %9176 = vmatmul.mubr.msk.f32.vlgmr.msra.gmra.mrb[20].mxu0 %vm566_vm8, %v9172_v53 }
0x109f   : > { %9616 = vmatpush1.bf16.msra.mxu0 %v14649_v28  ;;  %7512 = vmatprep.mubr.f32.mxu0 %v14650_v25  ;;  %v7685_v47 = vsel %vm833_vm0, %v11111_v4, %v11101_v54  ;;  %v7687_v21 = vsel %vm833_vm0, %v11112_v3, %v11106_v59  ;;  %v7690_v52 = vsel %vm833_vm0, %v11121_v63, %v11122_v55 }
0x10a0   : > { %v11115_v46 = vpop.permute.xlu0 %11114  ;;  %v11125_v7 = vpop.permute.xlu1 %11124  ;;  %9618 = vmatprep.subr.bf16.mxu0 %v14651_v18  ;;  %v9623_v61 = vpack.c.bf16 %v7687_v21, %v7685_v47 }
0x10a1   : > { %v11117_v22 = vunpack.i.h.bf16 %v11115_v46  ;;  %v11116_v19 = vunpack.i.l.bf16 %v11115_v46  ;;  %v11127_v31 = vunpack.i.h.bf16 %v11125_v7  ;;  %v11126_v56 = vunpack.i.l.bf16 %v11125_v7 }
0x10a2   : > { %9177 = vmatmul.mubr.msk.f32.gmra.mrb[22].mxu0 %vm566_vm8, %v9173_v8  ;;  %v9184_v8 = vld [vmem:[%s14585_s7 + $0x40] sm:$0xff] }
0x10a3   : > { %9620 = vmatpush1.bf16.msra.mxu0 %v14652_v58  ;;  %7518 = vmatprep.mubr.f32.mxu0 %v14650_v25  ;;  %v7692_v45 = vsel %vm833_vm0, %v11116_v19, %v11117_v22  ;;  %v7691_v12 = vsel %vm833_vm0, %v11127_v31, %v11116_v19  ;;  %v7689_v0 = vsel %vm833_vm0, %v11126_v56, %v11121_v63  ;;  %v9187_v63 = vld [vmem:[%s14585_s7 + $0x58] sm:$0xff] }
0x10a4   : > { %v11130_v48 = vpop.permute.xlu0 %11129  ;;  %v11135_v10 = vpop.permute.xlu1 %11134  ;;  %9622 = vmatprep.subr.bf16.mxu0 %v9621_v43  ;;  %v9625_v29 = vpack.c.bf16 %v7692_v45, %v7690_v52  ;;  %v9627_v39 = vpack.c.bf16 %v7691_v12, %v7689_v0  ;;  %v9192_v12 = vld [vmem:[%s14585_s7 + $0x60] sm:$0xff] }
0x10a5   : > { %v11132_v38 = vunpack.i.h.bf16 %v11130_v48  ;;  %v11131_v49 = vunpack.i.l.bf16 %v11130_v48  ;;  %v11137_v44 = vunpack.i.h.bf16 %v11135_v10  ;;  %v11136_v34 = vunpack.i.l.bf16 %v11135_v10 }
0x10a6   : > { %9178 = vmatmul.mubr.msk.f32.gmra.mrb[24].mxu0 %vm566_vm8, %v9174_v51  ;;  %v9185_v51 = vld [vmem:[%s14585_s7 + $0x48] sm:$0xff] }
0x10a7   : > { %7524 = vmatprep.mubr.f32.mxu0 %v14650_v25  ;;  %v7864_v24 = vsel %vm1023_vm1, %v11131_v49, %v11132_v38  ;;  %v7866_v11 = vsel %vm1023_vm1, %v11136_v34, %v11137_v44 }
0x10a8   : > { %v11140_v60 = vpop.permute.xlu0 %11139  ;;  %v14263_v57 = vpop.permute.xlu1 %11149  ;;  %v9629_v40 = vpack.c.bf16 %v7866_v11, %v7864_v24 }
0x10a9   : > { %v11141_v23 = vunpack.i.l.bf16 %v11140_v60  ;;  %v11142_v35 = vunpack.i.h.bf16 %v11140_v60  ;;  %v11152_v16 = vunpack.i.h.bf16 %v14263_v57  ;;  %v11151_v17 = vunpack.i.l.bf16 %v14263_v57 }
0x10aa   : > { %9179 = vmatmul.mubr.msk.f32.gmra.mrb[26].mxu0 %vm566_vm8, %v9175_v36  ;;  %v9186_v36 = vld [vmem:[%s14585_s7 + $0x50] sm:$0xff] }
0x10ab   : > { %7607 = vmatprep.mubr.f32.mxu0 %v14650_v25  ;;  %v7863_v1 = vsel %vm1023_vm1, %v11141_v23, %v11131_v49  ;;  %v7865_v54 = vsel %vm1023_vm1, %v11142_v35, %v11136_v34  ;;  %v7868_v7 = vsel %vm1023_vm1, %v11151_v17, %v11152_v16 }
0x10ac   : > { %v11145_v62 = vpop.permute.xlu0 %11144  ;;  %v11155_v6 = vpop.permute.xlu1 %11154  ;;  %v9631_v46 = vpack.c.bf16 %v7865_v54, %v7863_v1 }
0x10ad   : > { %v11147_v9 = vunpack.i.h.bf16 %v11145_v62  ;;  %v11146_v26 = vunpack.i.l.bf16 %v11145_v62  ;;  %v11157_v37 = vunpack.i.h.bf16 %v11155_v6  ;;  %v11156_v59 = vunpack.i.l.bf16 %v11155_v6 }
0x10ae   : > { %9180 = vmatmul.mubr.msk.f32.vlgmr.msra.gmra.mrb[20].mxu0 %vm566_vm8, %v7365_v50 }
0x10af   : > { %9624 = vmatpush1.bf16.msra.mxu0 %v9623_v61  ;;  %7613 = vmatprep.mubr.f32.mxu0 %v14650_v25  ;;  %v7870_v53 = vsel %vm1023_vm1, %v11146_v26, %v11147_v9  ;;  %v7869_v18 = vsel %vm1023_vm1, %v11157_v37, %v11146_v26  ;;  %v7867_v43 = vsel %vm1023_vm1, %v11156_v59, %v11151_v17  ;;  %v9194_v9 = vld [vmem:[%s14585_s7 + $0x70] sm:$0xff]  ;;  %v9195_v17 = vld [vmem:[%s14585_s7 + $0x78] sm:$0xff] }
0x10b0   : > { %9626 = vmatprep.subr.bf16.mxu0 %v9625_v29  ;;  %v14283_v20 = vpop.permute.xlu0 %11159  ;;  %v14285_v32 = vpop.permute.xlu1 %11164  ;;  %v9633_v58 = vpack.c.bf16 %v7870_v53, %v7868_v7  ;;  %v9635_v4 = vpack.c.bf16 %v7869_v18, %v7867_v43  ;;  %v9200_v18 = vld [vmem:[%s14585_s7 + $0x80] sm:$0xff] }
0x10b1   : > { %v11162_v41 = vunpack.i.h.bf16 %v14283_v20  ;;  %v11161_v5 = vunpack.i.l.bf16 %v14283_v20  ;;  %v11167_v14 = vunpack.i.h.bf16 %v14285_v32  ;;  %v11166_v28 = vunpack.i.l.bf16 %v14285_v32 }
0x10b2   : > { %9181 = vmatmul.mubr.msk.f32.gmra.mrb[22].mxu0 %vm566_vm8, %v7366_v30 }
0x10b3   : > { %9628 = vmatpush1.bf16.msra.mxu0 %v9627_v39  ;;  %7619 = vmatprep.mubr.f32.mxu0 %v14650_v25  ;;  %v8018_v48 = vsel %vm1178_vm12, %v11161_v5, %v11162_v41  ;;  %v8020_v10 = vsel %vm1178_vm12, %v11166_v28, %v11167_v14  ;;  %v9193_v39 = vld [vmem:[%s14585_s7 + $0x68] sm:$0xff] }
0x10b4   : > { %9630 = vmatprep.subr.bf16.mxu0 %v9629_v40  ;;  %v11170_v33 = vpop.permute.xlu0 %11169  ;;  %v14292_v27 = vpop.permute.xlu1 %11174  ;;  %v9637_v19 = vpack.c.bf16 %v8020_v10, %v8018_v48 }
0x10b5   : > { %v11171_v60 = vunpack.i.l.bf16 %v11170_v33  ;;  %v11172_v57 = vunpack.i.h.bf16 %v11170_v33  ;;  %v11177_v45 = vunpack.i.h.bf16 %v14292_v27  ;;  %v11176_v38 = vunpack.i.l.bf16 %v14292_v27 }
0x10b6   : > { %9182 = vmatmul.mubr.msk.f32.gmra.mrb[24].mxu0 %vm566_vm8, %v7367_v2 }
0x10b7   : > { %7625 = vmatprep.mubr.f32.mxu0 %v14650_v25  ;;  %v8017_v56 = vsel %vm1178_vm12, %v11171_v60, %v11161_v5  ;;  %v8019_v49 = vsel %vm1178_vm12, %v11172_v57, %v11166_v28  ;;  %v8022_v29 = vsel %vm1178_vm12, %v11176_v38, %v11177_v45 }
0x10b8   : > { %v11180_v42 = vpop.permute.xlu0 %11179  ;;  %v11185_v13 = vpop.permute.xlu1 %11184  ;;  %v9639_v0 = vpack.c.bf16 %v8019_v49, %v8017_v56 }
0x10b9   : > { %v11182_v47 = vunpack.i.h.bf16 %v11180_v42  ;;  %v11181_v55 = vunpack.i.l.bf16 %v11180_v42  ;;  %v11187_v44 = vunpack.i.h.bf16 %v11185_v13  ;;  %v11186_v34 = vunpack.i.l.bf16 %v11185_v13 }
0x10ba   : > { %9183 = vmatmul.mubr.msk.f32.gmra.mrb[26].mxu0 %vm566_vm8, %v7368_v15 }
0x10bb   : > { %7777 = vmatprep.mubr.f32.mxu0 %v14650_v25  ;;  %v8024_v50 = vsel %vm1178_vm12, %v11181_v55, %v11182_v47  ;;  %v8023_v30 = vsel %vm1178_vm12, %v11187_v44, %v11181_v55  ;;  %v8021_v24 = vsel %vm1178_vm12, %v11186_v34, %v11176_v38  ;;  %v9202_v47 = vld [vmem:[%s14585_s7 + $0x90] sm:$0xff]  ;;  %v9203_v38 = vld [vmem:[%s14585_s7 + $0x98] sm:$0xff] }
0x10bc   : > { %v14323_v3 = vpop.permute.xlu0 %11189  ;;  %v14325_v22 = vpop.permute.xlu1 %11194  ;;  %v9641_v32 = vpack.c.bf16 %v8024_v50, %v8022_v29  ;;  %v9643_v23 = vpack.c.bf16 %v8023_v30, %v8021_v24  ;;  %v9208_v30 = vld [vmem:[%s14585_s7 + $0xa0] sm:$0xff] }
0x10bd   : > { %v11192_v62 = vunpack.i.h.bf16 %v14323_v3  ;;  %v11191_v6 = vunpack.i.l.bf16 %v14323_v3  ;;  %v11197_v61 = vunpack.i.h.bf16 %v14325_v22  ;;  %v11196_v52 = vunpack.i.l.bf16 %v14325_v22 }
0x10be   : > { %9188 = vmatmul.mubr.msk.f32.vlgmr.msra.gmra.mrb[20].mxu0 %vm566_vm8, %v9184_v8 }
0x10bf   : > { %9632 = vmatpush1.bf16.msra.mxu0 %v9631_v46  ;;  %7783 = vmatprep.mubr.f32.mxu0 %v14650_v25  ;;  %v8196_v40 = vsel %vm1366_vm13, %v11191_v6, %v11192_v62  ;;  %v8198_v2 = vsel %vm1366_vm13, %v11196_v52, %v11197_v61 }
0x10c0   : > { %9634 = vmatprep.subr.bf16.mxu0 %v9633_v58  ;;  %v11200_v21 = vpop.permute.xlu0 %11199  ;;  %v14337_v31 = vpop.permute.xlu1 %11209  ;;  %v9645_v35 = vpack.c.bf16 %v8198_v2, %v8196_v40 }
0x10c1   : > { %v11201_v27 = vunpack.i.l.bf16 %v11200_v21  ;;  %v11202_v15 = vunpack.i.h.bf16 %v11200_v21  ;;  %v11212_v37 = vunpack.i.h.bf16 %v14337_v31  ;;  %v11211_v59 = vunpack.i.l.bf16 %v14337_v31 }
0x10c2   : > { %9189 = vmatmul.mubr.msk.f32.gmra.mrb[22].mxu0 %vm566_vm8, %v9185_v51 }
0x10c3   : > { %9636 = vmatpush1.bf16.msra.mxu0 %v9635_v4  ;;  %7789 = vmatprep.mubr.f32.mxu0 %v14650_v25  ;;  %v8195_v54 = vsel %vm1366_vm13, %v11201_v27, %v11191_v6  ;;  %v8197_v53 = vsel %vm1366_vm13, %v11202_v15, %v11196_v52  ;;  %v8200_v58 = vsel %vm1366_vm13, %v11211_v59, %v11212_v37  ;;  %v9201_v4 = vld [vmem:[%s14585_s7 + $0x88] sm:$0xff] }
0x10c4   : > { %9638 = vmatprep.subr.bf16.mxu0 %v9637_v19  ;;  %v11205_v11 = vpop.permute.xlu0 %11204  ;;  %v11215_v20 = vpop.permute.xlu1 %11214  ;;  %v9647_v43 = vpack.c.bf16 %v8197_v53, %v8195_v54 }
0x10c5   : > { %v11207_v1 = vunpack.i.h.bf16 %v11205_v11  ;;  %v11206_v16 = vunpack.i.l.bf16 %v11205_v11  ;;  %v11217_v41 = vunpack.i.h.bf16 %v11215_v20  ;;  %v11216_v5 = vunpack.i.l.bf16 %v11215_v20 }
0x10c6   : > { %9190 = vmatmul.mubr.msk.f32.gmra.mrb[24].mxu0 %vm566_vm8, %v9186_v36 }
0x10c7   : > { %7795 = vmatprep.mubr.f32.mxu0 %v14650_v25  ;;  %v8202_v8 = vsel %vm1366_vm13, %v11206_v16, %v11207_v1  ;;  %v8201_v51 = vsel %vm1366_vm13, %v11217_v41, %v11206_v16  ;;  %v8199_v48 = vsel %vm1366_vm13, %v11216_v5, %v11211_v59  ;;  %v9210_v1 = vld [vmem:[%s14585_s7 + $0xb0] sm:$0xff]  ;;  %v9211_v59 = vld [vmem:[%s14585_s7 + $0xb8] sm:$0xff] }
0x10c8   : > { %v11220_v26 = vpop.permute.xlu0 %11219  ;;  %v11225_v33 = vpop.permute.xlu1 %11224  ;;  %v9649_v10 = vpack.c.bf16 %v8202_v8, %v8200_v58  ;;  %v9651_v60 = vpack.c.bf16 %v8201_v51, %v8199_v48  ;;  %v9216_v51 = vld [vmem:[%s14585_s7 + $0xc0] sm:$0xff] }
0x10c9   : > { %v11222_v42 = vunpack.i.h.bf16 %v11220_v26  ;;  %v11221_v13 = vunpack.i.l.bf16 %v11220_v26  ;;  %v11227_v46 = vunpack.i.h.bf16 %v11225_v33  ;;  %v11226_v7 = vunpack.i.l.bf16 %v11225_v33 }
0x10ca   : > { %9191 = vmatmul.mubr.msk.f32.gmra.mrb[26].mxu0 %vm566_vm8, %v9187_v63 }
0x10cb   : > { %7955 = vmatprep.mubr.f32.mxu0 %v14650_v25  ;;  %v8374_v3 = vsel %vm1553_vm15, %v11221_v13, %v11222_v42  ;;  %v8376_v22 = vsel %vm1553_vm15, %v11226_v7, %v11227_v46 }
0x10cc   : > { %v11230_v14 = vpop.permute.xlu0 %11229  ;;  %v11240_v28 = vpop.permute.xlu1 %11239  ;;  %v9653_v57 = vpack.c.bf16 %v8376_v22, %v8374_v3 }
0x10cd   : > { %v11231_v55 = vunpack.i.l.bf16 %v11230_v14  ;;  %v11232_v63 = vunpack.i.h.bf16 %v11230_v14  ;;  %v11242_v44 = vunpack.i.h.bf16 %v11240_v28  ;;  %v11241_v34 = vunpack.i.l.bf16 %v11240_v28 }
0x10ce   : > { %9196 = vmatmul.mubr.msk.f32.vlgmr.msra.gmra.mrb[20].mxu0 %vm566_vm8, %v9192_v12 }
0x10cf   : > { %9640 = vmatpush1.bf16.msra.mxu0 %v9639_v0  ;;  %7961 = vmatprep.mubr.f32.mxu0 %v14650_v25  ;;  %v8373_v49 = vsel %vm1553_vm15, %v11231_v55, %v11221_v13  ;;  %v8375_v50 = vsel %vm1553_vm15, %v11232_v63, %v11226_v7 }
0x10d0   : > { %9642 = vmatprep.subr.bf16.mxu0 %v9641_v32  ;;  %v11235_v19 = vpop.permute.xlu0 %11234  ;;  %v11245_v36 = vpop.permute.xlu1 %11244  ;;  %v9655_v20 = vpack.c.bf16 %v8375_v50, %v8373_v49  ;;  %v8378_v32 = vsel %vm1553_vm15, %v11241_v34, %v11242_v44 }
0x10d1   : > { %v11237_v21 = vunpack.i.h.bf16 %v11235_v19  ;;  %v11236_v31 = vunpack.i.l.bf16 %v11235_v19  ;;  %v11247_v62 = vunpack.i.h.bf16 %v11245_v36  ;;  %v11246_v6 = vunpack.i.l.bf16 %v11245_v36  ;;  %v9217_v36 = vld [vmem:[%s14585_s7 + $0xc8] sm:$0xff] }
0x10d2   : > { %9197 = vmatmul.mubr.msk.f32.gmra.mrb[22].mxu0 %vm566_vm8, %v9193_v39 }
0x10d3   : > { %9644 = vmatpush1.bf16.msra.mxu0 %v9643_v23  ;;  %7967 = vmatprep.mubr.f32.mxu0 %v14650_v25  ;;  %v8380_v61 = vsel %vm1553_vm15, %v11236_v31, %v11237_v21  ;;  %v8379_v39 = vsel %vm1553_vm15, %v11247_v62, %v11236_v31  ;;  %v8377_v40 = vsel %vm1553_vm15, %v11246_v6, %v11241_v34  ;;  %v9209_v23 = vld [vmem:[%s14585_s7 + $0xa8] sm:$0xff]  ;;  %v9218_v21 = vld [vmem:[%s14585_s7 + $0xd0] sm:$0xff]  ;;  %v9219_v34 = vld [vmem:[%s14585_s7 + $0xd8] sm:$0xff] }
0x10d4   : > { %9646 = vmatprep.subr.bf16.mxu0 %v9645_v35  ;;  %v11250_v56 = vpop.permute.xlu0 %11249  ;;  %v11255_v45 = vpop.permute.xlu1 %11254  ;;  %v9657_v2 = vpack.c.bf16 %v8380_v61, %v8378_v32  ;;  %v9659_v26 = vpack.c.bf16 %v8379_v39, %v8377_v40  ;;  %v9225_v39 = vld [vmem:[%s14585_s7 + $0xe8] sm:$0xff] }
0x10d5   : > { %v11252_v52 = vunpack.i.h.bf16 %v11250_v56  ;;  %v11251_v12 = vunpack.i.l.bf16 %v11250_v56  ;;  %v11257_v0 = vunpack.i.h.bf16 %v11255_v45  ;;  %v11256_v29 = vunpack.i.l.bf16 %v11255_v45 }
0x10d6   : > { %9198 = vmatmul.mubr.msk.f32.gmra.mrb[24].mxu0 %vm566_vm8, %v9194_v9 }
0x10d7   : > { %7973 = vmatprep.mubr.f32.mxu0 %v14650_v25  ;;  %v8528_v35 = vsel %vm1708_vm14, %v11251_v12, %v11252_v52  ;;  %v8530_v9 = vsel %vm1708_vm14, %v11256_v29, %v11257_v0  ;;  %v9224_v0 = vld [vmem:[%s14585_s7 + $0xe0] sm:$0xff] }
0x10d8   : > { %v11260_v24 = vpop.permute.xlu0 %11259  ;;  %v11265_v11 = vpop.permute.xlu1 %11264  ;;  %v9661_v15 = vpack.c.bf16 %v8530_v9, %v8528_v35  ;;  %v9232_v35 = vld [vmem:[%s14585_s7 + $0x100] sm:$0xff]  ;;  %v9233_v9 = vld [vmem:[%s14585_s7 + $0x108] sm:$0xff] }
0x10d9   : > { %v11261_v16 = vunpack.i.l.bf16 %v11260_v24  ;;  %v11267_v14 = vunpack.i.h.bf16 %v11265_v11  ;;  %v11266_v28 = vunpack.i.l.bf16 %v11265_v11 }
0x10da   : > { %9199 = vmatmul.mubr.msk.f32.gmra.mrb[26].mxu0 %vm566_vm8, %v9195_v17  ;;  %v11262_v17 = vunpack.i.h.bf16 %v11260_v24 }
0x10db   : > { %8109 = vmatprep.mubr.f32.mxu0 %v14650_v25  ;;  %v8527_v5 = vsel %vm1708_vm14, %v11261_v16, %v11251_v12 }
0x10dc   : > { %v11270_v33 = vpop.permute.xlu0 %11269  ;;  %v11275_v27 = vpop.permute.xlu1 %11274  ;;  %v8529_v8 = vsel %vm1708_vm14, %v11262_v17, %v11256_v29 }
0x10dd   : > { %v11272_v54 = vunpack.i.h.bf16 %v11270_v33  ;;  %v11271_v37 = vunpack.i.l.bf16 %v11270_v33  ;;  %v11277_v42 = vunpack.i.h.bf16 %v11275_v27  ;;  %v11276_v13 = vunpack.i.l.bf16 %v11275_v27  ;;  %v9235_v33 = vld [vmem:[%s14585_s7 + $0x118] sm:$0xff] }
0x10de   : > { %9204 = vmatmul.mubr.msk.f32.vlgmr.msra.gmra.mrb[20].mxu0 %vm566_vm8, %v9200_v18  ;;  %v9663_v48 = vpack.c.bf16 %v8529_v8, %v8527_v5  ;;  %v11350_v8 = vld [vmem:[%s11707_s19 + $0x10] sm:$0xff] }
0x10df   : > { %9648 = vmatpush1.bf16.msra.mxu0 %v9647_v43  ;;  %8115 = vmatprep.mubr.f32.mxu0 %v14650_v25  ;;  %v8534_v46 = vsel %vm1708_vm14, %v11271_v37, %v11272_v54  ;;  %v8531_v3 = vsel %vm1708_vm14, %v11276_v13, %v11266_v28  ;;  %v11348_v54 = vld [vmem:[%s11707_s19] sm:$0xff] }
0x10e0   : > { %9650 = vmatprep.subr.bf16.mxu0 %v9649_v10  ;;  %v11280_v53 = vpop.permute.xlu0 %11279  ;;  %v11285_v41 = vpop.permute.xlu1 %11284  ;;  %v8532_v10 = vsel %vm1708_vm14, %v11266_v28, %v11267_v14 }
0x10e1   : > { %v11282_v7 = vunpack.i.h.bf16 %v11280_v53  ;;  %v11281_v18 = vunpack.i.l.bf16 %v11280_v53  ;;  %v11287_v43 = vunpack.i.h.bf16 %v11285_v41  ;;  %v11286_v58 = vunpack.i.l.bf16 %v11285_v41  ;;  %v11349_v53 = vld [vmem:[%s11707_s19 + $0x8] sm:$0xff] }
0x10e2   : > { %9205 = vmatmul.mubr.msk.f32.gmra.mrb[22].mxu0 %vm566_vm8, %v9201_v4  ;;  %v8533_v4 = vsel %vm1708_vm14, %v11277_v42, %v11271_v37  ;;  %v9665_v19 = vpack.c.bf16 %v8534_v46, %v8532_v10  ;;  %v11351_v46 = vld [vmem:[%s11707_s19 + $0x18] sm:$0xff] }
0x10e3   : > { %9652 = vmatpush1.bf16.msra.mxu0 %v9651_v60  ;;  %8121 = vmatprep.mubr.f32.mxu0 %v14650_v25  ;;  %v8706_v60 = vsel %vm1895_vm2, %v11281_v18, %v11282_v7 }
0x10e4   : > { %9654 = vmatprep.subr.bf16.mxu0 %v9653_v57  ;;  %v11290_v22 = vpop.permute.xlu0 %11289  ;;  %v8708_v57 = vsel %vm1895_vm2, %v11286_v58, %v11287_v43  ;;  %v11300_v55 = vpop.permute.xlu1 %11299 }
0x10e5   : > { %v9669_v63 = vpack.c.bf16 %v8708_v57, %v8706_v60  ;;  %v11292_v56 = vunpack.i.h.bf16 %v11290_v22  ;;  %v11291_v45 = vunpack.i.l.bf16 %v11290_v22  ;;  %v11302_v50 = vunpack.i.h.bf16 %v11300_v55 }
0x10e6   : > { %9206 = vmatmul.mubr.msk.f32.gmra.mrb[24].mxu0 %vm566_vm8, %v9202_v47  ;;  %v9667_v47 = vpack.c.bf16 %v8533_v4, %v8531_v3  ;;  %v11301_v62 = vunpack.i.l.bf16 %v11300_v55  ;;  %v11353_v3 = vld [vmem:[%s11707_s19 + $0x28] sm:$0xff] }
0x10e7   : > { %8127 = vmatprep.mubr.f32.mxu0 %v14650_v25  ;;  %v8705_v6 = vsel %vm1895_vm2, %v11291_v45, %v11281_v18  ;;  %v8707_v61 = vsel %vm1895_vm2, %v11292_v56, %v11286_v58 }
0x10e8   : > { %v11295_v31 = vpop.permute.xlu0 %11294  ;;  %v11305_v44 = vpop.permute.xlu1 %11304  ;;  %v8710_v24 = vsel %vm1895_vm2, %v11301_v62, %v11302_v50 }
0x10e9   : > { %v11296_v49 = vunpack.i.l.bf16 %v11295_v31  ;;  %v11307_v52 = vunpack.i.h.bf16 %v11305_v44  ;;  %v11306_v12 = vunpack.i.l.bf16 %v11305_v44 }
0x10ea   : > { %9207 = vmatmul.mubr.msk.f32.gmra.mrb[26].mxu0 %vm566_vm8, %v9203_v38  ;;  %v11297_v38 = vunpack.i.h.bf16 %v11295_v31 }
0x10eb   : > { %8287 = vmatprep.mubr.f32.mxu0 %v14650_v25  ;;  %v8711_v11 = vsel %vm1895_vm2, %v11307_v52, %v11296_v49 }
0x10ec   : > { %v8712_v29 = vsel %vm1895_vm2, %v11296_v49, %v11297_v38 }
0x10ed   : > { %v9673_v32 = vpack.c.bf16 %v8712_v29, %v8710_v24 }
0x10ee   : > { %9212 = vmatmul.mubr.msk.f32.vlgmr.msra.gmra.mrb[20].mxu0 %vm566_vm8, %v9208_v30  ;;  %v9671_v30 = vpack.c.bf16 %v8707_v61, %v8705_v6 }
0x10ef   : > { %9656 = vmatpush1.bf16.msra.mxu0 %v9655_v20  ;;  %8293 = vmatprep.mubr.f32.mxu0 %v14650_v25  ;;  %v8709_v20 = vsel %vm1895_vm2, %v11306_v12, %v11301_v62 }
0x10f0   : > { %9658 = vmatprep.subr.bf16.mxu0 %v9657_v2  ;;  %v9675_v40 = vpack.c.bf16 %v8711_v11, %v8709_v20  ;;  %v9226_v2 = vld [vmem:[%s14585_s7 + $0xf0] sm:$0xff] }
0x10f2   : > { %9213 = vmatmul.mubr.msk.f32.gmra.mrb[22].mxu0 %vm566_vm8, %v9209_v23  ;;  %v9227_v23 = vld [vmem:[%s14585_s7 + $0xf8] sm:$0xff] }
0x10f3   : > { %9660 = vmatpush1.bf16.msra.mxu0 %v9659_v26  ;;  %8299 = vmatprep.mubr.f32.mxu0 %v14650_v25  ;;  %v9234_v26 = vld [vmem:[%s14585_s7 + $0x110] sm:$0xff] }
0x10f4   : > { %9662 = vmatprep.subr.bf16.mxu0 %v9661_v15 }
0x10f6   : > { %9214 = vmatmul.mubr.msk.f32.gmra.mrb[24].mxu0 %vm566_vm8, %v9210_v1 }
0x10f7   : > { %8305 = vmatprep.mubr.f32.mxu0 %v14650_v25 }
0x10f9   : > { %v8833_v27 = vpop.permute.xlu0 %8832 }
0x10fa   : > { %9215 = vmatmul.mubr.msk.f32.gmra.mrb[26].mxu0 %vm566_vm8, %v9211_v59  ;;  %v8838_v59 = vpop.permute.xlu1 %8837 }
0x10fb   : > { %8465 = vmatprep.mubr.f32.mxu0 %v14650_v25 }
0x10fd   : > { %v8843_v13 = vpop.permute.xlu0 %8842 }
0x10fe   : > { %9220 = vmatmul.mubr.msk.f32.vlgmr.msra.gmra.mrb[20].mxu0 %vm566_vm8, %v9216_v51  ;;  %v8848_v4 = vpop.permute.xlu1 %8847 }
0x10ff   : > { %9664 = vmatpush1.bf16.msra.mxu0 %v9663_v48  ;;  %8471 = vmatprep.mubr.f32.mxu0 %v14650_v25  ;;  %v11352_v48 = vld [vmem:[%s11707_s19 + $0x20] sm:$0xff] }
0x1100   : > { %9666 = vmatprep.subr.bf16.mxu0 %v9665_v19 }
0x1102   : > { %9221 = vmatmul.mubr.msk.f32.gmra.mrb[22].mxu0 %vm566_vm8, %v9217_v36 }
0x1103   : > { %9668 = vmatpush1.bf16.msra.mxu0 %v9667_v47  ;;  %8477 = vmatprep.mubr.f32.mxu0 %v14650_v25  ;;  %v11354_v47 = vld [vmem:[%s11707_s19 + $0x30] sm:$0xff] }
0x1104   : > { %9670 = vmatprep.subr.bf16.mxu0 %v9669_v63  ;;  %v11355_v63 = vld [vmem:[%s11707_s19 + $0x38] sm:$0xff] }
0x1106   : > { %9222 = vmatmul.mubr.msk.f32.gmra.mrb[24].mxu0 %vm566_vm8, %v9218_v21 }
0x1107   : > { %8483 = vmatprep.mubr.f32.mxu0 %v14650_v25 }
0x110a   : > { %9223 = vmatmul.mubr.msk.f32.gmra.mrb[26].mxu0 %vm566_vm8, %v9219_v34 }
0x110b   : > { %8619 = vmatprep.mubr.f32.mxu0 %v14650_v25 }
0x110e   : > { %9228 = vmatmul.mubr.msk.f32.vlgmr.msra.gmra.mrb[20].mxu0 %vm566_vm8, %v9224_v0 }
0x110f   : > { %9672 = vmatpush1.bf16.msra.mxu0 %v9671_v30  ;;  %8625 = vmatprep.mubr.f32.mxu0 %v14650_v25 }
0x1110   : > { %9674 = vmatprep.subr.bf16.mxu0 %v9673_v32 }
0x1112   : > { %9229 = vmatmul.mubr.msk.f32.gmra.mrb[22].mxu0 %vm566_vm8, %v9225_v39 }
0x1113   : > { %9676 = vmatpush1.bf16.msra.mxu0 %v9675_v40  ;;  %8631 = vmatprep.mubr.f32.mxu0 %v14650_v25 }
0x1116   : > { %9230 = vmatmul.mubr.msk.f32.gmra.mrb[24].mxu0 %vm566_vm8, %v9226_v2 }
0x1117   : > { %8637 = vmatprep.mubr.f32.mxu0 %v14650_v25 }
0x111a   : > { %9231 = vmatmul.mubr.msk.f32.gmra.mrb[26].mxu0 %vm566_vm8, %v9227_v23 }
0x111b   : > { %8797 = vmatprep.mubr.f32.mxu0 %v14650_v25 }
0x111e   : > { %9236 = vmatmul.mubr.msk.f32.vlgmr.msra.gmra.mrb[20].mxu0 %vm566_vm8, %v9232_v35 }
0x111f   : > { %8803 = vmatprep.mubr.f32.mxu0 %v14650_v25 }
0x1122   : > { %9237 = vmatmul.mubr.msk.f32.gmra.mrb[22].mxu0 %vm566_vm8, %v9233_v9 }
0x1123   : > { %8809 = vmatprep.mubr.f32.mxu0 %v14650_v25 }
0x1126   : > { %9238 = vmatmul.mubr.msk.f32.gmra.mrb[24].mxu0 %vm566_vm8, %v9234_v26 }
0x1127   : > { %8815 = vmatprep.mubr.f32.mxu0 %v14650_v25 }
0x112a   : > { %9239 = vmatmul.mubr.msk.f32.gmra.mrb[26].mxu0 %vm566_vm8, %v9235_v33 }
0x11f1   : > { %v8799_v15 = vpop.f32.mrb[20].mxu0 }
0x11f2   : > { %v8850_v1 = vadd.f32 %v8833_v27, %v8799_v15  ;;  %v8801_v16 = vpop.f32.mrb[21].mxu0 }
0x11f3   : > { %v8851_v17 = vadd.f32 %v8833_v27, %v8801_v16 }
0x11f4   : > { %v8858_v37 = vadd.f32 %v11348_v54, %v8850_v1 }
0x11f5   : > { %v8859_v41 = vadd.f32 %v11349_v53, %v8851_v17  ;;  %v8805_v5 = vpop.f32.mrb[22].mxu0 }
0x11f6   : > { %8866 = vst [vmem:[%s14510_s1] sm:$0xff] %v8858_v37  ;;  %v8852_v25 = vadd.f32 %v8838_v59, %v8805_v5  ;;  %v8807_v14 = vpop.f32.mrb[23].mxu0 }
0x11f7   : > { %8867 = vst [vmem:[%s14510_s1 + $0x8] sm:$0xff] %v8859_v41  ;;  %v8853_v28 = vadd.f32 %v8838_v59, %v8807_v14 }
0x11f8   : > { %v8860_v42 = vadd.f32 %v11350_v8, %v8852_v25 }
0x11f9   : > { %v8861_v7 = vadd.f32 %v11351_v46, %v8853_v28  ;;  %v8811_v18 = vpop.f32.mrb[24].mxu0 }
0x11fa   : > { %8868 = vst [vmem:[%s14510_s1 + $0x10] sm:$0xff] %v8860_v42  ;;  %v8854_v43 = vadd.f32 %v8843_v13, %v8811_v18  ;;  %v8813_v58 = vpop.f32.mrb[25].mxu0 }
0x11fb   : > { %8869 = vst [vmem:[%s14510_s1 + $0x18] sm:$0xff] %v8861_v7  ;;  %v8855_v51 = vadd.f32 %v8843_v13, %v8813_v58 }
0x11fc   : > { %v8862_v10 = vadd.f32 %v11352_v48, %v8854_v43 }
0x11fd   : > { %v8863_v22 = vadd.f32 %v11353_v3, %v8855_v51  ;;  %v8817_v19 = vpop.f32.mrb[26].mxu0 }
0x11fe   : > { %8870 = vst [vmem:[%s14510_s1 + $0x20] sm:$0xff] %v8862_v10  ;;  %v8856_v36 = vadd.f32 %v8848_v4, %v8817_v19  ;;  %v8819_v60 = vpop.f32.mrb[27].mxu0 }
0x11ff   : > { %8871 = vst [vmem:[%s14510_s1 + $0x28] sm:$0xff] %v8863_v22  ;;  %v8857_v57 = vadd.f32 %v8848_v4, %v8819_v60 }
0x1200   : > { %v8864_v55 = vadd.f32 %v11354_v47, %v8856_v36 }
0x1201   : > { %v8865_v21 = vadd.f32 %v11355_v63, %v8857_v57 }
0x1202   : > { %8872 = vst [vmem:[%s14510_s1 + $0x30] sm:$0xff] %v8864_v55 }
0x1203   : > { %8873 = vst [vmem:[%s14510_s1 + $0x38] sm:$0xff] %v8865_v21 }
0x1204   : > { %11427 = shalt.err (!%p11424_p7)
}
0x1205   : > { %s11428_s19 = scalar_lea.hbm %s14531_s22, 1024  ;;  %s11432_s27 = scalar_lea.hbm %s14587_s9, 2048 }
0x1206   : > { %p11429_p9 = scmp.ne.s32.totalorder %s14531_s22, %s11428_s19  ;;  %p11433_p5 = scmp.lt.u32.totalorder %s14531_s22, %s14587_s9 }
0x1207   : > { %p11434_p11 = scmp.lt.u32.totalorder %s11432_s27, %s11428_s19  ;;  %p11436_p4 = scmp.lt.u32.totalorder %s11428_s19, %s14531_s22 }
0x1208   : > { %p11430_p2 = pnand %p11429_p9, %p11653_p12 }
0x1209   : > { %p11435_p1 = por %p11434_p11, %p11433_p5 }
0x120a   : > { %p11431_p0 = pneg %p11430_p2 }
0x120b   : > { %p11437_p6 = por %p11436_p4, %p11435_p1 }
0x120d   : > { %p11438_p8 = pnand %p11437_p6, %p11431_p0 }
0x120f   : > { %11441 = shalt.err (!%p11438_p8)
}
0x1210   : > { %s11511_s21 = smov 256   ;;  %s14654_s17 = smov 16  }
0x1211   : > { %10007 = dma.vmem_to_hbm [thread:$0]  (%p11653_p12), %s14524_s10, 1024, %s14531_s22, %s8875_s16, %s11511_s21, %s11511_s21, %s14654_s17  }
0x1212 PF: > { %s14655_s1 = sld [smem:[#allocation14_spill]]  ;;  %s8903_s11 = sand.u32 1, %s11472_s30  }
0x1213   : > { %p14657_p13 = scmp.ge.s32.totalorder %s11484_s12, 2  ;;  %s8904_s28 = scalar_lea.sflag [#allocation5], %s8903_s11 }
0x1218   : > { %p14656_p10 = scmp.ne.s32.totalorder %s14655_s1, 0 }
0x121a   : > { %p10018_p3 = pnand %p14657_p13, %p14656_p10 }
0x121c   : > { %11467 = dma.done.wait (!%p10018_p3), %s8904_s28, 1024  }
0x121d   : > { %11469 = vsyncadd (!%p10018_p3), %s8904_s28, 4294966272  ;;  %s14658_s12 = sld [smem:[#allocation15_spill]]  ;;  %s14659_s30 = sld [smem:[#allocation12_spill]] }
0x121e   : > { %s14660_s10 = sld [smem:[#allocation13_spill]]  ;;  %s14661_s11 = sld [smem:[#allocation16_spill]] }
0x1223   : > { %p23_p7 = scmp.ge.s32.totalorder %s14658_s12, 4  }
0x1225   :  { %25 = sbr.rel (!%p23_p7) target bundleno = 9 (0x9), region = 155 }
0x122c   :  { %8909 = vsyncpa [#allocation4], 1 }
0x122d   :  { %8911 = vsyncpa [#allocation4 + $0x1], 1 }
0x122e   :  { %8912 = vsyncpa [#allocation7], 1 }
0x122f   :  { %8913 = vsyncpa [#allocation5], 1 }
0x1230   :  { %8915 = vsyncpa [#allocation5 + $0x1], 1 }

</bundles_post_ra>
